<compile_context>
chip_gen: v6e
topology: v6e:2x2x1
jax: 0.10.0
libtpu: 0.0.40
codegen_flags: <defaults>
</compile_context>

<pallas_src>
import functools
import math

import jax
import jax.numpy as jnp
from jax.experimental import pallas as pl
from jax.experimental.pallas import tpu as pltpu

LANES = 128
_LN2PI = math.log(2.0 * math.pi)


def _round_up(x, m):
    return ((x + m - 1) // m) * m


def _full_spec(shape):
    """Whole-array block, re-used at every grid step."""
    return pl.BlockSpec(shape, lambda i, n=len(shape): (0,) * n)


def _cparams():
    return pltpu.CompilerParams(
        dimension_semantics=("parallel",),
        vmem_limit_bytes=32 * 1024 * 1024,
    )


# ----------------------------- Pallas kernels -----------------------------

def _conv_pool_kernel(p_ref, w_ref, b_ref, o_ref, *, n_pos):
    """Fused conv-matmul + max-pool.

    p_ref: [n_pos, TW, K]  im2col patches, grouped by pool-window position.
    w_ref: [K, 128]        conv weights (output channels zero-padded to 128).
    b_ref: [1, 128]        bias (padded).
    o_ref: [TW, 128]       pooled conv output (lane-dense).
    """
    w = w_ref[...]
    acc = jnp.dot(p_ref[0], w, preferred_element_type=jnp.float32)
    for p in range(1, n_pos):                       # static unroll (VPU max-tree)
        acc = jnp.maximum(
            acc, jnp.dot(p_ref[p], w, preferred_element_type=jnp.float32))
    o_ref[...] = (acc + b_ref[...]).astype(o_ref.dtype)


def _mlp2(x, w1, b1, w2, b2):
    h = jnp.tanh(jnp.dot(x, w1, preferred_element_type=jnp.float32) + b1)
    return jnp.tanh(jnp.dot(h, w2, preferred_element_type=jnp.float32) + b2)


def _gauss_logprob(action, mean, var, action_dim):
    # Diagonal-covariance MultivariateNormal log_prob.  `var` is padded to 128
    # lanes with ones and action/mean padding is zero, so the padded lanes
    # contribute exactly 0 to both sums.
    diff = action - mean
    quad = jnp.sum(diff * diff / var, axis=1, keepdims=True)
    logdet = jnp.sum(jnp.log(var), axis=1, keepdims=True)
    return -0.5 * (quad + action_dim * _LN2PI) - 0.5 * logdet


def _act_kernel(feats_ref, eps_ref, var_ref,
                aw1, ab1, aw2, ab2, aw3, ab3,
                action_ref, lp_ref, *, action_dim):
    """Fused actor MLP + reparameterized Gaussian sample + log_prob."""
    x = feats_ref[...]
    h = _mlp2(x, aw1[...], ab1[...], aw2[...], ab2[...])
    mean = jnp.tanh(jnp.dot(h, aw3[...], preferred_element_type=jnp.float32)
                    + ab3[...])                       # [TB, 128], padding -> 0
    var = var_ref[...]
    action = mean + jnp.sqrt(var) * eps_ref[...]      # padding lanes stay 0
    action_ref[...] = action
    lp_ref[...] = _gauss_logprob(action, mean, var, action_dim)


def _evaluate_kernel(feats_ref, action_ref, var_ref,
                     aw1, ab1, aw2, ab2, aw3, ab3,
                     cw1, cb1, cw2, cb2, cw3, cb3,
                     lp_ref, val_ref, *, action_dim):
    """Fused actor MLP + Gaussian log_prob + critic MLP (features reused)."""
    x = feats_ref[...]
    ha = _mlp2(x, aw1[...], ab1[...], aw2[...], ab2[...])
    mean = jnp.tanh(jnp.dot(ha, aw3[...], preferred_element_type=jnp.float32)
                    + ab3[...])
    hc = _mlp2(x, cw1[...], cb1[...], cw2[...], cb2[...])
    val = jnp.dot(hc, cw3[...], preferred_element_type=jnp.float32) + cb3[...]
    lp_ref[...] = _gauss_logprob(action_ref[...], mean, var_ref[...], action_dim)
    val_ref[...] = val


# --------------------------- pallas_call wrappers --------------------------

def conv2d_maxpool(x_nhwc, w_mat, b_row, kh, kw, pool_k, oc):
    """Conv2d(stride 1, no pad) + MaxPool2d(pool_k) fused in one pallas_call.

    x_nhwc: [B, H, W, C];  w_mat: [kh*kw*C, 128];  b_row: [1, 128].
    Returns NHWC [B, PH, PW, oc].
    """
    bsz, h, wdt, c = x_nhwc.shape
    oh, ow = h - kh + 1, wdt - kw + 1
    k = kh * kw * c
    if pool_k > 1:
        ph, pw = oh // pool_k, ow // pool_k         # PyTorch floor mode
    else:
        ph, pw = oh, ow
    n_pos = pool_k * pool_k

    # im2col in (kh, kw, C) order (matches w_mat row layout).
    cols = [x_nhwc[:, i:i + oh, j:j + ow, :] for i in range(kh) for j in range(kw)]
    pf = jnp.stack(cols, axis=3).reshape(bsz, oh, ow, k)        # [B, OH, OW, K]

    if pool_k > 1:
        pf = pf[:, :ph * pool_k, :pw * pool_k, :]
        pf = pf.reshape(bsz, ph, pool_k, pw, pool_k, k)
        pf = pf.transpose(2, 4, 0, 1, 3, 5)                     # [k, k, B, PH, PW, K]
    nw = bsz * ph * pw
    patches = pf.reshape(n_pos, nw, k)

    tw = min(512, _round_up(nw, 8))
    nwp = _round_up(nw, tw)
    if nwp != nw:
        patches = jnp.pad(patches, ((0, 0), (0, nwp - nw), (0, 0)))

    out = pl.pallas_call(
        functools.partial(_conv_pool_kernel, n_pos=n_pos),
        out_shape=jax.ShapeDtypeStruct((nwp, LANES), jnp.float32),
        grid=(nwp // tw,),
        in_specs=[
            pl.BlockSpec((n_pos, tw, k), lambda i: (0, i, 0)),
            _full_spec((k, LANES)),
            _full_spec((1, LANES)),
        ],
        out_specs=pl.BlockSpec((tw, LANES), lambda i: (i, 0)),
        compiler_params=_cparams(),
    )(patches, w_mat, b_row)

    return out[:nw, :oc].reshape(bsz, ph, pw, oc)


def actor_sample_logprob(params, feats, eps):
    """Fused actor MLP + Gaussian sample + log_prob (one pallas_call)."""
    b, kh_size = feats.shape
    a = params["action_dim"]
    tb = min(512, _round_up(b, 8))
    bp = _round_up(b, tb)
    feats_p = jnp.pad(feats, ((0, bp - b), (0, 0)))
    eps_p = jnp.pad(eps, ((0, bp - b), (0, LANES - a)))

    names = ("actor_w1", "actor_b1", "actor_w2", "actor_b2", "actor_w3", "actor_b3")
    w_specs = [_full_spec(params[n].shape) for n in names]

    action_p, lp = pl.pallas_call(
        functools.partial(_act_kernel, action_dim=a),
        out_shape=(jax.ShapeDtypeStruct((bp, LANES), jnp.float32),
                   jax.ShapeDtypeStruct((bp, 1), jnp.float32)),
        grid=(bp // tb,),
        in_specs=[pl.BlockSpec((tb, kh_size), lambda i: (i, 0)),
                  pl.BlockSpec((tb, LANES), lambda i: (i, 0)),
                  _full_spec((1, LANES))] + w_specs,
        out_specs=(pl.BlockSpec((tb, LANES), lambda i: (i, 0)),
                   pl.BlockSpec((tb, 1), lambda i: (i, 0))),
        compiler_params=_cparams(),
    )(feats_p, eps_p, params["action_var_p"], *[params[n] for n in names])
    return action_p[:b, :a], lp[:b, 0]


def evaluate_heads(params, feats, action):
    """Fused actor + critic MLPs + Gaussian log_prob (one pallas_call)."""
    b, kh_size = feats.shape
    a = params["action_dim"]
    tb = min(512, _round_up(b, 8))
    bp = _round_up(b, tb)
    feats_p = jnp.pad(feats, ((0, bp - b), (0, 0)))
    action_p = jnp.pad(action.astype(jnp.float32), ((0, bp - b), (0, LANES - a)))

    names = ("actor_w1", "actor_b1", "actor_w2", "actor_b2", "actor_w3", "actor_b3",
             "critic_w1", "critic_b1", "critic_w2", "critic_b2", "critic_w3", "critic_b3")
    w_specs = [_full_spec(params[n].shape) for n in names]

    lp, val = pl.pallas_call(
        functools.partial(_evaluate_kernel, action_dim=a),
        out_shape=(jax.ShapeDtypeStruct((bp, 1), jnp.float32),
                   jax.ShapeDtypeStruct((bp, 1), jnp.float32)),
        grid=(bp // tb,),
        in_specs=[pl.BlockSpec((tb, kh_size), lambda i: (i, 0)),
                  pl.BlockSpec((tb, LANES), lambda i: (i, 0)),
                  _full_spec((1, LANES))] + w_specs,
        out_specs=(pl.BlockSpec((tb, 1), lambda i: (i, 0)),
                   pl.BlockSpec((tb, 1), lambda i: (i, 0))),
        compiler_params=_cparams(),
    )(feats_p, action_p, params["action_var_p"], *[params[n] for n in names])
    return lp[:b, 0], val[:b, :]


# ---------------------------- model definition ------------------------------

def init_params(key, squared_image_side, action_dim, action_std_init):
    scale = 0.1

    def w(k, shape):
        return (scale * jax.random.normal(k, shape)).astype(jnp.float32)

    params = {"action_dim": action_dim}

    # cnn_head: Conv2d(3,6,4), MaxPool(4,4), Conv2d(6,16,4), MaxPool(3,3), Conv2d(16,30,4)
    ks = jax.random.split(key, 6)
    conv_defs = [("conv1", 3, 6, 4), ("conv2", 6, 16, 4), ("conv3", 16, 30, 4)]
    for idx, (name, ic, oc, kk) in enumerate(conv_defs):
        wt = w(ks[2 * idx], (oc, ic, kk, kk))            # torch [OC, IC, KH, KW]
        bt = w(ks[2 * idx + 1], (oc,))
        # pre-reshape once: rows ordered (kh, kw, ic); cols zero-padded to 128.
        wm = jnp.transpose(wt, (2, 3, 1, 0)).reshape(kk * kk * ic, oc)
        params[name + "_w"] = jnp.pad(wm, ((0, 0), (0, LANES - oc)))
        params[name + "_b"] = jnp.pad(bt.reshape(1, oc), ((0, 0), (0, LANES - oc)))

    # cnn_head_size exactly as torch __init__ derives it.
    s = squared_image_side
    s = s - 3          # conv 4x4
    s = s // 4         # maxpool 4,4
    s = s - 3          # conv 4x4
    s = s // 3         # maxpool 3,3
    s = s - 3          # conv 4x4
    cnn_head_size = 30 * s * s
    params["cnn_head_size"] = cnn_head_size

    ks2 = jax.random.split(jax.random.fold_in(key, 1), 12)

    def lin(kw_, kb_, n_in, n_out, pad_out=False):
        wt = w(kw_, (n_out, n_in))                       # torch [out, in]
        bt = w(kb_, (n_out,))
        wj, bj = wt.T, bt.reshape(1, n_out)              # pre-transposed [in, out]
        if pad_out:
            wj = jnp.pad(wj, ((0, 0), (0, LANES - n_out)))
            bj = jnp.pad(bj, ((0, 0), (0, LANES - n_out)))
        return wj, bj

    params["actor_w1"], params["actor_b1"] = lin(ks2[0], ks2[1], cnn_head_size, 64)
    params["actor_w2"], params["actor_b2"] = lin(ks2[2], ks2[3], 64, 64)
    params["actor_w3"], params["actor_b3"] = lin(ks2[4], ks2[5], 64, action_dim,
                                                 pad_out=True)
    params["critic_w1"], params["critic_b1"] = lin(ks2[6], ks2[7], cnn_head_size, 64)
    params["critic_w2"], params["critic_b2"] = lin(ks2[8], ks2[9], 64, 64)
    params["critic_w3"], params["critic_b3"] = lin(ks2[10], ks2[11], 64, 1)

    av = jnp.full((action_dim,), action_std_init * action_std_init, dtype=jnp.float32)
    params["action_var"] = av
    # padded with ones so padded lanes contribute 0 to quad-form and log-det.
    params["action_var_p"] = jnp.concatenate(
        [av, jnp.ones((LANES - action_dim,), jnp.float32)]).reshape(1, LANES)
    return params


def cnn_head(params, state):
    """state: NCHW [B, 3, S, S] -> feats [B, cnn_head_size] (torch flatten order)."""
    x = jnp.transpose(state.astype(jnp.float32), (0, 2, 3, 1))   # NHWC once
    x = conv2d_maxpool(x, params["conv1_w"], params["conv1_b"], 4, 4, 4, 6)
    x = conv2d_maxpool(x, params["conv2_w"], params["conv2_b"], 4, 4, 3, 16)
    x = conv2d_maxpool(x, params["conv3_w"], params["conv3_b"], 4, 4, 1, 30)
    x = jnp.transpose(x, (0, 3, 1, 2))                  # back to NCHW for .view()
    return x.reshape(-1, params["cnn_head_size"])


def act(params, state, sample_key):
    feats = cnn_head(params, state)
    # TODO(synk): dist.sample() randomness is drawn with jax.random in glue; the
    #   reparameterized sample + log_prob are computed inside the fused kernel.
    eps = jax.random.normal(sample_key, (feats.shape[0], params["action_dim"]),
                            dtype=jnp.float32)
    action, logprob = actor_sample_logprob(params, feats, eps)
    return action, logprob


def evaluate(params, state, action):
    feats = cnn_head(params, state)                 # computed once, reused by both heads
    if params["action_dim"] == 1:
        action = action.reshape(-1, 1)
    logprobs, state_values = evaluate_heads(params, feats, action)
    # Entropy of a fixed-covariance diagonal Gaussian: batch-independent constant.
    adim = params["action_dim"]
    ent = 0.5 * adim * (1.0 + _LN2PI) + 0.5 * jnp.sum(jnp.log(params["action_var"]))
    entropy = jnp.full((feats.shape[0],), ent, dtype=jnp.float32)
    return logprobs, state_values, entropy


# --------------------------------- main -------------------------------------

if __name__ == "__main__":
    squared_image_side = 64   # smallest side for which the torch cnn_head is valid
    action_dim = 4
    action_std_init = 0.6
    batch = 2

    key = jax.random.PRNGKey(0)
    k_param, k_state, k_action, k_sample = jax.random.split(key, 4)

    params = init_params(k_param, squared_image_side, action_dim, action_std_init)
    state = jax.random.normal(
        k_state, (batch, 3, squared_image_side, squared_image_side), dtype=jnp.float32)
    action = jax.random.normal(k_action, (batch, action_dim), dtype=jnp.float32)

    a, lp = act(params, state, k_sample)
    logprobs, state_values, entropy = evaluate(params, state, action)

    jax.block_until_ready((a, lp, logprobs, state_values, entropy))

    assert a.shape == (batch, action_dim)
    assert lp.shape == (batch,)
    assert logprobs.shape == (batch,)
    assert state_values.shape == (batch, 1)
    assert entropy.shape == (batch,)

    print("KERNEL_OK")
</pallas_src>

<mosaic_0001>
module attributes {stable_mosaic.version = 11 : i64} {
  func.func @_conv_pool_kernel(%arg0: i32, %arg1: memref<16x456x48xf32, #tpu.memory_space<vmem>>, %arg2: memref<48x128xf32, #tpu.memory_space<vmem>>, %arg3: memref<1x128xf32, #tpu.memory_space<vmem>>, %arg4: memref<456x128xf32, #tpu.memory_space<vmem>>) attributes {dimension_semantics = [#tpu.dimension_semantics<parallel>], iteration_bounds = array<i64: 1>, scalar_prefetch = 0 : i64, scratch_operands = 0 : i64, tpu.core_type = #tpu.core_type<tc>, window_params = [{transform_indices = @transform_0, window_bounds = array<i64: 16, 456, 48>}, {pipeline_mode = #tpu.pipeline_mode<synchronous>, transform_indices = @transform_1, window_bounds = array<i64: 48, 128>}, {pipeline_mode = #tpu.pipeline_mode<synchronous>, transform_indices = @transform_2, window_bounds = array<i64: 1, 128>}, {transform_indices = @transform_3, window_bounds = array<i64: 456, 128>}]} {
    %c0 = arith.constant 0 : index
    %c0_0 = arith.constant 0 : index
    %0 = vector.load %arg2[%c0, %c0_0] : memref<48x128xf32, #tpu.memory_space<vmem>>, vector<48x128xf32>
    %c0_1 = arith.constant 0 : index
    %c0_2 = arith.constant 0 : index
    %c0_3 = arith.constant 0 : index
    %1 = vector.load %arg1[%c0_1, %c0_2, %c0_3] : memref<16x456x48xf32, #tpu.memory_space<vmem>>, vector<1x456x48xf32>
    %2 = vector.shape_cast %1 : vector<1x456x48xf32> to vector<456x48xf32>
    %cst = arith.constant dense<0.000000e+00> : vector<456x128xf32>
    %3 = tpu.matmul %2, %0, %cst {dimension_numbers = #tpu.dot_dimension_numbers<[1], [0], [0], [1], [0, 0, 1, 1], [], []>} : vector<456x48xf32>, vector<48x128xf32>, vector<456x128xf32> -> vector<456x128xf32>
    %c1 = arith.constant 1 : index
    %c0_4 = arith.constant 0 : index
    %c0_5 = arith.constant 0 : index
    %4 = vector.load %arg1[%c1, %c0_4, %c0_5] : memref<16x456x48xf32, #tpu.memory_space<vmem>>, vector<1x456x48xf32>
    %5 = vector.shape_cast %4 : vector<1x456x48xf32> to vector<456x48xf32>
    %cst_6 = arith.constant dense<0.000000e+00> : vector<456x128xf32>
    %6 = tpu.matmul %5, %0, %cst_6 {dimension_numbers = #tpu.dot_dimension_numbers<[1], [0], [0], [1], [0, 0, 1, 1], [], []>} : vector<456x48xf32>, vector<48x128xf32>, vector<456x128xf32> -> vector<456x128xf32>
    %7 = arith.maximumf %3, %6 : vector<456x128xf32>
    %c2 = arith.constant 2 : index
    %c0_7 = arith.constant 0 : index
    %c0_8 = arith.constant 0 : index
    %8 = vector.load %arg1[%c2, %c0_7, %c0_8] : memref<16x456x48xf32, #tpu.memory_space<vmem>>, vector<1x456x48xf32>
    %9 = vector.shape_cast %8 : vector<1x456x48xf32> to vector<456x48xf32>
    %cst_9 = arith.constant dense<0.000000e+00> : vector<456x128xf32>
    %10 = tpu.matmul %9, %0, %cst_9 {dimension_numbers = #tpu.dot_dimension_numbers<[1], [0], [0], [1], [0, 0, 1, 1], [], []>} : vector<456x48xf32>, vector<48x128xf32>, vector<456x128xf32> -> vector<456x128xf32>
    %11 = arith.maximumf %7, %10 : vector<456x128xf32>
    %c3 = arith.constant 3 : index
    %c0_10 = arith.constant 0 : index
    %c0_11 = arith.constant 0 : index
    %12 = vector.load %arg1[%c3, %c0_10, %c0_11] : memref<16x456x48xf32, #tpu.memory_space<vmem>>, vector<1x456x48xf32>
    %13 = vector.shape_cast %12 : vector<1x456x48xf32> to vector<456x48xf32>
    %cst_12 = arith.constant dense<0.000000e+00> : vector<456x128xf32>
    %14 = tpu.matmul %13, %0, %cst_12 {dimension_numbers = #tpu.dot_dimension_numbers<[1], [0], [0], [1], [0, 0, 1, 1], [], []>} : vector<456x48xf32>, vector<48x128xf32>, vector<456x128xf32> -> vector<456x128xf32>
    %15 = arith.maximumf %11, %14 : vector<456x128xf32>
    %c4 = arith.constant 4 : index
    %c0_13 = arith.constant 0 : index
    %c0_14 = arith.constant 0 : index
    %16 = vector.load %arg1[%c4, %c0_13, %c0_14] : memref<16x456x48xf32, #tpu.memory_space<vmem>>, vector<1x456x48xf32>
    %17 = vector.shape_cast %16 : vector<1x456x48xf32> to vector<456x48xf32>
    %cst_15 = arith.constant dense<0.000000e+00> : vector<456x128xf32>
    %18 = tpu.matmul %17, %0, %cst_15 {dimension_numbers = #tpu.dot_dimension_numbers<[1], [0], [0], [1], [0, 0, 1, 1], [], []>} : vector<456x48xf32>, vector<48x128xf32>, vector<456x128xf32> -> vector<456x128xf32>
    %19 = arith.maximumf %15, %18 : vector<456x128xf32>
    %c5 = arith.constant 5 : index
    %c0_16 = arith.constant 0 : index
    %c0_17 = arith.constant 0 : index
    %20 = vector.load %arg1[%c5, %c0_16, %c0_17] : memref<16x456x48xf32, #tpu.memory_space<vmem>>, vector<1x456x48xf32>
    %21 = vector.shape_cast %20 : vector<1x456x48xf32> to vector<456x48xf32>
    %cst_18 = arith.constant dense<0.000000e+00> : vector<456x128xf32>
    %22 = tpu.matmul %21, %0, %cst_18 {dimension_numbers = #tpu.dot_dimension_numbers<[1], [0], [0], [1], [0, 0, 1, 1], [], []>} : vector<456x48xf32>, vector<48x128xf32>, vector<456x128xf32> -> vector<456x128xf32>
    %23 = arith.maximumf %19, %22 : vector<456x128xf32>
    %c6 = arith.constant 6 : index
    %c0_19 = arith.constant 0 : index
    %c0_20 = arith.constant 0 : index
    %24 = vector.load %arg1[%c6, %c0_19, %c0_20] : memref<16x456x48xf32, #tpu.memory_space<vmem>>, vector<1x456x48xf32>
    %25 = vector.shape_cast %24 : vector<1x456x48xf32> to vector<456x48xf32>
    %cst_21 = arith.constant dense<0.000000e+00> : vector<456x128xf32>
    %26 = tpu.matmul %25, %0, %cst_21 {dimension_numbers = #tpu.dot_dimension_numbers<[1], [0], [0], [1], [0, 0, 1, 1], [], []>} : vector<456x48xf32>, vector<48x128xf32>, vector<456x128xf32> -> vector<456x128xf32>
    %27 = arith.maximumf %23, %26 : vector<456x128xf32>
    %c7 = arith.constant 7 : index
    %c0_22 = arith.constant 0 : index
    %c0_23 = arith.constant 0 : index
    %28 = vector.load %arg1[%c7, %c0_22, %c0_23] : memref<16x456x48xf32, #tpu.memory_space<vmem>>, vector<1x456x48xf32>
    %29 = vector.shape_cast %28 : vector<1x456x48xf32> to vector<456x48xf32>
    %cst_24 = arith.constant dense<0.000000e+00> : vector<456x128xf32>
    %30 = tpu.matmul %29, %0, %cst_24 {dimension_numbers = #tpu.dot_dimension_numbers<[1], [0], [0], [1], [0, 0, 1, 1], [], []>} : vector<456x48xf32>, vector<48x128xf32>, vector<456x128xf32> -> vector<456x128xf32>
    %31 = arith.maximumf %27, %30 : vector<456x128xf32>
    %c8 = arith.constant 8 : index
    %c0_25 = arith.constant 0 : index
    %c0_26 = arith.constant 0 : index
    %32 = vector.load %arg1[%c8, %c0_25, %c0_26] : memref<16x456x48xf32, #tpu.memory_space<vmem>>, vector<1x456x48xf32>
    %33 = vector.shape_cast %32 : vector<1x456x48xf32> to vector<456x48xf32>
    %cst_27 = arith.constant dense<0.000000e+00> : vector<456x128xf32>
    %34 = tpu.matmul %33, %0, %cst_27 {dimension_numbers = #tpu.dot_dimension_numbers<[1], [0], [0], [1], [0, 0, 1, 1], [], []>} : vector<456x48xf32>, vector<48x128xf32>, vector<456x128xf32> -> vector<456x128xf32>
    %35 = arith.maximumf %31, %34 : vector<456x128xf32>
    %c9 = arith.constant 9 : index
    %c0_28 = arith.constant 0 : index
    %c0_29 = arith.constant 0 : index
    %36 = vector.load %arg1[%c9, %c0_28, %c0_29] : memref<16x456x48xf32, #tpu.memory_space<vmem>>, vector<1x456x48xf32>
    %37 = vector.shape_cast %36 : vector<1x456x48xf32> to vector<456x48xf32>
    %cst_30 = arith.constant dense<0.000000e+00> : vector<456x128xf32>
    %38 = tpu.matmul %37, %0, %cst_30 {dimension_numbers = #tpu.dot_dimension_numbers<[1], [0], [0], [1], [0, 0, 1, 1], [], []>} : vector<456x48xf32>, vector<48x128xf32>, vector<456x128xf32> -> vector<456x128xf32>
    %39 = arith.maximumf %35, %38 : vector<456x128xf32>
    %c10 = arith.constant 10 : index
    %c0_31 = arith.constant 0 : index
    %c0_32 = arith.constant 0 : index
    %40 = vector.load %arg1[%c10, %c0_31, %c0_32] : memref<16x456x48xf32, #tpu.memory_space<vmem>>, vector<1x456x48xf32>
    %41 = vector.shape_cast %40 : vector<1x456x48xf32> to vector<456x48xf32>
    %cst_33 = arith.constant dense<0.000000e+00> : vector<456x128xf32>
    %42 = tpu.matmul %41, %0, %cst_33 {dimension_numbers = #tpu.dot_dimension_numbers<[1], [0], [0], [1], [0, 0, 1, 1], [], []>} : vector<456x48xf32>, vector<48x128xf32>, vector<456x128xf32> -> vector<456x128xf32>
    %43 = arith.maximumf %39, %42 : vector<456x128xf32>
    %c11 = arith.constant 11 : index
    %c0_34 = arith.constant 0 : index
    %c0_35 = arith.constant 0 : index
    %44 = vector.load %arg1[%c11, %c0_34, %c0_35] : memref<16x456x48xf32, #tpu.memory_space<vmem>>, vector<1x456x48xf32>
    %45 = vector.shape_cast %44 : vector<1x456x48xf32> to vector<456x48xf32>
    %cst_36 = arith.constant dense<0.000000e+00> : vector<456x128xf32>
    %46 = tpu.matmul %45, %0, %cst_36 {dimension_numbers = #tpu.dot_dimension_numbers<[1], [0], [0], [1], [0, 0, 1, 1], [], []>} : vector<456x48xf32>, vector<48x128xf32>, vector<456x128xf32> -> vector<456x128xf32>
    %47 = arith.maximumf %43, %46 : vector<456x128xf32>
    %c12 = arith.constant 12 : index
    %c0_37 = arith.constant 0 : index
    %c0_38 = arith.constant 0 : index
    %48 = vector.load %arg1[%c12, %c0_37, %c0_38] : memref<16x456x48xf32, #tpu.memory_space<vmem>>, vector<1x456x48xf32>
    %49 = vector.shape_cast %48 : vector<1x456x48xf32> to vector<456x48xf32>
    %cst_39 = arith.constant dense<0.000000e+00> : vector<456x128xf32>
    %50 = tpu.matmul %49, %0, %cst_39 {dimension_numbers = #tpu.dot_dimension_numbers<[1], [0], [0], [1], [0, 0, 1, 1], [], []>} : vector<456x48xf32>, vector<48x128xf32>, vector<456x128xf32> -> vector<456x128xf32>
    %51 = arith.maximumf %47, %50 : vector<456x128xf32>
    %c13 = arith.constant 13 : index
    %c0_40 = arith.constant 0 : index
    %c0_41 = arith.constant 0 : index
    %52 = vector.load %arg1[%c13, %c0_40, %c0_41] : memref<16x456x48xf32, #tpu.memory_space<vmem>>, vector<1x456x48xf32>
    %53 = vector.shape_cast %52 : vector<1x456x48xf32> to vector<456x48xf32>
    %cst_42 = arith.constant dense<0.000000e+00> : vector<456x128xf32>
    %54 = tpu.matmul %53, %0, %cst_42 {dimension_numbers = #tpu.dot_dimension_numbers<[1], [0], [0], [1], [0, 0, 1, 1], [], []>} : vector<456x48xf32>, vector<48x128xf32>, vector<456x128xf32> -> vector<456x128xf32>
    %55 = arith.maximumf %51, %54 : vector<456x128xf32>
    %c14 = arith.constant 14 : index
    %c0_43 = arith.constant 0 : index
    %c0_44 = arith.constant 0 : index
    %56 = vector.load %arg1[%c14, %c0_43, %c0_44] : memref<16x456x48xf32, #tpu.memory_space<vmem>>, vector<1x456x48xf32>
    %57 = vector.shape_cast %56 : vector<1x456x48xf32> to vector<456x48xf32>
    %cst_45 = arith.constant dense<0.000000e+00> : vector<456x128xf32>
    %58 = tpu.matmul %57, %0, %cst_45 {dimension_numbers = #tpu.dot_dimension_numbers<[1], [0], [0], [1], [0, 0, 1, 1], [], []>} : vector<456x48xf32>, vector<48x128xf32>, vector<456x128xf32> -> vector<456x128xf32>
    %59 = arith.maximumf %55, %58 : vector<456x128xf32>
    %c15 = arith.constant 15 : index
    %c0_46 = arith.constant 0 : index
    %c0_47 = arith.constant 0 : index
    %60 = vector.load %arg1[%c15, %c0_46, %c0_47] : memref<16x456x48xf32, #tpu.memory_space<vmem>>, vector<1x456x48xf32>
    %61 = vector.shape_cast %60 : vector<1x456x48xf32> to vector<456x48xf32>
    %cst_48 = arith.constant dense<0.000000e+00> : vector<456x128xf32>
    %62 = tpu.matmul %61, %0, %cst_48 {dimension_numbers = #tpu.dot_dimension_numbers<[1], [0], [0], [1], [0, 0, 1, 1], [], []>} : vector<456x48xf32>, vector<48x128xf32>, vector<456x128xf32> -> vector<456x128xf32>
    %63 = arith.maximumf %59, %62 : vector<456x128xf32>
    %c0_49 = arith.constant 0 : index
    %c0_50 = arith.constant 0 : index
    %64 = vector.load %arg3[%c0_49, %c0_50] : memref<1x128xf32, #tpu.memory_space<vmem>>, vector<1x128xf32>
    %65 = vector.broadcast %64 : vector<1x128xf32> to vector<456x128xf32>
    %66 = arith.addf %63, %65 : vector<456x128xf32>
    %c0_51 = arith.constant 0 : index
    %c0_52 = arith.constant 0 : index
    %67 = vector.load %arg4[%c0_51, %c0_52] : memref<456x128xf32, #tpu.memory_space<vmem>>, vector<456x128xf32>
    tpu.vector_store %arg4[%c0_51, %c0_52], %66 {strides = array<i32>} : memref<456x128xf32, #tpu.memory_space<vmem>>, vector<456x128xf32>,
    return
  }
  func.func @transform_0(%arg0: i32) -> (i32, i32, i32) {
    %c0_i32 = arith.constant 0 : i32
    %c0_i32_0 = arith.constant 0 : i32
    %c0_i32_1 = arith.constant 0 : i32
    return %c0_i32, %arg0, %c0_i32_0 : i32, i32, i32
  }
  func.func @transform_1(%arg0: i32) -> (i32, i32) {
    %c0_i32 = arith.constant 0 : i32
    %c0_i32_0 = arith.constant 0 : i32
    %c0_i32_1 = arith.constant 0 : i32
    return %c0_i32, %c0_i32_0 : i32, i32
  }
  func.func @transform_2(%arg0: i32) -> (i32, i32) {
    %c0_i32 = arith.constant 0 : i32
    %c0_i32_0 = arith.constant 0 : i32
    %c0_i32_1 = arith.constant 0 : i32
    return %c0_i32, %c0_i32_0 : i32, i32
  }
  func.func @transform_3(%arg0: i32) -> (i32, i32) {
    %c0_i32 = arith.constant 0 : i32
    %c0_i32_0 = arith.constant 0 : i32
    return %arg0, %c0_i32 : i32, i32
  }
}

</mosaic_0001>

<bundles_post_ra>
// kernel: tpu_custom_call.1
= control target key start
LH: loop header
LB: loop body
LE: loop exit
PB: predicated region body
PF: predicated region fallthrough
CT: control target
= control target key end

     0   :  { %v16039_v1 = vmov 0.0   ;;  %vm78_vm0 = vcmask 392192   ;;  %vm16040_vm1 = vmmov 0   ;;  %s25446_s0 = inlined_call_operand.vmem [shape: f32[16,456,48], index: 0, kind: input, shape index: {}]   ;;  %s25447_s1 = inlined_call_operand.vmem [shape: f32[48,128], index: 1, kind: input, shape index: {}]   ;;  %s25448_s2 = inlined_call_operand.vmem [shape: f32[1,128], index: 2, kind: input, shape index: {}]   ;;  %s25449_s3 = inlined_call_operand.hbm [shape: f32[456,128], index: 3, kind: output, shape index: {}]  }
   0x1   :  { %v16067_v0 = vld [vmem:[%s25447_s1 + $0x28] sm:$0xff]  ;;  %13053 = vmatprep.subr.mxu0 %v16039_v1  ;;  %13236 = vmatprep.subr.mxu1 %v16039_v1  ;;  %v16074_v2 = vld [vmem:[%s25447_s1 + $0x20] sm:$0xff]  ;;  %v16083_v3 = vld [vmem:[%s25447_s1 + $0x18] sm:$0xff] }
   0x2   :  { %13054 = vmatpush3.msra.mxu0 %v16067_v0  ;;  %13237 = vmatpush3.msra.mxu1 %v16067_v0  ;;  %v16092_v4 = vld [vmem:[%s25447_s1 + $0x10] sm:$0xff]  ;;  %v16101_v5 = vld [vmem:[%s25447_s1 + $0x8] sm:$0xff]  ;;  %v16110_v6 = vld [vmem:[%s25447_s1] sm:$0xff] }
   0x3   :  { %13055 = vmatprep.subr.mxu0 %v16039_v1  ;;  %13238 = vmatprep.subr.mxu1 %v16039_v1  ;;  %v21_v7 = vld [vmem:[%s25446_s0] sm:$0xff]  ;;  %v10334_v8 = vld [vmem:[%s25446_s0 + $0x1c8] sm:$0xff]  ;;  %v10335_v10 = vld [vmem:[%s25446_s0 + $0x1d0] sm:$0xff] }
   0x4   :  { %13056 = vmatpush3.msra.mxu0 %v16074_v2  ;;  %13239 = vmatpush3.msra.mxu1 %v16074_v2  ;;  %v22_v9 = vld [vmem:[%s25446_s0 + $0x8] sm:$0xff]  ;;  %v23_v11 = vld [vmem:[%s25446_s0 + $0x10] sm:$0xff]  ;;  %v10336_v12 = vld [vmem:[%s25446_s0 + $0x1d8] sm:$0xff] }
   0x5   :  { %13057 = vmatprep.subr.mxu0 %v16039_v1  ;;  %13240 = vmatprep.subr.mxu1 %v16039_v1  ;;  %v24_v13 = vld [vmem:[%s25446_s0 + $0x18] sm:$0xff]  ;;  %v10337_v14 = vld [vmem:[%s25446_s0 + $0x1e0] sm:$0xff] }
   0x6   :  { %13058 = vmatpush3.msra.mxu0 %v16083_v3  ;;  %13241 = vmatpush3.msra.mxu1 %v16083_v3  ;;  %v25_v15 = vld [vmem:[%s25446_s0 + $0x20] sm:$0xff] }
   0x7   :  { %13059 = vmatprep.subr.mxu0 %v16039_v1  ;;  %13242 = vmatprep.subr.mxu1 %v16039_v1 }
   0x8   :  { %13060 = vmatpush3.msra.mxu0 %v16092_v4  ;;  %13243 = vmatpush3.msra.mxu1 %v16092_v4 }
   0x9   :  { %13061 = vmatprep.subr.mxu0 %v16039_v1  ;;  %13244 = vmatprep.subr.mxu1 %v16039_v1 }
   0xa   :  { %13062 = vmatpush3.msra.mxu0 %v16101_v5  ;;  %13245 = vmatpush3.msra.mxu1 %v16101_v5 }
   0xb   :  { %13063 = vmatprep.subr.mxu0 %v16039_v1  ;;  %13065 = vmatprep.mubr.msk.f32.mxu0 %vm16040_vm1, %v16039_v1 }
   0xc   :  { %13064 = vmatpush3.msra.mxu0 %v16110_v6  ;;  %13246 = vmatprep.subr.mxu1 %v16039_v1 }
   0xd   :  { %13066 = vmatmul.mubr.msk.f32.vlgmr.msra.gmra.mxu0 %vm78_vm0, %v21_v7  ;;  %13247 = vmatpush3.msra.mxu1 %v16110_v6 }
   0xe   :  { %13248 = vmatprep.mubr.msk.f32.mxu1 %vm16040_vm1, %v16039_v1  ;;  %13419 = vmatprep.subr.mxu0 %v16039_v1 }
   0xf   :  { %13249 = vmatmul.mubr.msk.f32.vlgmr.msra.gmra.mxu1 %vm78_vm0, %v10334_v8  ;;  %13420 = vmatpush3.msra.mxu0 %v16067_v0 }
  0x10   :  { %13602 = vmatprep.subr.mxu1 %v16039_v1  ;;  %13068 = vmatprep.mubr.msk.f32.mxu0 %vm16040_vm1, %v16039_v1 }
  0x11   :  { %13603 = vmatpush3.msra.mxu1 %v16067_v0  ;;  %13069 = vmatmul.mubr.msk.f32.gmra.mxu0 %vm78_vm0, %v22_v9 }
  0x12   :  { %13251 = vmatprep.mubr.msk.f32.mxu1 %vm16040_vm1, %v16039_v1  ;;  %13071 = vmatprep.mubr.msk.f32.mxu0 %vm16040_vm1, %v16039_v1 }
  0x13   :  { %13252 = vmatmul.mubr.msk.f32.gmra.mxu1 %vm78_vm0, %v10335_v10  ;;  %13421 = vmatprep.subr.mxu0 %v16039_v1 }
  0x14   :  { %13254 = vmatprep.mubr.msk.f32.mxu1 %vm16040_vm1, %v16039_v1  ;;  %13422 = vmatpush3.msra.mxu0 %v16074_v2 }
  0x15   :  { %13072 = vmatmul.mubr.msk.f32.gmra.mxu0 %vm78_vm0, %v23_v11  ;;  %13604 = vmatprep.subr.mxu1 %v16039_v1 }
  0x16   :  { %13074 = vmatprep.mubr.msk.f32.mxu0 %vm16040_vm1, %v16039_v1  ;;  %13605 = vmatpush3.msra.mxu1 %v16074_v2 }
  0x17   :  { %13255 = vmatmul.mubr.msk.f32.gmra.mxu1 %vm78_vm0, %v10336_v12  ;;  %13423 = vmatprep.subr.mxu0 %v16039_v1 }
  0x18   :  { %13257 = vmatprep.mubr.msk.f32.mxu1 %vm16040_vm1, %v16039_v1  ;;  %13424 = vmatpush3.msra.mxu0 %v16083_v3 }
  0x19   :  { %13075 = vmatmul.mubr.msk.f32.gmra.mxu0 %vm78_vm0, %v24_v13  ;;  %13606 = vmatprep.subr.mxu1 %v16039_v1 }
  0x1a   :  { %13077 = vmatprep.mubr.msk.f32.mxu0 %vm16040_vm1, %v16039_v1  ;;  %13607 = vmatpush3.msra.mxu1 %v16083_v3 }
  0x1b   :  { %8 = vsyncpa [#allocation3], 0  ;;  %13258 = vmatmul.mubr.msk.f32.gmra.mxu1 %vm78_vm0, %v10337_v14  ;;  %13425 = vmatprep.subr.mxu0 %v16039_v1  ;;  %v10338_v16 = vld [vmem:[%s25446_s0 + $0x1e8] sm:$0xff]  ;;  %v10339_v18 = vld [vmem:[%s25446_s0 + $0x1f0] sm:$0xff] }
  0x1c   :  { %13260 = vmatprep.mubr.msk.f32.mxu1 %vm16040_vm1, %v16039_v1  ;;  %13426 = vmatpush3.msra.mxu0 %v16092_v4  ;;  %v26_v17 = vld [vmem:[%s25446_s0 + $0x28] sm:$0xff]  ;;  %v27_v19 = vld [vmem:[%s25446_s0 + $0x30] sm:$0xff]  ;;  %v10340_v20 = vld [vmem:[%s25446_s0 + $0x1f8] sm:$0xff] }
  0x1d   :  { %13078 = vmatmul.mubr.msk.f32.gmra.mxu0 %vm78_vm0, %v25_v15  ;;  %13608 = vmatprep.subr.mxu1 %v16039_v1  ;;  %v28_v21 = vld [vmem:[%s25446_s0 + $0x38] sm:$0xff]  ;;  %v10341_v22 = vld [vmem:[%s25446_s0 + $0x200] sm:$0xff]  ;;  %v10342_v24 = vld [vmem:[%s25446_s0 + $0x208] sm:$0xff] }
  0x1e   :  { %13080 = vmatprep.mubr.msk.f32.mxu0 %vm16040_vm1, %v16039_v1  ;;  %13609 = vmatpush3.msra.mxu1 %v16092_v4  ;;  %v29_v23 = vld [vmem:[%s25446_s0 + $0x40] sm:$0xff]  ;;  %v30_v25 = vld [vmem:[%s25446_s0 + $0x48] sm:$0xff]  ;;  %v10343_v26 = vld [vmem:[%s25446_s0 + $0x210] sm:$0xff] }
  0x1f   :  { %13261 = vmatmul.mubr.msk.f32.gmra.mxu1 %vm78_vm0, %v10338_v16  ;;  %13427 = vmatprep.subr.mxu0 %v16039_v1  ;;  %v31_v27 = vld [vmem:[%s25446_s0 + $0x50] sm:$0xff]  ;;  %v10344_v28 = vld [vmem:[%s25446_s0 + $0x218] sm:$0xff]  ;;  %v10345_v30 = vld [vmem:[%s25446_s0 + $0x220] sm:$0xff] }
  0x20   :  { %13263 = vmatprep.mubr.msk.f32.mxu1 %vm16040_vm1, %v16039_v1  ;;  %13428 = vmatpush3.msra.mxu0 %v16101_v5  ;;  %v32_v29 = vld [vmem:[%s25446_s0 + $0x58] sm:$0xff]  ;;  %v33_v31 = vld [vmem:[%s25446_s0 + $0x60] sm:$0xff]  ;;  %v10346_v32 = vld [vmem:[%s25446_s0 + $0x228] sm:$0xff] }
  0x21   :  { %13081 = vmatmul.mubr.msk.f32.gmra.mxu0 %vm78_vm0, %v26_v17  ;;  %13610 = vmatprep.subr.mxu1 %v16039_v1  ;;  %v34_v33 = vld [vmem:[%s25446_s0 + $0x68] sm:$0xff]  ;;  %v10347_v34 = vld [vmem:[%s25446_s0 + $0x230] sm:$0xff]  ;;  %v10348_v36 = vld [vmem:[%s25446_s0 + $0x238] sm:$0xff] }
  0x22   :  { %13083 = vmatprep.mubr.msk.f32.mxu0 %vm16040_vm1, %v16039_v1  ;;  %13611 = vmatpush3.msra.mxu1 %v16101_v5  ;;  %v35_v35 = vld [vmem:[%s25446_s0 + $0x70] sm:$0xff]  ;;  %v36_v37 = vld [vmem:[%s25446_s0 + $0x78] sm:$0xff]  ;;  %v10349_v38 = vld [vmem:[%s25446_s0 + $0x240] sm:$0xff] }
  0x23   :  { %13264 = vmatmul.mubr.msk.f32.gmra.mxu1 %vm78_vm0, %v10339_v18  ;;  %13429 = vmatprep.subr.mxu0 %v16039_v1  ;;  %v37_v39 = vld [vmem:[%s25446_s0 + $0x80] sm:$0xff]  ;;  %v10350_v40 = vld [vmem:[%s25446_s0 + $0x248] sm:$0xff]  ;;  %v10351_v42 = vld [vmem:[%s25446_s0 + $0x250] sm:$0xff] }
  0x24   :  { %13266 = vmatprep.mubr.msk.f32.mxu1 %vm16040_vm1, %v16039_v1  ;;  %13430 = vmatpush3.msra.mxu0 %v16110_v6  ;;  %v38_v41 = vld [vmem:[%s25446_s0 + $0x88] sm:$0xff]  ;;  %v39_v43 = vld [vmem:[%s25446_s0 + $0x90] sm:$0xff]  ;;  %v10352_v44 = vld [vmem:[%s25446_s0 + $0x258] sm:$0xff] }
  0x25   :  { %13084 = vmatmul.mubr.msk.f32.gmra.mxu0 %vm78_vm0, %v27_v19  ;;  %13612 = vmatprep.subr.mxu1 %v16039_v1  ;;  %v40_v45 = vld [vmem:[%s25446_s0 + $0x98] sm:$0xff]  ;;  %v10353_v46 = vld [vmem:[%s25446_s0 + $0x260] sm:$0xff]  ;;  %v10354_v48 = vld [vmem:[%s25446_s0 + $0x268] sm:$0xff] }
  0x26   :  { %13086 = vmatprep.mubr.msk.f32.mxu0 %vm16040_vm1, %v16039_v1  ;;  %13613 = vmatpush3.msra.mxu1 %v16110_v6  ;;  %v41_v47 = vld [vmem:[%s25446_s0 + $0xa0] sm:$0xff]  ;;  %v42_v49 = vld [vmem:[%s25446_s0 + $0xa8] sm:$0xff]  ;;  %v10355_v50 = vld [vmem:[%s25446_s0 + $0x270] sm:$0xff] }
  0x27   :  { %13267 = vmatmul.mubr.msk.f32.gmra.mxu1 %vm78_vm0, %v10340_v20  ;;  %13785 = vmatprep.subr.mxu0 %v16039_v1  ;;  %v43_v51 = vld [vmem:[%s25446_s0 + $0xb0] sm:$0xff]  ;;  %v10356_v52 = vld [vmem:[%s25446_s0 + $0x278] sm:$0xff]  ;;  %v10357_v54 = vld [vmem:[%s25446_s0 + $0x280] sm:$0xff] }
  0x28   :  { %13269 = vmatprep.mubr.msk.f32.mxu1 %vm16040_vm1, %v16039_v1  ;;  %13968 = vmatprep.subr.mxu1 %v16039_v1  ;;  %v44_v53 = vld [vmem:[%s25446_s0 + $0xb8] sm:$0xff]  ;;  %v45_v55 = vld [vmem:[%s25446_s0 + $0xc0] sm:$0xff]  ;;  %v10358_v56 = vld [vmem:[%s25446_s0 + $0x288] sm:$0xff] }
  0x29   :  { %13087 = vmatmul.mubr.msk.f32.gmra.mxu0 %vm78_vm0, %v28_v21  ;;  %v46_v57 = vld [vmem:[%s25446_s0 + $0xc8] sm:$0xff]  ;;  %v10359_v58 = vld [vmem:[%s25446_s0 + $0x290] sm:$0xff]  ;;  %v10360_v60 = vld [vmem:[%s25446_s0 + $0x298] sm:$0xff] }
  0x2a   :  { %13089 = vmatprep.mubr.msk.f32.mxu0 %vm16040_vm1, %v16039_v1  ;;  %v47_v59 = vld [vmem:[%s25446_s0 + $0xd0] sm:$0xff]  ;;  %v48_v61 = vld [vmem:[%s25446_s0 + $0xd8] sm:$0xff]  ;;  %v10361_v62 = vld [vmem:[%s25446_s0 + $0x2a0] sm:$0xff] }
  0x2b   :  { %13270 = vmatmul.mubr.msk.f32.gmra.mxu1 %vm78_vm0, %v10341_v22  ;;  %v49_v63 = vld [vmem:[%s25446_s0 + $0xe0] sm:$0xff]  ;;  %v10362_v7 = vld [vmem:[%s25446_s0 + $0x2a8] sm:$0xff]  ;;  %v10363_v9 = vld [vmem:[%s25446_s0 + $0x2b0] sm:$0xff] }
  0x2c   :  { %13272 = vmatprep.mubr.msk.f32.mxu1 %vm16040_vm1, %v16039_v1  ;;  %v50_v8 = vld [vmem:[%s25446_s0 + $0xe8] sm:$0xff]  ;;  %v51_v10 = vld [vmem:[%s25446_s0 + $0xf0] sm:$0xff]  ;;  %v10364_v11 = vld [vmem:[%s25446_s0 + $0x2b8] sm:$0xff] }
  0x2d   :  { %13090 = vmatmul.mubr.msk.f32.gmra.mxu0 %vm78_vm0, %v29_v23  ;;  %v52_v12 = vld [vmem:[%s25446_s0 + $0xf8] sm:$0xff]  ;;  %v10365_v13 = vld [vmem:[%s25446_s0 + $0x2c0] sm:$0xff]  ;;  %v10366_v15 = vld [vmem:[%s25446_s0 + $0x2c8] sm:$0xff] }
  0x2e   :  { %13092 = vmatprep.mubr.msk.f32.mxu0 %vm16040_vm1, %v16039_v1  ;;  %v53_v14 = vld [vmem:[%s25446_s0 + $0x100] sm:$0xff]  ;;  %v54_v16 = vld [vmem:[%s25446_s0 + $0x108] sm:$0xff]  ;;  %v10367_v17 = vld [vmem:[%s25446_s0 + $0x2d0] sm:$0xff] }
  0x2f   :  { %13273 = vmatmul.mubr.msk.f32.gmra.mxu1 %vm78_vm0, %v10342_v24  ;;  %v55_v18 = vld [vmem:[%s25446_s0 + $0x110] sm:$0xff]  ;;  %v10368_v19 = vld [vmem:[%s25446_s0 + $0x2d8] sm:$0xff]  ;;  %v10369_v21 = vld [vmem:[%s25446_s0 + $0x2e0] sm:$0xff] }
  0x30   :  { %13275 = vmatprep.mubr.msk.f32.mxu1 %vm16040_vm1, %v16039_v1  ;;  %v56_v20 = vld [vmem:[%s25446_s0 + $0x118] sm:$0xff]  ;;  %v57_v22 = vld [vmem:[%s25446_s0 + $0x120] sm:$0xff]  ;;  %v10370_v23 = vld [vmem:[%s25446_s0 + $0x2e8] sm:$0xff] }
  0x31   :  { %13093 = vmatmul.mubr.msk.f32.gmra.mxu0 %vm78_vm0, %v30_v25  ;;  %v58_v24 = vld [vmem:[%s25446_s0 + $0x128] sm:$0xff]  ;;  %v10371_v25 = vld [vmem:[%s25446_s0 + $0x2f0] sm:$0xff] }
  0x32   :  { %13095 = vmatprep.mubr.msk.f32.mxu0 %vm16040_vm1, %v16039_v1 }
  0x33   :  { %13276 = vmatmul.mubr.msk.f32.gmra.mxu1 %vm78_vm0, %v10343_v26  ;;  %v59_v26 = vld [vmem:[%s25446_s0 + $0x130] sm:$0xff] }
  0x34   :  { %13278 = vmatprep.mubr.msk.f32.mxu1 %vm16040_vm1, %v16039_v1 }
  0x35   :  { %13096 = vmatmul.mubr.msk.f32.gmra.mxu0 %vm78_vm0, %v31_v27  ;;  %v10372_v27 = vld [vmem:[%s25446_s0 + $0x2f8] sm:$0xff] }
  0x36   :  { %13098 = vmatprep.mubr.msk.f32.mxu0 %vm16040_vm1, %v16039_v1 }
  0x37   :  { %13279 = vmatmul.mubr.msk.f32.gmra.mxu1 %vm78_vm0, %v10344_v28  ;;  %v60_v28 = vld [vmem:[%s25446_s0 + $0x138] sm:$0xff] }
  0x38   :  { %13281 = vmatprep.mubr.msk.f32.mxu1 %vm16040_vm1, %v16039_v1 }
  0x39   :  { %13099 = vmatmul.mubr.msk.f32.gmra.mxu0 %vm78_vm0, %v32_v29  ;;  %v10373_v29 = vld [vmem:[%s25446_s0 + $0x300] sm:$0xff] }
  0x3a   :  { %13101 = vmatprep.mubr.msk.f32.mxu0 %vm16040_vm1, %v16039_v1 }
  0x3b   :  { %13282 = vmatmul.mubr.msk.f32.gmra.mxu1 %vm78_vm0, %v10345_v30  ;;  %v61_v30 = vld [vmem:[%s25446_s0 + $0x140] sm:$0xff] }
  0x3c   :  { %13284 = vmatprep.mubr.msk.f32.mxu1 %vm16040_vm1, %v16039_v1 }
  0x3d   :  { %13102 = vmatmul.mubr.msk.f32.gmra.mxu0 %vm78_vm0, %v33_v31  ;;  %v10374_v31 = vld [vmem:[%s25446_s0 + $0x308] sm:$0xff] }
  0x3e   :  { %13104 = vmatprep.mubr.msk.f32.mxu0 %vm16040_vm1, %v16039_v1 }
  0x3f   :  { %13285 = vmatmul.mubr.msk.f32.gmra.mxu1 %vm78_vm0, %v10346_v32  ;;  %v62_v32 = vld [vmem:[%s25446_s0 + $0x148] sm:$0xff] }
  0x40   :  { %13287 = vmatprep.mubr.msk.f32.mxu1 %vm16040_vm1, %v16039_v1 }
  0x41   :  { %13105 = vmatmul.mubr.msk.f32.gmra.mxu0 %vm78_vm0, %v34_v33  ;;  %v10375_v33 = vld [vmem:[%s25446_s0 + $0x310] sm:$0xff] }
  0x42   :  { %13107 = vmatprep.mubr.msk.f32.mxu0 %vm16040_vm1, %v16039_v1 }
  0x43   :  { %13288 = vmatmul.mubr.msk.f32.gmra.mxu1 %vm78_vm0, %v10347_v34  ;;  %v63_v34 = vld [vmem:[%s25446_s0 + $0x150] sm:$0xff] }
  0x44   :  { %13290 = vmatprep.mubr.msk.f32.mxu1 %vm16040_vm1, %v16039_v1 }
  0x45   :  { %13108 = vmatmul.mubr.msk.f32.gmra.mxu0 %vm78_vm0, %v35_v35  ;;  %v10376_v35 = vld [vmem:[%s25446_s0 + $0x318] sm:$0xff] }
  0x46   :  { %13110 = vmatprep.mubr.msk.f32.mxu0 %vm16040_vm1, %v16039_v1 }
  0x47   :  { %13291 = vmatmul.mubr.msk.f32.gmra.mxu1 %vm78_vm0, %v10348_v36  ;;  %v64_v36 = vld [vmem:[%s25446_s0 + $0x158] sm:$0xff] }
  0x48   :  { %13293 = vmatprep.mubr.msk.f32.mxu1 %vm16040_vm1, %v16039_v1 }
  0x49   :  { %13111 = vmatmul.mubr.msk.f32.gmra.mxu0 %vm78_vm0, %v36_v37  ;;  %v10377_v37 = vld [vmem:[%s25446_s0 + $0x320] sm:$0xff] }
  0x4a   :  { %13113 = vmatprep.mubr.msk.f32.mxu0 %vm16040_vm1, %v16039_v1 }
  0x4b   :  { %13294 = vmatmul.mubr.msk.f32.gmra.mxu1 %vm78_vm0, %v10349_v38  ;;  %v65_v38 = vld [vmem:[%s25446_s0 + $0x160] sm:$0xff] }
  0x4c   :  { %13296 = vmatprep.mubr.msk.f32.mxu1 %vm16040_vm1, %v16039_v1 }
  0x4d   :  { %13114 = vmatmul.mubr.msk.f32.gmra.mxu0 %vm78_vm0, %v37_v39  ;;  %v10378_v39 = vld [vmem:[%s25446_s0 + $0x328] sm:$0xff] }
  0x4e   :  { %13116 = vmatprep.mubr.msk.f32.mxu0 %vm16040_vm1, %v16039_v1 }
  0x4f   :  { %13297 = vmatmul.mubr.msk.f32.gmra.mxu1 %vm78_vm0, %v10350_v40  ;;  %v66_v40 = vld [vmem:[%s25446_s0 + $0x168] sm:$0xff] }
  0x50   :  { %13299 = vmatprep.mubr.msk.f32.mxu1 %vm16040_vm1, %v16039_v1 }
  0x51   :  { %13117 = vmatmul.mubr.msk.f32.gmra.mxu0 %vm78_vm0, %v38_v41  ;;  %v10379_v41 = vld [vmem:[%s25446_s0 + $0x330] sm:$0xff] }
  0x52   :  { %13119 = vmatprep.mubr.msk.f32.mxu0 %vm16040_vm1, %v16039_v1 }
  0x53   :  { %13300 = vmatmul.mubr.msk.f32.gmra.mxu1 %vm78_vm0, %v10351_v42  ;;  %v67_v42 = vld [vmem:[%s25446_s0 + $0x170] sm:$0xff] }
  0x54   :  { %13302 = vmatprep.mubr.msk.f32.mxu1 %vm16040_vm1, %v16039_v1 }
  0x55   :  { %13120 = vmatmul.mubr.msk.f32.gmra.mxu0 %vm78_vm0, %v39_v43  ;;  %v10380_v43 = vld [vmem:[%s25446_s0 + $0x338] sm:$0xff] }
  0x56   :  { %13122 = vmatprep.mubr.msk.f32.mxu0 %vm16040_vm1, %v16039_v1 }
  0x57   :  { %13303 = vmatmul.mubr.msk.f32.gmra.mxu1 %vm78_vm0, %v10352_v44  ;;  %v68_v44 = vld [vmem:[%s25446_s0 + $0x178] sm:$0xff] }
  0x58   :  { %13305 = vmatprep.mubr.msk.f32.mxu1 %vm16040_vm1, %v16039_v1 }
  0x59   :  { %13123 = vmatmul.mubr.msk.f32.gmra.mxu0 %vm78_vm0, %v40_v45  ;;  %v10381_v45 = vld [vmem:[%s25446_s0 + $0x340] sm:$0xff] }
  0x5a   :  { %13125 = vmatprep.mubr.msk.f32.mxu0 %vm16040_vm1, %v16039_v1 }
  0x5b   :  { %13306 = vmatmul.mubr.msk.f32.gmra.mxu1 %vm78_vm0, %v10353_v46  ;;  %v69_v46 = vld [vmem:[%s25446_s0 + $0x180] sm:$0xff] }
  0x5c   :  { %13308 = vmatprep.mubr.msk.f32.mxu1 %vm16040_vm1, %v16039_v1 }
  0x5d   :  { %13126 = vmatmul.mubr.msk.f32.gmra.mxu0 %vm78_vm0, %v41_v47  ;;  %v10382_v47 = vld [vmem:[%s25446_s0 + $0x348] sm:$0xff] }
  0x5e   :  { %13128 = vmatprep.mubr.msk.f32.mxu0 %vm16040_vm1, %v16039_v1 }
  0x5f   :  { %13309 = vmatmul.mubr.msk.f32.gmra.mxu1 %vm78_vm0, %v10354_v48 }
  0x60   :  { %13311 = vmatprep.mubr.msk.f32.mxu1 %vm16040_vm1, %v16039_v1 }
  0x61   :  { %13129 = vmatmul.mubr.msk.f32.gmra.mxu0 %vm78_vm0, %v42_v49  ;;  %v70_v49 = vld [vmem:[%s25446_s0 + $0x188] sm:$0xff] }
  0x62   :  { %13131 = vmatprep.mubr.msk.f32.mxu0 %vm16040_vm1, %v16039_v1 }
  0x63   :  { %13312 = vmatmul.mubr.msk.f32.gmra.mxu1 %vm78_vm0, %v10355_v50 }
  0x64   :  { %13314 = vmatprep.mubr.msk.f32.mxu1 %vm16040_vm1, %v16039_v1 }
  0x65   :  { %13132 = vmatmul.mubr.msk.f32.gmra.mxu0 %vm78_vm0, %v43_v51 }
  0x66   :  { %13134 = vmatprep.mubr.msk.f32.mxu0 %vm16040_vm1, %v16039_v1 }
  0x67   :  { %13315 = vmatmul.mubr.msk.f32.gmra.mxu1 %vm78_vm0, %v10356_v52 }
  0x68   :  { %13317 = vmatprep.mubr.msk.f32.mxu1 %vm16040_vm1, %v16039_v1 }
  0x69   :  { %13135 = vmatmul.mubr.msk.f32.gmra.mxu0 %vm78_vm0, %v44_v53  ;;  %v10383_v53 = vld [vmem:[%s25446_s0 + $0x350] sm:$0xff] }
  0x6a   :  { %13137 = vmatprep.mubr.msk.f32.mxu0 %vm16040_vm1, %v16039_v1 }
  0x6b   :  { %13318 = vmatmul.mubr.msk.f32.gmra.mxu1 %vm78_vm0, %v10357_v54 }
  0x6c   :  { %13320 = vmatprep.mubr.msk.f32.mxu1 %vm16040_vm1, %v16039_v1 }
  0x6d   :  { %13138 = vmatmul.mubr.msk.f32.gmra.mxu0 %vm78_vm0, %v45_v55 }
  0x6e   :  { %13140 = vmatprep.mubr.msk.f32.mxu0 %vm16040_vm1, %v16039_v1 }
  0x6f   :  { %13321 = vmatmul.mubr.msk.f32.gmra.mxu1 %vm78_vm0, %v10358_v56  ;;  %v71_v56 = vld [vmem:[%s25446_s0 + $0x190] sm:$0xff] }
  0x70   :  { %13323 = vmatprep.mubr.msk.f32.mxu1 %vm16040_vm1, %v16039_v1 }
  0x71   :  { %13141 = vmatmul.mubr.msk.f32.gmra.mxu0 %vm78_vm0, %v46_v57 }
  0x72   :  { %13143 = vmatprep.mubr.msk.f32.mxu0 %vm16040_vm1, %v16039_v1 }
  0x73   :  { %13324 = vmatmul.mubr.msk.f32.gmra.mxu1 %vm78_vm0, %v10359_v58 }
  0x74   :  { %13326 = vmatprep.mubr.msk.f32.mxu1 %vm16040_vm1, %v16039_v1 }
  0x75   :  { %13144 = vmatmul.mubr.msk.f32.gmra.mxu0 %vm78_vm0, %v47_v59 }
  0x76   :  { %13146 = vmatprep.mubr.msk.f32.mxu0 %vm16040_vm1, %v16039_v1 }
  0x77   :  { %13327 = vmatmul.mubr.msk.f32.gmra.mxu1 %vm78_vm0, %v10360_v60  ;;  %v10384_v60 = vld [vmem:[%s25446_s0 + $0x358] sm:$0xff] }
  0x78   :  { %13329 = vmatprep.mubr.msk.f32.mxu1 %vm16040_vm1, %v16039_v1 }
  0x79   :  { %13147 = vmatmul.mubr.msk.f32.gmra.mxu0 %vm78_vm0, %v48_v61 }
  0x7a   :  { %13149 = vmatprep.mubr.msk.f32.mxu0 %vm16040_vm1, %v16039_v1 }
  0x7b   :  { %13330 = vmatmul.mubr.msk.f32.gmra.mxu1 %vm78_vm0, %v10361_v62 }
  0x7c   :  { %13332 = vmatprep.mubr.msk.f32.mxu1 %vm16040_vm1, %v16039_v1 }
  0x7d   :  { %13150 = vmatmul.mubr.msk.f32.gmra.mxu0 %vm78_vm0, %v49_v63  ;;  %v72_v63 = vld [vmem:[%s25446_s0 + $0x198] sm:$0xff] }
  0x7e   :  { %13152 = vmatprep.mubr.msk.f32.mxu0 %vm16040_vm1, %v16039_v1 }
  0x7f   :  { %13333 = vmatmul.mubr.msk.f32.gmra.mxu1 %vm78_vm0, %v10362_v7 }
  0x80   :  { %13335 = vmatprep.mubr.msk.f32.mxu1 %vm16040_vm1, %v16039_v1 }
  0x81   :  { %13153 = vmatmul.mubr.msk.f32.gmra.mxu0 %vm78_vm0, %v50_v8 }
  0x82   :  { %13155 = vmatprep.mubr.msk.f32.mxu0 %vm16040_vm1, %v16039_v1 }
  0x83   :  { %13336 = vmatmul.mubr.msk.f32.gmra.mxu1 %vm78_vm0, %v10363_v9 }
  0x84   :  { %13338 = vmatprep.mubr.msk.f32.mxu1 %vm16040_vm1, %v16039_v1 }
  0x85   :  { %13156 = vmatmul.mubr.msk.f32.gmra.mxu0 %vm78_vm0, %v51_v10  ;;  %v10385_v10 = vld [vmem:[%s25446_s0 + $0x360] sm:$0xff] }
  0x86   :  { %13158 = vmatprep.mubr.msk.f32.mxu0 %vm16040_vm1, %v16039_v1 }
  0x87   :  { %13339 = vmatmul.mubr.msk.f32.gmra.mxu1 %vm78_vm0, %v10364_v11 }
  0x88   :  { %13341 = vmatprep.mubr.msk.f32.mxu1 %vm16040_vm1, %v16039_v1 }
  0x89   :  { %13159 = vmatmul.mubr.msk.f32.gmra.mxu0 %vm78_vm0, %v52_v12 }
  0x8a   :  { %13161 = vmatprep.mubr.msk.f32.mxu0 %vm16040_vm1, %v16039_v1 }
  0x8b   :  { %13342 = vmatmul.mubr.msk.f32.gmra.mxu1 %vm78_vm0, %v10365_v13  ;;  %v73_v13 = vld [vmem:[%s25446_s0 + $0x1a0] sm:$0xff] }
  0x8c   :  { %13344 = vmatprep.mubr.msk.f32.mxu1 %vm16040_vm1, %v16039_v1 }
  0x8d   :  { %13162 = vmatmul.mubr.msk.f32.gmra.mxu0 %vm78_vm0, %v53_v14 }
  0x8e   :  { %13164 = vmatprep.mubr.msk.f32.mxu0 %vm16040_vm1, %v16039_v1 }
  0x8f   :  { %13345 = vmatmul.mubr.msk.f32.gmra.mxu1 %vm78_vm0, %v10366_v15 }
  0x90   :  { %13347 = vmatprep.mubr.msk.f32.mxu1 %vm16040_vm1, %v16039_v1 }
  0x91   :  { %13165 = vmatmul.mubr.msk.f32.gmra.mxu0 %vm78_vm0, %v54_v16 }
  0x92   :  { %13167 = vmatprep.mubr.msk.f32.mxu0 %vm16040_vm1, %v16039_v1 }
  0x93   :  { %13348 = vmatmul.mubr.msk.f32.gmra.mxu1 %vm78_vm0, %v10367_v17  ;;  %v10386_v17 = vld [vmem:[%s25446_s0 + $0x368] sm:$0xff] }
  0x94   :  { %13350 = vmatprep.mubr.msk.f32.mxu1 %vm16040_vm1, %v16039_v1 }
  0x95   :  { %13168 = vmatmul.mubr.msk.f32.gmra.mxu0 %vm78_vm0, %v55_v18 }
  0x96   :  { %13170 = vmatprep.mubr.msk.f32.mxu0 %vm16040_vm1, %v16039_v1 }
  0x97   :  { %13351 = vmatmul.mubr.msk.f32.gmra.mxu1 %vm78_vm0, %v10368_v19 }
  0x98   :  { %13353 = vmatprep.mubr.msk.f32.mxu1 %vm16040_vm1, %v16039_v1 }
  0x99   :  { %13171 = vmatmul.mubr.msk.f32.gmra.mxu0 %vm78_vm0, %v56_v20  ;;  %v74_v20 = vld [vmem:[%s25446_s0 + $0x1a8] sm:$0xff] }
  0x9a   :  { %13173 = vmatprep.mubr.msk.f32.mxu0 %vm16040_vm1, %v16039_v1 }
  0x9b   :  { %13354 = vmatmul.mubr.msk.f32.gmra.mxu1 %vm78_vm0, %v10369_v21 }
  0x9c   :  { %13356 = vmatprep.mubr.msk.f32.mxu1 %vm16040_vm1, %v16039_v1 }
  0x9d   :  { %13174 = vmatmul.mubr.msk.f32.gmra.mxu0 %vm78_vm0, %v57_v22 }
  0x9e   :  { %13176 = vmatprep.mubr.msk.f32.mxu0 %vm16040_vm1, %v16039_v1 }
  0x9f   :  { %13357 = vmatmul.mubr.msk.f32.gmra.mxu1 %vm78_vm0, %v10370_v23 }
  0xa0   :  { %13359 = vmatprep.mubr.msk.f32.mxu1 %vm16040_vm1, %v16039_v1 }
  0xa1   :  { %13177 = vmatmul.mubr.msk.f32.gmra.mxu0 %vm78_vm0, %v58_v24  ;;  %v10387_v24 = vld [vmem:[%s25446_s0 + $0x370] sm:$0xff] }
  0xa2   :  { %13179 = vmatprep.mubr.msk.f32.mxu0 %vm16040_vm1, %v16039_v1 }
  0xa3   :  { %13360 = vmatmul.mubr.msk.f32.gmra.mxu1 %vm78_vm0, %v10371_v25 }
  0xa4   :  { %13362 = vmatprep.mubr.msk.f32.mxu1 %vm16040_vm1, %v16039_v1 }
  0xa5   :  { %13180 = vmatmul.mubr.msk.f32.gmra.mxu0 %vm78_vm0, %v59_v26 }
  0xa6   :  { %13182 = vmatprep.mubr.msk.f32.mxu0 %vm16040_vm1, %v16039_v1 }
  0xa7   :  { %13363 = vmatmul.mubr.msk.f32.gmra.mxu1 %vm78_vm0, %v10372_v27  ;;  %v75_v27 = vld [vmem:[%s25446_s0 + $0x1b0] sm:$0xff] }
  0xa8   :  { %13365 = vmatprep.mubr.msk.f32.mxu1 %vm16040_vm1, %v16039_v1 }
  0xa9   :  { %13183 = vmatmul.mubr.msk.f32.gmra.mxu0 %vm78_vm0, %v60_v28 }
  0xaa   :  { %13185 = vmatprep.mubr.msk.f32.mxu0 %vm16040_vm1, %v16039_v1 }
  0xab   :  { %13366 = vmatmul.mubr.msk.f32.gmra.mxu1 %vm78_vm0, %v10373_v29 }
  0xac   :  { %13368 = vmatprep.mubr.msk.f32.mxu1 %vm16040_vm1, %v16039_v1 }
  0xad   :  { %13186 = vmatmul.mubr.msk.f32.gmra.mxu0 %vm78_vm0, %v61_v30 }
  0xae   :  { %13188 = vmatprep.mubr.msk.f32.mxu0 %vm16040_vm1, %v16039_v1 }
  0xaf   :  { %13369 = vmatmul.mubr.msk.f32.gmra.mxu1 %vm78_vm0, %v10374_v31  ;;  %v10388_v31 = vld [vmem:[%s25446_s0 + $0x378] sm:$0xff] }
  0xb0   :  { %13371 = vmatprep.mubr.msk.f32.mxu1 %vm16040_vm1, %v16039_v1 }
  0xb1   :  { %13189 = vmatmul.mubr.msk.f32.gmra.mxu0 %vm78_vm0, %v62_v32 }
  0xb2   :  { %13191 = vmatprep.mubr.msk.f32.mxu0 %vm16040_vm1, %v16039_v1 }
  0xb3   :  { %13372 = vmatmul.mubr.msk.f32.gmra.mxu1 %vm78_vm0, %v10375_v33 }
  0xb4   :  { %13374 = vmatprep.mubr.msk.f32.mxu1 %vm16040_vm1, %v16039_v1 }
  0xb5   :  { %13192 = vmatmul.mubr.msk.f32.gmra.mxu0 %vm78_vm0, %v63_v34  ;;  %v76_v34 = vld [vmem:[%s25446_s0 + $0x1b8] sm:$0xff] }
  0xb6   :  { %13194 = vmatprep.mubr.msk.f32.mxu0 %vm16040_vm1, %v16039_v1 }
  0xb7   :  { %13375 = vmatmul.mubr.msk.f32.gmra.mxu1 %vm78_vm0, %v10376_v35 }
  0xb8   :  { %13377 = vmatprep.mubr.msk.f32.mxu1 %vm16040_vm1, %v16039_v1 }
  0xb9   :  { %13195 = vmatmul.mubr.msk.f32.gmra.mxu0 %vm78_vm0, %v64_v36 }
  0xba   :  { %13197 = vmatprep.mubr.msk.f32.mxu0 %vm16040_vm1, %v16039_v1 }
  0xbb   :  { %13378 = vmatmul.mubr.msk.f32.gmra.mxu1 %vm78_vm0, %v10377_v37 }
  0xbc   :  { %13380 = vmatprep.mubr.msk.f32.mxu1 %vm16040_vm1, %v16039_v1 }
  0xbd   :  { %13198 = vmatmul.mubr.msk.f32.gmra.mxu0 %vm78_vm0, %v65_v38  ;;  %v10389_v38 = vld [vmem:[%s25446_s0 + $0x380] sm:$0xff] }
  0xbe   :  { %13200 = vmatprep.mubr.msk.f32.mxu0 %vm16040_vm1, %v16039_v1 }
  0xbf   :  { %13381 = vmatmul.mubr.msk.f32.gmra.mxu1 %vm78_vm0, %v10378_v39 }
  0xc0   :  { %13383 = vmatprep.mubr.msk.f32.mxu1 %vm16040_vm1, %v16039_v1 }
  0xc1   :  { %13201 = vmatmul.mubr.msk.f32.gmra.mxu0 %vm78_vm0, %v66_v40 }
  0xc2   :  { %13203 = vmatprep.mubr.msk.f32.mxu0 %vm16040_vm1, %v16039_v1 }
  0xc3   :  { %13384 = vmatmul.mubr.msk.f32.gmra.mxu1 %vm78_vm0, %v10379_v41  ;;  %v77_v41 = vld [vmem:[%s25446_s0 + $0x1c0] sm:$0xff] }
  0xc4   :  { %13386 = vmatprep.mubr.msk.f32.mxu1 %vm16040_vm1, %v16039_v1 }
  0xc5   :  { %13204 = vmatmul.mubr.msk.f32.gmra.mxu0 %vm78_vm0, %v67_v42 }
  0xc6   :  { %13206 = vmatprep.mubr.msk.f32.mxu0 %vm16040_vm1, %v16039_v1 }
  0xc7   :  { %13387 = vmatmul.mubr.msk.f32.gmra.mxu1 %vm78_vm0, %v10380_v43 }
  0xc8   :  { %13389 = vmatprep.mubr.msk.f32.mxu1 %vm16040_vm1, %v16039_v1 }
  0xc9   :  { %13207 = vmatmul.mubr.msk.f32.gmra.mxu0 %vm78_vm0, %v68_v44 }
  0xca   :  { %13209 = vmatprep.mubr.msk.f32.mxu0 %vm16040_vm1, %v16039_v1 }
  0xcb   :  { %13390 = vmatmul.mubr.msk.f32.gmra.mxu1 %vm78_vm0, %v10381_v45  ;;  %v10390_v45 = vld [vmem:[%s25446_s0 + $0x388] sm:$0xff] }
  0xcc   :  { %13392 = vmatprep.mubr.msk.f32.mxu1 %vm16040_vm1, %v16039_v1 }
  0xcd   :  { %v16730_v48 = vpop.f32.mrf.mxu0  ;;  %13210 = vmatmul.mubr.msk.f32.gmra.mxu0 %vm78_vm0, %v69_v46 }
  0xce   :  { %13212 = vmatprep.mubr.msk.f32.mxu0 %vm16040_vm1, %v16039_v1 }
  0xcf   :  { %v16738_v50 = vpop.f32.mrf.mxu1  ;;  %13393 = vmatmul.mubr.msk.f32.gmra.mxu1 %vm78_vm0, %v10382_v47  ;;  %v13067_v51 = vpop.f32.mrf.mxu0 }
  0xd0   :  { %13395 = vmatprep.mubr.msk.f32.mxu1 %vm16040_vm1, %v16039_v1 }
  0xd1   :  { %v13250_v54 = vpop.f32.mrf.mxu1  ;;  %v16748_v55 = vpop.f32.mrf.mxu0  ;;  %13213 = vmatmul.mubr.msk.f32.gmra.mxu0 %vm78_vm0, %v70_v49  ;;  %v10448_v49 = vld [vmem:[%s25446_s0 + $0x390] sm:$0xff] }
  0xd2   :  { %13215 = vmatprep.mubr.msk.f32.mxu0 %vm16040_vm1, %v16039_v1 }
  0xd3   :  { %v16756_v57 = vpop.f32.mrf.mxu1  ;;  %13396 = vmatmul.mubr.msk.f32.gmra.mxu1 %vm78_vm0, %v10383_v53  ;;  %v13070_v58 = vpop.f32.mrf.mxu0 }
  0xd4   :  { %13398 = vmatprep.mubr.msk.f32.mxu1 %vm16040_vm1, %v16039_v1 }
  0xd5   :  { %v13253_v61 = vpop.f32.mrf.mxu1  ;;  %v16766_v62 = vpop.f32.mrf.mxu0  ;;  %13216 = vmatmul.mubr.msk.f32.gmra.mxu0 %vm78_vm0, %v71_v56  ;;  %v10562_v56 = vld [vmem:[%s25446_s0 + $0x558] sm:$0xff] }
  0xd6   :  { %13218 = vmatprep.mubr.msk.f32.mxu0 %vm16040_vm1, %v16039_v1  ;;  %v10449_v61 = vld [vmem:[%s25446_s0 + $0x398] sm:$0xff] }
  0xd7   :  { %v16774_v7 = vpop.f32.mrf.mxu1  ;;  %13399 = vmatmul.mubr.msk.f32.gmra.mxu1 %vm78_vm0, %v10384_v60  ;;  %v13073_v8 = vpop.f32.mrf.mxu0 }
  0xd8   :  { %13401 = vmatprep.mubr.msk.f32.mxu1 %vm16040_vm1, %v16039_v1 }
  0xd9   :  { %v13256_v11 = vpop.f32.mrf.mxu1  ;;  %v16784_v12 = vpop.f32.mrf.mxu0  ;;  %13219 = vmatmul.mubr.msk.f32.gmra.mxu0 %vm78_vm0, %v72_v63 }
  0xda   :  { %13221 = vmatprep.mubr.msk.f32.mxu0 %vm16040_vm1, %v16039_v1  ;;  %v10563_v11 = vld [vmem:[%s25446_s0 + $0x560] sm:$0xff] }
  0xdb   :  { %v16792_v14 = vpop.f32.mrf.mxu1  ;;  %13402 = vmatmul.mubr.msk.f32.gmra.mxu1 %vm78_vm0, %v10385_v10  ;;  %v13076_v15 = vpop.f32.mrf.mxu0 }
  0xdc   :  { %13404 = vmatprep.mubr.msk.f32.mxu1 %vm16040_vm1, %v16039_v1 }
  0xdd   :  { %v13259_v18 = vpop.f32.mrf.mxu1  ;;  %v16802_v19 = vpop.f32.mrf.mxu0  ;;  %13222 = vmatmul.mubr.msk.f32.gmra.mxu0 %vm78_vm0, %v73_v13 }
  0xde   :  { %13224 = vmatprep.mubr.msk.f32.mxu0 %vm16040_vm1, %v16039_v1 }
  0xdf   :  { %v16810_v21 = vpop.f32.mrf.mxu1  ;;  %13405 = vmatmul.mubr.msk.f32.gmra.mxu1 %vm78_vm0, %v10386_v17  ;;  %v13079_v22 = vpop.f32.mrf.mxu0 }
  0xe0   :  { %13407 = vmatprep.mubr.msk.f32.mxu1 %vm16040_vm1, %v16039_v1  ;;  %v10564_v22 = vld [vmem:[%s25446_s0 + $0x568] sm:$0xff] }
  0xe1   :  { %v13262_v25 = vpop.f32.mrf.mxu1  ;;  %v16820_v26 = vpop.f32.mrf.mxu0  ;;  %13225 = vmatmul.mubr.msk.f32.gmra.mxu0 %vm78_vm0, %v74_v20 }
  0xe2   :  { %13227 = vmatprep.mubr.msk.f32.mxu0 %vm16040_vm1, %v16039_v1 }
  0xe3   :  { %v16828_v28 = vpop.f32.mrf.mxu1  ;;  %13408 = vmatmul.mubr.msk.f32.gmra.mxu1 %vm78_vm0, %v10387_v24  ;;  %v13082_v29 = vpop.f32.mrf.mxu0 }
  0xe4   :  { %13410 = vmatprep.mubr.msk.f32.mxu1 %vm16040_vm1, %v16039_v1 }
  0xe5   :  { %v13265_v32 = vpop.f32.mrf.mxu1  ;;  %v16838_v33 = vpop.f32.mrf.mxu0  ;;  %13228 = vmatmul.mubr.msk.f32.gmra.mxu0 %vm78_vm0, %v75_v27  ;;  %v10451_v27 = vld [vmem:[%s25446_s0 + $0x3a8] sm:$0xff] }
  0xe6   :  { %13230 = vmatprep.mubr.msk.f32.mxu0 %vm16040_vm1, %v16039_v1  ;;  %v10565_v32 = vld [vmem:[%s25446_s0 + $0x570] sm:$0xff] }
  0xe7   :  { %v16846_v35 = vpop.f32.mrf.mxu1  ;;  %13411 = vmatmul.mubr.msk.f32.gmra.mxu1 %vm78_vm0, %v10388_v31  ;;  %v13085_v36 = vpop.f32.mrf.mxu0 }
  0xe8   :  { %13413 = vmatprep.mubr.msk.f32.mxu1 %vm16040_vm1, %v16039_v1 }
  0xe9   :  { %v13268_v39 = vpop.f32.mrf.mxu1  ;;  %v16856_v40 = vpop.f32.mrf.mxu0  ;;  %13231 = vmatmul.mubr.msk.f32.gmra.mxu0 %vm78_vm0, %v76_v34 }
  0xea   :  { %13233 = vmatprep.mubr.msk.f32.mxu0 %vm16040_vm1, %v16039_v1 }
  0xeb   :  { %v16864_v42 = vpop.f32.mrf.mxu1  ;;  %13414 = vmatmul.mubr.msk.f32.gmra.mxu1 %vm78_vm0, %v10389_v38  ;;  %v13088_v43 = vpop.f32.mrf.mxu0  ;;  %v10452_v38 = vld [vmem:[%s25446_s0 + $0x3b0] sm:$0xff] }
  0xec   :  { %13416 = vmatprep.mubr.msk.f32.mxu1 %vm16040_vm1, %v16039_v1  ;;  %v10566_v43 = vld [vmem:[%s25446_s0 + $0x578] sm:$0xff] }
  0xed   :  { %v13271_v46 = vpop.f32.mrf.mxu1  ;;  %v16874_v47 = vpop.f32.mrf.mxu0  ;;  %13234 = vmatmul.mubr.msk.f32.gmra.mxu0 %vm78_vm0, %v77_v41 }
  0xee   :  { %13431 = vmatprep.mubr.msk.f32.mxu0 %vm16040_vm1, %v16039_v1 }
  0xef   :  { %v16882_v51 = vpop.f32.mrf.mxu1  ;;  %13417 = vmatmul.mubr.msk.f32.gmra.mxu1 %vm78_vm0, %v10390_v45  ;;  %v13091_v53 = vpop.f32.mrf.mxu0 }
  0xf0   :  { %13614 = vmatprep.mubr.msk.f32.mxu1 %vm16040_vm1, %v16039_v1 }
  0xf1   :  { %v13274_v58 = vpop.f32.mrf.mxu1  ;;  %v16892_v60 = vpop.f32.mrf.mxu0  ;;  %13432 = vmatmul.mubr.msk.f32.vlgmr.msra.gmra.mxu0 %vm78_vm0, %v10448_v49  ;;  %v10453_v49 = vld [vmem:[%s25446_s0 + $0x3b8] sm:$0xff] }
  0xf2   :  { %13786 = vmatpush3.msra.mxu0 %v16067_v0  ;;  %13434 = vmatprep.mubr.msk.f32.mxu0 %vm16040_vm1, %v16039_v1  ;;  %v10567_v58 = vld [vmem:[%s25446_s0 + $0x580] sm:$0xff] }
  0xf3   :  { %v16901_v63 = vpop.f32.mrf.mxu1  ;;  %13615 = vmatmul.mubr.msk.f32.vlgmr.msra.gmra.mxu1 %vm78_vm0, %v10562_v56  ;;  %v13094_v8 = vpop.f32.mrf.mxu0  ;;  %13787 = vmatprep.subr.mxu0 %v16039_v1 }
  0xf4   :  { %13969 = vmatpush3.msra.mxu1 %v16067_v0  ;;  %13617 = vmatprep.mubr.msk.f32.mxu1 %vm16040_vm1, %v16039_v1  ;;  %v10450_v0 = vld [vmem:[%s25446_s0 + $0x3a0] sm:$0xff] }
  0xf5   :  { %v13277_v13 = vpop.f32.mrf.mxu1  ;;  %v16913_v15 = vpop.f32.mrf.mxu0  ;;  %13435 = vmatmul.mubr.msk.f32.gmra.mxu0 %vm78_vm0, %v10449_v61  ;;  %13970 = vmatprep.subr.mxu1 %v16039_v1 }
  0xf6   :  { %13437 = vmatprep.mubr.msk.f32.mxu0 %vm16040_vm1, %v16039_v1  ;;  %13788 = vmatpush3.msra.mxu0 %v16074_v2 }
  0xf7   :  { %v16923_v17 = vpop.f32.mrf.mxu1  ;;  %13618 = vmatmul.mubr.msk.f32.gmra.mxu1 %vm78_vm0, %v10563_v11  ;;  %v13097_v18 = vpop.f32.mrf.mxu0  ;;  %13789 = vmatprep.subr.mxu0 %v16039_v1  ;;  %v10454_v11 = vld [vmem:[%s25446_s0 + $0x3c0] sm:$0xff] }
  0xf8   :  { %13620 = vmatprep.mubr.msk.f32.mxu1 %vm16040_vm1, %v16039_v1  ;;  %13971 = vmatpush3.msra.mxu1 %v16074_v2  ;;  %v10568_v18 = vld [vmem:[%s25446_s0 + $0x588] sm:$0xff] }
  0xf9   :  { %v13280_v24 = vpop.f32.mrf.mxu1  ;;  %v16935_v25 = vpop.f32.mrf.mxu0  ;;  %13438 = vmatmul.mubr.msk.f32.gmra.mxu0 %vm78_vm0, %v10450_v0  ;;  %13972 = vmatprep.subr.mxu1 %v16039_v1 }
  0xfa   :  { %13440 = vmatprep.mubr.msk.f32.mxu0 %vm16040_vm1, %v16039_v1  ;;  %13790 = vmatpush3.msra.mxu0 %v16083_v3 }
  0xfb   :  { %v16945_v29 = vpop.f32.mrf.mxu1  ;;  %13621 = vmatmul.mubr.msk.f32.gmra.mxu1 %vm78_vm0, %v10564_v22  ;;  %v13100_v2 = vpop.f32.mrf.mxu0  ;;  %13791 = vmatprep.subr.mxu0 %v16039_v1 }
  0xfc   :  { %13623 = vmatprep.mubr.msk.f32.mxu1 %vm16040_vm1, %v16039_v1  ;;  %13973 = vmatpush3.msra.mxu1 %v16083_v3 }
  0xfd   :  { %v13283_v34 = vpop.f32.mrf.mxu1  ;;  %v16957_v36 = vpop.f32.mrf.mxu0  ;;  %13441 = vmatmul.mubr.msk.f32.gmra.mxu0 %vm78_vm0, %v10451_v27  ;;  %13974 = vmatprep.subr.mxu1 %v16039_v1  ;;  %v10455_v27 = vld [vmem:[%s25446_s0 + $0x3c8] sm:$0xff] }
  0xfe   :  { %13443 = vmatprep.mubr.msk.f32.mxu0 %vm16040_vm1, %v16039_v1  ;;  %13792 = vmatpush3.msra.mxu0 %v16092_v4 }
  0xff   :  { %v16967_v39 = vpop.f32.mrf.mxu1  ;;  %13624 = vmatmul.mubr.msk.f32.gmra.mxu1 %vm78_vm0, %v10565_v32  ;;  %v13103_v3 = vpop.f32.mrf.mxu0  ;;  %13793 = vmatprep.subr.mxu0 %v16039_v1 }
 0x100   :  { %13626 = vmatprep.mubr.msk.f32.mxu1 %vm16040_vm1, %v16039_v1  ;;  %13975 = vmatpush3.msra.mxu1 %v16092_v4 }
 0x101   :  { %v13286_v45 = vpop.f32.mrf.mxu1  ;;  %v16979_v46 = vpop.f32.mrf.mxu0  ;;  %13444 = vmatmul.mubr.msk.f32.gmra.mxu0 %vm78_vm0, %v10452_v38  ;;  %13976 = vmatprep.subr.mxu1 %v16039_v1  ;;  %v10569_v38 = vld [vmem:[%s25446_s0 + $0x590] sm:$0xff] }
 0x102   :  { %13446 = vmatprep.mubr.msk.f32.mxu0 %vm16040_vm1, %v16039_v1  ;;  %13794 = vmatpush3.msra.mxu0 %v16101_v5  ;;  %v10456_v45 = vld [vmem:[%s25446_s0 + $0x3d0] sm:$0xff] }
 0x103   :  { %v16989_v53 = vpop.f32.mrf.mxu1  ;;  %13627 = vmatmul.mubr.msk.f32.gmra.mxu1 %vm78_vm0, %v10566_v43  ;;  %v13106_v4 = vpop.f32.mrf.mxu0  ;;  %13795 = vmatprep.subr.mxu0 %v16039_v1 }
 0x104   :  { %13629 = vmatprep.mubr.msk.f32.mxu1 %vm16040_vm1, %v16039_v1  ;;  %13977 = vmatpush3.msra.mxu1 %v16101_v5 }
 0x105   :  { %v13289_v61 = vpop.f32.mrf.mxu1  ;;  %v17001_v8 = vpop.f32.mrf.mxu0  ;;  %13447 = vmatmul.mubr.msk.f32.gmra.mxu0 %vm78_vm0, %v10453_v49  ;;  %13978 = vmatprep.subr.mxu1 %v16039_v1 }
 0x106   :  { %13449 = vmatprep.mubr.msk.f32.mxu0 %vm16040_vm1, %v16039_v1  ;;  %13796 = vmatpush3.msra.mxu0 %v16110_v6  ;;  %v15986_v6 = vld [vmem:[%s25447_s1] sm:$0xff]  ;;  %v10570_v61 = vld [vmem:[%s25446_s0 + $0x598] sm:$0xff] }
 0x107   :  { %v17011_v13 = vpop.f32.mrf.mxu1  ;;  %13630 = vmatmul.mubr.msk.f32.gmra.mxu1 %vm78_vm0, %v10567_v58  ;;  %v13109_v5 = vpop.f32.mrf.mxu0  ;;  %14151 = vmatprep.subr.mxu0 %v16039_v1 }
 0x108   :  { %13632 = vmatprep.mubr.msk.f32.mxu1 %vm16040_vm1, %v16039_v1  ;;  %13979 = vmatpush3.msra.mxu1 %v15986_v6 }
 0x109   :  { %v13292_v22 = vpop.f32.mrf.mxu1  ;;  %v17025_v24 = vpop.f32.mrf.mxu0  ;;  %13450 = vmatmul.mubr.msk.f32.gmra.mxu0 %vm78_vm0, %v10454_v11  ;;  %14334 = vmatprep.subr.mxu1 %v16039_v1 }
 0x10a   :  { %13452 = vmatprep.mubr.msk.f32.mxu0 %vm16040_vm1, %v16039_v1 }
 0x10b   :  { %v17034_v2 = vpop.f32.mrf.mxu1  ;;  %13633 = vmatmul.mubr.msk.f32.gmra.mxu1 %vm78_vm0, %v10568_v18  ;;  %v13112_v32 = vpop.f32.mrf.mxu0  ;;  %v10457_v18 = vld [vmem:[%s25446_s0 + $0x3d8] sm:$0xff] }
 0x10c   :  { %13635 = vmatprep.mubr.msk.f32.mxu1 %vm16040_vm1, %v16039_v1  ;;  %v10571_v32 = vld [vmem:[%s25446_s0 + $0x5a0] sm:$0xff] }
 0x10d   :  { %v13295_v3 = vpop.f32.mrf.mxu1  ;;  %v17044_v43 = vpop.f32.mrf.mxu0  ;;  %13453 = vmatmul.mubr.msk.f32.gmra.mxu0 %vm78_vm0, %v10455_v27 }
 0x10e   :  { %13455 = vmatprep.mubr.msk.f32.mxu0 %vm16040_vm1, %v16039_v1 }
 0x10f   :  { %v17052_v49 = vpop.f32.mrf.mxu1  ;;  %13636 = vmatmul.mubr.msk.f32.gmra.mxu1 %vm78_vm0, %v10569_v38  ;;  %v13115_v4 = vpop.f32.mrf.mxu0 }
 0x110   :  { %13638 = vmatprep.mubr.msk.f32.mxu1 %vm16040_vm1, %v16039_v1 }
 0x111   :  { %v13298_v11 = vpop.f32.mrf.mxu1  ;;  %v17062_v5 = vpop.f32.mrf.mxu0  ;;  %13456 = vmatmul.mubr.msk.f32.gmra.mxu0 %vm78_vm0, %v10456_v45  ;;  %v10458_v45 = vld [vmem:[%s25446_s0 + $0x3e0] sm:$0xff] }
 0x112   :  { %13458 = vmatprep.mubr.msk.f32.mxu0 %vm16040_vm1, %v16039_v1 }
 0x113   :  { %v17070_v6 = vpop.f32.mrf.mxu1  ;;  %13639 = vmatmul.mubr.msk.f32.gmra.mxu1 %vm78_vm0, %v10570_v61  ;;  %v13118_v22 = vpop.f32.mrf.mxu0 }
 0x114   :  { %13641 = vmatprep.mubr.msk.f32.mxu1 %vm16040_vm1, %v16039_v1 }
 0x115   :  { %v13301_v38 = vpop.f32.mrf.mxu1  ;;  %v17080_v3 = vpop.f32.mrf.mxu0  ;;  %13459 = vmatmul.mubr.msk.f32.gmra.mxu0 %vm78_vm0, %v10457_v18  ;;  %v10572_v18 = vld [vmem:[%s25446_s0 + $0x5a8] sm:$0xff] }
 0x116   :  { %13461 = vmatprep.mubr.msk.f32.mxu0 %vm16040_vm1, %v16039_v1 }
 0x117   :  { %v17088_v4 = vpop.f32.mrf.mxu1  ;;  %13642 = vmatmul.mubr.msk.f32.gmra.mxu1 %vm78_vm0, %v10571_v32  ;;  %v13121_v61 = vpop.f32.mrf.mxu0  ;;  %v10459_v32 = vld [vmem:[%s25446_s0 + $0x3e8] sm:$0xff] }
 0x118   :  { %13644 = vmatprep.mubr.msk.f32.mxu1 %vm16040_vm1, %v16039_v1 }
 0x119   :  { %v13304_v22 = vpop.f32.mrf.mxu1  ;;  %v17098_v38 = vpop.f32.mrf.mxu0  ;;  %13462 = vmatmul.mubr.msk.f32.gmra.mxu0 %vm78_vm0, %v10458_v45  ;;  %v10573_v45 = vld [vmem:[%s25446_s0 + $0x5b0] sm:$0xff] }
 0x11a   :  { %13464 = vmatprep.mubr.msk.f32.mxu0 %vm16040_vm1, %v16039_v1 }
 0x11b   :  { %v17106_v61 = vpop.f32.mrf.mxu1  ;;  %13645 = vmatmul.mubr.msk.f32.gmra.mxu1 %vm78_vm0, %v10572_v18  ;;  %v13124_v11 = vpop.f32.mrf.mxu0 }
 0x11c   :  { %13647 = vmatprep.mubr.msk.f32.mxu1 %vm16040_vm1, %v16039_v1  ;;  %v10460_v11 = vld [vmem:[%s25446_s0 + $0x3f0] sm:$0xff] }
 0x11d   :  { %v13307_v22 = vpop.f32.mrf.mxu1  ;;  %v17116_v58 = vpop.f32.mrf.mxu0  ;;  %13465 = vmatmul.mubr.msk.f32.gmra.mxu0 %vm78_vm0, %v10459_v32  ;;  %v10574_v32 = vld [vmem:[%s25446_s0 + $0x5b8] sm:$0xff] }
 0x11e   :  { %13467 = vmatprep.mubr.msk.f32.mxu0 %vm16040_vm1, %v16039_v1 }
 0x11f   :  { %v17124_v18 = vpop.f32.mrf.mxu1  ;;  %13648 = vmatmul.mubr.msk.f32.gmra.mxu1 %vm78_vm0, %v10573_v45  ;;  %v13127_v27 = vpop.f32.mrf.mxu0 }
 0x120   :  { %13650 = vmatprep.mubr.msk.f32.mxu1 %vm16040_vm1, %v16039_v1  ;;  %v10461_v27 = vld [vmem:[%s25446_s0 + $0x3f8] sm:$0xff] }
 0x121   :  { %v13310_v22 = vpop.f32.mrf.mxu1  ;;  %v17134_v0 = vpop.f32.mrf.mxu0  ;;  %13468 = vmatmul.mubr.msk.f32.gmra.mxu0 %vm78_vm0, %v10460_v11  ;;  %v10575_v11 = vld [vmem:[%s25446_s0 + $0x5c0] sm:$0xff] }
 0x122   :  { %13470 = vmatprep.mubr.msk.f32.mxu0 %vm16040_vm1, %v16039_v1 }
 0x123   :  { %v17142_v45 = vpop.f32.mrf.mxu1  ;;  %13651 = vmatmul.mubr.msk.f32.gmra.mxu1 %vm78_vm0, %v10574_v32  ;;  %v13130_v34 = vpop.f32.mrf.mxu0 }
 0x124   :  { %13653 = vmatprep.mubr.msk.f32.mxu1 %vm16040_vm1, %v16039_v1  ;;  %v10462_v34 = vld [vmem:[%s25446_s0 + $0x400] sm:$0xff] }
 0x125   :  { %v13313_v22 = vpop.f32.mrf.mxu1  ;;  %v17152_v41 = vpop.f32.mrf.mxu0  ;;  %13471 = vmatmul.mubr.msk.f32.gmra.mxu0 %vm78_vm0, %v10461_v27  ;;  %v10576_v27 = vld [vmem:[%s25446_s0 + $0x5c8] sm:$0xff] }
 0x126   :  { %13473 = vmatprep.mubr.msk.f32.mxu0 %vm16040_vm1, %v16039_v1 }
 0x127   :  { %v17160_v32 = vpop.f32.mrf.mxu1  ;;  %13654 = vmatmul.mubr.msk.f32.gmra.mxu1 %vm78_vm0, %v10575_v11  ;;  %v13133_v56 = vpop.f32.mrf.mxu0 }
 0x128   :  { %13656 = vmatprep.mubr.msk.f32.mxu1 %vm16040_vm1, %v16039_v1  ;;  %v10463_v56 = vld [vmem:[%s25446_s0 + $0x408] sm:$0xff] }
 0x129   :  { %v13316_v22 = vpop.f32.mrf.mxu1  ;;  %v17170_v20 = vpop.f32.mrf.mxu0  ;;  %13474 = vmatmul.mubr.msk.f32.gmra.mxu0 %vm78_vm0, %v10462_v34  ;;  %v10577_v34 = vld [vmem:[%s25446_s0 + $0x5d0] sm:$0xff] }
 0x12a   :  { %13476 = vmatprep.mubr.msk.f32.mxu0 %vm16040_vm1, %v16039_v1 }
 0x12b   :  { %v17178_v11 = vpop.f32.mrf.mxu1  ;;  %13657 = vmatmul.mubr.msk.f32.gmra.mxu1 %vm78_vm0, %v10576_v27  ;;  %v13136_v31 = vpop.f32.mrf.mxu0 }
 0x12c   :  { %13659 = vmatprep.mubr.msk.f32.mxu1 %vm16040_vm1, %v16039_v1  ;;  %v10464_v31 = vld [vmem:[%s25446_s0 + $0x410] sm:$0xff] }
 0x12d   :  { %v13319_v22 = vpop.f32.mrf.mxu1  ;;  %v17188_v54 = vpop.f32.mrf.mxu0  ;;  %13477 = vmatmul.mubr.msk.f32.gmra.mxu0 %vm78_vm0, %v10463_v56  ;;  %v10578_v56 = vld [vmem:[%s25446_s0 + $0x5d8] sm:$0xff] }
 0x12e   :  { %13479 = vmatprep.mubr.msk.f32.mxu0 %vm16040_vm1, %v16039_v1 }
 0x12f   :  { %v17196_v27 = vpop.f32.mrf.mxu1  ;;  %13660 = vmatmul.mubr.msk.f32.gmra.mxu1 %vm78_vm0, %v10577_v34  ;;  %v13139_v10 = vpop.f32.mrf.mxu0 }
 0x130   :  { %13662 = vmatprep.mubr.msk.f32.mxu1 %vm16040_vm1, %v16039_v1  ;;  %v10465_v10 = vld [vmem:[%s25446_s0 + $0x418] sm:$0xff] }
 0x131   :  { %v13322_v22 = vpop.f32.mrf.mxu1  ;;  %v17206_v37 = vpop.f32.mrf.mxu0  ;;  %13480 = vmatmul.mubr.msk.f32.gmra.mxu0 %vm78_vm0, %v10464_v31  ;;  %v10579_v31 = vld [vmem:[%s25446_s0 + $0x5e0] sm:$0xff] }
 0x132   :  { %13482 = vmatprep.mubr.msk.f32.mxu0 %vm16040_vm1, %v16039_v1 }
 0x133   :  { %v17214_v34 = vpop.f32.mrf.mxu1  ;;  %13663 = vmatmul.mubr.msk.f32.gmra.mxu1 %vm78_vm0, %v10578_v56  ;;  %v13142_v44 = vpop.f32.mrf.mxu0 }
 0x134   :  { %13665 = vmatprep.mubr.msk.f32.mxu1 %vm16040_vm1, %v16039_v1  ;;  %v10466_v44 = vld [vmem:[%s25446_s0 + $0x420] sm:$0xff] }
 0x135   :  { %v13325_v22 = vpop.f32.mrf.mxu1  ;;  %v17224_v23 = vpop.f32.mrf.mxu0  ;;  %13483 = vmatmul.mubr.msk.f32.gmra.mxu0 %vm78_vm0, %v10465_v10  ;;  %v10580_v10 = vld [vmem:[%s25446_s0 + $0x5e8] sm:$0xff] }
 0x136   :  { %25872 = vst [vmem:[#allocation5_spill] sm:$0xff] %v17224_v23  ;;  %13485 = vmatprep.mubr.msk.f32.mxu0 %vm16040_vm1, %v16039_v1 }
 0x137   :  { %v17232_v56 = vpop.f32.mrf.mxu1  ;;  %13666 = vmatmul.mubr.msk.f32.gmra.mxu1 %vm78_vm0, %v10579_v31  ;;  %v13145_v30 = vpop.f32.mrf.mxu0 }
 0x138   :  { %25873 = vst [vmem:[#allocation6_spill] sm:$0xff] %v17232_v56  ;;  %13668 = vmatprep.mubr.msk.f32.mxu1 %vm16040_vm1, %v16039_v1  ;;  %v10467_v30 = vld [vmem:[%s25446_s0 + $0x428] sm:$0xff]  ;;  %v25932_v56 = vmax.f32 %v16730_v48, %v16738_v50  ;;  %v10611_v48 = vld [vmem:[%s25446_s0 + $0x6e0] sm:$0xff] }
 0x139   :  { %v13328_v22 = vpop.f32.mrf.mxu1  ;;  %v17242_v9 = vpop.f32.mrf.mxu0  ;;  %13486 = vmatmul.mubr.msk.f32.gmra.mxu0 %vm78_vm0, %v10466_v44  ;;  %v10581_v44 = vld [vmem:[%s25446_s0 + $0x5f0] sm:$0xff] }
 0x13a   :  { %25874 = vst [vmem:[#allocation7_spill] sm:$0xff] %v17242_v9  ;;  %13488 = vmatprep.mubr.msk.f32.mxu0 %vm16040_vm1, %v16039_v1 }
 0x13b   :  { %v17250_v31 = vpop.f32.mrf.mxu1  ;;  %13669 = vmatmul.mubr.msk.f32.gmra.mxu1 %vm78_vm0, %v10580_v10  ;;  %v13148_v16 = vpop.f32.mrf.mxu0 }
 0x13c   :  { %25875 = vst [vmem:[#allocation8_spill] sm:$0xff] %v17250_v31  ;;  %13671 = vmatprep.mubr.msk.f32.mxu1 %vm16040_vm1, %v16039_v1  ;;  %v10468_v16 = vld [vmem:[%s25446_s0 + $0x430] sm:$0xff] }
 0x13d   :  { %v13331_v22 = vpop.f32.mrf.mxu1  ;;  %v17260_v52 = vpop.f32.mrf.mxu0  ;;  %13489 = vmatmul.mubr.msk.f32.gmra.mxu0 %vm78_vm0, %v10467_v30  ;;  %v10582_v30 = vld [vmem:[%s25446_s0 + $0x5f8] sm:$0xff] }
 0x13e   :  { %25876 = vst [vmem:[#allocation9_spill] sm:$0xff] %v17260_v52  ;;  %13491 = vmatprep.mubr.msk.f32.mxu0 %vm16040_vm1, %v16039_v1 }
 0x13f   :  { %v17268_v10 = vpop.f32.mrf.mxu1  ;;  %13672 = vmatmul.mubr.msk.f32.gmra.mxu1 %vm78_vm0, %v10581_v44  ;;  %v13151_v59 = vpop.f32.mrf.mxu0 }
 0x140   :  { %25877 = vst [vmem:[#allocation10_spill] sm:$0xff] %v17268_v10  ;;  %13674 = vmatprep.mubr.msk.f32.mxu1 %vm16040_vm1, %v16039_v1  ;;  %v10469_v59 = vld [vmem:[%s25446_s0 + $0x438] sm:$0xff] }
 0x141   :  { %v13334_v22 = vpop.f32.mrf.mxu1  ;;  %v17278_v9 = vpop.f32.mrf.mxu0  ;;  %13492 = vmatmul.mubr.msk.f32.gmra.mxu0 %vm78_vm0, %v10468_v16  ;;  %v10583_v16 = vld [vmem:[%s25446_s0 + $0x600] sm:$0xff] }
 0x142   :  { %25878 = vst [vmem:[#allocation11_spill] sm:$0xff] %v17278_v9  ;;  %13494 = vmatprep.mubr.msk.f32.mxu0 %vm16040_vm1, %v16039_v1 }
 0x143   :  { %v17286_v44 = vpop.f32.mrf.mxu1  ;;  %13675 = vmatmul.mubr.msk.f32.gmra.mxu1 %vm78_vm0, %v10582_v30  ;;  %v13154_v31 = vpop.f32.mrf.mxu0 }
 0x144   :  { %25879 = vst [vmem:[#allocation12_spill] sm:$0xff] %v17286_v44  ;;  %13677 = vmatprep.mubr.msk.f32.mxu1 %vm16040_vm1, %v16039_v1  ;;  %v10470_v31 = vld [vmem:[%s25446_s0 + $0x440] sm:$0xff] }
 0x145   :  { %v13337_v22 = vpop.f32.mrf.mxu1  ;;  %v17296_v52 = vpop.f32.mrf.mxu0  ;;  %13495 = vmatmul.mubr.msk.f32.gmra.mxu0 %vm78_vm0, %v10469_v59  ;;  %v10584_v59 = vld [vmem:[%s25446_s0 + $0x608] sm:$0xff] }
 0x146   :  { %25880 = vst [vmem:[#allocation13_spill] sm:$0xff] %v17296_v52  ;;  %13497 = vmatprep.mubr.msk.f32.mxu0 %vm16040_vm1, %v16039_v1 }
 0x147   :  { %v17304_v30 = vpop.f32.mrf.mxu1  ;;  %13678 = vmatmul.mubr.msk.f32.gmra.mxu1 %vm78_vm0, %v10583_v16  ;;  %v13157_v10 = vpop.f32.mrf.mxu0 }
 0x148   :  { %25881 = vst [vmem:[#allocation14_spill] sm:$0xff] %v17304_v30  ;;  %13680 = vmatprep.mubr.msk.f32.mxu1 %vm16040_vm1, %v16039_v1  ;;  %v10471_v10 = vld [vmem:[%s25446_s0 + $0x448] sm:$0xff] }
 0x149   :  { %v13340_v22 = vpop.f32.mrf.mxu1  ;;  %v17314_v9 = vpop.f32.mrf.mxu0  ;;  %13498 = vmatmul.mubr.msk.f32.gmra.mxu0 %vm78_vm0, %v10470_v31  ;;  %v10585_v31 = vld [vmem:[%s25446_s0 + $0x610] sm:$0xff] }
 0x14a   :  { %25882 = vst [vmem:[#allocation15_spill] sm:$0xff] %v17314_v9  ;;  %13500 = vmatprep.mubr.msk.f32.mxu0 %vm16040_vm1, %v16039_v1 }
 0x14b   :  { %v17322_v16 = vpop.f32.mrf.mxu1  ;;  %13681 = vmatmul.mubr.msk.f32.gmra.mxu1 %vm78_vm0, %v10584_v59  ;;  %v13160_v44 = vpop.f32.mrf.mxu0 }
 0x14c   :  { %25883 = vst [vmem:[#allocation16_spill] sm:$0xff] %v17322_v16  ;;  %13683 = vmatprep.mubr.msk.f32.mxu1 %vm16040_vm1, %v16039_v1  ;;  %v10472_v44 = vld [vmem:[%s25446_s0 + $0x450] sm:$0xff] }
 0x14d   :  { %v13343_v22 = vpop.f32.mrf.mxu1  ;;  %v17332_v52 = vpop.f32.mrf.mxu0  ;;  %13501 = vmatmul.mubr.msk.f32.gmra.mxu0 %vm78_vm0, %v10471_v10  ;;  %v10586_v10 = vld [vmem:[%s25446_s0 + $0x618] sm:$0xff] }
 0x14e   :  { %25884 = vst [vmem:[#allocation17_spill] sm:$0xff] %v17332_v52  ;;  %13503 = vmatprep.mubr.msk.f32.mxu0 %vm16040_vm1, %v16039_v1 }
 0x14f   :  { %v17340_v59 = vpop.f32.mrf.mxu1  ;;  %13684 = vmatmul.mubr.msk.f32.gmra.mxu1 %vm78_vm0, %v10585_v31  ;;  %v13163_v30 = vpop.f32.mrf.mxu0 }
 0x150   :  { %25885 = vst [vmem:[#allocation18_spill] sm:$0xff] %v17340_v59  ;;  %13686 = vmatprep.mubr.msk.f32.mxu1 %vm16040_vm1, %v16039_v1  ;;  %v10473_v30 = vld [vmem:[%s25446_s0 + $0x458] sm:$0xff] }
 0x151   :  { %v13346_v22 = vpop.f32.mrf.mxu1  ;;  %v17350_v9 = vpop.f32.mrf.mxu0  ;;  %13504 = vmatmul.mubr.msk.f32.gmra.mxu0 %vm78_vm0, %v10472_v44  ;;  %v10587_v44 = vld [vmem:[%s25446_s0 + $0x620] sm:$0xff] }
 0x152   :  { %25886 = vst [vmem:[#allocation19_spill] sm:$0xff] %v17350_v9  ;;  %13506 = vmatprep.mubr.msk.f32.mxu0 %vm16040_vm1, %v16039_v1 }
 0x153   :  { %v17358_v31 = vpop.f32.mrf.mxu1  ;;  %13687 = vmatmul.mubr.msk.f32.gmra.mxu1 %vm78_vm0, %v10586_v10  ;;  %v13166_v16 = vpop.f32.mrf.mxu0 }
 0x154   :  { %25887 = vst [vmem:[#allocation20_spill] sm:$0xff] %v17358_v31  ;;  %13689 = vmatprep.mubr.msk.f32.mxu1 %vm16040_vm1, %v16039_v1  ;;  %v10474_v16 = vld [vmem:[%s25446_s0 + $0x460] sm:$0xff] }
 0x155   :  { %v13349_v22 = vpop.f32.mrf.mxu1  ;;  %v17368_v52 = vpop.f32.mrf.mxu0  ;;  %13507 = vmatmul.mubr.msk.f32.gmra.mxu0 %vm78_vm0, %v10473_v30  ;;  %v10588_v30 = vld [vmem:[%s25446_s0 + $0x628] sm:$0xff] }
 0x156   :  { %25888 = vst [vmem:[#allocation21_spill] sm:$0xff] %v17368_v52  ;;  %13509 = vmatprep.mubr.msk.f32.mxu0 %vm16040_vm1, %v16039_v1 }
 0x157   :  { %v17376_v10 = vpop.f32.mrf.mxu1  ;;  %13690 = vmatmul.mubr.msk.f32.gmra.mxu1 %vm78_vm0, %v10587_v44  ;;  %v13169_v59 = vpop.f32.mrf.mxu0 }
 0x158   :  { %25889 = vst [vmem:[#allocation22_spill] sm:$0xff] %v17376_v10  ;;  %13692 = vmatprep.mubr.msk.f32.mxu1 %vm16040_vm1, %v16039_v1  ;;  %v10475_v59 = vld [vmem:[%s25446_s0 + $0x468] sm:$0xff] }
 0x159   :  { %v13352_v22 = vpop.f32.mrf.mxu1  ;;  %v17386_v9 = vpop.f32.mrf.mxu0  ;;  %13510 = vmatmul.mubr.msk.f32.gmra.mxu0 %vm78_vm0, %v10474_v16  ;;  %v10589_v16 = vld [vmem:[%s25446_s0 + $0x630] sm:$0xff] }
 0x15a   :  { %25890 = vst [vmem:[#allocation23_spill] sm:$0xff] %v17386_v9  ;;  %13512 = vmatprep.mubr.msk.f32.mxu0 %vm16040_vm1, %v16039_v1 }
 0x15b   :  { %v17394_v44 = vpop.f32.mrf.mxu1  ;;  %13693 = vmatmul.mubr.msk.f32.gmra.mxu1 %vm78_vm0, %v10588_v30  ;;  %v13172_v31 = vpop.f32.mrf.mxu0 }
 0x15c   :  { %25891 = vst [vmem:[#allocation24_spill] sm:$0xff] %v17394_v44  ;;  %13695 = vmatprep.mubr.msk.f32.mxu1 %vm16040_vm1, %v16039_v1  ;;  %v10476_v31 = vld [vmem:[%s25446_s0 + $0x470] sm:$0xff] }
 0x15d   :  { %v13355_v22 = vpop.f32.mrf.mxu1  ;;  %v17404_v52 = vpop.f32.mrf.mxu0  ;;  %13513 = vmatmul.mubr.msk.f32.gmra.mxu0 %vm78_vm0, %v10475_v59  ;;  %v10590_v59 = vld [vmem:[%s25446_s0 + $0x638] sm:$0xff] }
 0x15e   :  { %25892 = vst [vmem:[#allocation25_spill] sm:$0xff] %v17404_v52  ;;  %13515 = vmatprep.mubr.msk.f32.mxu0 %vm16040_vm1, %v16039_v1 }
 0x15f   :  { %v17412_v30 = vpop.f32.mrf.mxu1  ;;  %13696 = vmatmul.mubr.msk.f32.gmra.mxu1 %vm78_vm0, %v10589_v16  ;;  %v13175_v10 = vpop.f32.mrf.mxu0 }
 0x160   :  { %25893 = vst [vmem:[#allocation26_spill] sm:$0xff] %v17412_v30  ;;  %13698 = vmatprep.mubr.msk.f32.mxu1 %vm16040_vm1, %v16039_v1  ;;  %v10477_v10 = vld [vmem:[%s25446_s0 + $0x478] sm:$0xff] }
 0x161   :  { %v13358_v22 = vpop.f32.mrf.mxu1  ;;  %v17422_v9 = vpop.f32.mrf.mxu0  ;;  %13516 = vmatmul.mubr.msk.f32.gmra.mxu0 %vm78_vm0, %v10476_v31  ;;  %v10591_v31 = vld [vmem:[%s25446_s0 + $0x640] sm:$0xff] }
 0x162   :  { %25894 = vst [vmem:[#allocation27_spill] sm:$0xff] %v17422_v9  ;;  %13518 = vmatprep.mubr.msk.f32.mxu0 %vm16040_vm1, %v16039_v1 }
 0x163   :  { %v17430_v16 = vpop.f32.mrf.mxu1  ;;  %13699 = vmatmul.mubr.msk.f32.gmra.mxu1 %vm78_vm0, %v10590_v59  ;;  %v13178_v44 = vpop.f32.mrf.mxu0 }
 0x164   :  { %25895 = vst [vmem:[#allocation28_spill] sm:$0xff] %v17430_v16  ;;  %13701 = vmatprep.mubr.msk.f32.mxu1 %vm16040_vm1, %v16039_v1  ;;  %v10478_v44 = vld [vmem:[%s25446_s0 + $0x480] sm:$0xff] }
 0x165   :  { %v13361_v22 = vpop.f32.mrf.mxu1  ;;  %v17440_v52 = vpop.f32.mrf.mxu0  ;;  %13519 = vmatmul.mubr.msk.f32.gmra.mxu0 %vm78_vm0, %v10477_v10  ;;  %v10592_v10 = vld [vmem:[%s25446_s0 + $0x648] sm:$0xff] }
 0x166   :  { %25896 = vst [vmem:[#allocation29_spill] sm:$0xff] %v17440_v52  ;;  %13521 = vmatprep.mubr.msk.f32.mxu0 %vm16040_vm1, %v16039_v1 }
 0x167   :  { %v17448_v59 = vpop.f32.mrf.mxu1  ;;  %13702 = vmatmul.mubr.msk.f32.gmra.mxu1 %vm78_vm0, %v10591_v31  ;;  %v13181_v30 = vpop.f32.mrf.mxu0 }
 0x168   :  { %25897 = vst [vmem:[#allocation30_spill] sm:$0xff] %v17448_v59  ;;  %13704 = vmatprep.mubr.msk.f32.mxu1 %vm16040_vm1, %v16039_v1  ;;  %v10479_v30 = vld [vmem:[%s25446_s0 + $0x488] sm:$0xff] }
 0x169   :  { %v13364_v22 = vpop.f32.mrf.mxu1  ;;  %v17458_v9 = vpop.f32.mrf.mxu0  ;;  %13522 = vmatmul.mubr.msk.f32.gmra.mxu0 %vm78_vm0, %v10478_v44  ;;  %v10593_v44 = vld [vmem:[%s25446_s0 + $0x650] sm:$0xff] }
 0x16a   :  { %25898 = vst [vmem:[#allocation31_spill] sm:$0xff] %v17458_v9  ;;  %13524 = vmatprep.mubr.msk.f32.mxu0 %vm16040_vm1, %v16039_v1 }
 0x16b   :  { %v17466_v31 = vpop.f32.mrf.mxu1  ;;  %13705 = vmatmul.mubr.msk.f32.gmra.mxu1 %vm78_vm0, %v10592_v10  ;;  %v13184_v16 = vpop.f32.mrf.mxu0 }
 0x16c   :  { %25899 = vst [vmem:[#allocation32_spill] sm:$0xff] %v17466_v31  ;;  %13707 = vmatprep.mubr.msk.f32.mxu1 %vm16040_vm1, %v16039_v1  ;;  %v10480_v16 = vld [vmem:[%s25446_s0 + $0x490] sm:$0xff] }
 0x16d   :  { %v13367_v22 = vpop.f32.mrf.mxu1  ;;  %v17476_v52 = vpop.f32.mrf.mxu0  ;;  %13525 = vmatmul.mubr.msk.f32.gmra.mxu0 %vm78_vm0, %v10479_v30  ;;  %v10594_v30 = vld [vmem:[%s25446_s0 + $0x658] sm:$0xff] }
 0x16e   :  { %25900 = vst [vmem:[#allocation33_spill] sm:$0xff] %v17476_v52  ;;  %13527 = vmatprep.mubr.msk.f32.mxu0 %vm16040_vm1, %v16039_v1 }
 0x16f   :  { %v17484_v10 = vpop.f32.mrf.mxu1  ;;  %13708 = vmatmul.mubr.msk.f32.gmra.mxu1 %vm78_vm0, %v10593_v44  ;;  %v13187_v59 = vpop.f32.mrf.mxu0 }
 0x170   :  { %25901 = vst [vmem:[#allocation34_spill] sm:$0xff] %v17484_v10  ;;  %13710 = vmatprep.mubr.msk.f32.mxu1 %vm16040_vm1, %v16039_v1  ;;  %v10481_v59 = vld [vmem:[%s25446_s0 + $0x498] sm:$0xff] }
 0x171   :  { %v13370_v22 = vpop.f32.mrf.mxu1  ;;  %v17494_v9 = vpop.f32.mrf.mxu0  ;;  %13528 = vmatmul.mubr.msk.f32.gmra.mxu0 %vm78_vm0, %v10480_v16  ;;  %v10595_v16 = vld [vmem:[%s25446_s0 + $0x660] sm:$0xff] }
 0x172   :  { %25902 = vst [vmem:[#allocation35_spill] sm:$0xff] %v17494_v9  ;;  %13530 = vmatprep.mubr.msk.f32.mxu0 %vm16040_vm1, %v16039_v1 }
 0x173   :  { %v17502_v44 = vpop.f32.mrf.mxu1  ;;  %13711 = vmatmul.mubr.msk.f32.gmra.mxu1 %vm78_vm0, %v10594_v30  ;;  %v13190_v31 = vpop.f32.mrf.mxu0 }
 0x174   :  { %25903 = vst [vmem:[#allocation36_spill] sm:$0xff] %v17502_v44  ;;  %13713 = vmatprep.mubr.msk.f32.mxu1 %vm16040_vm1, %v16039_v1  ;;  %v10482_v31 = vld [vmem:[%s25446_s0 + $0x4a0] sm:$0xff] }
 0x175   :  { %v13373_v22 = vpop.f32.mrf.mxu1  ;;  %v17512_v52 = vpop.f32.mrf.mxu0  ;;  %13531 = vmatmul.mubr.msk.f32.gmra.mxu0 %vm78_vm0, %v10481_v59  ;;  %v10596_v59 = vld [vmem:[%s25446_s0 + $0x668] sm:$0xff] }
 0x176   :  { %25904 = vst [vmem:[#allocation37_spill] sm:$0xff] %v17512_v52  ;;  %13533 = vmatprep.mubr.msk.f32.mxu0 %vm16040_vm1, %v16039_v1 }
 0x177   :  { %v17520_v30 = vpop.f32.mrf.mxu1  ;;  %13714 = vmatmul.mubr.msk.f32.gmra.mxu1 %vm78_vm0, %v10595_v16  ;;  %v13193_v10 = vpop.f32.mrf.mxu0 }
 0x178   :  { %25905 = vst [vmem:[#allocation38_spill] sm:$0xff] %v17520_v30  ;;  %13716 = vmatprep.mubr.msk.f32.mxu1 %vm16040_vm1, %v16039_v1  ;;  %v10483_v10 = vld [vmem:[%s25446_s0 + $0x4a8] sm:$0xff] }
 0x179   :  { %v13376_v22 = vpop.f32.mrf.mxu1  ;;  %v17530_v9 = vpop.f32.mrf.mxu0  ;;  %13534 = vmatmul.mubr.msk.f32.gmra.mxu0 %vm78_vm0, %v10482_v31  ;;  %v10597_v31 = vld [vmem:[%s25446_s0 + $0x670] sm:$0xff] }
 0x17a   :  { %25906 = vst [vmem:[#allocation39_spill] sm:$0xff] %v17530_v9  ;;  %13536 = vmatprep.mubr.msk.f32.mxu0 %vm16040_vm1, %v16039_v1 }
 0x17b   :  { %v17538_v16 = vpop.f32.mrf.mxu1  ;;  %13717 = vmatmul.mubr.msk.f32.gmra.mxu1 %vm78_vm0, %v10596_v59  ;;  %v13196_v44 = vpop.f32.mrf.mxu0 }
 0x17c   :  { %25907 = vst [vmem:[#allocation40_spill] sm:$0xff] %v17538_v16  ;;  %13719 = vmatprep.mubr.msk.f32.mxu1 %vm16040_vm1, %v16039_v1  ;;  %v10484_v44 = vld [vmem:[%s25446_s0 + $0x4b0] sm:$0xff] }
 0x17d   :  { %v13379_v22 = vpop.f32.mrf.mxu1  ;;  %v17548_v52 = vpop.f32.mrf.mxu0  ;;  %13537 = vmatmul.mubr.msk.f32.gmra.mxu0 %vm78_vm0, %v10483_v10  ;;  %v10598_v10 = vld [vmem:[%s25446_s0 + $0x678] sm:$0xff] }
 0x17e   :  { %25908 = vst [vmem:[#allocation41_spill] sm:$0xff] %v17548_v52  ;;  %13539 = vmatprep.mubr.msk.f32.mxu0 %vm16040_vm1, %v16039_v1 }
 0x17f   :  { %v17556_v59 = vpop.f32.mrf.mxu1  ;;  %13720 = vmatmul.mubr.msk.f32.gmra.mxu1 %vm78_vm0, %v10597_v31  ;;  %v13199_v30 = vpop.f32.mrf.mxu0 }
 0x180   :  { %25909 = vst [vmem:[#allocation42_spill] sm:$0xff] %v17556_v59  ;;  %13722 = vmatprep.mubr.msk.f32.mxu1 %vm16040_vm1, %v16039_v1  ;;  %v10485_v30 = vld [vmem:[%s25446_s0 + $0x4b8] sm:$0xff] }
 0x181   :  { %v13382_v22 = vpop.f32.mrf.mxu1  ;;  %v17566_v9 = vpop.f32.mrf.mxu0  ;;  %13540 = vmatmul.mubr.msk.f32.gmra.mxu0 %vm78_vm0, %v10484_v44  ;;  %v10599_v44 = vld [vmem:[%s25446_s0 + $0x680] sm:$0xff] }
 0x182   :  { %25910 = vst [vmem:[#allocation43_spill] sm:$0xff] %v17566_v9  ;;  %13542 = vmatprep.mubr.msk.f32.mxu0 %vm16040_vm1, %v16039_v1 }
 0x183   :  { %v17574_v31 = vpop.f32.mrf.mxu1  ;;  %13723 = vmatmul.mubr.msk.f32.gmra.mxu1 %vm78_vm0, %v10598_v10  ;;  %v13202_v16 = vpop.f32.mrf.mxu0 }
 0x184   :  { %25911 = vst [vmem:[#allocation44_spill] sm:$0xff] %v17574_v31  ;;  %13725 = vmatprep.mubr.msk.f32.mxu1 %vm16040_vm1, %v16039_v1  ;;  %v10486_v16 = vld [vmem:[%s25446_s0 + $0x4c0] sm:$0xff] }
 0x185   :  { %v13385_v22 = vpop.f32.mrf.mxu1  ;;  %v17584_v52 = vpop.f32.mrf.mxu0  ;;  %13543 = vmatmul.mubr.msk.f32.gmra.mxu0 %vm78_vm0, %v10485_v30  ;;  %v10600_v30 = vld [vmem:[%s25446_s0 + $0x688] sm:$0xff] }
 0x186   :  { %25912 = vst [vmem:[#allocation45_spill] sm:$0xff] %v17584_v52  ;;  %13545 = vmatprep.mubr.msk.f32.mxu0 %vm16040_vm1, %v16039_v1 }
 0x187   :  { %v17592_v10 = vpop.f32.mrf.mxu1  ;;  %13726 = vmatmul.mubr.msk.f32.gmra.mxu1 %vm78_vm0, %v10599_v44  ;;  %v13205_v59 = vpop.f32.mrf.mxu0 }
 0x188   :  { %25913 = vst [vmem:[#allocation46_spill] sm:$0xff] %v17592_v10  ;;  %13728 = vmatprep.mubr.msk.f32.mxu1 %vm16040_vm1, %v16039_v1  ;;  %v10487_v59 = vld [vmem:[%s25446_s0 + $0x4c8] sm:$0xff] }
 0x189   :  { %v13388_v22 = vpop.f32.mrf.mxu1  ;;  %v17602_v9 = vpop.f32.mrf.mxu0  ;;  %13546 = vmatmul.mubr.msk.f32.gmra.mxu0 %vm78_vm0, %v10486_v16  ;;  %v10601_v16 = vld [vmem:[%s25446_s0 + $0x690] sm:$0xff] }
 0x18a   :  { %25914 = vst [vmem:[#allocation47_spill] sm:$0xff] %v17602_v9  ;;  %13548 = vmatprep.mubr.msk.f32.mxu0 %vm16040_vm1, %v16039_v1 }
 0x18b   :  { %v17610_v44 = vpop.f32.mrf.mxu1  ;;  %13729 = vmatmul.mubr.msk.f32.gmra.mxu1 %vm78_vm0, %v10600_v30  ;;  %v13208_v31 = vpop.f32.mrf.mxu0 }
 0x18c   :  { %25915 = vst [vmem:[#allocation48_spill] sm:$0xff] %v17610_v44  ;;  %13731 = vmatprep.mubr.msk.f32.mxu1 %vm16040_vm1, %v16039_v1  ;;  %v10488_v31 = vld [vmem:[%s25446_s0 + $0x4d0] sm:$0xff] }
 0x18d   :  { %v13391_v22 = vpop.f32.mrf.mxu1  ;;  %v17620_v52 = vpop.f32.mrf.mxu0  ;;  %13549 = vmatmul.mubr.msk.f32.gmra.mxu0 %vm78_vm0, %v10487_v59  ;;  %v10602_v59 = vld [vmem:[%s25446_s0 + $0x698] sm:$0xff] }
 0x18e   :  { %25916 = vst [vmem:[#allocation49_spill] sm:$0xff] %v17620_v52  ;;  %13551 = vmatprep.mubr.msk.f32.mxu0 %vm16040_vm1, %v16039_v1 }
 0x18f   :  { %v17628_v30 = vpop.f32.mrf.mxu1  ;;  %13732 = vmatmul.mubr.msk.f32.gmra.mxu1 %vm78_vm0, %v10601_v16  ;;  %v13211_v10 = vpop.f32.mrf.mxu0 }
 0x190   :  { %25917 = vst [vmem:[#allocation50_spill] sm:$0xff] %v17628_v30  ;;  %13734 = vmatprep.mubr.msk.f32.mxu1 %vm16040_vm1, %v16039_v1  ;;  %v10489_v10 = vld [vmem:[%s25446_s0 + $0x4d8] sm:$0xff] }
 0x191   :  { %v13394_v22 = vpop.f32.mrf.mxu1  ;;  %v17638_v9 = vpop.f32.mrf.mxu0  ;;  %13552 = vmatmul.mubr.msk.f32.gmra.mxu0 %vm78_vm0, %v10488_v31  ;;  %v10603_v31 = vld [vmem:[%s25446_s0 + $0x6a0] sm:$0xff] }
 0x192   :  { %25918 = vst [vmem:[#allocation51_spill] sm:$0xff] %v17638_v9  ;;  %13554 = vmatprep.mubr.msk.f32.mxu0 %vm16040_vm1, %v16039_v1 }
 0x193   :  { %v17646_v16 = vpop.f32.mrf.mxu1  ;;  %13735 = vmatmul.mubr.msk.f32.gmra.mxu1 %vm78_vm0, %v10602_v59  ;;  %v13214_v44 = vpop.f32.mrf.mxu0 }
 0x194   :  { %25919 = vst [vmem:[#allocation52_spill] sm:$0xff] %v17646_v16  ;;  %13737 = vmatprep.mubr.msk.f32.mxu1 %vm16040_vm1, %v16039_v1  ;;  %v10490_v44 = vld [vmem:[%s25446_s0 + $0x4e0] sm:$0xff] }
 0x195   :  { %v13397_v22 = vpop.f32.mrf.mxu1  ;;  %v17656_v52 = vpop.f32.mrf.mxu0  ;;  %13555 = vmatmul.mubr.msk.f32.gmra.mxu0 %vm78_vm0, %v10489_v10  ;;  %v10604_v10 = vld [vmem:[%s25446_s0 + $0x6a8] sm:$0xff] }
 0x196   :  { %25920 = vst [vmem:[#allocation53_spill] sm:$0xff] %v17656_v52  ;;  %13557 = vmatprep.mubr.msk.f32.mxu0 %vm16040_vm1, %v16039_v1 }
 0x197   :  { %v17664_v59 = vpop.f32.mrf.mxu1  ;;  %13738 = vmatmul.mubr.msk.f32.gmra.mxu1 %vm78_vm0, %v10603_v31  ;;  %v13217_v30 = vpop.f32.mrf.mxu0 }
 0x198   :  { %25921 = vst [vmem:[#allocation54_spill] sm:$0xff] %v17664_v59  ;;  %13740 = vmatprep.mubr.msk.f32.mxu1 %vm16040_vm1, %v16039_v1  ;;  %v10491_v30 = vld [vmem:[%s25446_s0 + $0x4e8] sm:$0xff] }
 0x199   :  { %v13400_v22 = vpop.f32.mrf.mxu1  ;;  %v17674_v9 = vpop.f32.mrf.mxu0  ;;  %13558 = vmatmul.mubr.msk.f32.gmra.mxu0 %vm78_vm0, %v10490_v44  ;;  %v10605_v44 = vld [vmem:[%s25446_s0 + $0x6b0] sm:$0xff] }
 0x19a   :  { %25922 = vst [vmem:[#allocation55_spill] sm:$0xff] %v17674_v9  ;;  %13560 = vmatprep.mubr.msk.f32.mxu0 %vm16040_vm1, %v16039_v1 }
 0x19b   :  { %v17682_v31 = vpop.f32.mrf.mxu1  ;;  %13741 = vmatmul.mubr.msk.f32.gmra.mxu1 %vm78_vm0, %v10604_v10  ;;  %v13220_v16 = vpop.f32.mrf.mxu0 }
 0x19c   :  { %25923 = vst [vmem:[#allocation56_spill] sm:$0xff] %v17682_v31  ;;  %13743 = vmatprep.mubr.msk.f32.mxu1 %vm16040_vm1, %v16039_v1  ;;  %v10492_v16 = vld [vmem:[%s25446_s0 + $0x4f0] sm:$0xff] }
 0x19d   :  { %v13403_v22 = vpop.f32.mrf.mxu1  ;;  %v17692_v52 = vpop.f32.mrf.mxu0  ;;  %13561 = vmatmul.mubr.msk.f32.gmra.mxu0 %vm78_vm0, %v10491_v30  ;;  %v10606_v30 = vld [vmem:[%s25446_s0 + $0x6b8] sm:$0xff] }
 0x19e   :  { %25924 = vst [vmem:[#allocation57_spill] sm:$0xff] %v17692_v52  ;;  %13563 = vmatprep.mubr.msk.f32.mxu0 %vm16040_vm1, %v16039_v1 }
 0x19f   :  { %v17700_v10 = vpop.f32.mrf.mxu1  ;;  %13744 = vmatmul.mubr.msk.f32.gmra.mxu1 %vm78_vm0, %v10605_v44  ;;  %v13223_v59 = vpop.f32.mrf.mxu0 }
 0x1a0   :  { %25925 = vst [vmem:[#allocation58_spill] sm:$0xff] %v17700_v10  ;;  %13746 = vmatprep.mubr.msk.f32.mxu1 %vm16040_vm1, %v16039_v1  ;;  %v10493_v59 = vld [vmem:[%s25446_s0 + $0x4f8] sm:$0xff] }
 0x1a1   :  { %v13406_v22 = vpop.f32.mrf.mxu1  ;;  %v17710_v9 = vpop.f32.mrf.mxu0  ;;  %13564 = vmatmul.mubr.msk.f32.gmra.mxu0 %vm78_vm0, %v10492_v16  ;;  %v10607_v16 = vld [vmem:[%s25446_s0 + $0x6c0] sm:$0xff] }
 0x1a2   :  { %25926 = vst [vmem:[#allocation59_spill] sm:$0xff] %v17710_v9  ;;  %13566 = vmatprep.mubr.msk.f32.mxu0 %vm16040_vm1, %v16039_v1 }
 0x1a3   :  { %v17718_v44 = vpop.f32.mrf.mxu1  ;;  %13747 = vmatmul.mubr.msk.f32.gmra.mxu1 %vm78_vm0, %v10606_v30  ;;  %v13226_v31 = vpop.f32.mrf.mxu0 }
 0x1a4   :  { %25927 = vst [vmem:[#allocation60_spill] sm:$0xff] %v17718_v44  ;;  %13749 = vmatprep.mubr.msk.f32.mxu1 %vm16040_vm1, %v16039_v1  ;;  %v10494_v31 = vld [vmem:[%s25446_s0 + $0x500] sm:$0xff] }
 0x1a5   :  { %v13409_v22 = vpop.f32.mrf.mxu1  ;;  %v17728_v52 = vpop.f32.mrf.mxu0  ;;  %13567 = vmatmul.mubr.msk.f32.gmra.mxu0 %vm78_vm0, %v10493_v59  ;;  %v10608_v59 = vld [vmem:[%s25446_s0 + $0x6c8] sm:$0xff] }
 0x1a6   :  { %25928 = vst [vmem:[#allocation61_spill] sm:$0xff] %v17728_v52  ;;  %13569 = vmatprep.mubr.msk.f32.mxu0 %vm16040_vm1, %v16039_v1 }
 0x1a7   :  { %v17736_v30 = vpop.f32.mrf.mxu1  ;;  %13750 = vmatmul.mubr.msk.f32.gmra.mxu1 %vm78_vm0, %v10607_v16  ;;  %v13229_v10 = vpop.f32.mrf.mxu0 }
 0x1a8   :  { %25929 = vst [vmem:[#allocation62_spill] sm:$0xff] %v17736_v30  ;;  %13752 = vmatprep.mubr.msk.f32.mxu1 %vm16040_vm1, %v16039_v1  ;;  %v10495_v10 = vld [vmem:[%s25446_s0 + $0x508] sm:$0xff] }
 0x1a9   :  { %v13412_v22 = vpop.f32.mrf.mxu1  ;;  %v17746_v9 = vpop.f32.mrf.mxu0  ;;  %13570 = vmatmul.mubr.msk.f32.gmra.mxu0 %vm78_vm0, %v10494_v31  ;;  %v10609_v31 = vld [vmem:[%s25446_s0 + $0x6d0] sm:$0xff] }
 0x1aa   :  { %25930 = vst [vmem:[#allocation63_spill] sm:$0xff] %v17746_v9  ;;  %13572 = vmatprep.mubr.msk.f32.mxu0 %vm16040_vm1, %v16039_v1 }
 0x1ab   :  { %v17754_v16 = vpop.f32.mrf.mxu1  ;;  %13753 = vmatmul.mubr.msk.f32.gmra.mxu1 %vm78_vm0, %v10608_v59  ;;  %v13232_v44 = vpop.f32.mrf.mxu0 }
 0x1ac   :  { %25931 = vst [vmem:[#allocation64_spill] sm:$0xff] %v17754_v16  ;;  %13755 = vmatprep.mubr.msk.f32.mxu1 %vm16040_vm1, %v16039_v1  ;;  %v10496_v44 = vld [vmem:[%s25446_s0 + $0x510] sm:$0xff] }
 0x1ad   :  { %v13415_v22 = vpop.f32.mrf.mxu1  ;;  %v17764_v52 = vpop.f32.mrf.mxu0  ;;  %13573 = vmatmul.mubr.msk.f32.gmra.mxu0 %vm78_vm0, %v10495_v10  ;;  %v10610_v10 = vld [vmem:[%s25446_s0 + $0x6d8] sm:$0xff] }
 0x1ae   :  { %13575 = vmatprep.mubr.msk.f32.mxu0 %vm16040_vm1, %v16039_v1 }
 0x1af   :  { %v17772_v59 = vpop.f32.mrf.mxu1  ;;  %13756 = vmatmul.mubr.msk.f32.gmra.mxu1 %vm78_vm0, %v10609_v31  ;;  %v13235_v30 = vpop.f32.mrf.mxu0 }
 0x1b0   :  { %13758 = vmatprep.mubr.msk.f32.mxu1 %vm16040_vm1, %v16039_v1  ;;  %v10497_v30 = vld [vmem:[%s25446_s0 + $0x518] sm:$0xff] }
 0x1b1   :  { %v13418_v22 = vpop.f32.mrf.mxu1  ;;  %v1531_v9 = vpop.f32.mrf.mxu0  ;;  %13576 = vmatmul.mubr.msk.f32.gmra.mxu0 %vm78_vm0, %v10496_v44 }
 0x1b2   :  { %v17786_v23 = vmax.f32 %v25932_v56, %v1531_v9  ;;  %13578 = vmatprep.mubr.msk.f32.mxu0 %vm16040_vm1, %v16039_v1  ;;  %v25933_v56 = vmax.f32 %v16748_v55, %v16756_v57  ;;  %v10612_v55 = vld [vmem:[%s25446_s0 + $0x6e8] sm:$0xff] }
 0x1b3   :  { %v17793_v31 = vpop.f32.mrf.mxu1  ;;  %13759 = vmatmul.mubr.msk.f32.gmra.mxu1 %vm78_vm0, %v10610_v10  ;;  %v13433_v22 = vpop.f32.mrf.mxu0  ;;  %v10498_v10 = vld [vmem:[%s25446_s0 + $0x520] sm:$0xff] }
 0x1b4   :  { %13761 = vmatprep.mubr.msk.f32.mxu1 %vm16040_vm1, %v16039_v1 }
 0x1b5   :  { %v13616_v50 = vpop.f32.mrf.mxu1  ;;  %v1536_v9 = vpop.f32.mrf.mxu0  ;;  %13579 = vmatmul.mubr.msk.f32.gmra.mxu0 %vm78_vm0, %v10497_v30 }
 0x1b6   :  { %v17807_v16 = vmax.f32 %v25933_v56, %v1536_v9  ;;  %13581 = vmatprep.mubr.msk.f32.mxu0 %vm16040_vm1, %v16039_v1  ;;  %v25934_v56 = vmax.f32 %v16766_v62, %v16774_v7  ;;  %v10613_v62 = vld [vmem:[%s25446_s0 + $0x6f0] sm:$0xff] }
 0x1b7   :  { %v17814_v22 = vpop.f32.mrf.mxu1  ;;  %13762 = vmatmul.mubr.msk.f32.gmra.mxu1 %vm78_vm0, %v10611_v48  ;;  %v13436_v50 = vpop.f32.mrf.mxu0  ;;  %v10499_v48 = vld [vmem:[%s25446_s0 + $0x528] sm:$0xff] }
 0x1b8   :  { %13764 = vmatprep.mubr.msk.f32.mxu1 %vm16040_vm1, %v16039_v1 }
 0x1b9   :  { %v13619_v57 = vpop.f32.mrf.mxu1  ;;  %v1541_v9 = vpop.f32.mrf.mxu0  ;;  %13582 = vmatmul.mubr.msk.f32.gmra.mxu0 %vm78_vm0, %v10498_v10 }
 0x1ba   :  { %v17828_v44 = vmax.f32 %v25934_v56, %v1541_v9  ;;  %13584 = vmatprep.mubr.msk.f32.mxu0 %vm16040_vm1, %v16039_v1  ;;  %v25935_v56 = vmax.f32 %v16784_v12, %v16792_v14  ;;  %v10614_v12 = vld [vmem:[%s25446_s0 + $0x6f8] sm:$0xff] }
 0x1bb   :  { %v17835_v50 = vpop.f32.mrf.mxu1  ;;  %13765 = vmatmul.mubr.msk.f32.gmra.mxu1 %vm78_vm0, %v10612_v55  ;;  %v13439_v57 = vpop.f32.mrf.mxu0  ;;  %v10500_v55 = vld [vmem:[%s25446_s0 + $0x530] sm:$0xff] }
 0x1bc   :  { %13767 = vmatprep.mubr.msk.f32.mxu1 %vm16040_vm1, %v16039_v1 }
 0x1bd   :  { %v13622_v7 = vpop.f32.mrf.mxu1  ;;  %v1546_v9 = vpop.f32.mrf.mxu0  ;;  %13585 = vmatmul.mubr.msk.f32.gmra.mxu0 %vm78_vm0, %v10499_v48 }
 0x1be   :  { %v17849_v30 = vmax.f32 %v25935_v56, %v1546_v9  ;;  %13587 = vmatprep.mubr.msk.f32.mxu0 %vm16040_vm1, %v16039_v1  ;;  %v25936_v56 = vmax.f32 %v16802_v19, %v16810_v21  ;;  %v10615_v19 = vld [vmem:[%s25446_s0 + $0x700] sm:$0xff] }
 0x1bf   :  { %v17856_v57 = vpop.f32.mrf.mxu1  ;;  %13768 = vmatmul.mubr.msk.f32.gmra.mxu1 %vm78_vm0, %v10613_v62  ;;  %v13442_v7 = vpop.f32.mrf.mxu0  ;;  %v10501_v62 = vld [vmem:[%s25446_s0 + $0x538] sm:$0xff] }
 0x1c0   :  { %13770 = vmatprep.mubr.msk.f32.mxu1 %vm16040_vm1, %v16039_v1 }
 0x1c1   :  { %v13625_v14 = vpop.f32.mrf.mxu1  ;;  %v1551_v9 = vpop.f32.mrf.mxu0  ;;  %13588 = vmatmul.mubr.msk.f32.gmra.mxu0 %vm78_vm0, %v10500_v55 }
 0x1c2   :  { %v17870_v10 = vmax.f32 %v25936_v56, %v1551_v9  ;;  %13590 = vmatprep.mubr.msk.f32.mxu0 %vm16040_vm1, %v16039_v1  ;;  %v25937_v56 = vmax.f32 %v16820_v26, %v16828_v28  ;;  %v10616_v26 = vld [vmem:[%s25446_s0 + $0x708] sm:$0xff] }
 0x1c3   :  { %v17877_v7 = vpop.f32.mrf.mxu1  ;;  %13771 = vmatmul.mubr.msk.f32.gmra.mxu1 %vm78_vm0, %v10614_v12  ;;  %v13445_v14 = vpop.f32.mrf.mxu0  ;;  %v10502_v12 = vld [vmem:[%s25446_s0 + $0x540] sm:$0xff] }
 0x1c4   :  { %13773 = vmatprep.mubr.msk.f32.mxu1 %vm16040_vm1, %v16039_v1 }
 0x1c5   :  { %v13628_v21 = vpop.f32.mrf.mxu1  ;;  %v1556_v9 = vpop.f32.mrf.mxu0  ;;  %13591 = vmatmul.mubr.msk.f32.gmra.mxu0 %vm78_vm0, %v10501_v62 }
 0x1c6   :  { %v17891_v48 = vmax.f32 %v25937_v56, %v1556_v9  ;;  %13593 = vmatprep.mubr.msk.f32.mxu0 %vm16040_vm1, %v16039_v1  ;;  %v25938_v56 = vmax.f32 %v16838_v33, %v16846_v35  ;;  %v10617_v33 = vld [vmem:[%s25446_s0 + $0x710] sm:$0xff] }
 0x1c7   :  { %v17898_v14 = vpop.f32.mrf.mxu1  ;;  %13774 = vmatmul.mubr.msk.f32.gmra.mxu1 %vm78_vm0, %v10615_v19  ;;  %v13448_v21 = vpop.f32.mrf.mxu0  ;;  %v10503_v19 = vld [vmem:[%s25446_s0 + $0x548] sm:$0xff] }
 0x1c8   :  { %13776 = vmatprep.mubr.msk.f32.mxu1 %vm16040_vm1, %v16039_v1 }
 0x1c9   :  { %v13631_v28 = vpop.f32.mrf.mxu1  ;;  %v1561_v9 = vpop.f32.mrf.mxu0  ;;  %13594 = vmatmul.mubr.msk.f32.gmra.mxu0 %vm78_vm0, %v10502_v12 }
 0x1ca   :  { %v17912_v55 = vmax.f32 %v25938_v56, %v1561_v9  ;;  %13596 = vmatprep.mubr.msk.f32.mxu0 %vm16040_vm1, %v16039_v1  ;;  %v25939_v56 = vmax.f32 %v16856_v40, %v16864_v42  ;;  %v10618_v40 = vld [vmem:[%s25446_s0 + $0x718] sm:$0xff] }
 0x1cb   :  { %v17919_v21 = vpop.f32.mrf.mxu1  ;;  %13777 = vmatmul.mubr.msk.f32.gmra.mxu1 %vm78_vm0, %v10616_v26  ;;  %v13451_v28 = vpop.f32.mrf.mxu0  ;;  %v10504_v26 = vld [vmem:[%s25446_s0 + $0x550] sm:$0xff] }
 0x1cc   :  { %13779 = vmatprep.mubr.msk.f32.mxu1 %vm16040_vm1, %v16039_v1 }
 0x1cd   :  { %v13634_v35 = vpop.f32.mrf.mxu1  ;;  %v1566_v9 = vpop.f32.mrf.mxu0  ;;  %13597 = vmatmul.mubr.msk.f32.gmra.mxu0 %vm78_vm0, %v10503_v19 }
 0x1ce   :  { %v17933_v62 = vmax.f32 %v25939_v56, %v1566_v9  ;;  %13599 = vmatprep.mubr.msk.f32.mxu0 %vm16040_vm1, %v16039_v1  ;;  %v25940_v56 = vmax.f32 %v16874_v47, %v16882_v51  ;;  %v10790_v47 = vld [vmem:[%s25446_s0 + $0x8e8] sm:$0xff] }
 0x1cf   :  { %v17940_v28 = vpop.f32.mrf.mxu1  ;;  %13780 = vmatmul.mubr.msk.f32.gmra.mxu1 %vm78_vm0, %v10617_v33  ;;  %v13454_v35 = vpop.f32.mrf.mxu0  ;;  %v10676_v33 = vld [vmem:[%s25446_s0 + $0x720] sm:$0xff] }
 0x1d0   :  { %13782 = vmatprep.mubr.msk.f32.mxu1 %vm16040_vm1, %v16039_v1 }
 0x1d1   :  { %v13637_v42 = vpop.f32.mrf.mxu1  ;;  %v1571_v9 = vpop.f32.mrf.mxu0  ;;  %13600 = vmatmul.mubr.msk.f32.gmra.mxu0 %vm78_vm0, %v10504_v26 }
 0x1d2   :  { %v17954_v12 = vmax.f32 %v25940_v56, %v1571_v9  ;;  %13797 = vmatprep.mubr.msk.f32.mxu0 %vm16040_vm1, %v16039_v1  ;;  %v25941_v56 = vmax.f32 %v16892_v60, %v16901_v63  ;;  %v10791_v63 = vld [vmem:[%s25446_s0 + $0x8f0] sm:$0xff] }
 0x1d3   :  { %v17961_v35 = vpop.f32.mrf.mxu1  ;;  %13783 = vmatmul.mubr.msk.f32.gmra.mxu1 %vm78_vm0, %v10618_v40  ;;  %v13457_v42 = vpop.f32.mrf.mxu0  ;;  %v15987_v40 = vld [vmem:[%s25447_s1 + $0x28] sm:$0xff] }
 0x1d4   :  { %13980 = vmatprep.mubr.msk.f32.mxu1 %vm16040_vm1, %v16039_v1  ;;  %v10677_v42 = vld [vmem:[%s25446_s0 + $0x728] sm:$0xff] }
 0x1d5   :  { %v13640_v51 = vpop.f32.mrf.mxu1  ;;  %v1576_v9 = vpop.f32.mrf.mxu0  ;;  %13798 = vmatmul.mubr.msk.f32.vlgmr.msra.gmra.mxu0 %vm78_vm0, %v10676_v33 }
 0x1d6   :  { %v17975_v19 = vmax.f32 %v25941_v56, %v1576_v9  ;;  %14152 = vmatpush3.msra.mxu0 %v15987_v40  ;;  %13800 = vmatprep.mubr.msk.f32.mxu0 %vm16040_vm1, %v16039_v1 }
 0x1d7   :  { %v17985_v51 = vpop.f32.mrf.mxu1  ;;  %13981 = vmatmul.mubr.msk.f32.vlgmr.msra.gmra.mxu1 %vm78_vm0, %v10790_v47  ;;  %v13460_v33 = vpop.f32.mrf.mxu0  ;;  %14153 = vmatprep.subr.mxu0 %v16039_v1  ;;  %v25942_v47 = vmax.f32 %v16913_v15, %v16923_v17  ;;  %v10792_v17 = vld [vmem:[%s25446_s0 + $0x8f8] sm:$0xff] }
 0x1d8   :  { %14335 = vmatpush3.msra.mxu1 %v15987_v40  ;;  %13983 = vmatprep.mubr.msk.f32.mxu1 %vm16040_vm1, %v16039_v1  ;;  %v10678_v40 = vld [vmem:[%s25446_s0 + $0x730] sm:$0xff]  ;;  %v10679_v15 = vld [vmem:[%s25446_s0 + $0x738] sm:$0xff] }
 0x1d9   :  { %v13643_v9 = vpop.f32.mrf.mxu1  ;;  %v1581_v56 = vpop.f32.mrf.mxu0  ;;  %13801 = vmatmul.mubr.msk.f32.gmra.mxu0 %vm78_vm0, %v10677_v42  ;;  %14336 = vmatprep.subr.mxu1 %v16039_v1 }
 0x1da   :  { %v18001_v33 = vmax.f32 %v25942_v47, %v1581_v56  ;;  %13803 = vmatprep.mubr.msk.f32.mxu0 %vm16040_vm1, %v16039_v1  ;;  %v15988_v9 = vld [vmem:[%s25447_s1 + $0x20] sm:$0xff] }
 0x1db   :  { %14154 = vmatpush3.msra.mxu0 %v15988_v9  ;;  %v18011_v42 = vpop.f32.mrf.mxu1  ;;  %13984 = vmatmul.mubr.msk.f32.gmra.mxu1 %vm78_vm0, %v10791_v63  ;;  %v13463_v60 = vpop.f32.mrf.mxu0 }
 0x1dc   :  { %14155 = vmatprep.subr.mxu0 %v16039_v1  ;;  %13986 = vmatprep.mubr.msk.f32.mxu1 %vm16040_vm1, %v16039_v1  ;;  %v25943_v60 = vmax.f32 %v16935_v25, %v16945_v29  ;;  %v10793_v29 = vld [vmem:[%s25446_s0 + $0x900] sm:$0xff] }
 0x1dd   :  { %14337 = vmatpush3.msra.mxu1 %v15988_v9  ;;  %v13646_v56 = vpop.f32.mrf.mxu1  ;;  %v1586_v47 = vpop.f32.mrf.mxu0  ;;  %13804 = vmatmul.mubr.msk.f32.gmra.mxu0 %vm78_vm0, %v10678_v40  ;;  %v15989_v9 = vld [vmem:[%s25447_s1 + $0x18] sm:$0xff]  ;;  %v10680_v25 = vld [vmem:[%s25446_s0 + $0x740] sm:$0xff] }
 0x1de   :  { %14338 = vmatprep.subr.mxu1 %v16039_v1  ;;  %v18027_v63 = vmax.f32 %v25943_v60, %v1586_v47  ;;  %13806 = vmatprep.mubr.msk.f32.mxu0 %vm16040_vm1, %v16039_v1 }
 0x1df   :  { %14156 = vmatpush3.msra.mxu0 %v15989_v9  ;;  %v18037_v40 = vpop.f32.mrf.mxu1  ;;  %13987 = vmatmul.mubr.msk.f32.gmra.mxu1 %vm78_vm0, %v10792_v17  ;;  %v13466_v56 = vpop.f32.mrf.mxu0  ;;  %v25944_v17 = vmax.f32 %v16957_v36, %v16967_v39  ;;  %v10794_v39 = vld [vmem:[%s25446_s0 + $0x908] sm:$0xff] }
 0x1e0   :  { %14157 = vmatprep.subr.mxu0 %v16039_v1  ;;  %13989 = vmatprep.mubr.msk.f32.mxu1 %vm16040_vm1, %v16039_v1  ;;  %v10681_v36 = vld [vmem:[%s25446_s0 + $0x748] sm:$0xff] }
 0x1e1   :  { %14339 = vmatpush3.msra.mxu1 %v15989_v9  ;;  %v13649_v47 = vpop.f32.mrf.mxu1  ;;  %v1591_v60 = vpop.f32.mrf.mxu0  ;;  %13807 = vmatmul.mubr.msk.f32.gmra.mxu0 %vm78_vm0, %v10679_v15  ;;  %v15990_v9 = vld [vmem:[%s25447_s1 + $0x10] sm:$0xff] }
 0x1e2   :  { %14340 = vmatprep.subr.mxu1 %v16039_v1  ;;  %v18053_v56 = vmax.f32 %v25944_v17, %v1591_v60  ;;  %13809 = vmatprep.mubr.msk.f32.mxu0 %vm16040_vm1, %v16039_v1 }
 0x1e3   :  { %14158 = vmatpush3.msra.mxu0 %v15990_v9  ;;  %v18063_v15 = vpop.f32.mrf.mxu1  ;;  %13990 = vmatmul.mubr.msk.f32.gmra.mxu1 %vm78_vm0, %v10793_v29  ;;  %v13469_v47 = vpop.f32.mrf.mxu0  ;;  %v25945_v29 = vmax.f32 %v16979_v46, %v16989_v53  ;;  %v10795_v53 = vld [vmem:[%s25446_s0 + $0x910] sm:$0xff] }
 0x1e4   :  { %14159 = vmatprep.subr.mxu0 %v16039_v1  ;;  %13992 = vmatprep.mubr.msk.f32.mxu1 %vm16040_vm1, %v16039_v1  ;;  %v10682_v46 = vld [vmem:[%s25446_s0 + $0x750] sm:$0xff] }
 0x1e5   :  { %14341 = vmatpush3.msra.mxu1 %v15990_v9  ;;  %v13652_v60 = vpop.f32.mrf.mxu1  ;;  %v1596_v17 = vpop.f32.mrf.mxu0  ;;  %13810 = vmatmul.mubr.msk.f32.gmra.mxu0 %vm78_vm0, %v10680_v25  ;;  %v15991_v9 = vld [vmem:[%s25447_s1 + $0x8] sm:$0xff] }
 0x1e6   :  { %14342 = vmatprep.subr.mxu1 %v16039_v1  ;;  %v18079_v47 = vmax.f32 %v25945_v29, %v1596_v17  ;;  %13812 = vmatprep.mubr.msk.f32.mxu0 %vm16040_vm1, %v16039_v1 }
 0x1e7   :  { %14160 = vmatpush3.msra.mxu0 %v15991_v9  ;;  %v18089_v25 = vpop.f32.mrf.mxu1  ;;  %13993 = vmatmul.mubr.msk.f32.gmra.mxu1 %vm78_vm0, %v10794_v39  ;;  %v13472_v60 = vpop.f32.mrf.mxu0  ;;  %v25946_v39 = vmax.f32 %v17001_v8, %v17011_v13  ;;  %v10796_v13 = vld [vmem:[%s25446_s0 + $0x918] sm:$0xff] }
 0x1e8   :  { %14161 = vmatprep.subr.mxu0 %v16039_v1  ;;  %13995 = vmatprep.mubr.msk.f32.mxu1 %vm16040_vm1, %v16039_v1  ;;  %v10683_v8 = vld [vmem:[%s25446_s0 + $0x758] sm:$0xff] }
 0x1e9   :  { %14343 = vmatpush3.msra.mxu1 %v15991_v9  ;;  %v13655_v17 = vpop.f32.mrf.mxu1  ;;  %v1601_v29 = vpop.f32.mrf.mxu0  ;;  %13813 = vmatmul.mubr.msk.f32.gmra.mxu0 %vm78_vm0, %v10681_v36  ;;  %v15992_v9 = vld [vmem:[%s25447_s1] sm:$0xff] }
 0x1ea   :  { %14344 = vmatprep.subr.mxu1 %v16039_v1  ;;  %v18105_v60 = vmax.f32 %v25946_v39, %v1601_v29  ;;  %13815 = vmatprep.mubr.msk.f32.mxu0 %vm16040_vm1, %v16039_v1 }
 0x1eb   :  { %14162 = vmatpush3.msra.mxu0 %v15992_v9  ;;  %v18115_v36 = vpop.f32.mrf.mxu1  ;;  %13996 = vmatmul.mubr.msk.f32.gmra.mxu1 %vm78_vm0, %v10795_v53  ;;  %v13475_v17 = vpop.f32.mrf.mxu0  ;;  %v25947_v53 = vmax.f32 %v17025_v24, %v17034_v2  ;;  %v10797_v24 = vld [vmem:[%s25446_s0 + $0x920] sm:$0xff] }
 0x1ec   :  { %14517 = vmatprep.subr.mxu0 %v16039_v1  ;;  %13998 = vmatprep.mubr.msk.f32.mxu1 %vm16040_vm1, %v16039_v1 }
 0x1ed   :  { %14345 = vmatpush3.msra.mxu1 %v15992_v9  ;;  %v13658_v29 = vpop.f32.mrf.mxu1  ;;  %v1606_v39 = vpop.f32.mrf.mxu0  ;;  %13816 = vmatmul.mubr.msk.f32.gmra.mxu0 %vm78_vm0, %v10682_v46 }
 0x1ee   :  { %14700 = vmatprep.subr.mxu1 %v16039_v1  ;;  %v18131_v17 = vmax.f32 %v25947_v53, %v1606_v39  ;;  %13818 = vmatprep.mubr.msk.f32.mxu0 %vm16040_vm1, %v16039_v1  ;;  %v25948_v39 = vmax.f32 %v17044_v43, %v17052_v49  ;;  %v10798_v43 = vld [vmem:[%s25446_s0 + $0x928] sm:$0xff] }
 0x1ef   :  { %v18138_v26 = vpop.f32.mrf.mxu1  ;;  %13999 = vmatmul.mubr.msk.f32.gmra.mxu1 %vm78_vm0, %v10796_v13  ;;  %v13478_v9 = vpop.f32.mrf.mxu0  ;;  %v10684_v13 = vld [vmem:[%s25446_s0 + $0x760] sm:$0xff] }
 0x1f0   :  { %14001 = vmatprep.mubr.msk.f32.mxu1 %vm16040_vm1, %v16039_v1 }
 0x1f1   :  { %v13661_v2 = vpop.f32.mrf.mxu1  ;;  %v1611_v29 = vpop.f32.mrf.mxu0  ;;  %13819 = vmatmul.mubr.msk.f32.gmra.mxu0 %vm78_vm0, %v10683_v8 }
 0x1f2   :  { %v18152_v53 = vmax.f32 %v25948_v39, %v1611_v29  ;;  %13821 = vmatprep.mubr.msk.f32.mxu0 %vm16040_vm1, %v16039_v1  ;;  %v25949_v39 = vmax.f32 %v17062_v5, %v17070_v6  ;;  %v10799_v5 = vld [vmem:[%s25446_s0 + $0x930] sm:$0xff] }
 0x1f3   :  { %v18159_v9 = vpop.f32.mrf.mxu1  ;;  %14002 = vmatmul.mubr.msk.f32.gmra.mxu1 %vm78_vm0, %v10797_v24  ;;  %v13481_v2 = vpop.f32.mrf.mxu0  ;;  %v10685_v24 = vld [vmem:[%s25446_s0 + $0x768] sm:$0xff] }
 0x1f4   :  { %14004 = vmatprep.mubr.msk.f32.mxu1 %vm16040_vm1, %v16039_v1 }
 0x1f5   :  { %v13664_v49 = vpop.f32.mrf.mxu1  ;;  %v1616_v29 = vpop.f32.mrf.mxu0  ;;  %13822 = vmatmul.mubr.msk.f32.gmra.mxu0 %vm78_vm0, %v10684_v13 }
 0x1f6   :  { %v18173_v46 = vmax.f32 %v25949_v39, %v1616_v29  ;;  %13824 = vmatprep.mubr.msk.f32.mxu0 %vm16040_vm1, %v16039_v1  ;;  %v25950_v39 = vmax.f32 %v17080_v3, %v17088_v4  ;;  %v10800_v3 = vld [vmem:[%s25446_s0 + $0x938] sm:$0xff] }
 0x1f7   :  { %v18180_v2 = vpop.f32.mrf.mxu1  ;;  %14005 = vmatmul.mubr.msk.f32.gmra.mxu1 %vm78_vm0, %v10798_v43  ;;  %v13484_v49 = vpop.f32.mrf.mxu0  ;;  %v10686_v43 = vld [vmem:[%s25446_s0 + $0x770] sm:$0xff] }
 0x1f8   :  { %14007 = vmatprep.mubr.msk.f32.mxu1 %vm16040_vm1, %v16039_v1 }
 0x1f9   :  { %v13667_v6 = vpop.f32.mrf.mxu1  ;;  %v1621_v29 = vpop.f32.mrf.mxu0  ;;  %13825 = vmatmul.mubr.msk.f32.gmra.mxu0 %vm78_vm0, %v10685_v24 }
 0x1fa   :  { %v18194_v8 = vmax.f32 %v25950_v39, %v1621_v29  ;;  %13827 = vmatprep.mubr.msk.f32.mxu0 %vm16040_vm1, %v16039_v1  ;;  %v25951_v39 = vmax.f32 %v17098_v38, %v17106_v61  ;;  %v10801_v38 = vld [vmem:[%s25446_s0 + $0x940] sm:$0xff] }
 0x1fb   :  { %v18201_v49 = vpop.f32.mrf.mxu1  ;;  %14008 = vmatmul.mubr.msk.f32.gmra.mxu1 %vm78_vm0, %v10799_v5  ;;  %v13487_v6 = vpop.f32.mrf.mxu0  ;;  %v10687_v5 = vld [vmem:[%s25446_s0 + $0x778] sm:$0xff] }
 0x1fc   :  { %14010 = vmatprep.mubr.msk.f32.mxu1 %vm16040_vm1, %v16039_v1 }
 0x1fd   :  { %v13670_v4 = vpop.f32.mrf.mxu1  ;;  %v1626_v29 = vpop.f32.mrf.mxu0  ;;  %13828 = vmatmul.mubr.msk.f32.gmra.mxu0 %vm78_vm0, %v10686_v43 }
 0x1fe   :  { %v18215_v13 = vmax.f32 %v25951_v39, %v1626_v29  ;;  %13830 = vmatprep.mubr.msk.f32.mxu0 %vm16040_vm1, %v16039_v1  ;;  %v25952_v39 = vmax.f32 %v17116_v58, %v17124_v18  ;;  %v10802_v58 = vld [vmem:[%s25446_s0 + $0x948] sm:$0xff] }
 0x1ff   :  { %v18222_v6 = vpop.f32.mrf.mxu1  ;;  %14011 = vmatmul.mubr.msk.f32.gmra.mxu1 %vm78_vm0, %v10800_v3  ;;  %v13490_v4 = vpop.f32.mrf.mxu0  ;;  %v10688_v3 = vld [vmem:[%s25446_s0 + $0x780] sm:$0xff] }
 0x200   :  { %14013 = vmatprep.mubr.msk.f32.mxu1 %vm16040_vm1, %v16039_v1 }
 0x201   :  { %v13673_v61 = vpop.f32.mrf.mxu1  ;;  %v1631_v29 = vpop.f32.mrf.mxu0  ;;  %13831 = vmatmul.mubr.msk.f32.gmra.mxu0 %vm78_vm0, %v10687_v5 }
 0x202   :  { %v18236_v24 = vmax.f32 %v25952_v39, %v1631_v29  ;;  %13833 = vmatprep.mubr.msk.f32.mxu0 %vm16040_vm1, %v16039_v1  ;;  %v25953_v39 = vmax.f32 %v17134_v0, %v17142_v45  ;;  %v10803_v0 = vld [vmem:[%s25446_s0 + $0x950] sm:$0xff] }
 0x203   :  { %v18243_v4 = vpop.f32.mrf.mxu1  ;;  %14014 = vmatmul.mubr.msk.f32.gmra.mxu1 %vm78_vm0, %v10801_v38  ;;  %v13493_v61 = vpop.f32.mrf.mxu0  ;;  %v10689_v38 = vld [vmem:[%s25446_s0 + $0x788] sm:$0xff] }
 0x204   :  { %14016 = vmatprep.mubr.msk.f32.mxu1 %vm16040_vm1, %v16039_v1 }
 0x205   :  { %v13676_v18 = vpop.f32.mrf.mxu1  ;;  %v1636_v29 = vpop.f32.mrf.mxu0  ;;  %13834 = vmatmul.mubr.msk.f32.gmra.mxu0 %vm78_vm0, %v10688_v3 }
 0x206   :  { %v18257_v43 = vmax.f32 %v25953_v39, %v1636_v29  ;;  %13836 = vmatprep.mubr.msk.f32.mxu0 %vm16040_vm1, %v16039_v1  ;;  %v25954_v39 = vmax.f32 %v17152_v41, %v17160_v32  ;;  %v10804_v41 = vld [vmem:[%s25446_s0 + $0x958] sm:$0xff] }
 0x207   :  { %v18264_v61 = vpop.f32.mrf.mxu1  ;;  %14017 = vmatmul.mubr.msk.f32.gmra.mxu1 %vm78_vm0, %v10802_v58  ;;  %v13496_v18 = vpop.f32.mrf.mxu0  ;;  %v10690_v58 = vld [vmem:[%s25446_s0 + $0x790] sm:$0xff] }
 0x208   :  { %14019 = vmatprep.mubr.msk.f32.mxu1 %vm16040_vm1, %v16039_v1 }
 0x209   :  { %v13679_v45 = vpop.f32.mrf.mxu1  ;;  %v1641_v29 = vpop.f32.mrf.mxu0  ;;  %13837 = vmatmul.mubr.msk.f32.gmra.mxu0 %vm78_vm0, %v10689_v38 }
 0x20a   :  { %v18278_v5 = vmax.f32 %v25954_v39, %v1641_v29  ;;  %13839 = vmatprep.mubr.msk.f32.mxu0 %vm16040_vm1, %v16039_v1  ;;  %v25955_v39 = vmax.f32 %v17170_v20, %v17178_v11  ;;  %v10805_v20 = vld [vmem:[%s25446_s0 + $0x960] sm:$0xff] }
 0x20b   :  { %v18285_v18 = vpop.f32.mrf.mxu1  ;;  %14020 = vmatmul.mubr.msk.f32.gmra.mxu1 %vm78_vm0, %v10803_v0  ;;  %v13499_v45 = vpop.f32.mrf.mxu0  ;;  %v10691_v0 = vld [vmem:[%s25446_s0 + $0x798] sm:$0xff] }
 0x20c   :  { %14022 = vmatprep.mubr.msk.f32.mxu1 %vm16040_vm1, %v16039_v1 }
 0x20d   :  { %v13682_v32 = vpop.f32.mrf.mxu1  ;;  %v1646_v29 = vpop.f32.mrf.mxu0  ;;  %13840 = vmatmul.mubr.msk.f32.gmra.mxu0 %vm78_vm0, %v10690_v58 }
 0x20e   :  { %v18299_v3 = vmax.f32 %v25955_v39, %v1646_v29  ;;  %13842 = vmatprep.mubr.msk.f32.mxu0 %vm16040_vm1, %v16039_v1  ;;  %v25956_v39 = vmax.f32 %v17188_v54, %v17196_v27  ;;  %v10806_v54 = vld [vmem:[%s25446_s0 + $0x968] sm:$0xff] }
 0x20f   :  { %v18306_v45 = vpop.f32.mrf.mxu1  ;;  %14023 = vmatmul.mubr.msk.f32.gmra.mxu1 %vm78_vm0, %v10804_v41  ;;  %v13502_v32 = vpop.f32.mrf.mxu0  ;;  %v10692_v41 = vld [vmem:[%s25446_s0 + $0x7a0] sm:$0xff] }
 0x210   :  { %14025 = vmatprep.mubr.msk.f32.mxu1 %vm16040_vm1, %v16039_v1 }
 0x211   :  { %v13685_v11 = vpop.f32.mrf.mxu1  ;;  %v1651_v29 = vpop.f32.mrf.mxu0  ;;  %13843 = vmatmul.mubr.msk.f32.gmra.mxu0 %vm78_vm0, %v10691_v0  ;;  %v25963_v0 = vld [vmem:[#allocation6_spill] sm:$0xff] }
 0x212   :  { %v18320_v38 = vmax.f32 %v25956_v39, %v1651_v29  ;;  %13845 = vmatprep.mubr.msk.f32.mxu0 %vm16040_vm1, %v16039_v1  ;;  %v25959_v39 = vmax.f32 %v17206_v37, %v17214_v34  ;;  %v10807_v37 = vld [vmem:[%s25446_s0 + $0x970] sm:$0xff] }
 0x213   :  { %v18327_v32 = vpop.f32.mrf.mxu1  ;;  %14026 = vmatmul.mubr.msk.f32.gmra.mxu1 %vm78_vm0, %v10805_v20  ;;  %v13505_v11 = vpop.f32.mrf.mxu0  ;;  %v10693_v20 = vld [vmem:[%s25446_s0 + $0x7a8] sm:$0xff] }
 0x214   :  { %25957 = vst [vmem:[#allocation65_spill] sm:$0xff] %v18320_v38  ;;  %25958 = vst [vmem:[#allocation66_spill] sm:$0xff] %v18327_v32  ;;  %14028 = vmatprep.mubr.msk.f32.mxu1 %vm16040_vm1, %v16039_v1 }
 0x215   :  { %v13688_v27 = vpop.f32.mrf.mxu1  ;;  %v1656_v29 = vpop.f32.mrf.mxu0  ;;  %13846 = vmatmul.mubr.msk.f32.gmra.mxu0 %vm78_vm0, %v10692_v41  ;;  %v25968_v41 = vld [vmem:[#allocation8_spill] sm:$0xff] }
 0x216   :  { %v18341_v58 = vmax.f32 %v25959_v39, %v1656_v29  ;;  %13848 = vmatprep.mubr.msk.f32.mxu0 %vm16040_vm1, %v16039_v1  ;;  %v25962_v39 = vld [vmem:[#allocation5_spill] sm:$0xff] }
 0x217   :  { %v18348_v11 = vpop.f32.mrf.mxu1  ;;  %14029 = vmatmul.mubr.msk.f32.gmra.mxu1 %vm78_vm0, %v10806_v54  ;;  %v13508_v27 = vpop.f32.mrf.mxu0  ;;  %v25964_v32 = vmax.f32 %v25962_v39, %v25963_v0  ;;  %v10694_v54 = vld [vmem:[%s25446_s0 + $0x7b0] sm:$0xff]  ;;  %v25967_v39 = vld [vmem:[#allocation7_spill] sm:$0xff] }
 0x218   :  { %25960 = vst [vmem:[#allocation67_spill] sm:$0xff] %v18341_v58  ;;  %25961 = vst [vmem:[#allocation68_spill] sm:$0xff] %v18348_v11  ;;  %14031 = vmatprep.mubr.msk.f32.mxu1 %vm16040_vm1, %v16039_v1  ;;  %v25969_v11 = vmax.f32 %v25967_v39, %v25968_v41  ;;  %v25972_v39 = vld [vmem:[#allocation9_spill] sm:$0xff] }
 0x219   :  { %v13691_v34 = vpop.f32.mrf.mxu1  ;;  %v1661_v29 = vpop.f32.mrf.mxu0  ;;  %13849 = vmatmul.mubr.msk.f32.gmra.mxu0 %vm78_vm0, %v10693_v20  ;;  %v25973_v20 = vld [vmem:[#allocation10_spill] sm:$0xff] }
 0x21a   :  { %v18362_v38 = vmax.f32 %v25964_v32, %v1661_v29  ;;  %13851 = vmatprep.mubr.msk.f32.mxu0 %vm16040_vm1, %v16039_v1  ;;  %v10808_v32 = vld [vmem:[%s25446_s0 + $0x978] sm:$0xff] }
 0x21b   :  { %v18369_v27 = vpop.f32.mrf.mxu1  ;;  %14032 = vmatmul.mubr.msk.f32.gmra.mxu1 %vm78_vm0, %v10807_v37  ;;  %v13511_v34 = vpop.f32.mrf.mxu0  ;;  %v10695_v37 = vld [vmem:[%s25446_s0 + $0x7b8] sm:$0xff] }
 0x21c   :  { %25965 = vst [vmem:[#allocation5_spill] sm:$0xff] %v18362_v38  ;;  %25966 = vst [vmem:[#allocation6_spill] sm:$0xff] %v18369_v27  ;;  %14034 = vmatprep.mubr.msk.f32.mxu1 %vm16040_vm1, %v16039_v1  ;;  %v25974_v27 = vmax.f32 %v25972_v39, %v25973_v20  ;;  %v25977_v39 = vld [vmem:[#allocation11_spill] sm:$0xff] }
 0x21d   :  { %v13694_v0 = vpop.f32.mrf.mxu1  ;;  %v1666_v29 = vpop.f32.mrf.mxu0  ;;  %13852 = vmatmul.mubr.msk.f32.gmra.mxu0 %vm78_vm0, %v10694_v54  ;;  %v25978_v54 = vld [vmem:[#allocation12_spill] sm:$0xff] }
 0x21e   :  { %v18383_v58 = vmax.f32 %v25969_v11, %v1666_v29  ;;  %13854 = vmatprep.mubr.msk.f32.mxu0 %vm16040_vm1, %v16039_v1  ;;  %v10809_v11 = vld [vmem:[%s25446_s0 + $0x980] sm:$0xff] }
 0x21f   :  { %v18390_v34 = vpop.f32.mrf.mxu1  ;;  %14035 = vmatmul.mubr.msk.f32.gmra.mxu1 %vm78_vm0, %v10808_v32  ;;  %v13514_v0 = vpop.f32.mrf.mxu0  ;;  %v10696_v32 = vld [vmem:[%s25446_s0 + $0x7c0] sm:$0xff] }
 0x220   :  { %25970 = vst [vmem:[#allocation7_spill] sm:$0xff] %v18383_v58  ;;  %25971 = vst [vmem:[#allocation8_spill] sm:$0xff] %v18390_v34  ;;  %14037 = vmatprep.mubr.msk.f32.mxu1 %vm16040_vm1, %v16039_v1  ;;  %v25979_v34 = vmax.f32 %v25977_v39, %v25978_v54  ;;  %v25982_v39 = vld [vmem:[#allocation13_spill] sm:$0xff] }
 0x221   :  { %v13697_v41 = vpop.f32.mrf.mxu1  ;;  %v1671_v29 = vpop.f32.mrf.mxu0  ;;  %13855 = vmatmul.mubr.msk.f32.gmra.mxu0 %vm78_vm0, %v10695_v37  ;;  %v25983_v37 = vld [vmem:[#allocation14_spill] sm:$0xff] }
 0x222   :  { %v18404_v38 = vmax.f32 %v25974_v27, %v1671_v29  ;;  %13857 = vmatprep.mubr.msk.f32.mxu0 %vm16040_vm1, %v16039_v1  ;;  %v10810_v27 = vld [vmem:[%s25446_s0 + $0x988] sm:$0xff] }
 0x223   :  { %v18411_v0 = vpop.f32.mrf.mxu1  ;;  %14038 = vmatmul.mubr.msk.f32.gmra.mxu1 %vm78_vm0, %v10809_v11  ;;  %v13517_v41 = vpop.f32.mrf.mxu0  ;;  %v10697_v11 = vld [vmem:[%s25446_s0 + $0x7c8] sm:$0xff] }
 0x224   :  { %25975 = vst [vmem:[#allocation9_spill] sm:$0xff] %v18404_v38  ;;  %25976 = vst [vmem:[#allocation10_spill] sm:$0xff] %v18411_v0  ;;  %14040 = vmatprep.mubr.msk.f32.mxu1 %vm16040_vm1, %v16039_v1  ;;  %v25984_v0 = vmax.f32 %v25982_v39, %v25983_v37  ;;  %v25987_v39 = vld [vmem:[#allocation15_spill] sm:$0xff] }
 0x225   :  { %v13700_v20 = vpop.f32.mrf.mxu1  ;;  %v1676_v29 = vpop.f32.mrf.mxu0  ;;  %13858 = vmatmul.mubr.msk.f32.gmra.mxu0 %vm78_vm0, %v10696_v32  ;;  %v25988_v32 = vld [vmem:[#allocation16_spill] sm:$0xff] }
 0x226   :  { %v18425_v58 = vmax.f32 %v25979_v34, %v1676_v29  ;;  %13860 = vmatprep.mubr.msk.f32.mxu0 %vm16040_vm1, %v16039_v1  ;;  %v10811_v34 = vld [vmem:[%s25446_s0 + $0x990] sm:$0xff] }
 0x227   :  { %v18432_v41 = vpop.f32.mrf.mxu1  ;;  %14041 = vmatmul.mubr.msk.f32.gmra.mxu1 %vm78_vm0, %v10810_v27  ;;  %v13520_v20 = vpop.f32.mrf.mxu0  ;;  %v10698_v27 = vld [vmem:[%s25446_s0 + $0x7d0] sm:$0xff] }
 0x228   :  { %25980 = vst [vmem:[#allocation11_spill] sm:$0xff] %v18425_v58  ;;  %25981 = vst [vmem:[#allocation12_spill] sm:$0xff] %v18432_v41  ;;  %14043 = vmatprep.mubr.msk.f32.mxu1 %vm16040_vm1, %v16039_v1  ;;  %v25989_v41 = vmax.f32 %v25987_v39, %v25988_v32  ;;  %v25992_v39 = vld [vmem:[#allocation17_spill] sm:$0xff] }
 0x229   :  { %v13703_v54 = vpop.f32.mrf.mxu1  ;;  %v1681_v29 = vpop.f32.mrf.mxu0  ;;  %13861 = vmatmul.mubr.msk.f32.gmra.mxu0 %vm78_vm0, %v10697_v11  ;;  %v25993_v11 = vld [vmem:[#allocation18_spill] sm:$0xff] }
 0x22a   :  { %v18446_v38 = vmax.f32 %v25984_v0, %v1681_v29  ;;  %13863 = vmatprep.mubr.msk.f32.mxu0 %vm16040_vm1, %v16039_v1  ;;  %v10812_v0 = vld [vmem:[%s25446_s0 + $0x998] sm:$0xff] }
 0x22b   :  { %v18453_v20 = vpop.f32.mrf.mxu1  ;;  %14044 = vmatmul.mubr.msk.f32.gmra.mxu1 %vm78_vm0, %v10811_v34  ;;  %v13523_v54 = vpop.f32.mrf.mxu0  ;;  %v10699_v34 = vld [vmem:[%s25446_s0 + $0x7d8] sm:$0xff] }
 0x22c   :  { %25985 = vst [vmem:[#allocation13_spill] sm:$0xff] %v18446_v38  ;;  %25986 = vst [vmem:[#allocation14_spill] sm:$0xff] %v18453_v20  ;;  %14046 = vmatprep.mubr.msk.f32.mxu1 %vm16040_vm1, %v16039_v1  ;;  %v25994_v20 = vmax.f32 %v25992_v39, %v25993_v11  ;;  %v25997_v39 = vld [vmem:[#allocation19_spill] sm:$0xff] }
 0x22d   :  { %v13706_v37 = vpop.f32.mrf.mxu1  ;;  %v1686_v29 = vpop.f32.mrf.mxu0  ;;  %13864 = vmatmul.mubr.msk.f32.gmra.mxu0 %vm78_vm0, %v10698_v27  ;;  %v25998_v27 = vld [vmem:[#allocation20_spill] sm:$0xff] }
 0x22e   :  { %v18467_v58 = vmax.f32 %v25989_v41, %v1686_v29  ;;  %13866 = vmatprep.mubr.msk.f32.mxu0 %vm16040_vm1, %v16039_v1  ;;  %v10813_v41 = vld [vmem:[%s25446_s0 + $0x9a0] sm:$0xff] }
 0x22f   :  { %v18474_v54 = vpop.f32.mrf.mxu1  ;;  %14047 = vmatmul.mubr.msk.f32.gmra.mxu1 %vm78_vm0, %v10812_v0  ;;  %v13526_v37 = vpop.f32.mrf.mxu0  ;;  %v10700_v0 = vld [vmem:[%s25446_s0 + $0x7e0] sm:$0xff] }
 0x230   :  { %25990 = vst [vmem:[#allocation15_spill] sm:$0xff] %v18467_v58  ;;  %25991 = vst [vmem:[#allocation16_spill] sm:$0xff] %v18474_v54  ;;  %14049 = vmatprep.mubr.msk.f32.mxu1 %vm16040_vm1, %v16039_v1  ;;  %v25999_v54 = vmax.f32 %v25997_v39, %v25998_v27  ;;  %v26002_v39 = vld [vmem:[#allocation21_spill] sm:$0xff] }
 0x231   :  { %v13709_v32 = vpop.f32.mrf.mxu1  ;;  %v1691_v29 = vpop.f32.mrf.mxu0  ;;  %13867 = vmatmul.mubr.msk.f32.gmra.mxu0 %vm78_vm0, %v10699_v34  ;;  %v26003_v34 = vld [vmem:[#allocation22_spill] sm:$0xff] }
 0x232   :  { %v18488_v38 = vmax.f32 %v25994_v20, %v1691_v29  ;;  %13869 = vmatprep.mubr.msk.f32.mxu0 %vm16040_vm1, %v16039_v1  ;;  %v10814_v20 = vld [vmem:[%s25446_s0 + $0x9a8] sm:$0xff] }
 0x233   :  { %v18495_v37 = vpop.f32.mrf.mxu1  ;;  %14050 = vmatmul.mubr.msk.f32.gmra.mxu1 %vm78_vm0, %v10813_v41  ;;  %v13529_v32 = vpop.f32.mrf.mxu0  ;;  %v10701_v41 = vld [vmem:[%s25446_s0 + $0x7e8] sm:$0xff] }
 0x234   :  { %25995 = vst [vmem:[#allocation17_spill] sm:$0xff] %v18488_v38  ;;  %25996 = vst [vmem:[#allocation18_spill] sm:$0xff] %v18495_v37  ;;  %14052 = vmatprep.mubr.msk.f32.mxu1 %vm16040_vm1, %v16039_v1  ;;  %v26004_v37 = vmax.f32 %v26002_v39, %v26003_v34  ;;  %v26007_v39 = vld [vmem:[#allocation23_spill] sm:$0xff] }
 0x235   :  { %v13712_v11 = vpop.f32.mrf.mxu1  ;;  %v1696_v29 = vpop.f32.mrf.mxu0  ;;  %13870 = vmatmul.mubr.msk.f32.gmra.mxu0 %vm78_vm0, %v10700_v0  ;;  %v26008_v0 = vld [vmem:[#allocation24_spill] sm:$0xff] }
 0x236   :  { %v18509_v58 = vmax.f32 %v25999_v54, %v1696_v29  ;;  %13872 = vmatprep.mubr.msk.f32.mxu0 %vm16040_vm1, %v16039_v1  ;;  %v10815_v54 = vld [vmem:[%s25446_s0 + $0x9b0] sm:$0xff] }
 0x237   :  { %v18516_v32 = vpop.f32.mrf.mxu1  ;;  %14053 = vmatmul.mubr.msk.f32.gmra.mxu1 %vm78_vm0, %v10814_v20  ;;  %v13532_v11 = vpop.f32.mrf.mxu0  ;;  %v10702_v20 = vld [vmem:[%s25446_s0 + $0x7f0] sm:$0xff] }
 0x238   :  { %26000 = vst [vmem:[#allocation19_spill] sm:$0xff] %v18509_v58  ;;  %26001 = vst [vmem:[#allocation20_spill] sm:$0xff] %v18516_v32  ;;  %14055 = vmatprep.mubr.msk.f32.mxu1 %vm16040_vm1, %v16039_v1  ;;  %v26009_v32 = vmax.f32 %v26007_v39, %v26008_v0  ;;  %v26012_v39 = vld [vmem:[#allocation25_spill] sm:$0xff] }
 0x239   :  { %v13715_v27 = vpop.f32.mrf.mxu1  ;;  %v1701_v29 = vpop.f32.mrf.mxu0  ;;  %13873 = vmatmul.mubr.msk.f32.gmra.mxu0 %vm78_vm0, %v10701_v41  ;;  %v26013_v41 = vld [vmem:[#allocation26_spill] sm:$0xff] }
 0x23a   :  { %v18530_v38 = vmax.f32 %v26004_v37, %v1701_v29  ;;  %13875 = vmatprep.mubr.msk.f32.mxu0 %vm16040_vm1, %v16039_v1  ;;  %v10816_v37 = vld [vmem:[%s25446_s0 + $0x9b8] sm:$0xff] }
 0x23b   :  { %v18537_v11 = vpop.f32.mrf.mxu1  ;;  %14056 = vmatmul.mubr.msk.f32.gmra.mxu1 %vm78_vm0, %v10815_v54  ;;  %v13535_v27 = vpop.f32.mrf.mxu0  ;;  %v10703_v54 = vld [vmem:[%s25446_s0 + $0x7f8] sm:$0xff] }
 0x23c   :  { %26005 = vst [vmem:[#allocation21_spill] sm:$0xff] %v18530_v38  ;;  %26006 = vst [vmem:[#allocation22_spill] sm:$0xff] %v18537_v11  ;;  %14058 = vmatprep.mubr.msk.f32.mxu1 %vm16040_vm1, %v16039_v1  ;;  %v26014_v11 = vmax.f32 %v26012_v39, %v26013_v41  ;;  %v26017_v39 = vld [vmem:[#allocation27_spill] sm:$0xff] }
 0x23d   :  { %v13718_v34 = vpop.f32.mrf.mxu1  ;;  %v1706_v29 = vpop.f32.mrf.mxu0  ;;  %13876 = vmatmul.mubr.msk.f32.gmra.mxu0 %vm78_vm0, %v10702_v20  ;;  %v26018_v20 = vld [vmem:[#allocation28_spill] sm:$0xff] }
 0x23e   :  { %v18551_v58 = vmax.f32 %v26009_v32, %v1706_v29  ;;  %13878 = vmatprep.mubr.msk.f32.mxu0 %vm16040_vm1, %v16039_v1  ;;  %v10817_v32 = vld [vmem:[%s25446_s0 + $0x9c0] sm:$0xff] }
 0x23f   :  { %v18558_v27 = vpop.f32.mrf.mxu1  ;;  %14059 = vmatmul.mubr.msk.f32.gmra.mxu1 %vm78_vm0, %v10816_v37  ;;  %v13538_v34 = vpop.f32.mrf.mxu0  ;;  %v10704_v37 = vld [vmem:[%s25446_s0 + $0x800] sm:$0xff] }
 0x240   :  { %26010 = vst [vmem:[#allocation23_spill] sm:$0xff] %v18551_v58  ;;  %26011 = vst [vmem:[#allocation24_spill] sm:$0xff] %v18558_v27  ;;  %14061 = vmatprep.mubr.msk.f32.mxu1 %vm16040_vm1, %v16039_v1  ;;  %v26019_v27 = vmax.f32 %v26017_v39, %v26018_v20  ;;  %v26022_v39 = vld [vmem:[#allocation29_spill] sm:$0xff] }
 0x241   :  { %v13721_v0 = vpop.f32.mrf.mxu1  ;;  %v1711_v29 = vpop.f32.mrf.mxu0  ;;  %13879 = vmatmul.mubr.msk.f32.gmra.mxu0 %vm78_vm0, %v10703_v54  ;;  %v26023_v54 = vld [vmem:[#allocation30_spill] sm:$0xff] }
 0x242   :  { %v18572_v38 = vmax.f32 %v26014_v11, %v1711_v29  ;;  %13881 = vmatprep.mubr.msk.f32.mxu0 %vm16040_vm1, %v16039_v1  ;;  %v10818_v11 = vld [vmem:[%s25446_s0 + $0x9c8] sm:$0xff] }
 0x243   :  { %v18579_v34 = vpop.f32.mrf.mxu1  ;;  %14062 = vmatmul.mubr.msk.f32.gmra.mxu1 %vm78_vm0, %v10817_v32  ;;  %v13541_v0 = vpop.f32.mrf.mxu0  ;;  %v10705_v32 = vld [vmem:[%s25446_s0 + $0x808] sm:$0xff] }
 0x244   :  { %26015 = vst [vmem:[#allocation25_spill] sm:$0xff] %v18572_v38  ;;  %26016 = vst [vmem:[#allocation26_spill] sm:$0xff] %v18579_v34  ;;  %14064 = vmatprep.mubr.msk.f32.mxu1 %vm16040_vm1, %v16039_v1  ;;  %v26024_v34 = vmax.f32 %v26022_v39, %v26023_v54  ;;  %v26027_v39 = vld [vmem:[#allocation31_spill] sm:$0xff] }
 0x245   :  { %v13724_v41 = vpop.f32.mrf.mxu1  ;;  %v1716_v29 = vpop.f32.mrf.mxu0  ;;  %13882 = vmatmul.mubr.msk.f32.gmra.mxu0 %vm78_vm0, %v10704_v37  ;;  %v26028_v37 = vld [vmem:[#allocation32_spill] sm:$0xff] }
 0x246   :  { %v18593_v58 = vmax.f32 %v26019_v27, %v1716_v29  ;;  %13884 = vmatprep.mubr.msk.f32.mxu0 %vm16040_vm1, %v16039_v1  ;;  %v10819_v27 = vld [vmem:[%s25446_s0 + $0x9d0] sm:$0xff] }
 0x247   :  { %v18600_v0 = vpop.f32.mrf.mxu1  ;;  %14065 = vmatmul.mubr.msk.f32.gmra.mxu1 %vm78_vm0, %v10818_v11  ;;  %v13544_v41 = vpop.f32.mrf.mxu0  ;;  %v10706_v11 = vld [vmem:[%s25446_s0 + $0x810] sm:$0xff] }
 0x248   :  { %26020 = vst [vmem:[#allocation27_spill] sm:$0xff] %v18593_v58  ;;  %26021 = vst [vmem:[#allocation28_spill] sm:$0xff] %v18600_v0  ;;  %14067 = vmatprep.mubr.msk.f32.mxu1 %vm16040_vm1, %v16039_v1  ;;  %v26029_v0 = vmax.f32 %v26027_v39, %v26028_v37  ;;  %v26032_v39 = vld [vmem:[#allocation33_spill] sm:$0xff] }
 0x249   :  { %v13727_v20 = vpop.f32.mrf.mxu1  ;;  %v1721_v29 = vpop.f32.mrf.mxu0  ;;  %13885 = vmatmul.mubr.msk.f32.gmra.mxu0 %vm78_vm0, %v10705_v32  ;;  %v26033_v32 = vld [vmem:[#allocation34_spill] sm:$0xff] }
 0x24a   :  { %v18614_v38 = vmax.f32 %v26024_v34, %v1721_v29  ;;  %13887 = vmatprep.mubr.msk.f32.mxu0 %vm16040_vm1, %v16039_v1  ;;  %v10820_v34 = vld [vmem:[%s25446_s0 + $0x9d8] sm:$0xff] }
 0x24b   :  { %v18621_v41 = vpop.f32.mrf.mxu1  ;;  %14068 = vmatmul.mubr.msk.f32.gmra.mxu1 %vm78_vm0, %v10819_v27  ;;  %v13547_v20 = vpop.f32.mrf.mxu0  ;;  %v10707_v27 = vld [vmem:[%s25446_s0 + $0x818] sm:$0xff] }
 0x24c   :  { %26025 = vst [vmem:[#allocation29_spill] sm:$0xff] %v18614_v38  ;;  %26026 = vst [vmem:[#allocation30_spill] sm:$0xff] %v18621_v41  ;;  %14070 = vmatprep.mubr.msk.f32.mxu1 %vm16040_vm1, %v16039_v1  ;;  %v26034_v41 = vmax.f32 %v26032_v39, %v26033_v32  ;;  %v26037_v39 = vld [vmem:[#allocation35_spill] sm:$0xff] }
 0x24d   :  { %v13730_v54 = vpop.f32.mrf.mxu1  ;;  %v1726_v29 = vpop.f32.mrf.mxu0  ;;  %13888 = vmatmul.mubr.msk.f32.gmra.mxu0 %vm78_vm0, %v10706_v11  ;;  %v26038_v11 = vld [vmem:[#allocation36_spill] sm:$0xff] }
 0x24e   :  { %v18635_v58 = vmax.f32 %v26029_v0, %v1726_v29  ;;  %13890 = vmatprep.mubr.msk.f32.mxu0 %vm16040_vm1, %v16039_v1  ;;  %v10821_v0 = vld [vmem:[%s25446_s0 + $0x9e0] sm:$0xff] }
 0x24f   :  { %v18642_v20 = vpop.f32.mrf.mxu1  ;;  %14071 = vmatmul.mubr.msk.f32.gmra.mxu1 %vm78_vm0, %v10820_v34  ;;  %v13550_v54 = vpop.f32.mrf.mxu0  ;;  %v10708_v34 = vld [vmem:[%s25446_s0 + $0x820] sm:$0xff] }
 0x250   :  { %26030 = vst [vmem:[#allocation31_spill] sm:$0xff] %v18635_v58  ;;  %26031 = vst [vmem:[#allocation32_spill] sm:$0xff] %v18642_v20  ;;  %14073 = vmatprep.mubr.msk.f32.mxu1 %vm16040_vm1, %v16039_v1  ;;  %v26039_v20 = vmax.f32 %v26037_v39, %v26038_v11  ;;  %v26042_v39 = vld [vmem:[#allocation37_spill] sm:$0xff] }
 0x251   :  { %v13733_v37 = vpop.f32.mrf.mxu1  ;;  %v1731_v29 = vpop.f32.mrf.mxu0  ;;  %13891 = vmatmul.mubr.msk.f32.gmra.mxu0 %vm78_vm0, %v10707_v27  ;;  %v26043_v27 = vld [vmem:[#allocation38_spill] sm:$0xff] }
 0x252   :  { %v18656_v38 = vmax.f32 %v26034_v41, %v1731_v29  ;;  %13893 = vmatprep.mubr.msk.f32.mxu0 %vm16040_vm1, %v16039_v1  ;;  %v10822_v41 = vld [vmem:[%s25446_s0 + $0x9e8] sm:$0xff] }
 0x253   :  { %v18663_v54 = vpop.f32.mrf.mxu1  ;;  %14074 = vmatmul.mubr.msk.f32.gmra.mxu1 %vm78_vm0, %v10821_v0  ;;  %v13553_v37 = vpop.f32.mrf.mxu0  ;;  %v10709_v0 = vld [vmem:[%s25446_s0 + $0x828] sm:$0xff] }
 0x254   :  { %26035 = vst [vmem:[#allocation33_spill] sm:$0xff] %v18656_v38  ;;  %26036 = vst [vmem:[#allocation34_spill] sm:$0xff] %v18663_v54  ;;  %14076 = vmatprep.mubr.msk.f32.mxu1 %vm16040_vm1, %v16039_v1  ;;  %v26044_v54 = vmax.f32 %v26042_v39, %v26043_v27  ;;  %v26047_v39 = vld [vmem:[#allocation39_spill] sm:$0xff] }
 0x255   :  { %v13736_v32 = vpop.f32.mrf.mxu1  ;;  %v1736_v29 = vpop.f32.mrf.mxu0  ;;  %13894 = vmatmul.mubr.msk.f32.gmra.mxu0 %vm78_vm0, %v10708_v34  ;;  %v26048_v34 = vld [vmem:[#allocation40_spill] sm:$0xff] }
 0x256   :  { %v18677_v58 = vmax.f32 %v26039_v20, %v1736_v29  ;;  %13896 = vmatprep.mubr.msk.f32.mxu0 %vm16040_vm1, %v16039_v1  ;;  %v10823_v20 = vld [vmem:[%s25446_s0 + $0x9f0] sm:$0xff] }
 0x257   :  { %v18684_v37 = vpop.f32.mrf.mxu1  ;;  %14077 = vmatmul.mubr.msk.f32.gmra.mxu1 %vm78_vm0, %v10822_v41  ;;  %v13556_v32 = vpop.f32.mrf.mxu0  ;;  %v10710_v41 = vld [vmem:[%s25446_s0 + $0x830] sm:$0xff] }
 0x258   :  { %26040 = vst [vmem:[#allocation35_spill] sm:$0xff] %v18677_v58  ;;  %26041 = vst [vmem:[#allocation36_spill] sm:$0xff] %v18684_v37  ;;  %14079 = vmatprep.mubr.msk.f32.mxu1 %vm16040_vm1, %v16039_v1  ;;  %v26049_v37 = vmax.f32 %v26047_v39, %v26048_v34  ;;  %v26052_v39 = vld [vmem:[#allocation41_spill] sm:$0xff] }
 0x259   :  { %v13739_v11 = vpop.f32.mrf.mxu1  ;;  %v1741_v29 = vpop.f32.mrf.mxu0  ;;  %13897 = vmatmul.mubr.msk.f32.gmra.mxu0 %vm78_vm0, %v10709_v0  ;;  %v26053_v0 = vld [vmem:[#allocation42_spill] sm:$0xff] }
 0x25a   :  { %v18698_v38 = vmax.f32 %v26044_v54, %v1741_v29  ;;  %13899 = vmatprep.mubr.msk.f32.mxu0 %vm16040_vm1, %v16039_v1  ;;  %v10824_v54 = vld [vmem:[%s25446_s0 + $0x9f8] sm:$0xff] }
 0x25b   :  { %v18705_v32 = vpop.f32.mrf.mxu1  ;;  %14080 = vmatmul.mubr.msk.f32.gmra.mxu1 %vm78_vm0, %v10823_v20  ;;  %v13559_v11 = vpop.f32.mrf.mxu0  ;;  %v10711_v20 = vld [vmem:[%s25446_s0 + $0x838] sm:$0xff] }
 0x25c   :  { %26045 = vst [vmem:[#allocation37_spill] sm:$0xff] %v18698_v38  ;;  %26046 = vst [vmem:[#allocation38_spill] sm:$0xff] %v18705_v32  ;;  %14082 = vmatprep.mubr.msk.f32.mxu1 %vm16040_vm1, %v16039_v1  ;;  %v26054_v32 = vmax.f32 %v26052_v39, %v26053_v0  ;;  %v26057_v39 = vld [vmem:[#allocation43_spill] sm:$0xff] }
 0x25d   :  { %v13742_v27 = vpop.f32.mrf.mxu1  ;;  %v1746_v29 = vpop.f32.mrf.mxu0  ;;  %13900 = vmatmul.mubr.msk.f32.gmra.mxu0 %vm78_vm0, %v10710_v41  ;;  %v26058_v41 = vld [vmem:[#allocation44_spill] sm:$0xff] }
 0x25e   :  { %v18719_v58 = vmax.f32 %v26049_v37, %v1746_v29  ;;  %13902 = vmatprep.mubr.msk.f32.mxu0 %vm16040_vm1, %v16039_v1  ;;  %v10825_v37 = vld [vmem:[%s25446_s0 + $0xa00] sm:$0xff] }
 0x25f   :  { %v18726_v11 = vpop.f32.mrf.mxu1  ;;  %14083 = vmatmul.mubr.msk.f32.gmra.mxu1 %vm78_vm0, %v10824_v54  ;;  %v13562_v27 = vpop.f32.mrf.mxu0  ;;  %v10712_v54 = vld [vmem:[%s25446_s0 + $0x840] sm:$0xff] }
 0x260   :  { %26050 = vst [vmem:[#allocation39_spill] sm:$0xff] %v18719_v58  ;;  %26051 = vst [vmem:[#allocation40_spill] sm:$0xff] %v18726_v11  ;;  %14085 = vmatprep.mubr.msk.f32.mxu1 %vm16040_vm1, %v16039_v1  ;;  %v26059_v11 = vmax.f32 %v26057_v39, %v26058_v41  ;;  %v26062_v39 = vld [vmem:[#allocation45_spill] sm:$0xff] }
 0x261   :  { %v13745_v34 = vpop.f32.mrf.mxu1  ;;  %v1751_v29 = vpop.f32.mrf.mxu0  ;;  %13903 = vmatmul.mubr.msk.f32.gmra.mxu0 %vm78_vm0, %v10711_v20  ;;  %v26063_v20 = vld [vmem:[#allocation46_spill] sm:$0xff] }
 0x262   :  { %v18740_v38 = vmax.f32 %v26054_v32, %v1751_v29  ;;  %13905 = vmatprep.mubr.msk.f32.mxu0 %vm16040_vm1, %v16039_v1  ;;  %v10826_v32 = vld [vmem:[%s25446_s0 + $0xa08] sm:$0xff] }
 0x263   :  { %v18747_v27 = vpop.f32.mrf.mxu1  ;;  %14086 = vmatmul.mubr.msk.f32.gmra.mxu1 %vm78_vm0, %v10825_v37  ;;  %v13565_v34 = vpop.f32.mrf.mxu0  ;;  %v10713_v37 = vld [vmem:[%s25446_s0 + $0x848] sm:$0xff] }
 0x264   :  { %26055 = vst [vmem:[#allocation41_spill] sm:$0xff] %v18740_v38  ;;  %26056 = vst [vmem:[#allocation42_spill] sm:$0xff] %v18747_v27  ;;  %14088 = vmatprep.mubr.msk.f32.mxu1 %vm16040_vm1, %v16039_v1  ;;  %v26064_v27 = vmax.f32 %v26062_v39, %v26063_v20  ;;  %v26067_v39 = vld [vmem:[#allocation47_spill] sm:$0xff] }
 0x265   :  { %v13748_v0 = vpop.f32.mrf.mxu1  ;;  %v1756_v29 = vpop.f32.mrf.mxu0  ;;  %13906 = vmatmul.mubr.msk.f32.gmra.mxu0 %vm78_vm0, %v10712_v54  ;;  %v26068_v54 = vld [vmem:[#allocation48_spill] sm:$0xff] }
 0x266   :  { %v18761_v58 = vmax.f32 %v26059_v11, %v1756_v29  ;;  %13908 = vmatprep.mubr.msk.f32.mxu0 %vm16040_vm1, %v16039_v1  ;;  %v10827_v11 = vld [vmem:[%s25446_s0 + $0xa10] sm:$0xff] }
 0x267   :  { %v18768_v34 = vpop.f32.mrf.mxu1  ;;  %14089 = vmatmul.mubr.msk.f32.gmra.mxu1 %vm78_vm0, %v10826_v32  ;;  %v13568_v0 = vpop.f32.mrf.mxu0  ;;  %v10714_v32 = vld [vmem:[%s25446_s0 + $0x850] sm:$0xff] }
 0x268   :  { %26060 = vst [vmem:[#allocation43_spill] sm:$0xff] %v18761_v58  ;;  %26061 = vst [vmem:[#allocation44_spill] sm:$0xff] %v18768_v34  ;;  %14091 = vmatprep.mubr.msk.f32.mxu1 %vm16040_vm1, %v16039_v1  ;;  %v26069_v34 = vmax.f32 %v26067_v39, %v26068_v54  ;;  %v26072_v39 = vld [vmem:[#allocation49_spill] sm:$0xff] }
 0x269   :  { %v13751_v41 = vpop.f32.mrf.mxu1  ;;  %v1761_v29 = vpop.f32.mrf.mxu0  ;;  %13909 = vmatmul.mubr.msk.f32.gmra.mxu0 %vm78_vm0, %v10713_v37  ;;  %v26073_v37 = vld [vmem:[#allocation50_spill] sm:$0xff] }
 0x26a   :  { %v18782_v38 = vmax.f32 %v26064_v27, %v1761_v29  ;;  %13911 = vmatprep.mubr.msk.f32.mxu0 %vm16040_vm1, %v16039_v1  ;;  %v10828_v27 = vld [vmem:[%s25446_s0 + $0xa18] sm:$0xff] }
 0x26b   :  { %v18789_v0 = vpop.f32.mrf.mxu1  ;;  %14092 = vmatmul.mubr.msk.f32.gmra.mxu1 %vm78_vm0, %v10827_v11  ;;  %v13571_v41 = vpop.f32.mrf.mxu0  ;;  %v10715_v11 = vld [vmem:[%s25446_s0 + $0x858] sm:$0xff] }
 0x26c   :  { %26065 = vst [vmem:[#allocation45_spill] sm:$0xff] %v18782_v38  ;;  %26066 = vst [vmem:[#allocation46_spill] sm:$0xff] %v18789_v0  ;;  %14094 = vmatprep.mubr.msk.f32.mxu1 %vm16040_vm1, %v16039_v1  ;;  %v26074_v0 = vmax.f32 %v26072_v39, %v26073_v37  ;;  %v26077_v39 = vld [vmem:[#allocation51_spill] sm:$0xff] }
 0x26d   :  { %v13754_v20 = vpop.f32.mrf.mxu1  ;;  %v1766_v29 = vpop.f32.mrf.mxu0  ;;  %13912 = vmatmul.mubr.msk.f32.gmra.mxu0 %vm78_vm0, %v10714_v32  ;;  %v26078_v32 = vld [vmem:[#allocation52_spill] sm:$0xff] }
 0x26e   :  { %v18803_v58 = vmax.f32 %v26069_v34, %v1766_v29  ;;  %13914 = vmatprep.mubr.msk.f32.mxu0 %vm16040_vm1, %v16039_v1  ;;  %v10829_v34 = vld [vmem:[%s25446_s0 + $0xa20] sm:$0xff] }
 0x26f   :  { %v18810_v41 = vpop.f32.mrf.mxu1  ;;  %14095 = vmatmul.mubr.msk.f32.gmra.mxu1 %vm78_vm0, %v10828_v27  ;;  %v13574_v20 = vpop.f32.mrf.mxu0  ;;  %v10716_v27 = vld [vmem:[%s25446_s0 + $0x860] sm:$0xff] }
 0x270   :  { %26070 = vst [vmem:[#allocation47_spill] sm:$0xff] %v18803_v58  ;;  %26071 = vst [vmem:[#allocation48_spill] sm:$0xff] %v18810_v41  ;;  %14097 = vmatprep.mubr.msk.f32.mxu1 %vm16040_vm1, %v16039_v1  ;;  %v26079_v41 = vmax.f32 %v26077_v39, %v26078_v32  ;;  %v26082_v39 = vld [vmem:[#allocation53_spill] sm:$0xff] }
 0x271   :  { %v13757_v54 = vpop.f32.mrf.mxu1  ;;  %v1771_v29 = vpop.f32.mrf.mxu0  ;;  %13915 = vmatmul.mubr.msk.f32.gmra.mxu0 %vm78_vm0, %v10715_v11  ;;  %v26083_v11 = vld [vmem:[#allocation54_spill] sm:$0xff] }
 0x272   :  { %v18824_v38 = vmax.f32 %v26074_v0, %v1771_v29  ;;  %13917 = vmatprep.mubr.msk.f32.mxu0 %vm16040_vm1, %v16039_v1  ;;  %v10830_v0 = vld [vmem:[%s25446_s0 + $0xa28] sm:$0xff] }
 0x273   :  { %v18831_v20 = vpop.f32.mrf.mxu1  ;;  %14098 = vmatmul.mubr.msk.f32.gmra.mxu1 %vm78_vm0, %v10829_v34  ;;  %v13577_v54 = vpop.f32.mrf.mxu0  ;;  %v10717_v34 = vld [vmem:[%s25446_s0 + $0x868] sm:$0xff] }
 0x274   :  { %26075 = vst [vmem:[#allocation49_spill] sm:$0xff] %v18824_v38  ;;  %26076 = vst [vmem:[#allocation50_spill] sm:$0xff] %v18831_v20  ;;  %14100 = vmatprep.mubr.msk.f32.mxu1 %vm16040_vm1, %v16039_v1  ;;  %v26084_v20 = vmax.f32 %v26082_v39, %v26083_v11  ;;  %v26087_v39 = vld [vmem:[#allocation55_spill] sm:$0xff] }
 0x275   :  { %v13760_v37 = vpop.f32.mrf.mxu1  ;;  %v1776_v29 = vpop.f32.mrf.mxu0  ;;  %13918 = vmatmul.mubr.msk.f32.gmra.mxu0 %vm78_vm0, %v10716_v27  ;;  %v26088_v27 = vld [vmem:[#allocation56_spill] sm:$0xff] }
 0x276   :  { %v18845_v58 = vmax.f32 %v26079_v41, %v1776_v29  ;;  %13920 = vmatprep.mubr.msk.f32.mxu0 %vm16040_vm1, %v16039_v1  ;;  %v10831_v41 = vld [vmem:[%s25446_s0 + $0xa30] sm:$0xff] }
 0x277   :  { %v18852_v54 = vpop.f32.mrf.mxu1  ;;  %14101 = vmatmul.mubr.msk.f32.gmra.mxu1 %vm78_vm0, %v10830_v0  ;;  %v13580_v37 = vpop.f32.mrf.mxu0  ;;  %v10718_v0 = vld [vmem:[%s25446_s0 + $0x870] sm:$0xff] }
 0x278   :  { %26080 = vst [vmem:[#allocation51_spill] sm:$0xff] %v18845_v58  ;;  %26081 = vst [vmem:[#allocation52_spill] sm:$0xff] %v18852_v54  ;;  %14103 = vmatprep.mubr.msk.f32.mxu1 %vm16040_vm1, %v16039_v1  ;;  %v26089_v54 = vmax.f32 %v26087_v39, %v26088_v27  ;;  %v26092_v39 = vld [vmem:[#allocation57_spill] sm:$0xff] }
 0x279   :  { %v13763_v32 = vpop.f32.mrf.mxu1  ;;  %v1781_v29 = vpop.f32.mrf.mxu0  ;;  %13921 = vmatmul.mubr.msk.f32.gmra.mxu0 %vm78_vm0, %v10717_v34  ;;  %v26093_v34 = vld [vmem:[#allocation58_spill] sm:$0xff] }
 0x27a   :  { %v18866_v38 = vmax.f32 %v26084_v20, %v1781_v29  ;;  %13923 = vmatprep.mubr.msk.f32.mxu0 %vm16040_vm1, %v16039_v1  ;;  %v10832_v20 = vld [vmem:[%s25446_s0 + $0xa38] sm:$0xff] }
 0x27b   :  { %v18873_v37 = vpop.f32.mrf.mxu1  ;;  %14104 = vmatmul.mubr.msk.f32.gmra.mxu1 %vm78_vm0, %v10831_v41  ;;  %v13583_v32 = vpop.f32.mrf.mxu0  ;;  %v10719_v41 = vld [vmem:[%s25446_s0 + $0x878] sm:$0xff] }
 0x27c   :  { %26085 = vst [vmem:[#allocation53_spill] sm:$0xff] %v18866_v38  ;;  %26086 = vst [vmem:[#allocation54_spill] sm:$0xff] %v18873_v37  ;;  %14106 = vmatprep.mubr.msk.f32.mxu1 %vm16040_vm1, %v16039_v1  ;;  %v26094_v37 = vmax.f32 %v26092_v39, %v26093_v34  ;;  %v26097_v39 = vld [vmem:[#allocation59_spill] sm:$0xff] }
 0x27d   :  { %v13766_v11 = vpop.f32.mrf.mxu1  ;;  %v1786_v29 = vpop.f32.mrf.mxu0  ;;  %13924 = vmatmul.mubr.msk.f32.gmra.mxu0 %vm78_vm0, %v10718_v0  ;;  %v26098_v0 = vld [vmem:[#allocation60_spill] sm:$0xff] }
 0x27e   :  { %v18887_v58 = vmax.f32 %v26089_v54, %v1786_v29  ;;  %13926 = vmatprep.mubr.msk.f32.mxu0 %vm16040_vm1, %v16039_v1  ;;  %v10833_v54 = vld [vmem:[%s25446_s0 + $0xa40] sm:$0xff] }
 0x27f   :  { %v18894_v32 = vpop.f32.mrf.mxu1  ;;  %14107 = vmatmul.mubr.msk.f32.gmra.mxu1 %vm78_vm0, %v10832_v20  ;;  %v13586_v11 = vpop.f32.mrf.mxu0  ;;  %v10720_v20 = vld [vmem:[%s25446_s0 + $0x880] sm:$0xff] }
 0x280   :  { %26090 = vst [vmem:[#allocation55_spill] sm:$0xff] %v18887_v58  ;;  %26091 = vst [vmem:[#allocation56_spill] sm:$0xff] %v18894_v32  ;;  %14109 = vmatprep.mubr.msk.f32.mxu1 %vm16040_vm1, %v16039_v1  ;;  %v26099_v32 = vmax.f32 %v26097_v39, %v26098_v0  ;;  %v26102_v39 = vld [vmem:[#allocation61_spill] sm:$0xff] }
 0x281   :  { %v13769_v27 = vpop.f32.mrf.mxu1  ;;  %v1791_v29 = vpop.f32.mrf.mxu0  ;;  %13927 = vmatmul.mubr.msk.f32.gmra.mxu0 %vm78_vm0, %v10719_v41  ;;  %v26103_v41 = vld [vmem:[#allocation62_spill] sm:$0xff] }
 0x282   :  { %v18908_v38 = vmax.f32 %v26094_v37, %v1791_v29  ;;  %13929 = vmatprep.mubr.msk.f32.mxu0 %vm16040_vm1, %v16039_v1  ;;  %v10834_v37 = vld [vmem:[%s25446_s0 + $0xa48] sm:$0xff] }
 0x283   :  { %v18915_v11 = vpop.f32.mrf.mxu1  ;;  %14110 = vmatmul.mubr.msk.f32.gmra.mxu1 %vm78_vm0, %v10833_v54  ;;  %v13589_v27 = vpop.f32.mrf.mxu0  ;;  %v10721_v54 = vld [vmem:[%s25446_s0 + $0x888] sm:$0xff] }
 0x284   :  { %26095 = vst [vmem:[#allocation57_spill] sm:$0xff] %v18908_v38  ;;  %26096 = vst [vmem:[#allocation58_spill] sm:$0xff] %v18915_v11  ;;  %14112 = vmatprep.mubr.msk.f32.mxu1 %vm16040_vm1, %v16039_v1  ;;  %v26104_v11 = vmax.f32 %v26102_v39, %v26103_v41  ;;  %v26105_v39 = vld [vmem:[#allocation63_spill] sm:$0xff] }
 0x285   :  { %v13772_v34 = vpop.f32.mrf.mxu1  ;;  %v1796_v29 = vpop.f32.mrf.mxu0  ;;  %13930 = vmatmul.mubr.msk.f32.gmra.mxu0 %vm78_vm0, %v10720_v20  ;;  %v26106_v20 = vld [vmem:[#allocation64_spill] sm:$0xff] }
 0x286   :  { %v18929_v58 = vmax.f32 %v26099_v32, %v1796_v29  ;;  %13932 = vmatprep.mubr.msk.f32.mxu0 %vm16040_vm1, %v16039_v1  ;;  %v10835_v32 = vld [vmem:[%s25446_s0 + $0xa50] sm:$0xff] }
 0x287   :  { %v18936_v27 = vpop.f32.mrf.mxu1  ;;  %14113 = vmatmul.mubr.msk.f32.gmra.mxu1 %vm78_vm0, %v10834_v37  ;;  %v13592_v34 = vpop.f32.mrf.mxu0  ;;  %v10722_v37 = vld [vmem:[%s25446_s0 + $0x890] sm:$0xff] }
 0x288   :  { %26100 = vst [vmem:[#allocation59_spill] sm:$0xff] %v18929_v58  ;;  %26101 = vst [vmem:[#allocation60_spill] sm:$0xff] %v18936_v27  ;;  %14115 = vmatprep.mubr.msk.f32.mxu1 %vm16040_vm1, %v16039_v1  ;;  %v26107_v27 = vmax.f32 %v26105_v39, %v26106_v20  ;;  %v26108_v39 = vmax.f32 %v17764_v52, %v17772_v59  ;;  %v10838_v52 = vld [vmem:[%s25446_s0 + $0xa68] sm:$0xff] }
 0x289   :  { %v13775_v0 = vpop.f32.mrf.mxu1  ;;  %v1801_v29 = vpop.f32.mrf.mxu0  ;;  %13933 = vmatmul.mubr.msk.f32.gmra.mxu0 %vm78_vm0, %v10721_v54 }
 0x28a   :  { %v18950_v38 = vmax.f32 %v26104_v11, %v1801_v29  ;;  %13935 = vmatprep.mubr.msk.f32.mxu0 %vm16040_vm1, %v16039_v1  ;;  %v10836_v11 = vld [vmem:[%s25446_s0 + $0xa58] sm:$0xff] }
 0x28b   :  { %v18957_v34 = vpop.f32.mrf.mxu1  ;;  %14116 = vmatmul.mubr.msk.f32.gmra.mxu1 %vm78_vm0, %v10835_v32  ;;  %v13595_v0 = vpop.f32.mrf.mxu0  ;;  %v10723_v32 = vld [vmem:[%s25446_s0 + $0x898] sm:$0xff] }
 0x28c   :  { %14118 = vmatprep.mubr.msk.f32.mxu1 %vm16040_vm1, %v16039_v1 }
 0x28d   :  { %v13778_v41 = vpop.f32.mrf.mxu1  ;;  %v1806_v29 = vpop.f32.mrf.mxu0  ;;  %13936 = vmatmul.mubr.msk.f32.gmra.mxu0 %vm78_vm0, %v10722_v37 }
 0x28e   :  { %v18971_v58 = vmax.f32 %v26107_v27, %v1806_v29  ;;  %13938 = vmatprep.mubr.msk.f32.mxu0 %vm16040_vm1, %v16039_v1  ;;  %v10837_v27 = vld [vmem:[%s25446_s0 + $0xa60] sm:$0xff] }
 0x28f   :  { %v18978_v0 = vpop.f32.mrf.mxu1  ;;  %14119 = vmatmul.mubr.msk.f32.gmra.mxu1 %vm78_vm0, %v10836_v11  ;;  %v13598_v41 = vpop.f32.mrf.mxu0  ;;  %v10724_v11 = vld [vmem:[%s25446_s0 + $0x8a0] sm:$0xff] }
 0x290   :  { %14121 = vmatprep.mubr.msk.f32.mxu1 %vm16040_vm1, %v16039_v1 }
 0x291   :  { %v13781_v20 = vpop.f32.mrf.mxu1  ;;  %v1811_v29 = vpop.f32.mrf.mxu0  ;;  %13939 = vmatmul.mubr.msk.f32.gmra.mxu0 %vm78_vm0, %v10723_v32 }
 0x292   :  { %v18992_v54 = vmax.f32 %v26108_v39, %v1811_v29  ;;  %13941 = vmatprep.mubr.msk.f32.mxu0 %vm16040_vm1, %v16039_v1  ;;  %v26109_v39 = vmax.f32 %v17786_v23, %v17793_v31  ;;  %v10839_v23 = vld [vmem:[%s25446_s0 + $0xa70] sm:$0xff] }
 0x293   :  { %v18999_v41 = vpop.f32.mrf.mxu1  ;;  %14122 = vmatmul.mubr.msk.f32.gmra.mxu1 %vm78_vm0, %v10837_v27  ;;  %v13601_v20 = vpop.f32.mrf.mxu0  ;;  %v10725_v27 = vld [vmem:[%s25446_s0 + $0x8a8] sm:$0xff] }
 0x294   :  { %14124 = vmatprep.mubr.msk.f32.mxu1 %vm16040_vm1, %v16039_v1 }
 0x295   :  { %v13784_v59 = vpop.f32.mrf.mxu1  ;;  %v2803_v29 = vpop.f32.mrf.mxu0  ;;  %13942 = vmatmul.mubr.msk.f32.gmra.mxu0 %vm78_vm0, %v10724_v11 }
 0x296   :  { %v19013_v37 = vmax.f32 %v26109_v39, %v2803_v29  ;;  %13944 = vmatprep.mubr.msk.f32.mxu0 %vm16040_vm1, %v16039_v1  ;;  %v26110_v39 = vmax.f32 %v17807_v16, %v17814_v22  ;;  %v10840_v16 = vld [vmem:[%s25446_s0 + $0xa78] sm:$0xff] }
 0x297   :  { %v19020_v20 = vpop.f32.mrf.mxu1  ;;  %14125 = vmatmul.mubr.msk.f32.gmra.mxu1 %vm78_vm0, %v10838_v52  ;;  %v13799_v59 = vpop.f32.mrf.mxu0  ;;  %v10726_v52 = vld [vmem:[%s25446_s0 + $0x8b0] sm:$0xff] }
 0x298   :  { %14127 = vmatprep.mubr.msk.f32.mxu1 %vm16040_vm1, %v16039_v1 }
 0x299   :  { %v13982_v31 = vpop.f32.mrf.mxu1  ;;  %v2808_v29 = vpop.f32.mrf.mxu0  ;;  %13945 = vmatmul.mubr.msk.f32.gmra.mxu0 %vm78_vm0, %v10725_v27 }
 0x29a   :  { %v19034_v32 = vmax.f32 %v26110_v39, %v2808_v29  ;;  %13947 = vmatprep.mubr.msk.f32.mxu0 %vm16040_vm1, %v16039_v1  ;;  %v26111_v39 = vmax.f32 %v17828_v44, %v17835_v50  ;;  %v10841_v44 = vld [vmem:[%s25446_s0 + $0xa80] sm:$0xff] }
 0x29b   :  { %v19041_v59 = vpop.f32.mrf.mxu1  ;;  %14128 = vmatmul.mubr.msk.f32.gmra.mxu1 %vm78_vm0, %v10839_v23  ;;  %v13802_v31 = vpop.f32.mrf.mxu0  ;;  %v10727_v23 = vld [vmem:[%s25446_s0 + $0x8b8] sm:$0xff] }
 0x29c   :  { %14130 = vmatprep.mubr.msk.f32.mxu1 %vm16040_vm1, %v16039_v1 }
 0x29d   :  { %v13985_v22 = vpop.f32.mrf.mxu1  ;;  %v2813_v29 = vpop.f32.mrf.mxu0  ;;  %13948 = vmatmul.mubr.msk.f32.gmra.mxu0 %vm78_vm0, %v10726_v52 }
 0x29e   :  { %v19055_v11 = vmax.f32 %v26111_v39, %v2813_v29  ;;  %13950 = vmatprep.mubr.msk.f32.mxu0 %vm16040_vm1, %v16039_v1  ;;  %v26112_v39 = vmax.f32 %v17849_v30, %v17856_v57  ;;  %v10842_v30 = vld [vmem:[%s25446_s0 + $0xa88] sm:$0xff] }
 0x29f   :  { %v19062_v31 = vpop.f32.mrf.mxu1  ;;  %14131 = vmatmul.mubr.msk.f32.gmra.mxu1 %vm78_vm0, %v10840_v16  ;;  %v13805_v22 = vpop.f32.mrf.mxu0  ;;  %v10728_v16 = vld [vmem:[%s25446_s0 + $0x8c0] sm:$0xff] }
 0x2a0   :  { %14133 = vmatprep.mubr.msk.f32.mxu1 %vm16040_vm1, %v16039_v1 }
 0x2a1   :  { %v13988_v50 = vpop.f32.mrf.mxu1  ;;  %v2818_v29 = vpop.f32.mrf.mxu0  ;;  %13951 = vmatmul.mubr.msk.f32.gmra.mxu0 %vm78_vm0, %v10727_v23 }
 0x2a2   :  { %v19076_v27 = vmax.f32 %v26112_v39, %v2818_v29  ;;  %13953 = vmatprep.mubr.msk.f32.mxu0 %vm16040_vm1, %v16039_v1  ;;  %v26113_v39 = vmax.f32 %v17870_v10, %v17877_v7  ;;  %v10843_v10 = vld [vmem:[%s25446_s0 + $0xa90] sm:$0xff] }
 0x2a3   :  { %v19083_v22 = vpop.f32.mrf.mxu1  ;;  %14134 = vmatmul.mubr.msk.f32.gmra.mxu1 %vm78_vm0, %v10841_v44  ;;  %v13808_v50 = vpop.f32.mrf.mxu0  ;;  %v10729_v44 = vld [vmem:[%s25446_s0 + $0x8c8] sm:$0xff] }
 0x2a4   :  { %14136 = vmatprep.mubr.msk.f32.mxu1 %vm16040_vm1, %v16039_v1 }
 0x2a5   :  { %v13991_v57 = vpop.f32.mrf.mxu1  ;;  %v2823_v29 = vpop.f32.mrf.mxu0  ;;  %13954 = vmatmul.mubr.msk.f32.gmra.mxu0 %vm78_vm0, %v10728_v16 }
 0x2a6   :  { %v19097_v52 = vmax.f32 %v26113_v39, %v2823_v29  ;;  %13956 = vmatprep.mubr.msk.f32.mxu0 %vm16040_vm1, %v16039_v1  ;;  %v26114_v39 = vmax.f32 %v17891_v48, %v17898_v14  ;;  %v10844_v48 = vld [vmem:[%s25446_s0 + $0xa98] sm:$0xff] }
 0x2a7   :  { %v19104_v50 = vpop.f32.mrf.mxu1  ;;  %14137 = vmatmul.mubr.msk.f32.gmra.mxu1 %vm78_vm0, %v10842_v30  ;;  %v13811_v57 = vpop.f32.mrf.mxu0  ;;  %v10730_v30 = vld [vmem:[%s25446_s0 + $0x8d0] sm:$0xff] }
 0x2a8   :  { %14139 = vmatprep.mubr.msk.f32.mxu1 %vm16040_vm1, %v16039_v1 }
 0x2a9   :  { %v13994_v7 = vpop.f32.mrf.mxu1  ;;  %v2828_v29 = vpop.f32.mrf.mxu0  ;;  %13957 = vmatmul.mubr.msk.f32.gmra.mxu0 %vm78_vm0, %v10729_v44 }
 0x2aa   :  { %v19118_v23 = vmax.f32 %v26114_v39, %v2828_v29  ;;  %13959 = vmatprep.mubr.msk.f32.mxu0 %vm16040_vm1, %v16039_v1  ;;  %v26115_v39 = vmax.f32 %v17912_v55, %v17919_v21  ;;  %v10845_v55 = vld [vmem:[%s25446_s0 + $0xaa0] sm:$0xff] }
 0x2ab   :  { %v19125_v57 = vpop.f32.mrf.mxu1  ;;  %14140 = vmatmul.mubr.msk.f32.gmra.mxu1 %vm78_vm0, %v10843_v10  ;;  %v13814_v7 = vpop.f32.mrf.mxu0  ;;  %v10731_v10 = vld [vmem:[%s25446_s0 + $0x8d8] sm:$0xff] }
 0x2ac   :  { %14142 = vmatprep.mubr.msk.f32.mxu1 %vm16040_vm1, %v16039_v1 }
 0x2ad   :  { %v13997_v14 = vpop.f32.mrf.mxu1  ;;  %v2833_v29 = vpop.f32.mrf.mxu0  ;;  %13960 = vmatmul.mubr.msk.f32.gmra.mxu0 %vm78_vm0, %v10730_v30 }
 0x2ae   :  { %v19139_v16 = vmax.f32 %v26115_v39, %v2833_v29  ;;  %13962 = vmatprep.mubr.msk.f32.mxu0 %vm16040_vm1, %v16039_v1  ;;  %v26116_v39 = vmax.f32 %v17933_v62, %v17940_v28  ;;  %v10846_v62 = vld [vmem:[%s25446_s0 + $0xaa8] sm:$0xff] }
 0x2af   :  { %v19146_v7 = vpop.f32.mrf.mxu1  ;;  %14143 = vmatmul.mubr.msk.f32.gmra.mxu1 %vm78_vm0, %v10844_v48  ;;  %v13817_v14 = vpop.f32.mrf.mxu0  ;;  %v10732_v48 = vld [vmem:[%s25446_s0 + $0x8e0] sm:$0xff] }
 0x2b0   :  { %14145 = vmatprep.mubr.msk.f32.mxu1 %vm16040_vm1, %v16039_v1 }
 0x2b1   :  { %v14000_v21 = vpop.f32.mrf.mxu1  ;;  %v2838_v29 = vpop.f32.mrf.mxu0  ;;  %13963 = vmatmul.mubr.msk.f32.gmra.mxu0 %vm78_vm0, %v10731_v10 }
 0x2b2   :  { %v19160_v44 = vmax.f32 %v26116_v39, %v2838_v29  ;;  %13965 = vmatprep.mubr.msk.f32.mxu0 %vm16040_vm1, %v16039_v1  ;;  %v26117_v39 = vmax.f32 %v17954_v12, %v17961_v35  ;;  %v11018_v12 = vld [vmem:[%s25446_s0 + $0xc78] sm:$0xff] }
 0x2b3   :  { %v19167_v14 = vpop.f32.mrf.mxu1  ;;  %14146 = vmatmul.mubr.msk.f32.gmra.mxu1 %vm78_vm0, %v10845_v55  ;;  %v13820_v21 = vpop.f32.mrf.mxu0  ;;  %v10904_v55 = vld [vmem:[%s25446_s0 + $0xab0] sm:$0xff] }
 0x2b4   :  { %14148 = vmatprep.mubr.msk.f32.mxu1 %vm16040_vm1, %v16039_v1 }
 0x2b5   :  { %v14003_v28 = vpop.f32.mrf.mxu1  ;;  %v2843_v29 = vpop.f32.mrf.mxu0  ;;  %13966 = vmatmul.mubr.msk.f32.gmra.mxu0 %vm78_vm0, %v10732_v48 }
 0x2b6   :  { %v19181_v30 = vmax.f32 %v26117_v39, %v2843_v29  ;;  %14163 = vmatprep.mubr.msk.f32.mxu0 %vm16040_vm1, %v16039_v1  ;;  %v26118_v39 = vmax.f32 %v17975_v19, %v17985_v51  ;;  %v11019_v51 = vld [vmem:[%s25446_s0 + $0xc80] sm:$0xff] }
 0x2b7   :  { %v19188_v21 = vpop.f32.mrf.mxu1  ;;  %14149 = vmatmul.mubr.msk.f32.gmra.mxu1 %vm78_vm0, %v10846_v62  ;;  %v13823_v28 = vpop.f32.mrf.mxu0  ;;  %v15993_v62 = vld [vmem:[%s25447_s1 + $0x28] sm:$0xff] }
 0x2b8   :  { %14346 = vmatprep.mubr.msk.f32.mxu1 %vm16040_vm1, %v16039_v1  ;;  %v10905_v28 = vld [vmem:[%s25446_s0 + $0xab8] sm:$0xff] }
 0x2b9   :  { %v14006_v35 = vpop.f32.mrf.mxu1  ;;  %v2848_v29 = vpop.f32.mrf.mxu0  ;;  %14164 = vmatmul.mubr.msk.f32.vlgmr.msra.gmra.mxu0 %vm78_vm0, %v10904_v55 }
 0x2ba   :  { %v19202_v10 = vmax.f32 %v26118_v39, %v2848_v29  ;;  %14518 = vmatpush3.msra.mxu0 %v15993_v62  ;;  %14166 = vmatprep.mubr.msk.f32.mxu0 %vm16040_vm1, %v16039_v1 }
 0x2bb   :  { %v19212_v35 = vpop.f32.mrf.mxu1  ;;  %14347 = vmatmul.mubr.msk.f32.vlgmr.msra.gmra.mxu1 %vm78_vm0, %v11018_v12  ;;  %v13826_v55 = vpop.f32.mrf.mxu0  ;;  %14519 = vmatprep.subr.mxu0 %v16039_v1  ;;  %v26119_v12 = vmax.f32 %v18001_v33, %v18011_v42  ;;  %v11020_v42 = vld [vmem:[%s25446_s0 + $0xc88] sm:$0xff] }
 0x2bc   :  { %14701 = vmatpush3.msra.mxu1 %v15993_v62  ;;  %14349 = vmatprep.mubr.msk.f32.mxu1 %vm16040_vm1, %v16039_v1  ;;  %v10906_v62 = vld [vmem:[%s25446_s0 + $0xac0] sm:$0xff]  ;;  %v10907_v33 = vld [vmem:[%s25446_s0 + $0xac8] sm:$0xff] }
 0x2bd   :  { %v14009_v29 = vpop.f32.mrf.mxu1  ;;  %v2853_v39 = vpop.f32.mrf.mxu0  ;;  %14167 = vmatmul.mubr.msk.f32.gmra.mxu0 %vm78_vm0, %v10905_v28  ;;  %14702 = vmatprep.subr.mxu1 %v16039_v1 }
 0x2be   :  { %v19228_v55 = vmax.f32 %v26119_v12, %v2853_v39  ;;  %14169 = vmatprep.mubr.msk.f32.mxu0 %vm16040_vm1, %v16039_v1  ;;  %v15994_v29 = vld [vmem:[%s25447_s1 + $0x20] sm:$0xff] }
 0x2bf   :  { %14520 = vmatpush3.msra.mxu0 %v15994_v29  ;;  %v19238_v28 = vpop.f32.mrf.mxu1  ;;  %14350 = vmatmul.mubr.msk.f32.gmra.mxu1 %vm78_vm0, %v11019_v51  ;;  %v13829_v19 = vpop.f32.mrf.mxu0 }
 0x2c0   :  { %14521 = vmatprep.subr.mxu0 %v16039_v1  ;;  %14352 = vmatprep.mubr.msk.f32.mxu1 %vm16040_vm1, %v16039_v1  ;;  %v26120_v19 = vmax.f32 %v18027_v63, %v18037_v40  ;;  %v11021_v40 = vld [vmem:[%s25446_s0 + $0xc90] sm:$0xff] }
 0x2c1   :  { %14703 = vmatpush3.msra.mxu1 %v15994_v29  ;;  %v14012_v39 = vpop.f32.mrf.mxu1  ;;  %v2858_v12 = vpop.f32.mrf.mxu0  ;;  %14170 = vmatmul.mubr.msk.f32.gmra.mxu0 %vm78_vm0, %v10906_v62  ;;  %v15995_v29 = vld [vmem:[%s25447_s1 + $0x18] sm:$0xff]  ;;  %v10908_v63 = vld [vmem:[%s25446_s0 + $0xad0] sm:$0xff] }
 0x2c2   :  { %14704 = vmatprep.subr.mxu1 %v16039_v1  ;;  %v19254_v51 = vmax.f32 %v26120_v19, %v2858_v12  ;;  %14172 = vmatprep.mubr.msk.f32.mxu0 %vm16040_vm1, %v16039_v1 }
 0x2c3   :  { %14522 = vmatpush3.msra.mxu0 %v15995_v29  ;;  %v19264_v62 = vpop.f32.mrf.mxu1  ;;  %14353 = vmatmul.mubr.msk.f32.gmra.mxu1 %vm78_vm0, %v11020_v42  ;;  %v13832_v39 = vpop.f32.mrf.mxu0  ;;  %v26121_v42 = vmax.f32 %v18053_v56, %v18063_v15  ;;  %v11022_v15 = vld [vmem:[%s25446_s0 + $0xc98] sm:$0xff] }
 0x2c4   :  { %14523 = vmatprep.subr.mxu0 %v16039_v1  ;;  %14355 = vmatprep.mubr.msk.f32.mxu1 %vm16040_vm1, %v16039_v1  ;;  %v10909_v56 = vld [vmem:[%s25446_s0 + $0xad8] sm:$0xff] }
 0x2c5   :  { %14705 = vmatpush3.msra.mxu1 %v15995_v29  ;;  %v14015_v12 = vpop.f32.mrf.mxu1  ;;  %v2863_v19 = vpop.f32.mrf.mxu0  ;;  %14173 = vmatmul.mubr.msk.f32.gmra.mxu0 %vm78_vm0, %v10907_v33  ;;  %v15996_v29 = vld [vmem:[%s25447_s1 + $0x10] sm:$0xff] }
 0x2c6   :  { %14706 = vmatprep.subr.mxu1 %v16039_v1  ;;  %v19280_v39 = vmax.f32 %v26121_v42, %v2863_v19  ;;  %14175 = vmatprep.mubr.msk.f32.mxu0 %vm16040_vm1, %v16039_v1 }
 0x2c7   :  { %14524 = vmatpush3.msra.mxu0 %v15996_v29  ;;  %v19290_v33 = vpop.f32.mrf.mxu1  ;;  %14356 = vmatmul.mubr.msk.f32.gmra.mxu1 %vm78_vm0, %v11021_v40  ;;  %v13835_v12 = vpop.f32.mrf.mxu0  ;;  %v26122_v40 = vmax.f32 %v18079_v47, %v18089_v25  ;;  %v11023_v25 = vld [vmem:[%s25446_s0 + $0xca0] sm:$0xff] }
 0x2c8   :  { %14525 = vmatprep.subr.mxu0 %v16039_v1  ;;  %14358 = vmatprep.mubr.msk.f32.mxu1 %vm16040_vm1, %v16039_v1  ;;  %v10910_v47 = vld [vmem:[%s25446_s0 + $0xae0] sm:$0xff] }
 0x2c9   :  { %14707 = vmatpush3.msra.mxu1 %v15996_v29  ;;  %v14018_v19 = vpop.f32.mrf.mxu1  ;;  %v2868_v42 = vpop.f32.mrf.mxu0  ;;  %14176 = vmatmul.mubr.msk.f32.gmra.mxu0 %vm78_vm0, %v10908_v63  ;;  %v15997_v29 = vld [vmem:[%s25447_s1 + $0x8] sm:$0xff] }
 0x2ca   :  { %14708 = vmatprep.subr.mxu1 %v16039_v1  ;;  %v19306_v12 = vmax.f32 %v26122_v40, %v2868_v42  ;;  %14178 = vmatprep.mubr.msk.f32.mxu0 %vm16040_vm1, %v16039_v1 }
 0x2cb   :  { %14526 = vmatpush3.msra.mxu0 %v15997_v29  ;;  %v19316_v63 = vpop.f32.mrf.mxu1  ;;  %14359 = vmatmul.mubr.msk.f32.gmra.mxu1 %vm78_vm0, %v11022_v15  ;;  %v13838_v19 = vpop.f32.mrf.mxu0  ;;  %v26123_v15 = vmax.f32 %v18105_v60, %v18115_v36  ;;  %v11024_v36 = vld [vmem:[%s25446_s0 + $0xca8] sm:$0xff] }
 0x2cc   :  { %14527 = vmatprep.subr.mxu0 %v16039_v1  ;;  %14361 = vmatprep.mubr.msk.f32.mxu1 %vm16040_vm1, %v16039_v1  ;;  %v10911_v60 = vld [vmem:[%s25446_s0 + $0xae8] sm:$0xff] }
 0x2cd   :  { %14709 = vmatpush3.msra.mxu1 %v15997_v29  ;;  %v14021_v42 = vpop.f32.mrf.mxu1  ;;  %v2873_v40 = vpop.f32.mrf.mxu0  ;;  %14179 = vmatmul.mubr.msk.f32.gmra.mxu0 %vm78_vm0, %v10909_v56  ;;  %v15998_v29 = vld [vmem:[%s25447_s1] sm:$0xff] }
 0x2ce   :  { %14710 = vmatprep.subr.mxu1 %v16039_v1  ;;  %v19332_v19 = vmax.f32 %v26123_v15, %v2873_v40  ;;  %14181 = vmatprep.mubr.msk.f32.mxu0 %vm16040_vm1, %v16039_v1 }
 0x2cf   :  { %14528 = vmatpush3.msra.mxu0 %v15998_v29  ;;  %v19342_v56 = vpop.f32.mrf.mxu1  ;;  %14362 = vmatmul.mubr.msk.f32.gmra.mxu1 %vm78_vm0, %v11023_v25  ;;  %v13841_v42 = vpop.f32.mrf.mxu0  ;;  %v26124_v25 = vmax.f32 %v18131_v17, %v18138_v26  ;;  %v11025_v26 = vld [vmem:[%s25446_s0 + $0xcb0] sm:$0xff] }
 0x2d0   :  { %14883 = vmatprep.subr.mxu0 %v16039_v1  ;;  %14364 = vmatprep.mubr.msk.f32.mxu1 %vm16040_vm1, %v16039_v1 }
 0x2d1   :  { %14711 = vmatpush3.msra.mxu1 %v15998_v29  ;;  %v14024_v40 = vpop.f32.mrf.mxu1  ;;  %v2878_v15 = vpop.f32.mrf.mxu0  ;;  %14182 = vmatmul.mubr.msk.f32.gmra.mxu0 %vm78_vm0, %v10910_v47 }
 0x2d2   :  { %15066 = vmatprep.subr.mxu1 %v16039_v1  ;;  %v19358_v42 = vmax.f32 %v26124_v25, %v2878_v15  ;;  %14184 = vmatprep.mubr.msk.f32.mxu0 %vm16040_vm1, %v16039_v1  ;;  %v26125_v15 = vmax.f32 %v18152_v53, %v18159_v9  ;;  %v11026_v53 = vld [vmem:[%s25446_s0 + $0xcb8] sm:$0xff] }
 0x2d3   :  { %v19365_v48 = vpop.f32.mrf.mxu1  ;;  %14365 = vmatmul.mubr.msk.f32.gmra.mxu1 %vm78_vm0, %v11024_v36  ;;  %v13844_v29 = vpop.f32.mrf.mxu0  ;;  %v10912_v36 = vld [vmem:[%s25446_s0 + $0xaf0] sm:$0xff] }
 0x2d4   :  { %14367 = vmatprep.mubr.msk.f32.mxu1 %vm16040_vm1, %v16039_v1 }
 0x2d5   :  { %v14027_v17 = vpop.f32.mrf.mxu1  ;;  %v2883_v40 = vpop.f32.mrf.mxu0  ;;  %14185 = vmatmul.mubr.msk.f32.gmra.mxu0 %vm78_vm0, %v10911_v60 }
 0x2d6   :  { %v19379_v25 = vmax.f32 %v26125_v15, %v2883_v40  ;;  %14187 = vmatprep.mubr.msk.f32.mxu0 %vm16040_vm1, %v16039_v1  ;;  %v26126_v15 = vmax.f32 %v18173_v46, %v18180_v2  ;;  %v11027_v46 = vld [vmem:[%s25446_s0 + $0xcc0] sm:$0xff] }
 0x2d7   :  { %v19386_v29 = vpop.f32.mrf.mxu1  ;;  %14368 = vmatmul.mubr.msk.f32.gmra.mxu1 %vm78_vm0, %v11025_v26  ;;  %v13847_v17 = vpop.f32.mrf.mxu0  ;;  %v10913_v26 = vld [vmem:[%s25446_s0 + $0xaf8] sm:$0xff] }
 0x2d8   :  { %14370 = vmatprep.mubr.msk.f32.mxu1 %vm16040_vm1, %v16039_v1 }
 0x2d9   :  { %v14030_v9 = vpop.f32.mrf.mxu1  ;;  %v2888_v40 = vpop.f32.mrf.mxu0  ;;  %14188 = vmatmul.mubr.msk.f32.gmra.mxu0 %vm78_vm0, %v10912_v36 }
 0x2da   :  { %v19400_v47 = vmax.f32 %v26126_v15, %v2888_v40  ;;  %14190 = vmatprep.mubr.msk.f32.mxu0 %vm16040_vm1, %v16039_v1  ;;  %v26127_v15 = vmax.f32 %v18194_v8, %v18201_v49  ;;  %v11028_v8 = vld [vmem:[%s25446_s0 + $0xcc8] sm:$0xff] }
 0x2db   :  { %v19407_v17 = vpop.f32.mrf.mxu1  ;;  %14371 = vmatmul.mubr.msk.f32.gmra.mxu1 %vm78_vm0, %v11026_v53  ;;  %v13850_v9 = vpop.f32.mrf.mxu0  ;;  %v10914_v53 = vld [vmem:[%s25446_s0 + $0xb00] sm:$0xff] }
 0x2dc   :  { %14373 = vmatprep.mubr.msk.f32.mxu1 %vm16040_vm1, %v16039_v1 }
 0x2dd   :  { %v14033_v2 = vpop.f32.mrf.mxu1  ;;  %v2893_v40 = vpop.f32.mrf.mxu0  ;;  %14191 = vmatmul.mubr.msk.f32.gmra.mxu0 %vm78_vm0, %v10913_v26 }
 0x2de   :  { %v19421_v60 = vmax.f32 %v26127_v15, %v2893_v40  ;;  %14193 = vmatprep.mubr.msk.f32.mxu0 %vm16040_vm1, %v16039_v1  ;;  %v26128_v15 = vmax.f32 %v18215_v13, %v18222_v6  ;;  %v11029_v13 = vld [vmem:[%s25446_s0 + $0xcd0] sm:$0xff] }
 0x2df   :  { %v19428_v9 = vpop.f32.mrf.mxu1  ;;  %14374 = vmatmul.mubr.msk.f32.gmra.mxu1 %vm78_vm0, %v11027_v46  ;;  %v13853_v2 = vpop.f32.mrf.mxu0  ;;  %v10915_v46 = vld [vmem:[%s25446_s0 + $0xb08] sm:$0xff] }
 0x2e0   :  { %14376 = vmatprep.mubr.msk.f32.mxu1 %vm16040_vm1, %v16039_v1 }
 0x2e1   :  { %v14036_v49 = vpop.f32.mrf.mxu1  ;;  %v2898_v40 = vpop.f32.mrf.mxu0  ;;  %14194 = vmatmul.mubr.msk.f32.gmra.mxu0 %vm78_vm0, %v10914_v53 }
 0x2e2   :  { %v19442_v36 = vmax.f32 %v26128_v15, %v2898_v40  ;;  %14196 = vmatprep.mubr.msk.f32.mxu0 %vm16040_vm1, %v16039_v1  ;;  %v26129_v15 = vmax.f32 %v18236_v24, %v18243_v4  ;;  %v11030_v24 = vld [vmem:[%s25446_s0 + $0xcd8] sm:$0xff] }
 0x2e3   :  { %v19449_v2 = vpop.f32.mrf.mxu1  ;;  %14377 = vmatmul.mubr.msk.f32.gmra.mxu1 %vm78_vm0, %v11028_v8  ;;  %v13856_v49 = vpop.f32.mrf.mxu0  ;;  %v10916_v8 = vld [vmem:[%s25446_s0 + $0xb10] sm:$0xff] }
 0x2e4   :  { %14379 = vmatprep.mubr.msk.f32.mxu1 %vm16040_vm1, %v16039_v1 }
 0x2e5   :  { %v14039_v6 = vpop.f32.mrf.mxu1  ;;  %v2903_v40 = vpop.f32.mrf.mxu0  ;;  %14197 = vmatmul.mubr.msk.f32.gmra.mxu0 %vm78_vm0, %v10915_v46 }
 0x2e6   :  { %v19463_v26 = vmax.f32 %v26129_v15, %v2903_v40  ;;  %14199 = vmatprep.mubr.msk.f32.mxu0 %vm16040_vm1, %v16039_v1  ;;  %v26130_v15 = vmax.f32 %v18257_v43, %v18264_v61  ;;  %v11031_v43 = vld [vmem:[%s25446_s0 + $0xce0] sm:$0xff] }
 0x2e7   :  { %v19470_v49 = vpop.f32.mrf.mxu1  ;;  %14380 = vmatmul.mubr.msk.f32.gmra.mxu1 %vm78_vm0, %v11029_v13  ;;  %v13859_v6 = vpop.f32.mrf.mxu0  ;;  %v10917_v13 = vld [vmem:[%s25446_s0 + $0xb18] sm:$0xff] }
 0x2e8   :  { %14382 = vmatprep.mubr.msk.f32.mxu1 %vm16040_vm1, %v16039_v1 }
 0x2e9   :  { %v14042_v4 = vpop.f32.mrf.mxu1  ;;  %v2908_v40 = vpop.f32.mrf.mxu0  ;;  %14200 = vmatmul.mubr.msk.f32.gmra.mxu0 %vm78_vm0, %v10916_v8 }
 0x2ea   :  { %v19484_v53 = vmax.f32 %v26130_v15, %v2908_v40  ;;  %14202 = vmatprep.mubr.msk.f32.mxu0 %vm16040_vm1, %v16039_v1  ;;  %v26131_v15 = vmax.f32 %v18278_v5, %v18285_v18  ;;  %v11032_v5 = vld [vmem:[%s25446_s0 + $0xce8] sm:$0xff] }
 0x2eb   :  { %v19491_v6 = vpop.f32.mrf.mxu1  ;;  %14383 = vmatmul.mubr.msk.f32.gmra.mxu1 %vm78_vm0, %v11030_v24  ;;  %v13862_v4 = vpop.f32.mrf.mxu0  ;;  %v10918_v24 = vld [vmem:[%s25446_s0 + $0xb20] sm:$0xff] }
 0x2ec   :  { %14385 = vmatprep.mubr.msk.f32.mxu1 %vm16040_vm1, %v16039_v1 }
 0x2ed   :  { %v14045_v61 = vpop.f32.mrf.mxu1  ;;  %v2913_v40 = vpop.f32.mrf.mxu0  ;;  %14203 = vmatmul.mubr.msk.f32.gmra.mxu0 %vm78_vm0, %v10917_v13  ;;  %v26138_v13 = vld [vmem:[#allocation66_spill] sm:$0xff] }
 0x2ee   :  { %v19505_v46 = vmax.f32 %v26131_v15, %v2913_v40  ;;  %14205 = vmatprep.mubr.msk.f32.mxu0 %vm16040_vm1, %v16039_v1  ;;  %v26134_v15 = vmax.f32 %v18299_v3, %v18306_v45  ;;  %v11033_v3 = vld [vmem:[%s25446_s0 + $0xcf0] sm:$0xff] }
 0x2ef   :  { %v19512_v4 = vpop.f32.mrf.mxu1  ;;  %14386 = vmatmul.mubr.msk.f32.gmra.mxu1 %vm78_vm0, %v11031_v43  ;;  %v13865_v61 = vpop.f32.mrf.mxu0  ;;  %v10919_v43 = vld [vmem:[%s25446_s0 + $0xb28] sm:$0xff] }
 0x2f0   :  { %26132 = vst [vmem:[#allocation61_spill] sm:$0xff] %v19505_v46  ;;  %26133 = vst [vmem:[#allocation62_spill] sm:$0xff] %v19512_v4  ;;  %14388 = vmatprep.mubr.msk.f32.mxu1 %vm16040_vm1, %v16039_v1 }
 0x2f1   :  { %v14048_v18 = vpop.f32.mrf.mxu1  ;;  %v2918_v40 = vpop.f32.mrf.mxu0  ;;  %14206 = vmatmul.mubr.msk.f32.gmra.mxu0 %vm78_vm0, %v10918_v24  ;;  %v26143_v24 = vld [vmem:[#allocation68_spill] sm:$0xff] }
 0x2f2   :  { %v19526_v8 = vmax.f32 %v26134_v15, %v2918_v40  ;;  %14208 = vmatprep.mubr.msk.f32.mxu0 %vm16040_vm1, %v16039_v1  ;;  %v26137_v15 = vld [vmem:[#allocation65_spill] sm:$0xff] }
 0x2f3   :  { %v19533_v61 = vpop.f32.mrf.mxu1  ;;  %14389 = vmatmul.mubr.msk.f32.gmra.mxu1 %vm78_vm0, %v11032_v5  ;;  %v13868_v18 = vpop.f32.mrf.mxu0  ;;  %v26139_v4 = vmax.f32 %v26137_v15, %v26138_v13  ;;  %v10920_v5 = vld [vmem:[%s25446_s0 + $0xb30] sm:$0xff]  ;;  %v26142_v15 = vld [vmem:[#allocation67_spill] sm:$0xff] }
 0x2f4   :  { %26135 = vst [vmem:[#allocation63_spill] sm:$0xff] %v19526_v8  ;;  %26136 = vst [vmem:[#allocation64_spill] sm:$0xff] %v19533_v61  ;;  %14391 = vmatprep.mubr.msk.f32.mxu1 %vm16040_vm1, %v16039_v1  ;;  %v26144_v61 = vmax.f32 %v26142_v15, %v26143_v24  ;;  %v26147_v15 = vld [vmem:[#allocation5_spill] sm:$0xff] }
 0x2f5   :  { %v14051_v45 = vpop.f32.mrf.mxu1  ;;  %v2923_v40 = vpop.f32.mrf.mxu0  ;;  %14209 = vmatmul.mubr.msk.f32.gmra.mxu0 %vm78_vm0, %v10919_v43  ;;  %v26148_v43 = vld [vmem:[#allocation6_spill] sm:$0xff] }
 0x2f6   :  { %v19547_v46 = vmax.f32 %v26139_v4, %v2923_v40  ;;  %14211 = vmatprep.mubr.msk.f32.mxu0 %vm16040_vm1, %v16039_v1  ;;  %v11034_v4 = vld [vmem:[%s25446_s0 + $0xcf8] sm:$0xff] }
 0x2f7   :  { %v19554_v18 = vpop.f32.mrf.mxu1  ;;  %14392 = vmatmul.mubr.msk.f32.gmra.mxu1 %vm78_vm0, %v11033_v3  ;;  %v13871_v45 = vpop.f32.mrf.mxu0  ;;  %v10921_v3 = vld [vmem:[%s25446_s0 + $0xb38] sm:$0xff] }
 0x2f8   :  { %26140 = vst [vmem:[#allocation65_spill] sm:$0xff] %v19547_v46  ;;  %26141 = vst [vmem:[#allocation66_spill] sm:$0xff] %v19554_v18  ;;  %14394 = vmatprep.mubr.msk.f32.mxu1 %vm16040_vm1, %v16039_v1  ;;  %v26149_v18 = vmax.f32 %v26147_v15, %v26148_v43  ;;  %v26152_v15 = vld [vmem:[#allocation7_spill] sm:$0xff] }
 0x2f9   :  { %v14054_v13 = vpop.f32.mrf.mxu1  ;;  %v2928_v40 = vpop.f32.mrf.mxu0  ;;  %14212 = vmatmul.mubr.msk.f32.gmra.mxu0 %vm78_vm0, %v10920_v5  ;;  %v26153_v5 = vld [vmem:[#allocation8_spill] sm:$0xff] }
 0x2fa   :  { %v19568_v8 = vmax.f32 %v26144_v61, %v2928_v40  ;;  %14214 = vmatprep.mubr.msk.f32.mxu0 %vm16040_vm1, %v16039_v1  ;;  %v11035_v61 = vld [vmem:[%s25446_s0 + $0xd00] sm:$0xff] }
 0x2fb   :  { %v19575_v45 = vpop.f32.mrf.mxu1  ;;  %14395 = vmatmul.mubr.msk.f32.gmra.mxu1 %vm78_vm0, %v11034_v4  ;;  %v13874_v13 = vpop.f32.mrf.mxu0  ;;  %v10922_v4 = vld [vmem:[%s25446_s0 + $0xb40] sm:$0xff] }
 0x2fc   :  { %26145 = vst [vmem:[#allocation67_spill] sm:$0xff] %v19568_v8  ;;  %26146 = vst [vmem:[#allocation68_spill] sm:$0xff] %v19575_v45  ;;  %14397 = vmatprep.mubr.msk.f32.mxu1 %vm16040_vm1, %v16039_v1  ;;  %v26154_v45 = vmax.f32 %v26152_v15, %v26153_v5  ;;  %v26157_v15 = vld [vmem:[#allocation9_spill] sm:$0xff] }
 0x2fd   :  { %v14057_v24 = vpop.f32.mrf.mxu1  ;;  %v2933_v40 = vpop.f32.mrf.mxu0  ;;  %14215 = vmatmul.mubr.msk.f32.gmra.mxu0 %vm78_vm0, %v10921_v3  ;;  %v26158_v3 = vld [vmem:[#allocation10_spill] sm:$0xff] }
 0x2fe   :  { %v19589_v46 = vmax.f32 %v26149_v18, %v2933_v40  ;;  %14217 = vmatprep.mubr.msk.f32.mxu0 %vm16040_vm1, %v16039_v1  ;;  %v11036_v18 = vld [vmem:[%s25446_s0 + $0xd08] sm:$0xff] }
 0x2ff   :  { %v19596_v13 = vpop.f32.mrf.mxu1  ;;  %14398 = vmatmul.mubr.msk.f32.gmra.mxu1 %vm78_vm0, %v11035_v61  ;;  %v13877_v24 = vpop.f32.mrf.mxu0  ;;  %v10923_v61 = vld [vmem:[%s25446_s0 + $0xb48] sm:$0xff] }
 0x300   :  { %26150 = vst [vmem:[#allocation5_spill] sm:$0xff] %v19589_v46  ;;  %26151 = vst [vmem:[#allocation6_spill] sm:$0xff] %v19596_v13  ;;  %14400 = vmatprep.mubr.msk.f32.mxu1 %vm16040_vm1, %v16039_v1  ;;  %v26159_v13 = vmax.f32 %v26157_v15, %v26158_v3  ;;  %v26162_v15 = vld [vmem:[#allocation11_spill] sm:$0xff] }
 0x301   :  { %v14060_v43 = vpop.f32.mrf.mxu1  ;;  %v2938_v40 = vpop.f32.mrf.mxu0  ;;  %14218 = vmatmul.mubr.msk.f32.gmra.mxu0 %vm78_vm0, %v10922_v4  ;;  %v26163_v4 = vld [vmem:[#allocation12_spill] sm:$0xff] }
 0x302   :  { %v19610_v8 = vmax.f32 %v26154_v45, %v2938_v40  ;;  %14220 = vmatprep.mubr.msk.f32.mxu0 %vm16040_vm1, %v16039_v1  ;;  %v11037_v45 = vld [vmem:[%s25446_s0 + $0xd10] sm:$0xff] }
 0x303   :  { %v19617_v24 = vpop.f32.mrf.mxu1  ;;  %14401 = vmatmul.mubr.msk.f32.gmra.mxu1 %vm78_vm0, %v11036_v18  ;;  %v13880_v43 = vpop.f32.mrf.mxu0  ;;  %v10924_v18 = vld [vmem:[%s25446_s0 + $0xb50] sm:$0xff] }
 0x304   :  { %26155 = vst [vmem:[#allocation7_spill] sm:$0xff] %v19610_v8  ;;  %26156 = vst [vmem:[#allocation8_spill] sm:$0xff] %v19617_v24  ;;  %14403 = vmatprep.mubr.msk.f32.mxu1 %vm16040_vm1, %v16039_v1  ;;  %v26164_v24 = vmax.f32 %v26162_v15, %v26163_v4  ;;  %v26167_v15 = vld [vmem:[#allocation13_spill] sm:$0xff] }
 0x305   :  { %v14063_v5 = vpop.f32.mrf.mxu1  ;;  %v2943_v40 = vpop.f32.mrf.mxu0  ;;  %14221 = vmatmul.mubr.msk.f32.gmra.mxu0 %vm78_vm0, %v10923_v61  ;;  %v26168_v61 = vld [vmem:[#allocation14_spill] sm:$0xff] }
 0x306   :  { %v19631_v46 = vmax.f32 %v26159_v13, %v2943_v40  ;;  %14223 = vmatprep.mubr.msk.f32.mxu0 %vm16040_vm1, %v16039_v1  ;;  %v11038_v13 = vld [vmem:[%s25446_s0 + $0xd18] sm:$0xff] }
 0x307   :  { %v19638_v43 = vpop.f32.mrf.mxu1  ;;  %14404 = vmatmul.mubr.msk.f32.gmra.mxu1 %vm78_vm0, %v11037_v45  ;;  %v13883_v5 = vpop.f32.mrf.mxu0  ;;  %v10925_v45 = vld [vmem:[%s25446_s0 + $0xb58] sm:$0xff] }
 0x308   :  { %26160 = vst [vmem:[#allocation9_spill] sm:$0xff] %v19631_v46  ;;  %26161 = vst [vmem:[#allocation10_spill] sm:$0xff] %v19638_v43  ;;  %14406 = vmatprep.mubr.msk.f32.mxu1 %vm16040_vm1, %v16039_v1  ;;  %v26169_v43 = vmax.f32 %v26167_v15, %v26168_v61  ;;  %v26172_v15 = vld [vmem:[#allocation15_spill] sm:$0xff] }
 0x309   :  { %v14066_v3 = vpop.f32.mrf.mxu1  ;;  %v2948_v40 = vpop.f32.mrf.mxu0  ;;  %14224 = vmatmul.mubr.msk.f32.gmra.mxu0 %vm78_vm0, %v10924_v18  ;;  %v26173_v18 = vld [vmem:[#allocation16_spill] sm:$0xff] }
 0x30a   :  { %v19652_v8 = vmax.f32 %v26164_v24, %v2948_v40  ;;  %14226 = vmatprep.mubr.msk.f32.mxu0 %vm16040_vm1, %v16039_v1  ;;  %v11039_v24 = vld [vmem:[%s25446_s0 + $0xd20] sm:$0xff] }
 0x30b   :  { %v19659_v5 = vpop.f32.mrf.mxu1  ;;  %14407 = vmatmul.mubr.msk.f32.gmra.mxu1 %vm78_vm0, %v11038_v13  ;;  %v13886_v3 = vpop.f32.mrf.mxu0  ;;  %v10926_v13 = vld [vmem:[%s25446_s0 + $0xb60] sm:$0xff] }
 0x30c   :  { %26165 = vst [vmem:[#allocation11_spill] sm:$0xff] %v19652_v8  ;;  %26166 = vst [vmem:[#allocation12_spill] sm:$0xff] %v19659_v5  ;;  %14409 = vmatprep.mubr.msk.f32.mxu1 %vm16040_vm1, %v16039_v1  ;;  %v26174_v5 = vmax.f32 %v26172_v15, %v26173_v18  ;;  %v26177_v15 = vld [vmem:[#allocation17_spill] sm:$0xff] }
 0x30d   :  { %v14069_v4 = vpop.f32.mrf.mxu1  ;;  %v2953_v40 = vpop.f32.mrf.mxu0  ;;  %14227 = vmatmul.mubr.msk.f32.gmra.mxu0 %vm78_vm0, %v10925_v45  ;;  %v26178_v45 = vld [vmem:[#allocation18_spill] sm:$0xff] }
 0x30e   :  { %v19673_v46 = vmax.f32 %v26169_v43, %v2953_v40  ;;  %14229 = vmatprep.mubr.msk.f32.mxu0 %vm16040_vm1, %v16039_v1  ;;  %v11040_v43 = vld [vmem:[%s25446_s0 + $0xd28] sm:$0xff] }
 0x30f   :  { %v19680_v3 = vpop.f32.mrf.mxu1  ;;  %14410 = vmatmul.mubr.msk.f32.gmra.mxu1 %vm78_vm0, %v11039_v24  ;;  %v13889_v4 = vpop.f32.mrf.mxu0  ;;  %v10927_v24 = vld [vmem:[%s25446_s0 + $0xb68] sm:$0xff] }
 0x310   :  { %26170 = vst [vmem:[#allocation13_spill] sm:$0xff] %v19673_v46  ;;  %26171 = vst [vmem:[#allocation14_spill] sm:$0xff] %v19680_v3  ;;  %14412 = vmatprep.mubr.msk.f32.mxu1 %vm16040_vm1, %v16039_v1  ;;  %v26179_v3 = vmax.f32 %v26177_v15, %v26178_v45  ;;  %v26182_v15 = vld [vmem:[#allocation19_spill] sm:$0xff] }
 0x311   :  { %v14072_v61 = vpop.f32.mrf.mxu1  ;;  %v2958_v40 = vpop.f32.mrf.mxu0  ;;  %14230 = vmatmul.mubr.msk.f32.gmra.mxu0 %vm78_vm0, %v10926_v13  ;;  %v26183_v13 = vld [vmem:[#allocation20_spill] sm:$0xff] }
 0x312   :  { %v19694_v8 = vmax.f32 %v26174_v5, %v2958_v40  ;;  %14232 = vmatprep.mubr.msk.f32.mxu0 %vm16040_vm1, %v16039_v1  ;;  %v11041_v5 = vld [vmem:[%s25446_s0 + $0xd30] sm:$0xff] }
 0x313   :  { %v19701_v4 = vpop.f32.mrf.mxu1  ;;  %14413 = vmatmul.mubr.msk.f32.gmra.mxu1 %vm78_vm0, %v11040_v43  ;;  %v13892_v61 = vpop.f32.mrf.mxu0  ;;  %v10928_v43 = vld [vmem:[%s25446_s0 + $0xb70] sm:$0xff] }
 0x314   :  { %26175 = vst [vmem:[#allocation15_spill] sm:$0xff] %v19694_v8  ;;  %26176 = vst [vmem:[#allocation16_spill] sm:$0xff] %v19701_v4  ;;  %14415 = vmatprep.mubr.msk.f32.mxu1 %vm16040_vm1, %v16039_v1  ;;  %v26184_v4 = vmax.f32 %v26182_v15, %v26183_v13  ;;  %v26187_v15 = vld [vmem:[#allocation21_spill] sm:$0xff] }
 0x315   :  { %v14075_v18 = vpop.f32.mrf.mxu1  ;;  %v2963_v40 = vpop.f32.mrf.mxu0  ;;  %14233 = vmatmul.mubr.msk.f32.gmra.mxu0 %vm78_vm0, %v10927_v24  ;;  %v26188_v24 = vld [vmem:[#allocation22_spill] sm:$0xff] }
 0x316   :  { %v19715_v46 = vmax.f32 %v26179_v3, %v2963_v40  ;;  %14235 = vmatprep.mubr.msk.f32.mxu0 %vm16040_vm1, %v16039_v1  ;;  %v11042_v3 = vld [vmem:[%s25446_s0 + $0xd38] sm:$0xff] }
 0x317   :  { %v19722_v61 = vpop.f32.mrf.mxu1  ;;  %14416 = vmatmul.mubr.msk.f32.gmra.mxu1 %vm78_vm0, %v11041_v5  ;;  %v13895_v18 = vpop.f32.mrf.mxu0  ;;  %v10929_v5 = vld [vmem:[%s25446_s0 + $0xb78] sm:$0xff] }
 0x318   :  { %26180 = vst [vmem:[#allocation17_spill] sm:$0xff] %v19715_v46  ;;  %26181 = vst [vmem:[#allocation18_spill] sm:$0xff] %v19722_v61  ;;  %14418 = vmatprep.mubr.msk.f32.mxu1 %vm16040_vm1, %v16039_v1  ;;  %v26189_v61 = vmax.f32 %v26187_v15, %v26188_v24  ;;  %v26192_v15 = vld [vmem:[#allocation23_spill] sm:$0xff] }
 0x319   :  { %v14078_v45 = vpop.f32.mrf.mxu1  ;;  %v2968_v40 = vpop.f32.mrf.mxu0  ;;  %14236 = vmatmul.mubr.msk.f32.gmra.mxu0 %vm78_vm0, %v10928_v43  ;;  %v26193_v43 = vld [vmem:[#allocation24_spill] sm:$0xff] }
 0x31a   :  { %v19736_v8 = vmax.f32 %v26184_v4, %v2968_v40  ;;  %14238 = vmatprep.mubr.msk.f32.mxu0 %vm16040_vm1, %v16039_v1  ;;  %v11043_v4 = vld [vmem:[%s25446_s0 + $0xd40] sm:$0xff] }
 0x31b   :  { %v19743_v18 = vpop.f32.mrf.mxu1  ;;  %14419 = vmatmul.mubr.msk.f32.gmra.mxu1 %vm78_vm0, %v11042_v3  ;;  %v13898_v45 = vpop.f32.mrf.mxu0  ;;  %v10930_v3 = vld [vmem:[%s25446_s0 + $0xb80] sm:$0xff] }
 0x31c   :  { %26185 = vst [vmem:[#allocation19_spill] sm:$0xff] %v19736_v8  ;;  %26186 = vst [vmem:[#allocation20_spill] sm:$0xff] %v19743_v18  ;;  %14421 = vmatprep.mubr.msk.f32.mxu1 %vm16040_vm1, %v16039_v1  ;;  %v26194_v18 = vmax.f32 %v26192_v15, %v26193_v43  ;;  %v26197_v15 = vld [vmem:[#allocation25_spill] sm:$0xff] }
 0x31d   :  { %v14081_v13 = vpop.f32.mrf.mxu1  ;;  %v2973_v40 = vpop.f32.mrf.mxu0  ;;  %14239 = vmatmul.mubr.msk.f32.gmra.mxu0 %vm78_vm0, %v10929_v5  ;;  %v26198_v5 = vld [vmem:[#allocation26_spill] sm:$0xff] }
 0x31e   :  { %v19757_v46 = vmax.f32 %v26189_v61, %v2973_v40  ;;  %14241 = vmatprep.mubr.msk.f32.mxu0 %vm16040_vm1, %v16039_v1  ;;  %v11044_v61 = vld [vmem:[%s25446_s0 + $0xd48] sm:$0xff] }
 0x31f   :  { %v19764_v45 = vpop.f32.mrf.mxu1  ;;  %14422 = vmatmul.mubr.msk.f32.gmra.mxu1 %vm78_vm0, %v11043_v4  ;;  %v13901_v13 = vpop.f32.mrf.mxu0  ;;  %v10931_v4 = vld [vmem:[%s25446_s0 + $0xb88] sm:$0xff] }
 0x320   :  { %26190 = vst [vmem:[#allocation21_spill] sm:$0xff] %v19757_v46  ;;  %26191 = vst [vmem:[#allocation22_spill] sm:$0xff] %v19764_v45  ;;  %14424 = vmatprep.mubr.msk.f32.mxu1 %vm16040_vm1, %v16039_v1  ;;  %v26199_v45 = vmax.f32 %v26197_v15, %v26198_v5  ;;  %v26202_v15 = vld [vmem:[#allocation27_spill] sm:$0xff] }
 0x321   :  { %v14084_v24 = vpop.f32.mrf.mxu1  ;;  %v2978_v40 = vpop.f32.mrf.mxu0  ;;  %14242 = vmatmul.mubr.msk.f32.gmra.mxu0 %vm78_vm0, %v10930_v3  ;;  %v26203_v3 = vld [vmem:[#allocation28_spill] sm:$0xff] }
 0x322   :  { %v19778_v8 = vmax.f32 %v26194_v18, %v2978_v40  ;;  %14244 = vmatprep.mubr.msk.f32.mxu0 %vm16040_vm1, %v16039_v1  ;;  %v11045_v18 = vld [vmem:[%s25446_s0 + $0xd50] sm:$0xff] }
 0x323   :  { %v19785_v13 = vpop.f32.mrf.mxu1  ;;  %14425 = vmatmul.mubr.msk.f32.gmra.mxu1 %vm78_vm0, %v11044_v61  ;;  %v13904_v24 = vpop.f32.mrf.mxu0  ;;  %v10932_v61 = vld [vmem:[%s25446_s0 + $0xb90] sm:$0xff] }
 0x324   :  { %26195 = vst [vmem:[#allocation23_spill] sm:$0xff] %v19778_v8  ;;  %26196 = vst [vmem:[#allocation24_spill] sm:$0xff] %v19785_v13  ;;  %14427 = vmatprep.mubr.msk.f32.mxu1 %vm16040_vm1, %v16039_v1  ;;  %v26204_v13 = vmax.f32 %v26202_v15, %v26203_v3  ;;  %v26207_v15 = vld [vmem:[#allocation29_spill] sm:$0xff] }
 0x325   :  { %v14087_v43 = vpop.f32.mrf.mxu1  ;;  %v2983_v40 = vpop.f32.mrf.mxu0  ;;  %14245 = vmatmul.mubr.msk.f32.gmra.mxu0 %vm78_vm0, %v10931_v4  ;;  %v26208_v4 = vld [vmem:[#allocation30_spill] sm:$0xff] }
 0x326   :  { %v19799_v46 = vmax.f32 %v26199_v45, %v2983_v40  ;;  %14247 = vmatprep.mubr.msk.f32.mxu0 %vm16040_vm1, %v16039_v1  ;;  %v11046_v45 = vld [vmem:[%s25446_s0 + $0xd58] sm:$0xff] }
 0x327   :  { %v19806_v24 = vpop.f32.mrf.mxu1  ;;  %14428 = vmatmul.mubr.msk.f32.gmra.mxu1 %vm78_vm0, %v11045_v18  ;;  %v13907_v43 = vpop.f32.mrf.mxu0  ;;  %v10933_v18 = vld [vmem:[%s25446_s0 + $0xb98] sm:$0xff] }
 0x328   :  { %26200 = vst [vmem:[#allocation25_spill] sm:$0xff] %v19799_v46  ;;  %26201 = vst [vmem:[#allocation26_spill] sm:$0xff] %v19806_v24  ;;  %14430 = vmatprep.mubr.msk.f32.mxu1 %vm16040_vm1, %v16039_v1  ;;  %v26209_v24 = vmax.f32 %v26207_v15, %v26208_v4  ;;  %v26212_v15 = vld [vmem:[#allocation31_spill] sm:$0xff] }
 0x329   :  { %v14090_v5 = vpop.f32.mrf.mxu1  ;;  %v2988_v40 = vpop.f32.mrf.mxu0  ;;  %14248 = vmatmul.mubr.msk.f32.gmra.mxu0 %vm78_vm0, %v10932_v61  ;;  %v26213_v61 = vld [vmem:[#allocation32_spill] sm:$0xff] }
 0x32a   :  { %v19820_v8 = vmax.f32 %v26204_v13, %v2988_v40  ;;  %14250 = vmatprep.mubr.msk.f32.mxu0 %vm16040_vm1, %v16039_v1  ;;  %v11047_v13 = vld [vmem:[%s25446_s0 + $0xd60] sm:$0xff] }
 0x32b   :  { %v19827_v43 = vpop.f32.mrf.mxu1  ;;  %14431 = vmatmul.mubr.msk.f32.gmra.mxu1 %vm78_vm0, %v11046_v45  ;;  %v13910_v5 = vpop.f32.mrf.mxu0  ;;  %v10934_v45 = vld [vmem:[%s25446_s0 + $0xba0] sm:$0xff] }
 0x32c   :  { %26205 = vst [vmem:[#allocation27_spill] sm:$0xff] %v19820_v8  ;;  %26206 = vst [vmem:[#allocation28_spill] sm:$0xff] %v19827_v43  ;;  %14433 = vmatprep.mubr.msk.f32.mxu1 %vm16040_vm1, %v16039_v1  ;;  %v26214_v43 = vmax.f32 %v26212_v15, %v26213_v61  ;;  %v26217_v15 = vld [vmem:[#allocation33_spill] sm:$0xff] }
 0x32d   :  { %v14093_v3 = vpop.f32.mrf.mxu1  ;;  %v2993_v40 = vpop.f32.mrf.mxu0  ;;  %14251 = vmatmul.mubr.msk.f32.gmra.mxu0 %vm78_vm0, %v10933_v18  ;;  %v26218_v18 = vld [vmem:[#allocation34_spill] sm:$0xff] }
 0x32e   :  { %v19841_v46 = vmax.f32 %v26209_v24, %v2993_v40  ;;  %14253 = vmatprep.mubr.msk.f32.mxu0 %vm16040_vm1, %v16039_v1  ;;  %v11048_v24 = vld [vmem:[%s25446_s0 + $0xd68] sm:$0xff] }
 0x32f   :  { %v19848_v5 = vpop.f32.mrf.mxu1  ;;  %14434 = vmatmul.mubr.msk.f32.gmra.mxu1 %vm78_vm0, %v11047_v13  ;;  %v13913_v3 = vpop.f32.mrf.mxu0  ;;  %v10935_v13 = vld [vmem:[%s25446_s0 + $0xba8] sm:$0xff] }
 0x330   :  { %26210 = vst [vmem:[#allocation29_spill] sm:$0xff] %v19841_v46  ;;  %26211 = vst [vmem:[#allocation30_spill] sm:$0xff] %v19848_v5  ;;  %14436 = vmatprep.mubr.msk.f32.mxu1 %vm16040_vm1, %v16039_v1  ;;  %v26219_v5 = vmax.f32 %v26217_v15, %v26218_v18  ;;  %v26222_v15 = vld [vmem:[#allocation35_spill] sm:$0xff] }
 0x331   :  { %v14096_v4 = vpop.f32.mrf.mxu1  ;;  %v2998_v40 = vpop.f32.mrf.mxu0  ;;  %14254 = vmatmul.mubr.msk.f32.gmra.mxu0 %vm78_vm0, %v10934_v45  ;;  %v26223_v45 = vld [vmem:[#allocation36_spill] sm:$0xff] }
 0x332   :  { %v19862_v8 = vmax.f32 %v26214_v43, %v2998_v40  ;;  %14256 = vmatprep.mubr.msk.f32.mxu0 %vm16040_vm1, %v16039_v1  ;;  %v11049_v43 = vld [vmem:[%s25446_s0 + $0xd70] sm:$0xff] }
 0x333   :  { %v19869_v3 = vpop.f32.mrf.mxu1  ;;  %14437 = vmatmul.mubr.msk.f32.gmra.mxu1 %vm78_vm0, %v11048_v24  ;;  %v13916_v4 = vpop.f32.mrf.mxu0  ;;  %v10936_v24 = vld [vmem:[%s25446_s0 + $0xbb0] sm:$0xff] }
 0x334   :  { %26215 = vst [vmem:[#allocation31_spill] sm:$0xff] %v19862_v8  ;;  %26216 = vst [vmem:[#allocation32_spill] sm:$0xff] %v19869_v3  ;;  %14439 = vmatprep.mubr.msk.f32.mxu1 %vm16040_vm1, %v16039_v1  ;;  %v26224_v3 = vmax.f32 %v26222_v15, %v26223_v45  ;;  %v26227_v15 = vld [vmem:[#allocation37_spill] sm:$0xff] }
 0x335   :  { %v14099_v61 = vpop.f32.mrf.mxu1  ;;  %v3003_v40 = vpop.f32.mrf.mxu0  ;;  %14257 = vmatmul.mubr.msk.f32.gmra.mxu0 %vm78_vm0, %v10935_v13  ;;  %v26228_v13 = vld [vmem:[#allocation38_spill] sm:$0xff] }
 0x336   :  { %v19883_v46 = vmax.f32 %v26219_v5, %v3003_v40  ;;  %14259 = vmatprep.mubr.msk.f32.mxu0 %vm16040_vm1, %v16039_v1  ;;  %v11050_v5 = vld [vmem:[%s25446_s0 + $0xd78] sm:$0xff] }
 0x337   :  { %v19890_v4 = vpop.f32.mrf.mxu1  ;;  %14440 = vmatmul.mubr.msk.f32.gmra.mxu1 %vm78_vm0, %v11049_v43  ;;  %v13919_v61 = vpop.f32.mrf.mxu0  ;;  %v10937_v43 = vld [vmem:[%s25446_s0 + $0xbb8] sm:$0xff] }
 0x338   :  { %26220 = vst [vmem:[#allocation33_spill] sm:$0xff] %v19883_v46  ;;  %26221 = vst [vmem:[#allocation34_spill] sm:$0xff] %v19890_v4  ;;  %14442 = vmatprep.mubr.msk.f32.mxu1 %vm16040_vm1, %v16039_v1  ;;  %v26229_v4 = vmax.f32 %v26227_v15, %v26228_v13  ;;  %v26232_v15 = vld [vmem:[#allocation39_spill] sm:$0xff] }
 0x339   :  { %v14102_v18 = vpop.f32.mrf.mxu1  ;;  %v3008_v40 = vpop.f32.mrf.mxu0  ;;  %14260 = vmatmul.mubr.msk.f32.gmra.mxu0 %vm78_vm0, %v10936_v24  ;;  %v26233_v24 = vld [vmem:[#allocation40_spill] sm:$0xff] }
 0x33a   :  { %v19904_v8 = vmax.f32 %v26224_v3, %v3008_v40  ;;  %14262 = vmatprep.mubr.msk.f32.mxu0 %vm16040_vm1, %v16039_v1  ;;  %v11051_v3 = vld [vmem:[%s25446_s0 + $0xd80] sm:$0xff] }
 0x33b   :  { %v19911_v61 = vpop.f32.mrf.mxu1  ;;  %14443 = vmatmul.mubr.msk.f32.gmra.mxu1 %vm78_vm0, %v11050_v5  ;;  %v13922_v18 = vpop.f32.mrf.mxu0  ;;  %v10938_v5 = vld [vmem:[%s25446_s0 + $0xbc0] sm:$0xff] }
 0x33c   :  { %26225 = vst [vmem:[#allocation35_spill] sm:$0xff] %v19904_v8  ;;  %26226 = vst [vmem:[#allocation36_spill] sm:$0xff] %v19911_v61  ;;  %14445 = vmatprep.mubr.msk.f32.mxu1 %vm16040_vm1, %v16039_v1  ;;  %v26234_v61 = vmax.f32 %v26232_v15, %v26233_v24  ;;  %v26237_v15 = vld [vmem:[#allocation41_spill] sm:$0xff] }
 0x33d   :  { %v14105_v45 = vpop.f32.mrf.mxu1  ;;  %v3013_v40 = vpop.f32.mrf.mxu0  ;;  %14263 = vmatmul.mubr.msk.f32.gmra.mxu0 %vm78_vm0, %v10937_v43  ;;  %v26238_v43 = vld [vmem:[#allocation42_spill] sm:$0xff] }
 0x33e   :  { %v19925_v46 = vmax.f32 %v26229_v4, %v3013_v40  ;;  %14265 = vmatprep.mubr.msk.f32.mxu0 %vm16040_vm1, %v16039_v1  ;;  %v11052_v4 = vld [vmem:[%s25446_s0 + $0xd88] sm:$0xff] }
 0x33f   :  { %v19932_v18 = vpop.f32.mrf.mxu1  ;;  %14446 = vmatmul.mubr.msk.f32.gmra.mxu1 %vm78_vm0, %v11051_v3  ;;  %v13925_v45 = vpop.f32.mrf.mxu0  ;;  %v10939_v3 = vld [vmem:[%s25446_s0 + $0xbc8] sm:$0xff] }
 0x340   :  { %26230 = vst [vmem:[#allocation37_spill] sm:$0xff] %v19925_v46  ;;  %26231 = vst [vmem:[#allocation38_spill] sm:$0xff] %v19932_v18  ;;  %14448 = vmatprep.mubr.msk.f32.mxu1 %vm16040_vm1, %v16039_v1  ;;  %v26239_v18 = vmax.f32 %v26237_v15, %v26238_v43  ;;  %v26242_v15 = vld [vmem:[#allocation43_spill] sm:$0xff] }
 0x341   :  { %v14108_v13 = vpop.f32.mrf.mxu1  ;;  %v3018_v40 = vpop.f32.mrf.mxu0  ;;  %14266 = vmatmul.mubr.msk.f32.gmra.mxu0 %vm78_vm0, %v10938_v5  ;;  %v26243_v5 = vld [vmem:[#allocation44_spill] sm:$0xff] }
 0x342   :  { %v19946_v8 = vmax.f32 %v26234_v61, %v3018_v40  ;;  %14268 = vmatprep.mubr.msk.f32.mxu0 %vm16040_vm1, %v16039_v1  ;;  %v11053_v61 = vld [vmem:[%s25446_s0 + $0xd90] sm:$0xff] }
 0x343   :  { %v19953_v45 = vpop.f32.mrf.mxu1  ;;  %14449 = vmatmul.mubr.msk.f32.gmra.mxu1 %vm78_vm0, %v11052_v4  ;;  %v13928_v13 = vpop.f32.mrf.mxu0  ;;  %v10940_v4 = vld [vmem:[%s25446_s0 + $0xbd0] sm:$0xff] }
 0x344   :  { %26235 = vst [vmem:[#allocation39_spill] sm:$0xff] %v19946_v8  ;;  %26236 = vst [vmem:[#allocation40_spill] sm:$0xff] %v19953_v45  ;;  %14451 = vmatprep.mubr.msk.f32.mxu1 %vm16040_vm1, %v16039_v1  ;;  %v26244_v45 = vmax.f32 %v26242_v15, %v26243_v5  ;;  %v26247_v15 = vld [vmem:[#allocation45_spill] sm:$0xff] }
 0x345   :  { %v14111_v24 = vpop.f32.mrf.mxu1  ;;  %v3023_v40 = vpop.f32.mrf.mxu0  ;;  %14269 = vmatmul.mubr.msk.f32.gmra.mxu0 %vm78_vm0, %v10939_v3  ;;  %v26248_v3 = vld [vmem:[#allocation46_spill] sm:$0xff] }
 0x346   :  { %v19967_v46 = vmax.f32 %v26239_v18, %v3023_v40  ;;  %14271 = vmatprep.mubr.msk.f32.mxu0 %vm16040_vm1, %v16039_v1  ;;  %v11054_v18 = vld [vmem:[%s25446_s0 + $0xd98] sm:$0xff] }
 0x347   :  { %v19974_v13 = vpop.f32.mrf.mxu1  ;;  %14452 = vmatmul.mubr.msk.f32.gmra.mxu1 %vm78_vm0, %v11053_v61  ;;  %v13931_v24 = vpop.f32.mrf.mxu0  ;;  %v10941_v61 = vld [vmem:[%s25446_s0 + $0xbd8] sm:$0xff] }
 0x348   :  { %26240 = vst [vmem:[#allocation41_spill] sm:$0xff] %v19967_v46  ;;  %26241 = vst [vmem:[#allocation42_spill] sm:$0xff] %v19974_v13  ;;  %14454 = vmatprep.mubr.msk.f32.mxu1 %vm16040_vm1, %v16039_v1  ;;  %v26249_v13 = vmax.f32 %v26247_v15, %v26248_v3  ;;  %v26252_v15 = vld [vmem:[#allocation47_spill] sm:$0xff] }
 0x349   :  { %v14114_v43 = vpop.f32.mrf.mxu1  ;;  %v3028_v40 = vpop.f32.mrf.mxu0  ;;  %14272 = vmatmul.mubr.msk.f32.gmra.mxu0 %vm78_vm0, %v10940_v4  ;;  %v26253_v4 = vld [vmem:[#allocation48_spill] sm:$0xff] }
 0x34a   :  { %v19988_v8 = vmax.f32 %v26244_v45, %v3028_v40  ;;  %14274 = vmatprep.mubr.msk.f32.mxu0 %vm16040_vm1, %v16039_v1  ;;  %v11055_v45 = vld [vmem:[%s25446_s0 + $0xda0] sm:$0xff] }
 0x34b   :  { %v19995_v24 = vpop.f32.mrf.mxu1  ;;  %14455 = vmatmul.mubr.msk.f32.gmra.mxu1 %vm78_vm0, %v11054_v18  ;;  %v13934_v43 = vpop.f32.mrf.mxu0  ;;  %v10942_v18 = vld [vmem:[%s25446_s0 + $0xbe0] sm:$0xff] }
 0x34c   :  { %26245 = vst [vmem:[#allocation43_spill] sm:$0xff] %v19988_v8  ;;  %26246 = vst [vmem:[#allocation44_spill] sm:$0xff] %v19995_v24  ;;  %14457 = vmatprep.mubr.msk.f32.mxu1 %vm16040_vm1, %v16039_v1  ;;  %v26254_v24 = vmax.f32 %v26252_v15, %v26253_v4  ;;  %v26257_v15 = vld [vmem:[#allocation49_spill] sm:$0xff] }
 0x34d   :  { %v14117_v5 = vpop.f32.mrf.mxu1  ;;  %v3033_v40 = vpop.f32.mrf.mxu0  ;;  %14275 = vmatmul.mubr.msk.f32.gmra.mxu0 %vm78_vm0, %v10941_v61  ;;  %v26258_v61 = vld [vmem:[#allocation50_spill] sm:$0xff] }
 0x34e   :  { %v20009_v46 = vmax.f32 %v26249_v13, %v3033_v40  ;;  %14277 = vmatprep.mubr.msk.f32.mxu0 %vm16040_vm1, %v16039_v1  ;;  %v11056_v13 = vld [vmem:[%s25446_s0 + $0xda8] sm:$0xff] }
 0x34f   :  { %v20016_v43 = vpop.f32.mrf.mxu1  ;;  %14458 = vmatmul.mubr.msk.f32.gmra.mxu1 %vm78_vm0, %v11055_v45  ;;  %v13937_v5 = vpop.f32.mrf.mxu0  ;;  %v10943_v45 = vld [vmem:[%s25446_s0 + $0xbe8] sm:$0xff] }
 0x350   :  { %26250 = vst [vmem:[#allocation45_spill] sm:$0xff] %v20009_v46  ;;  %26251 = vst [vmem:[#allocation46_spill] sm:$0xff] %v20016_v43  ;;  %14460 = vmatprep.mubr.msk.f32.mxu1 %vm16040_vm1, %v16039_v1  ;;  %v26259_v43 = vmax.f32 %v26257_v15, %v26258_v61  ;;  %v26262_v15 = vld [vmem:[#allocation51_spill] sm:$0xff] }
 0x351   :  { %v14120_v3 = vpop.f32.mrf.mxu1  ;;  %v3038_v40 = vpop.f32.mrf.mxu0  ;;  %14278 = vmatmul.mubr.msk.f32.gmra.mxu0 %vm78_vm0, %v10942_v18  ;;  %v26263_v18 = vld [vmem:[#allocation52_spill] sm:$0xff] }
 0x352   :  { %v20030_v8 = vmax.f32 %v26254_v24, %v3038_v40  ;;  %14280 = vmatprep.mubr.msk.f32.mxu0 %vm16040_vm1, %v16039_v1  ;;  %v11057_v24 = vld [vmem:[%s25446_s0 + $0xdb0] sm:$0xff] }
 0x353   :  { %v20037_v5 = vpop.f32.mrf.mxu1  ;;  %14461 = vmatmul.mubr.msk.f32.gmra.mxu1 %vm78_vm0, %v11056_v13  ;;  %v13940_v3 = vpop.f32.mrf.mxu0  ;;  %v10944_v13 = vld [vmem:[%s25446_s0 + $0xbf0] sm:$0xff] }
 0x354   :  { %26255 = vst [vmem:[#allocation47_spill] sm:$0xff] %v20030_v8  ;;  %26256 = vst [vmem:[#allocation48_spill] sm:$0xff] %v20037_v5  ;;  %14463 = vmatprep.mubr.msk.f32.mxu1 %vm16040_vm1, %v16039_v1  ;;  %v26264_v5 = vmax.f32 %v26262_v15, %v26263_v18  ;;  %v26267_v15 = vld [vmem:[#allocation53_spill] sm:$0xff] }
 0x355   :  { %v14123_v4 = vpop.f32.mrf.mxu1  ;;  %v3043_v40 = vpop.f32.mrf.mxu0  ;;  %14281 = vmatmul.mubr.msk.f32.gmra.mxu0 %vm78_vm0, %v10943_v45  ;;  %v26268_v45 = vld [vmem:[#allocation54_spill] sm:$0xff] }
 0x356   :  { %v20051_v46 = vmax.f32 %v26259_v43, %v3043_v40  ;;  %14283 = vmatprep.mubr.msk.f32.mxu0 %vm16040_vm1, %v16039_v1  ;;  %v11058_v43 = vld [vmem:[%s25446_s0 + $0xdb8] sm:$0xff] }
 0x357   :  { %v20058_v3 = vpop.f32.mrf.mxu1  ;;  %14464 = vmatmul.mubr.msk.f32.gmra.mxu1 %vm78_vm0, %v11057_v24  ;;  %v13943_v4 = vpop.f32.mrf.mxu0  ;;  %v10945_v24 = vld [vmem:[%s25446_s0 + $0xbf8] sm:$0xff] }
 0x358   :  { %26260 = vst [vmem:[#allocation49_spill] sm:$0xff] %v20051_v46  ;;  %26261 = vst [vmem:[#allocation50_spill] sm:$0xff] %v20058_v3  ;;  %14466 = vmatprep.mubr.msk.f32.mxu1 %vm16040_vm1, %v16039_v1  ;;  %v26269_v3 = vmax.f32 %v26267_v15, %v26268_v45  ;;  %v26272_v15 = vld [vmem:[#allocation55_spill] sm:$0xff] }
 0x359   :  { %v14126_v61 = vpop.f32.mrf.mxu1  ;;  %v3048_v40 = vpop.f32.mrf.mxu0  ;;  %14284 = vmatmul.mubr.msk.f32.gmra.mxu0 %vm78_vm0, %v10944_v13  ;;  %v26273_v13 = vld [vmem:[#allocation56_spill] sm:$0xff] }
 0x35a   :  { %v20072_v8 = vmax.f32 %v26264_v5, %v3048_v40  ;;  %14286 = vmatprep.mubr.msk.f32.mxu0 %vm16040_vm1, %v16039_v1  ;;  %v11059_v5 = vld [vmem:[%s25446_s0 + $0xdc0] sm:$0xff] }
 0x35b   :  { %v20079_v4 = vpop.f32.mrf.mxu1  ;;  %14467 = vmatmul.mubr.msk.f32.gmra.mxu1 %vm78_vm0, %v11058_v43  ;;  %v13946_v61 = vpop.f32.mrf.mxu0  ;;  %v10946_v43 = vld [vmem:[%s25446_s0 + $0xc00] sm:$0xff] }
 0x35c   :  { %26265 = vst [vmem:[#allocation51_spill] sm:$0xff] %v20072_v8  ;;  %26266 = vst [vmem:[#allocation52_spill] sm:$0xff] %v20079_v4  ;;  %14469 = vmatprep.mubr.msk.f32.mxu1 %vm16040_vm1, %v16039_v1  ;;  %v26274_v4 = vmax.f32 %v26272_v15, %v26273_v13  ;;  %v26277_v15 = vld [vmem:[#allocation57_spill] sm:$0xff] }
 0x35d   :  { %v14129_v18 = vpop.f32.mrf.mxu1  ;;  %v3053_v40 = vpop.f32.mrf.mxu0  ;;  %14287 = vmatmul.mubr.msk.f32.gmra.mxu0 %vm78_vm0, %v10945_v24  ;;  %v26278_v24 = vld [vmem:[#allocation58_spill] sm:$0xff] }
 0x35e   :  { %v20093_v46 = vmax.f32 %v26269_v3, %v3053_v40  ;;  %14289 = vmatprep.mubr.msk.f32.mxu0 %vm16040_vm1, %v16039_v1  ;;  %v11060_v3 = vld [vmem:[%s25446_s0 + $0xdc8] sm:$0xff] }
 0x35f   :  { %v20100_v61 = vpop.f32.mrf.mxu1  ;;  %14470 = vmatmul.mubr.msk.f32.gmra.mxu1 %vm78_vm0, %v11059_v5  ;;  %v13949_v18 = vpop.f32.mrf.mxu0  ;;  %v10947_v5 = vld [vmem:[%s25446_s0 + $0xc08] sm:$0xff] }
 0x360   :  { %26270 = vst [vmem:[#allocation53_spill] sm:$0xff] %v20093_v46  ;;  %26271 = vst [vmem:[#allocation54_spill] sm:$0xff] %v20100_v61  ;;  %14472 = vmatprep.mubr.msk.f32.mxu1 %vm16040_vm1, %v16039_v1  ;;  %v26279_v61 = vmax.f32 %v26277_v15, %v26278_v24  ;;  %v26280_v15 = vld [vmem:[#allocation59_spill] sm:$0xff] }
 0x361   :  { %v14132_v45 = vpop.f32.mrf.mxu1  ;;  %v3058_v40 = vpop.f32.mrf.mxu0  ;;  %14290 = vmatmul.mubr.msk.f32.gmra.mxu0 %vm78_vm0, %v10946_v43  ;;  %v26281_v43 = vld [vmem:[#allocation60_spill] sm:$0xff] }
 0x362   :  { %v20114_v8 = vmax.f32 %v26274_v4, %v3058_v40  ;;  %14292 = vmatprep.mubr.msk.f32.mxu0 %vm16040_vm1, %v16039_v1  ;;  %v11061_v4 = vld [vmem:[%s25446_s0 + $0xdd0] sm:$0xff] }
 0x363   :  { %v20121_v18 = vpop.f32.mrf.mxu1  ;;  %14473 = vmatmul.mubr.msk.f32.gmra.mxu1 %vm78_vm0, %v11060_v3  ;;  %v13952_v45 = vpop.f32.mrf.mxu0  ;;  %v10948_v3 = vld [vmem:[%s25446_s0 + $0xc10] sm:$0xff] }
 0x364   :  { %26275 = vst [vmem:[#allocation55_spill] sm:$0xff] %v20114_v8  ;;  %26276 = vst [vmem:[#allocation56_spill] sm:$0xff] %v20121_v18  ;;  %14475 = vmatprep.mubr.msk.f32.mxu1 %vm16040_vm1, %v16039_v1  ;;  %v26282_v18 = vmax.f32 %v26280_v15, %v26281_v43  ;;  %v26283_v15 = vmax.f32 %v18950_v38, %v18957_v34  ;;  %v11064_v38 = vld [vmem:[%s25446_s0 + $0xde8] sm:$0xff] }
 0x365   :  { %v14135_v13 = vpop.f32.mrf.mxu1  ;;  %v3063_v40 = vpop.f32.mrf.mxu0  ;;  %14293 = vmatmul.mubr.msk.f32.gmra.mxu0 %vm78_vm0, %v10947_v5 }
 0x366   :  { %v20135_v46 = vmax.f32 %v26279_v61, %v3063_v40  ;;  %14295 = vmatprep.mubr.msk.f32.mxu0 %vm16040_vm1, %v16039_v1  ;;  %v11062_v61 = vld [vmem:[%s25446_s0 + $0xdd8] sm:$0xff] }
 0x367   :  { %v20142_v45 = vpop.f32.mrf.mxu1  ;;  %14476 = vmatmul.mubr.msk.f32.gmra.mxu1 %vm78_vm0, %v11061_v4  ;;  %v13955_v13 = vpop.f32.mrf.mxu0  ;;  %v10949_v4 = vld [vmem:[%s25446_s0 + $0xc18] sm:$0xff] }
 0x368   :  { %14478 = vmatprep.mubr.msk.f32.mxu1 %vm16040_vm1, %v16039_v1 }
 0x369   :  { %v14138_v24 = vpop.f32.mrf.mxu1  ;;  %v3068_v40 = vpop.f32.mrf.mxu0  ;;  %14296 = vmatmul.mubr.msk.f32.gmra.mxu0 %vm78_vm0, %v10948_v3 }
 0x36a   :  { %v20156_v8 = vmax.f32 %v26282_v18, %v3068_v40  ;;  %14298 = vmatprep.mubr.msk.f32.mxu0 %vm16040_vm1, %v16039_v1  ;;  %v11063_v18 = vld [vmem:[%s25446_s0 + $0xde0] sm:$0xff] }
 0x36b   :  { %v20163_v13 = vpop.f32.mrf.mxu1  ;;  %14479 = vmatmul.mubr.msk.f32.gmra.mxu1 %vm78_vm0, %v11062_v61  ;;  %v13958_v24 = vpop.f32.mrf.mxu0  ;;  %v10950_v61 = vld [vmem:[%s25446_s0 + $0xc20] sm:$0xff] }
 0x36c   :  { %14481 = vmatprep.mubr.msk.f32.mxu1 %vm16040_vm1, %v16039_v1 }
 0x36d   :  { %v14141_v43 = vpop.f32.mrf.mxu1  ;;  %v3073_v40 = vpop.f32.mrf.mxu0  ;;  %14299 = vmatmul.mubr.msk.f32.gmra.mxu0 %vm78_vm0, %v10949_v4 }
 0x36e   :  { %v20177_v5 = vmax.f32 %v26283_v15, %v3073_v40  ;;  %14301 = vmatprep.mubr.msk.f32.mxu0 %vm16040_vm1, %v16039_v1  ;;  %v26284_v15 = vmax.f32 %v18971_v58, %v18978_v0  ;;  %v11065_v58 = vld [vmem:[%s25446_s0 + $0xdf0] sm:$0xff] }
 0x36f   :  { %v20184_v24 = vpop.f32.mrf.mxu1  ;;  %14482 = vmatmul.mubr.msk.f32.gmra.mxu1 %vm78_vm0, %v11063_v18  ;;  %v13961_v43 = vpop.f32.mrf.mxu0  ;;  %v10951_v18 = vld [vmem:[%s25446_s0 + $0xc28] sm:$0xff] }
 0x370   :  { %14484 = vmatprep.mubr.msk.f32.mxu1 %vm16040_vm1, %v16039_v1 }
 0x371   :  { %v14144_v34 = vpop.f32.mrf.mxu1  ;;  %v3078_v40 = vpop.f32.mrf.mxu0  ;;  %14302 = vmatmul.mubr.msk.f32.gmra.mxu0 %vm78_vm0, %v10950_v61 }
 0x372   :  { %v20198_v3 = vmax.f32 %v26284_v15, %v3078_v40  ;;  %14304 = vmatprep.mubr.msk.f32.mxu0 %vm16040_vm1, %v16039_v1  ;;  %v26285_v15 = vmax.f32 %v18992_v54, %v18999_v41  ;;  %v11066_v54 = vld [vmem:[%s25446_s0 + $0xdf8] sm:$0xff] }
 0x373   :  { %v20205_v43 = vpop.f32.mrf.mxu1  ;;  %14485 = vmatmul.mubr.msk.f32.gmra.mxu1 %vm78_vm0, %v11064_v38  ;;  %v13964_v34 = vpop.f32.mrf.mxu0  ;;  %v10952_v38 = vld [vmem:[%s25446_s0 + $0xc30] sm:$0xff] }
 0x374   :  { %14487 = vmatprep.mubr.msk.f32.mxu1 %vm16040_vm1, %v16039_v1 }
 0x375   :  { %v14147_v0 = vpop.f32.mrf.mxu1  ;;  %v3083_v40 = vpop.f32.mrf.mxu0  ;;  %14305 = vmatmul.mubr.msk.f32.gmra.mxu0 %vm78_vm0, %v10951_v18 }
 0x376   :  { %v20219_v4 = vmax.f32 %v26285_v15, %v3083_v40  ;;  %14307 = vmatprep.mubr.msk.f32.mxu0 %vm16040_vm1, %v16039_v1  ;;  %v26286_v15 = vmax.f32 %v19013_v37, %v19020_v20  ;;  %v11067_v37 = vld [vmem:[%s25446_s0 + $0xe00] sm:$0xff] }
 0x377   :  { %v20226_v34 = vpop.f32.mrf.mxu1  ;;  %14488 = vmatmul.mubr.msk.f32.gmra.mxu1 %vm78_vm0, %v11065_v58  ;;  %v13967_v0 = vpop.f32.mrf.mxu0  ;;  %v10953_v58 = vld [vmem:[%s25446_s0 + $0xc38] sm:$0xff] }
 0x378   :  { %14490 = vmatprep.mubr.msk.f32.mxu1 %vm16040_vm1, %v16039_v1 }
 0x379   :  { %v14150_v41 = vpop.f32.mrf.mxu1  ;;  %v4075_v40 = vpop.f32.mrf.mxu0  ;;  %14308 = vmatmul.mubr.msk.f32.gmra.mxu0 %vm78_vm0, %v10952_v38 }
 0x37a   :  { %v20240_v61 = vmax.f32 %v26286_v15, %v4075_v40  ;;  %14310 = vmatprep.mubr.msk.f32.mxu0 %vm16040_vm1, %v16039_v1  ;;  %v26287_v15 = vmax.f32 %v19034_v32, %v19041_v59  ;;  %v11068_v32 = vld [vmem:[%s25446_s0 + $0xe08] sm:$0xff] }
 0x37b   :  { %v20247_v0 = vpop.f32.mrf.mxu1  ;;  %14491 = vmatmul.mubr.msk.f32.gmra.mxu1 %vm78_vm0, %v11066_v54  ;;  %v14165_v41 = vpop.f32.mrf.mxu0  ;;  %v10954_v54 = vld [vmem:[%s25446_s0 + $0xc40] sm:$0xff] }
 0x37c   :  { %14493 = vmatprep.mubr.msk.f32.mxu1 %vm16040_vm1, %v16039_v1 }
 0x37d   :  { %v14348_v20 = vpop.f32.mrf.mxu1  ;;  %v4080_v40 = vpop.f32.mrf.mxu0  ;;  %14311 = vmatmul.mubr.msk.f32.gmra.mxu0 %vm78_vm0, %v10953_v58 }
 0x37e   :  { %v20261_v18 = vmax.f32 %v26287_v15, %v4080_v40  ;;  %14313 = vmatprep.mubr.msk.f32.mxu0 %vm16040_vm1, %v16039_v1  ;;  %v26288_v15 = vmax.f32 %v19055_v11, %v19062_v31  ;;  %v11069_v11 = vld [vmem:[%s25446_s0 + $0xe10] sm:$0xff] }
 0x37f   :  { %v20268_v41 = vpop.f32.mrf.mxu1  ;;  %14494 = vmatmul.mubr.msk.f32.gmra.mxu1 %vm78_vm0, %v11067_v37  ;;  %v14168_v20 = vpop.f32.mrf.mxu0  ;;  %v10955_v37 = vld [vmem:[%s25446_s0 + $0xc48] sm:$0xff] }
 0x380   :  { %14496 = vmatprep.mubr.msk.f32.mxu1 %vm16040_vm1, %v16039_v1 }
 0x381   :  { %v14351_v59 = vpop.f32.mrf.mxu1  ;;  %v4085_v40 = vpop.f32.mrf.mxu0  ;;  %14314 = vmatmul.mubr.msk.f32.gmra.mxu0 %vm78_vm0, %v10954_v54 }
 0x382   :  { %v20282_v38 = vmax.f32 %v26288_v15, %v4085_v40  ;;  %14316 = vmatprep.mubr.msk.f32.mxu0 %vm16040_vm1, %v16039_v1  ;;  %v26289_v15 = vmax.f32 %v19076_v27, %v19083_v22  ;;  %v11070_v27 = vld [vmem:[%s25446_s0 + $0xe18] sm:$0xff] }
 0x383   :  { %v20289_v20 = vpop.f32.mrf.mxu1  ;;  %14497 = vmatmul.mubr.msk.f32.gmra.mxu1 %vm78_vm0, %v11068_v32  ;;  %v14171_v59 = vpop.f32.mrf.mxu0  ;;  %v10956_v32 = vld [vmem:[%s25446_s0 + $0xc50] sm:$0xff] }
 0x384   :  { %14499 = vmatprep.mubr.msk.f32.mxu1 %vm16040_vm1, %v16039_v1 }
 0x385   :  { %v14354_v31 = vpop.f32.mrf.mxu1  ;;  %v4090_v40 = vpop.f32.mrf.mxu0  ;;  %14317 = vmatmul.mubr.msk.f32.gmra.mxu0 %vm78_vm0, %v10955_v37 }
 0x386   :  { %v20303_v58 = vmax.f32 %v26289_v15, %v4090_v40  ;;  %14319 = vmatprep.mubr.msk.f32.mxu0 %vm16040_vm1, %v16039_v1  ;;  %v26290_v15 = vmax.f32 %v19097_v52, %v19104_v50  ;;  %v11071_v52 = vld [vmem:[%s25446_s0 + $0xe20] sm:$0xff] }
 0x387   :  { %v20310_v59 = vpop.f32.mrf.mxu1  ;;  %14500 = vmatmul.mubr.msk.f32.gmra.mxu1 %vm78_vm0, %v11069_v11  ;;  %v14174_v31 = vpop.f32.mrf.mxu0  ;;  %v10957_v11 = vld [vmem:[%s25446_s0 + $0xc58] sm:$0xff] }
 0x388   :  { %14502 = vmatprep.mubr.msk.f32.mxu1 %vm16040_vm1, %v16039_v1 }
 0x389   :  { %v14357_v22 = vpop.f32.mrf.mxu1  ;;  %v4095_v40 = vpop.f32.mrf.mxu0  ;;  %14320 = vmatmul.mubr.msk.f32.gmra.mxu0 %vm78_vm0, %v10956_v32 }
 0x38a   :  { %v20324_v54 = vmax.f32 %v26290_v15, %v4095_v40  ;;  %14322 = vmatprep.mubr.msk.f32.mxu0 %vm16040_vm1, %v16039_v1  ;;  %v26291_v15 = vmax.f32 %v19118_v23, %v19125_v57  ;;  %v11072_v23 = vld [vmem:[%s25446_s0 + $0xe28] sm:$0xff] }
 0x38b   :  { %v20331_v31 = vpop.f32.mrf.mxu1  ;;  %14503 = vmatmul.mubr.msk.f32.gmra.mxu1 %vm78_vm0, %v11070_v27  ;;  %v14177_v22 = vpop.f32.mrf.mxu0  ;;  %v10958_v27 = vld [vmem:[%s25446_s0 + $0xc60] sm:$0xff] }
 0x38c   :  { %14505 = vmatprep.mubr.msk.f32.mxu1 %vm16040_vm1, %v16039_v1 }
 0x38d   :  { %v14360_v50 = vpop.f32.mrf.mxu1  ;;  %v4100_v40 = vpop.f32.mrf.mxu0  ;;  %14323 = vmatmul.mubr.msk.f32.gmra.mxu0 %vm78_vm0, %v10957_v11 }
 0x38e   :  { %v20345_v37 = vmax.f32 %v26291_v15, %v4100_v40  ;;  %14325 = vmatprep.mubr.msk.f32.mxu0 %vm16040_vm1, %v16039_v1  ;;  %v26292_v15 = vmax.f32 %v19139_v16, %v19146_v7  ;;  %v11073_v16 = vld [vmem:[%s25446_s0 + $0xe30] sm:$0xff] }
 0x38f   :  { %v20352_v22 = vpop.f32.mrf.mxu1  ;;  %14506 = vmatmul.mubr.msk.f32.gmra.mxu1 %vm78_vm0, %v11071_v52  ;;  %v14180_v50 = vpop.f32.mrf.mxu0  ;;  %v10959_v52 = vld [vmem:[%s25446_s0 + $0xc68] sm:$0xff] }
 0x390   :  { %14508 = vmatprep.mubr.msk.f32.mxu1 %vm16040_vm1, %v16039_v1 }
 0x391   :  { %v14363_v57 = vpop.f32.mrf.mxu1  ;;  %v4105_v40 = vpop.f32.mrf.mxu0  ;;  %14326 = vmatmul.mubr.msk.f32.gmra.mxu0 %vm78_vm0, %v10958_v27 }
 0x392   :  { %v20366_v32 = vmax.f32 %v26292_v15, %v4105_v40  ;;  %14328 = vmatprep.mubr.msk.f32.mxu0 %vm16040_vm1, %v16039_v1  ;;  %v26293_v15 = vmax.f32 %v19160_v44, %v19167_v14  ;;  %v11074_v44 = vld [vmem:[%s25446_s0 + $0xe38] sm:$0xff] }
 0x393   :  { %v20373_v50 = vpop.f32.mrf.mxu1  ;;  %14509 = vmatmul.mubr.msk.f32.gmra.mxu1 %vm78_vm0, %v11072_v23  ;;  %v14183_v57 = vpop.f32.mrf.mxu0  ;;  %v10960_v23 = vld [vmem:[%s25446_s0 + $0xc70] sm:$0xff] }
 0x394   :  { %14511 = vmatprep.mubr.msk.f32.mxu1 %vm16040_vm1, %v16039_v1 }
 0x395   :  { %v14366_v7 = vpop.f32.mrf.mxu1  ;;  %v4110_v40 = vpop.f32.mrf.mxu0  ;;  %14329 = vmatmul.mubr.msk.f32.gmra.mxu0 %vm78_vm0, %v10959_v52 }
 0x396   :  { %v20387_v11 = vmax.f32 %v26293_v15, %v4110_v40  ;;  %14331 = vmatprep.mubr.msk.f32.mxu0 %vm16040_vm1, %v16039_v1  ;;  %v26294_v15 = vmax.f32 %v19181_v30, %v19188_v21  ;;  %v11246_v30 = vld [vmem:[%s25446_s0 + $0x1008] sm:$0xff] }
 0x397   :  { %v20394_v57 = vpop.f32.mrf.mxu1  ;;  %14512 = vmatmul.mubr.msk.f32.gmra.mxu1 %vm78_vm0, %v11073_v16  ;;  %v14186_v7 = vpop.f32.mrf.mxu0  ;;  %v11132_v16 = vld [vmem:[%s25446_s0 + $0xe40] sm:$0xff] }
 0x398   :  { %14514 = vmatprep.mubr.msk.f32.mxu1 %vm16040_vm1, %v16039_v1 }
 0x399   :  { %v14369_v14 = vpop.f32.mrf.mxu1  ;;  %v4115_v40 = vpop.f32.mrf.mxu0  ;;  %14332 = vmatmul.mubr.msk.f32.gmra.mxu0 %vm78_vm0, %v10960_v23 }
 0x39a   :  { %v20408_v27 = vmax.f32 %v26294_v15, %v4115_v40  ;;  %14529 = vmatprep.mubr.msk.f32.mxu0 %vm16040_vm1, %v16039_v1  ;;  %v26295_v15 = vmax.f32 %v19202_v10, %v19212_v35  ;;  %v11247_v35 = vld [vmem:[%s25446_s0 + $0x1010] sm:$0xff] }
 0x39b   :  { %v20415_v7 = vpop.f32.mrf.mxu1  ;;  %14515 = vmatmul.mubr.msk.f32.gmra.mxu1 %vm78_vm0, %v11074_v44  ;;  %v14189_v14 = vpop.f32.mrf.mxu0  ;;  %v15999_v44 = vld [vmem:[%s25447_s1 + $0x28] sm:$0xff] }
 0x39c   :  { %14712 = vmatprep.mubr.msk.f32.mxu1 %vm16040_vm1, %v16039_v1  ;;  %v11133_v14 = vld [vmem:[%s25446_s0 + $0xe48] sm:$0xff] }
 0x39d   :  { %v14372_v21 = vpop.f32.mrf.mxu1  ;;  %v4120_v40 = vpop.f32.mrf.mxu0  ;;  %14530 = vmatmul.mubr.msk.f32.vlgmr.msra.gmra.mxu0 %vm78_vm0, %v11132_v16 }
 0x39e   :  { %v20429_v52 = vmax.f32 %v26295_v15, %v4120_v40  ;;  %14884 = vmatpush3.msra.mxu0 %v15999_v44  ;;  %14532 = vmatprep.mubr.msk.f32.mxu0 %vm16040_vm1, %v16039_v1 }
 0x39f   :  { %v20439_v21 = vpop.f32.mrf.mxu1  ;;  %14713 = vmatmul.mubr.msk.f32.vlgmr.msra.gmra.mxu1 %vm78_vm0, %v11246_v30  ;;  %v14192_v16 = vpop.f32.mrf.mxu0  ;;  %14885 = vmatprep.subr.mxu0 %v16039_v1  ;;  %v26296_v30 = vmax.f32 %v19228_v55, %v19238_v28  ;;  %v11248_v28 = vld [vmem:[%s25446_s0 + $0x1018] sm:$0xff] }
 0x3a0   :  { %15067 = vmatpush3.msra.mxu1 %v15999_v44  ;;  %14715 = vmatprep.mubr.msk.f32.mxu1 %vm16040_vm1, %v16039_v1  ;;  %v11134_v44 = vld [vmem:[%s25446_s0 + $0xe50] sm:$0xff]  ;;  %v11135_v55 = vld [vmem:[%s25446_s0 + $0xe58] sm:$0xff] }
 0x3a1   :  { %v14375_v40 = vpop.f32.mrf.mxu1  ;;  %v4125_v15 = vpop.f32.mrf.mxu0  ;;  %14533 = vmatmul.mubr.msk.f32.gmra.mxu0 %vm78_vm0, %v11133_v14  ;;  %15068 = vmatprep.subr.mxu1 %v16039_v1 }
 0x3a2   :  { %v20455_v16 = vmax.f32 %v26296_v30, %v4125_v15  ;;  %14535 = vmatprep.mubr.msk.f32.mxu0 %vm16040_vm1, %v16039_v1  ;;  %v16000_v40 = vld [vmem:[%s25447_s1 + $0x20] sm:$0xff] }
 0x3a3   :  { %14886 = vmatpush3.msra.mxu0 %v16000_v40  ;;  %v20465_v14 = vpop.f32.mrf.mxu1  ;;  %14716 = vmatmul.mubr.msk.f32.gmra.mxu1 %vm78_vm0, %v11247_v35  ;;  %v14195_v10 = vpop.f32.mrf.mxu0 }
 0x3a4   :  { %14887 = vmatprep.subr.mxu0 %v16039_v1  ;;  %14718 = vmatprep.mubr.msk.f32.mxu1 %vm16040_vm1, %v16039_v1  ;;  %v26297_v10 = vmax.f32 %v19254_v51, %v19264_v62  ;;  %v11249_v62 = vld [vmem:[%s25446_s0 + $0x1020] sm:$0xff] }
 0x3a5   :  { %15069 = vmatpush3.msra.mxu1 %v16000_v40  ;;  %v14378_v15 = vpop.f32.mrf.mxu1  ;;  %v4130_v30 = vpop.f32.mrf.mxu0  ;;  %14536 = vmatmul.mubr.msk.f32.gmra.mxu0 %vm78_vm0, %v11134_v44  ;;  %v16001_v40 = vld [vmem:[%s25447_s1 + $0x18] sm:$0xff]  ;;  %v11136_v51 = vld [vmem:[%s25446_s0 + $0xe60] sm:$0xff] }
 0x3a6   :  { %15070 = vmatprep.subr.mxu1 %v16039_v1  ;;  %v20481_v35 = vmax.f32 %v26297_v10, %v4130_v30  ;;  %14538 = vmatprep.mubr.msk.f32.mxu0 %vm16040_vm1, %v16039_v1 }
 0x3a7   :  { %14888 = vmatpush3.msra.mxu0 %v16001_v40  ;;  %v20491_v44 = vpop.f32.mrf.mxu1  ;;  %14719 = vmatmul.mubr.msk.f32.gmra.mxu1 %vm78_vm0, %v11248_v28  ;;  %v14198_v15 = vpop.f32.mrf.mxu0  ;;  %v26298_v28 = vmax.f32 %v19280_v39, %v19290_v33  ;;  %v11250_v33 = vld [vmem:[%s25446_s0 + $0x1028] sm:$0xff] }
 0x3a8   :  { %14889 = vmatprep.subr.mxu0 %v16039_v1  ;;  %14721 = vmatprep.mubr.msk.f32.mxu1 %vm16040_vm1, %v16039_v1  ;;  %v11137_v39 = vld [vmem:[%s25446_s0 + $0xe68] sm:$0xff] }
 0x3a9   :  { %15071 = vmatpush3.msra.mxu1 %v16001_v40  ;;  %v14381_v30 = vpop.f32.mrf.mxu1  ;;  %v4135_v10 = vpop.f32.mrf.mxu0  ;;  %14539 = vmatmul.mubr.msk.f32.gmra.mxu0 %vm78_vm0, %v11135_v55  ;;  %v16002_v40 = vld [vmem:[%s25447_s1 + $0x10] sm:$0xff] }
 0x3aa   :  { %15072 = vmatprep.subr.mxu1 %v16039_v1  ;;  %v20507_v15 = vmax.f32 %v26298_v28, %v4135_v10  ;;  %14541 = vmatprep.mubr.msk.f32.mxu0 %vm16040_vm1, %v16039_v1 }
 0x3ab   :  { %14890 = vmatpush3.msra.mxu0 %v16002_v40  ;;  %v20517_v55 = vpop.f32.mrf.mxu1  ;;  %14722 = vmatmul.mubr.msk.f32.gmra.mxu1 %vm78_vm0, %v11249_v62  ;;  %v14201_v30 = vpop.f32.mrf.mxu0  ;;  %v26299_v62 = vmax.f32 %v19306_v12, %v19316_v63  ;;  %v11251_v63 = vld [vmem:[%s25446_s0 + $0x1030] sm:$0xff] }
 0x3ac   :  { %14891 = vmatprep.subr.mxu0 %v16039_v1  ;;  %14724 = vmatprep.mubr.msk.f32.mxu1 %vm16040_vm1, %v16039_v1  ;;  %v11138_v12 = vld [vmem:[%s25446_s0 + $0xe70] sm:$0xff] }
 0x3ad   :  { %15073 = vmatpush3.msra.mxu1 %v16002_v40  ;;  %v14384_v10 = vpop.f32.mrf.mxu1  ;;  %v4140_v28 = vpop.f32.mrf.mxu0  ;;  %14542 = vmatmul.mubr.msk.f32.gmra.mxu0 %vm78_vm0, %v11136_v51  ;;  %v16003_v40 = vld [vmem:[%s25447_s1 + $0x8] sm:$0xff] }
 0x3ae   :  { %15074 = vmatprep.subr.mxu1 %v16039_v1  ;;  %v20533_v30 = vmax.f32 %v26299_v62, %v4140_v28  ;;  %14544 = vmatprep.mubr.msk.f32.mxu0 %vm16040_vm1, %v16039_v1 }
 0x3af   :  { %14892 = vmatpush3.msra.mxu0 %v16003_v40  ;;  %v20543_v51 = vpop.f32.mrf.mxu1  ;;  %14725 = vmatmul.mubr.msk.f32.gmra.mxu1 %vm78_vm0, %v11250_v33  ;;  %v14204_v10 = vpop.f32.mrf.mxu0  ;;  %v26300_v33 = vmax.f32 %v19332_v19, %v19342_v56  ;;  %v11252_v56 = vld [vmem:[%s25446_s0 + $0x1038] sm:$0xff] }
 0x3b0   :  { %14893 = vmatprep.subr.mxu0 %v16039_v1  ;;  %14727 = vmatprep.mubr.msk.f32.mxu1 %vm16040_vm1, %v16039_v1  ;;  %v11139_v19 = vld [vmem:[%s25446_s0 + $0xe78] sm:$0xff] }
 0x3b1   :  { %15075 = vmatpush3.msra.mxu1 %v16003_v40  ;;  %v14387_v28 = vpop.f32.mrf.mxu1  ;;  %v4145_v62 = vpop.f32.mrf.mxu0  ;;  %14545 = vmatmul.mubr.msk.f32.gmra.mxu0 %vm78_vm0, %v11137_v39  ;;  %v16004_v40 = vld [vmem:[%s25447_s1] sm:$0xff] }
 0x3b2   :  { %15076 = vmatprep.subr.mxu1 %v16039_v1  ;;  %v20559_v10 = vmax.f32 %v26300_v33, %v4145_v62  ;;  %14547 = vmatprep.mubr.msk.f32.mxu0 %vm16040_vm1, %v16039_v1 }
 0x3b3   :  { %14894 = vmatpush3.msra.mxu0 %v16004_v40  ;;  %v20569_v39 = vpop.f32.mrf.mxu1  ;;  %14728 = vmatmul.mubr.msk.f32.gmra.mxu1 %vm78_vm0, %v11251_v63  ;;  %v14207_v28 = vpop.f32.mrf.mxu0  ;;  %v26301_v63 = vmax.f32 %v19358_v42, %v19365_v48  ;;  %v11253_v48 = vld [vmem:[%s25446_s0 + $0x1040] sm:$0xff] }
 0x3b4   :  { %15249 = vmatprep.subr.mxu0 %v16039_v1  ;;  %14730 = vmatprep.mubr.msk.f32.mxu1 %vm16040_vm1, %v16039_v1 }
 0x3b5   :  { %15077 = vmatpush3.msra.mxu1 %v16004_v40  ;;  %v14390_v62 = vpop.f32.mrf.mxu1  ;;  %v4150_v33 = vpop.f32.mrf.mxu0  ;;  %14548 = vmatmul.mubr.msk.f32.gmra.mxu0 %vm78_vm0, %v11138_v12 }
 0x3b6   :  { %15432 = vmatprep.subr.mxu1 %v16039_v1  ;;  %v20585_v28 = vmax.f32 %v26301_v63, %v4150_v33  ;;  %14550 = vmatprep.mubr.msk.f32.mxu0 %vm16040_vm1, %v16039_v1  ;;  %v26302_v33 = vmax.f32 %v19379_v25, %v19386_v29  ;;  %v11254_v25 = vld [vmem:[%s25446_s0 + $0x1048] sm:$0xff] }
 0x3b7   :  { %v20592_v23 = vpop.f32.mrf.mxu1  ;;  %14731 = vmatmul.mubr.msk.f32.gmra.mxu1 %vm78_vm0, %v11252_v56  ;;  %v14210_v40 = vpop.f32.mrf.mxu0  ;;  %v11140_v56 = vld [vmem:[%s25446_s0 + $0xe80] sm:$0xff] }
 0x3b8   :  { %14733 = vmatprep.mubr.msk.f32.mxu1 %vm16040_vm1, %v16039_v1 }
 0x3b9   :  { %v14393_v42 = vpop.f32.mrf.mxu1  ;;  %v4155_v62 = vpop.f32.mrf.mxu0  ;;  %14551 = vmatmul.mubr.msk.f32.gmra.mxu0 %vm78_vm0, %v11139_v19 }
 0x3ba   :  { %v20606_v63 = vmax.f32 %v26302_v33, %v4155_v62  ;;  %14553 = vmatprep.mubr.msk.f32.mxu0 %vm16040_vm1, %v16039_v1  ;;  %v26303_v33 = vmax.f32 %v19400_v47, %v19407_v17  ;;  %v11255_v47 = vld [vmem:[%s25446_s0 + $0x1050] sm:$0xff] }
 0x3bb   :  { %v20613_v40 = vpop.f32.mrf.mxu1  ;;  %14734 = vmatmul.mubr.msk.f32.gmra.mxu1 %vm78_vm0, %v11253_v48  ;;  %v14213_v42 = vpop.f32.mrf.mxu0  ;;  %v11141_v48 = vld [vmem:[%s25446_s0 + $0xe88] sm:$0xff] }
 0x3bc   :  { %14736 = vmatprep.mubr.msk.f32.mxu1 %vm16040_vm1, %v16039_v1 }
 0x3bd   :  { %v14396_v29 = vpop.f32.mrf.mxu1  ;;  %v4160_v62 = vpop.f32.mrf.mxu0  ;;  %14554 = vmatmul.mubr.msk.f32.gmra.mxu0 %vm78_vm0, %v11140_v56 }
 0x3be   :  { %v20627_v12 = vmax.f32 %v26303_v33, %v4160_v62  ;;  %14556 = vmatprep.mubr.msk.f32.mxu0 %vm16040_vm1, %v16039_v1  ;;  %v26304_v33 = vmax.f32 %v19421_v60, %v19428_v9  ;;  %v11256_v60 = vld [vmem:[%s25446_s0 + $0x1058] sm:$0xff] }
 0x3bf   :  { %v20634_v42 = vpop.f32.mrf.mxu1  ;;  %14737 = vmatmul.mubr.msk.f32.gmra.mxu1 %vm78_vm0, %v11254_v25  ;;  %v14216_v29 = vpop.f32.mrf.mxu0  ;;  %v11142_v25 = vld [vmem:[%s25446_s0 + $0xe90] sm:$0xff] }
 0x3c0   :  { %14739 = vmatprep.mubr.msk.f32.mxu1 %vm16040_vm1, %v16039_v1 }
 0x3c1   :  { %v14399_v17 = vpop.f32.mrf.mxu1  ;;  %v4165_v62 = vpop.f32.mrf.mxu0  ;;  %14557 = vmatmul.mubr.msk.f32.gmra.mxu0 %vm78_vm0, %v11141_v48 }
 0x3c2   :  { %v20648_v19 = vmax.f32 %v26304_v33, %v4165_v62  ;;  %14559 = vmatprep.mubr.msk.f32.mxu0 %vm16040_vm1, %v16039_v1  ;;  %v26305_v33 = vmax.f32 %v19442_v36, %v19449_v2  ;;  %v11257_v36 = vld [vmem:[%s25446_s0 + $0x1060] sm:$0xff] }
 0x3c3   :  { %v20655_v29 = vpop.f32.mrf.mxu1  ;;  %14740 = vmatmul.mubr.msk.f32.gmra.mxu1 %vm78_vm0, %v11255_v47  ;;  %v14219_v17 = vpop.f32.mrf.mxu0  ;;  %v11143_v47 = vld [vmem:[%s25446_s0 + $0xe98] sm:$0xff] }
 0x3c4   :  { %14742 = vmatprep.mubr.msk.f32.mxu1 %vm16040_vm1, %v16039_v1 }
 0x3c5   :  { %v14402_v9 = vpop.f32.mrf.mxu1  ;;  %v4170_v62 = vpop.f32.mrf.mxu0  ;;  %14560 = vmatmul.mubr.msk.f32.gmra.mxu0 %vm78_vm0, %v11142_v25 }
 0x3c6   :  { %v20669_v56 = vmax.f32 %v26305_v33, %v4170_v62  ;;  %14562 = vmatprep.mubr.msk.f32.mxu0 %vm16040_vm1, %v16039_v1  ;;  %v26306_v33 = vmax.f32 %v19463_v26, %v19470_v49  ;;  %v11258_v26 = vld [vmem:[%s25446_s0 + $0x1068] sm:$0xff] }
 0x3c7   :  { %v20676_v17 = vpop.f32.mrf.mxu1  ;;  %14743 = vmatmul.mubr.msk.f32.gmra.mxu1 %vm78_vm0, %v11256_v60  ;;  %v14222_v9 = vpop.f32.mrf.mxu0  ;;  %v11144_v60 = vld [vmem:[%s25446_s0 + $0xea0] sm:$0xff] }
 0x3c8   :  { %14745 = vmatprep.mubr.msk.f32.mxu1 %vm16040_vm1, %v16039_v1 }
 0x3c9   :  { %v14405_v2 = vpop.f32.mrf.mxu1  ;;  %v4175_v62 = vpop.f32.mrf.mxu0  ;;  %14563 = vmatmul.mubr.msk.f32.gmra.mxu0 %vm78_vm0, %v11143_v47  ;;  %v26313_v47 = vld [vmem:[#allocation62_spill] sm:$0xff] }
 0x3ca   :  { %v20690_v48 = vmax.f32 %v26306_v33, %v4175_v62  ;;  %14565 = vmatprep.mubr.msk.f32.mxu0 %vm16040_vm1, %v16039_v1  ;;  %v26309_v33 = vmax.f32 %v19484_v53, %v19491_v6  ;;  %v11259_v53 = vld [vmem:[%s25446_s0 + $0x1070] sm:$0xff] }
 0x3cb   :  { %v20697_v9 = vpop.f32.mrf.mxu1  ;;  %14746 = vmatmul.mubr.msk.f32.gmra.mxu1 %vm78_vm0, %v11257_v36  ;;  %v14225_v2 = vpop.f32.mrf.mxu0  ;;  %v11145_v36 = vld [vmem:[%s25446_s0 + $0xea8] sm:$0xff] }
 0x3cc   :  { %26307 = vst [vmem:[#allocation57_spill] sm:$0xff] %v20690_v48  ;;  %26308 = vst [vmem:[#allocation58_spill] sm:$0xff] %v20697_v9  ;;  %14748 = vmatprep.mubr.msk.f32.mxu1 %vm16040_vm1, %v16039_v1 }
 0x3cd   :  { %v14408_v49 = vpop.f32.mrf.mxu1  ;;  %v4180_v62 = vpop.f32.mrf.mxu0  ;;  %14566 = vmatmul.mubr.msk.f32.gmra.mxu0 %vm78_vm0, %v11144_v60  ;;  %v26318_v60 = vld [vmem:[#allocation64_spill] sm:$0xff] }
 0x3ce   :  { %v20711_v25 = vmax.f32 %v26309_v33, %v4180_v62  ;;  %14568 = vmatprep.mubr.msk.f32.mxu0 %vm16040_vm1, %v16039_v1  ;;  %v26312_v33 = vld [vmem:[#allocation61_spill] sm:$0xff] }
 0x3cf   :  { %v20718_v2 = vpop.f32.mrf.mxu1  ;;  %14749 = vmatmul.mubr.msk.f32.gmra.mxu1 %vm78_vm0, %v11258_v26  ;;  %v14228_v49 = vpop.f32.mrf.mxu0  ;;  %v26314_v9 = vmax.f32 %v26312_v33, %v26313_v47  ;;  %v11146_v26 = vld [vmem:[%s25446_s0 + $0xeb0] sm:$0xff]  ;;  %v26317_v33 = vld [vmem:[#allocation63_spill] sm:$0xff] }
 0x3d0   :  { %26310 = vst [vmem:[#allocation59_spill] sm:$0xff] %v20711_v25  ;;  %26311 = vst [vmem:[#allocation60_spill] sm:$0xff] %v20718_v2  ;;  %14751 = vmatprep.mubr.msk.f32.mxu1 %vm16040_vm1, %v16039_v1  ;;  %v26319_v2 = vmax.f32 %v26317_v33, %v26318_v60  ;;  %v26322_v33 = vld [vmem:[#allocation65_spill] sm:$0xff] }
 0x3d1   :  { %v14411_v6 = vpop.f32.mrf.mxu1  ;;  %v4185_v62 = vpop.f32.mrf.mxu0  ;;  %14569 = vmatmul.mubr.msk.f32.gmra.mxu0 %vm78_vm0, %v11145_v36  ;;  %v26323_v36 = vld [vmem:[#allocation66_spill] sm:$0xff] }
 0x3d2   :  { %v20732_v48 = vmax.f32 %v26314_v9, %v4185_v62  ;;  %14571 = vmatprep.mubr.msk.f32.mxu0 %vm16040_vm1, %v16039_v1  ;;  %v11260_v9 = vld [vmem:[%s25446_s0 + $0x1078] sm:$0xff] }
 0x3d3   :  { %v20739_v49 = vpop.f32.mrf.mxu1  ;;  %14752 = vmatmul.mubr.msk.f32.gmra.mxu1 %vm78_vm0, %v11259_v53  ;;  %v14231_v6 = vpop.f32.mrf.mxu0  ;;  %v11147_v53 = vld [vmem:[%s25446_s0 + $0xeb8] sm:$0xff] }
 0x3d4   :  { %26315 = vst [vmem:[#allocation61_spill] sm:$0xff] %v20732_v48  ;;  %26316 = vst [vmem:[#allocation62_spill] sm:$0xff] %v20739_v49  ;;  %14754 = vmatprep.mubr.msk.f32.mxu1 %vm16040_vm1, %v16039_v1  ;;  %v26324_v49 = vmax.f32 %v26322_v33, %v26323_v36  ;;  %v26327_v33 = vld [vmem:[#allocation67_spill] sm:$0xff] }
 0x3d5   :  { %v14414_v47 = vpop.f32.mrf.mxu1  ;;  %v4190_v62 = vpop.f32.mrf.mxu0  ;;  %14572 = vmatmul.mubr.msk.f32.gmra.mxu0 %vm78_vm0, %v11146_v26  ;;  %v26328_v26 = vld [vmem:[#allocation68_spill] sm:$0xff] }
 0x3d6   :  { %v20753_v25 = vmax.f32 %v26319_v2, %v4190_v62  ;;  %14574 = vmatprep.mubr.msk.f32.mxu0 %vm16040_vm1, %v16039_v1  ;;  %v11261_v2 = vld [vmem:[%s25446_s0 + $0x1080] sm:$0xff] }
 0x3d7   :  { %v20760_v6 = vpop.f32.mrf.mxu1  ;;  %14755 = vmatmul.mubr.msk.f32.gmra.mxu1 %vm78_vm0, %v11260_v9  ;;  %v14234_v47 = vpop.f32.mrf.mxu0  ;;  %v11148_v9 = vld [vmem:[%s25446_s0 + $0xec0] sm:$0xff] }
 0x3d8   :  { %26320 = vst [vmem:[#allocation63_spill] sm:$0xff] %v20753_v25  ;;  %26321 = vst [vmem:[#allocation64_spill] sm:$0xff] %v20760_v6  ;;  %14757 = vmatprep.mubr.msk.f32.mxu1 %vm16040_vm1, %v16039_v1  ;;  %v26329_v6 = vmax.f32 %v26327_v33, %v26328_v26  ;;  %v26332_v33 = vld [vmem:[#allocation5_spill] sm:$0xff] }
 0x3d9   :  { %v14417_v60 = vpop.f32.mrf.mxu1  ;;  %v4195_v62 = vpop.f32.mrf.mxu0  ;;  %14575 = vmatmul.mubr.msk.f32.gmra.mxu0 %vm78_vm0, %v11147_v53  ;;  %v26333_v53 = vld [vmem:[#allocation6_spill] sm:$0xff] }
 0x3da   :  { %v20774_v48 = vmax.f32 %v26324_v49, %v4195_v62  ;;  %14577 = vmatprep.mubr.msk.f32.mxu0 %vm16040_vm1, %v16039_v1  ;;  %v11262_v49 = vld [vmem:[%s25446_s0 + $0x1088] sm:$0xff] }
 0x3db   :  { %v20781_v47 = vpop.f32.mrf.mxu1  ;;  %14758 = vmatmul.mubr.msk.f32.gmra.mxu1 %vm78_vm0, %v11261_v2  ;;  %v14237_v60 = vpop.f32.mrf.mxu0  ;;  %v11149_v2 = vld [vmem:[%s25446_s0 + $0xec8] sm:$0xff] }
 0x3dc   :  { %26325 = vst [vmem:[#allocation65_spill] sm:$0xff] %v20774_v48  ;;  %26326 = vst [vmem:[#allocation66_spill] sm:$0xff] %v20781_v47  ;;  %14760 = vmatprep.mubr.msk.f32.mxu1 %vm16040_vm1, %v16039_v1  ;;  %v26334_v47 = vmax.f32 %v26332_v33, %v26333_v53  ;;  %v26337_v33 = vld [vmem:[#allocation7_spill] sm:$0xff] }
 0x3dd   :  { %v14420_v36 = vpop.f32.mrf.mxu1  ;;  %v4200_v62 = vpop.f32.mrf.mxu0  ;;  %14578 = vmatmul.mubr.msk.f32.gmra.mxu0 %vm78_vm0, %v11148_v9  ;;  %v26338_v9 = vld [vmem:[#allocation8_spill] sm:$0xff] }
 0x3de   :  { %v20795_v25 = vmax.f32 %v26329_v6, %v4200_v62  ;;  %14580 = vmatprep.mubr.msk.f32.mxu0 %vm16040_vm1, %v16039_v1  ;;  %v11263_v6 = vld [vmem:[%s25446_s0 + $0x1090] sm:$0xff] }
 0x3df   :  { %v20802_v60 = vpop.f32.mrf.mxu1  ;;  %14761 = vmatmul.mubr.msk.f32.gmra.mxu1 %vm78_vm0, %v11262_v49  ;;  %v14240_v36 = vpop.f32.mrf.mxu0  ;;  %v11150_v49 = vld [vmem:[%s25446_s0 + $0xed0] sm:$0xff] }
 0x3e0   :  { %26330 = vst [vmem:[#allocation67_spill] sm:$0xff] %v20795_v25  ;;  %26331 = vst [vmem:[#allocation68_spill] sm:$0xff] %v20802_v60  ;;  %14763 = vmatprep.mubr.msk.f32.mxu1 %vm16040_vm1, %v16039_v1  ;;  %v26339_v60 = vmax.f32 %v26337_v33, %v26338_v9  ;;  %v26342_v33 = vld [vmem:[#allocation9_spill] sm:$0xff] }
 0x3e1   :  { %v14423_v26 = vpop.f32.mrf.mxu1  ;;  %v4205_v62 = vpop.f32.mrf.mxu0  ;;  %14581 = vmatmul.mubr.msk.f32.gmra.mxu0 %vm78_vm0, %v11149_v2  ;;  %v26343_v2 = vld [vmem:[#allocation10_spill] sm:$0xff] }
 0x3e2   :  { %v20816_v48 = vmax.f32 %v26334_v47, %v4205_v62  ;;  %14583 = vmatprep.mubr.msk.f32.mxu0 %vm16040_vm1, %v16039_v1  ;;  %v11264_v47 = vld [vmem:[%s25446_s0 + $0x1098] sm:$0xff] }
 0x3e3   :  { %v20823_v36 = vpop.f32.mrf.mxu1  ;;  %14764 = vmatmul.mubr.msk.f32.gmra.mxu1 %vm78_vm0, %v11263_v6  ;;  %v14243_v26 = vpop.f32.mrf.mxu0  ;;  %v11151_v6 = vld [vmem:[%s25446_s0 + $0xed8] sm:$0xff] }
 0x3e4   :  { %26335 = vst [vmem:[#allocation5_spill] sm:$0xff] %v20816_v48  ;;  %26336 = vst [vmem:[#allocation6_spill] sm:$0xff] %v20823_v36  ;;  %14766 = vmatprep.mubr.msk.f32.mxu1 %vm16040_vm1, %v16039_v1  ;;  %v26344_v36 = vmax.f32 %v26342_v33, %v26343_v2  ;;  %v26347_v33 = vld [vmem:[#allocation11_spill] sm:$0xff] }
 0x3e5   :  { %v14426_v53 = vpop.f32.mrf.mxu1  ;;  %v4210_v62 = vpop.f32.mrf.mxu0  ;;  %14584 = vmatmul.mubr.msk.f32.gmra.mxu0 %vm78_vm0, %v11150_v49  ;;  %v26348_v49 = vld [vmem:[#allocation12_spill] sm:$0xff] }
 0x3e6   :  { %v20837_v25 = vmax.f32 %v26339_v60, %v4210_v62  ;;  %14586 = vmatprep.mubr.msk.f32.mxu0 %vm16040_vm1, %v16039_v1  ;;  %v11265_v60 = vld [vmem:[%s25446_s0 + $0x10a0] sm:$0xff] }
 0x3e7   :  { %v20844_v26 = vpop.f32.mrf.mxu1  ;;  %14767 = vmatmul.mubr.msk.f32.gmra.mxu1 %vm78_vm0, %v11264_v47  ;;  %v14246_v53 = vpop.f32.mrf.mxu0  ;;  %v11152_v47 = vld [vmem:[%s25446_s0 + $0xee0] sm:$0xff] }
 0x3e8   :  { %26340 = vst [vmem:[#allocation7_spill] sm:$0xff] %v20837_v25  ;;  %26341 = vst [vmem:[#allocation8_spill] sm:$0xff] %v20844_v26  ;;  %14769 = vmatprep.mubr.msk.f32.mxu1 %vm16040_vm1, %v16039_v1  ;;  %v26349_v26 = vmax.f32 %v26347_v33, %v26348_v49  ;;  %v26352_v33 = vld [vmem:[#allocation13_spill] sm:$0xff] }
 0x3e9   :  { %v14429_v9 = vpop.f32.mrf.mxu1  ;;  %v4215_v62 = vpop.f32.mrf.mxu0  ;;  %14587 = vmatmul.mubr.msk.f32.gmra.mxu0 %vm78_vm0, %v11151_v6  ;;  %v26353_v6 = vld [vmem:[#allocation14_spill] sm:$0xff] }
 0x3ea   :  { %v20858_v48 = vmax.f32 %v26344_v36, %v4215_v62  ;;  %14589 = vmatprep.mubr.msk.f32.mxu0 %vm16040_vm1, %v16039_v1  ;;  %v11266_v36 = vld [vmem:[%s25446_s0 + $0x10a8] sm:$0xff] }
 0x3eb   :  { %v20865_v53 = vpop.f32.mrf.mxu1  ;;  %14770 = vmatmul.mubr.msk.f32.gmra.mxu1 %vm78_vm0, %v11265_v60  ;;  %v14249_v9 = vpop.f32.mrf.mxu0  ;;  %v11153_v60 = vld [vmem:[%s25446_s0 + $0xee8] sm:$0xff] }
 0x3ec   :  { %26345 = vst [vmem:[#allocation9_spill] sm:$0xff] %v20858_v48  ;;  %26346 = vst [vmem:[#allocation10_spill] sm:$0xff] %v20865_v53  ;;  %14772 = vmatprep.mubr.msk.f32.mxu1 %vm16040_vm1, %v16039_v1  ;;  %v26354_v53 = vmax.f32 %v26352_v33, %v26353_v6  ;;  %v26357_v33 = vld [vmem:[#allocation15_spill] sm:$0xff] }
 0x3ed   :  { %v14432_v2 = vpop.f32.mrf.mxu1  ;;  %v4220_v62 = vpop.f32.mrf.mxu0  ;;  %14590 = vmatmul.mubr.msk.f32.gmra.mxu0 %vm78_vm0, %v11152_v47  ;;  %v26358_v47 = vld [vmem:[#allocation16_spill] sm:$0xff] }
 0x3ee   :  { %v20879_v25 = vmax.f32 %v26349_v26, %v4220_v62  ;;  %14592 = vmatprep.mubr.msk.f32.mxu0 %vm16040_vm1, %v16039_v1  ;;  %v11267_v26 = vld [vmem:[%s25446_s0 + $0x10b0] sm:$0xff] }
 0x3ef   :  { %v20886_v9 = vpop.f32.mrf.mxu1  ;;  %14773 = vmatmul.mubr.msk.f32.gmra.mxu1 %vm78_vm0, %v11266_v36  ;;  %v14252_v2 = vpop.f32.mrf.mxu0  ;;  %v11154_v36 = vld [vmem:[%s25446_s0 + $0xef0] sm:$0xff] }
 0x3f0   :  { %26350 = vst [vmem:[#allocation11_spill] sm:$0xff] %v20879_v25  ;;  %26351 = vst [vmem:[#allocation12_spill] sm:$0xff] %v20886_v9  ;;  %14775 = vmatprep.mubr.msk.f32.mxu1 %vm16040_vm1, %v16039_v1  ;;  %v26359_v9 = vmax.f32 %v26357_v33, %v26358_v47  ;;  %v26362_v33 = vld [vmem:[#allocation17_spill] sm:$0xff] }
 0x3f1   :  { %v14435_v49 = vpop.f32.mrf.mxu1  ;;  %v4225_v62 = vpop.f32.mrf.mxu0  ;;  %14593 = vmatmul.mubr.msk.f32.gmra.mxu0 %vm78_vm0, %v11153_v60  ;;  %v26363_v60 = vld [vmem:[#allocation18_spill] sm:$0xff] }
 0x3f2   :  { %v20900_v48 = vmax.f32 %v26354_v53, %v4225_v62  ;;  %14595 = vmatprep.mubr.msk.f32.mxu0 %vm16040_vm1, %v16039_v1  ;;  %v11268_v53 = vld [vmem:[%s25446_s0 + $0x10b8] sm:$0xff] }
 0x3f3   :  { %v20907_v2 = vpop.f32.mrf.mxu1  ;;  %14776 = vmatmul.mubr.msk.f32.gmra.mxu1 %vm78_vm0, %v11267_v26  ;;  %v14255_v49 = vpop.f32.mrf.mxu0  ;;  %v11155_v26 = vld [vmem:[%s25446_s0 + $0xef8] sm:$0xff] }
 0x3f4   :  { %26355 = vst [vmem:[#allocation13_spill] sm:$0xff] %v20900_v48  ;;  %26356 = vst [vmem:[#allocation14_spill] sm:$0xff] %v20907_v2  ;;  %14778 = vmatprep.mubr.msk.f32.mxu1 %vm16040_vm1, %v16039_v1  ;;  %v26364_v2 = vmax.f32 %v26362_v33, %v26363_v60  ;;  %v26367_v33 = vld [vmem:[#allocation19_spill] sm:$0xff] }
 0x3f5   :  { %v14438_v6 = vpop.f32.mrf.mxu1  ;;  %v4230_v62 = vpop.f32.mrf.mxu0  ;;  %14596 = vmatmul.mubr.msk.f32.gmra.mxu0 %vm78_vm0, %v11154_v36  ;;  %v26368_v36 = vld [vmem:[#allocation20_spill] sm:$0xff] }
 0x3f6   :  { %v20921_v25 = vmax.f32 %v26359_v9, %v4230_v62  ;;  %14598 = vmatprep.mubr.msk.f32.mxu0 %vm16040_vm1, %v16039_v1  ;;  %v11269_v9 = vld [vmem:[%s25446_s0 + $0x10c0] sm:$0xff] }
 0x3f7   :  { %v20928_v49 = vpop.f32.mrf.mxu1  ;;  %14779 = vmatmul.mubr.msk.f32.gmra.mxu1 %vm78_vm0, %v11268_v53  ;;  %v14258_v6 = vpop.f32.mrf.mxu0  ;;  %v11156_v53 = vld [vmem:[%s25446_s0 + $0xf00] sm:$0xff] }
 0x3f8   :  { %26360 = vst [vmem:[#allocation15_spill] sm:$0xff] %v20921_v25  ;;  %26361 = vst [vmem:[#allocation16_spill] sm:$0xff] %v20928_v49  ;;  %14781 = vmatprep.mubr.msk.f32.mxu1 %vm16040_vm1, %v16039_v1  ;;  %v26369_v49 = vmax.f32 %v26367_v33, %v26368_v36  ;;  %v26372_v33 = vld [vmem:[#allocation21_spill] sm:$0xff] }
 0x3f9   :  { %v14441_v47 = vpop.f32.mrf.mxu1  ;;  %v4235_v62 = vpop.f32.mrf.mxu0  ;;  %14599 = vmatmul.mubr.msk.f32.gmra.mxu0 %vm78_vm0, %v11155_v26  ;;  %v26373_v26 = vld [vmem:[#allocation22_spill] sm:$0xff] }
 0x3fa   :  { %v20942_v48 = vmax.f32 %v26364_v2, %v4235_v62  ;;  %14601 = vmatprep.mubr.msk.f32.mxu0 %vm16040_vm1, %v16039_v1  ;;  %v11270_v2 = vld [vmem:[%s25446_s0 + $0x10c8] sm:$0xff] }
 0x3fb   :  { %v20949_v6 = vpop.f32.mrf.mxu1  ;;  %14782 = vmatmul.mubr.msk.f32.gmra.mxu1 %vm78_vm0, %v11269_v9  ;;  %v14261_v47 = vpop.f32.mrf.mxu0  ;;  %v11157_v9 = vld [vmem:[%s25446_s0 + $0xf08] sm:$0xff] }
 0x3fc   :  { %26365 = vst [vmem:[#allocation17_spill] sm:$0xff] %v20942_v48  ;;  %26366 = vst [vmem:[#allocation18_spill] sm:$0xff] %v20949_v6  ;;  %14784 = vmatprep.mubr.msk.f32.mxu1 %vm16040_vm1, %v16039_v1  ;;  %v26374_v6 = vmax.f32 %v26372_v33, %v26373_v26  ;;  %v26377_v33 = vld [vmem:[#allocation23_spill] sm:$0xff] }
 0x3fd   :  { %v14444_v60 = vpop.f32.mrf.mxu1  ;;  %v4240_v62 = vpop.f32.mrf.mxu0  ;;  %14602 = vmatmul.mubr.msk.f32.gmra.mxu0 %vm78_vm0, %v11156_v53  ;;  %v26378_v53 = vld [vmem:[#allocation24_spill] sm:$0xff] }
 0x3fe   :  { %v20963_v25 = vmax.f32 %v26369_v49, %v4240_v62  ;;  %14604 = vmatprep.mubr.msk.f32.mxu0 %vm16040_vm1, %v16039_v1  ;;  %v11271_v49 = vld [vmem:[%s25446_s0 + $0x10d0] sm:$0xff] }
 0x3ff   :  { %v20970_v47 = vpop.f32.mrf.mxu1  ;;  %14785 = vmatmul.mubr.msk.f32.gmra.mxu1 %vm78_vm0, %v11270_v2  ;;  %v14264_v60 = vpop.f32.mrf.mxu0  ;;  %v11158_v2 = vld [vmem:[%s25446_s0 + $0xf10] sm:$0xff] }
 0x400   :  { %26370 = vst [vmem:[#allocation19_spill] sm:$0xff] %v20963_v25  ;;  %26371 = vst [vmem:[#allocation20_spill] sm:$0xff] %v20970_v47  ;;  %14787 = vmatprep.mubr.msk.f32.mxu1 %vm16040_vm1, %v16039_v1  ;;  %v26379_v47 = vmax.f32 %v26377_v33, %v26378_v53  ;;  %v26382_v33 = vld [vmem:[#allocation25_spill] sm:$0xff] }
 0x401   :  { %v14447_v36 = vpop.f32.mrf.mxu1  ;;  %v4245_v62 = vpop.f32.mrf.mxu0  ;;  %14605 = vmatmul.mubr.msk.f32.gmra.mxu0 %vm78_vm0, %v11157_v9  ;;  %v26383_v9 = vld [vmem:[#allocation26_spill] sm:$0xff] }
 0x402   :  { %v20984_v48 = vmax.f32 %v26374_v6, %v4245_v62  ;;  %14607 = vmatprep.mubr.msk.f32.mxu0 %vm16040_vm1, %v16039_v1  ;;  %v11272_v6 = vld [vmem:[%s25446_s0 + $0x10d8] sm:$0xff] }
 0x403   :  { %v20991_v60 = vpop.f32.mrf.mxu1  ;;  %14788 = vmatmul.mubr.msk.f32.gmra.mxu1 %vm78_vm0, %v11271_v49  ;;  %v14267_v36 = vpop.f32.mrf.mxu0  ;;  %v11159_v49 = vld [vmem:[%s25446_s0 + $0xf18] sm:$0xff] }
 0x404   :  { %26375 = vst [vmem:[#allocation21_spill] sm:$0xff] %v20984_v48  ;;  %26376 = vst [vmem:[#allocation22_spill] sm:$0xff] %v20991_v60  ;;  %14790 = vmatprep.mubr.msk.f32.mxu1 %vm16040_vm1, %v16039_v1  ;;  %v26384_v60 = vmax.f32 %v26382_v33, %v26383_v9  ;;  %v26387_v33 = vld [vmem:[#allocation27_spill] sm:$0xff] }
 0x405   :  { %v14450_v26 = vpop.f32.mrf.mxu1  ;;  %v4250_v62 = vpop.f32.mrf.mxu0  ;;  %14608 = vmatmul.mubr.msk.f32.gmra.mxu0 %vm78_vm0, %v11158_v2  ;;  %v26388_v2 = vld [vmem:[#allocation28_spill] sm:$0xff] }
 0x406   :  { %v21005_v25 = vmax.f32 %v26379_v47, %v4250_v62  ;;  %14610 = vmatprep.mubr.msk.f32.mxu0 %vm16040_vm1, %v16039_v1  ;;  %v11273_v47 = vld [vmem:[%s25446_s0 + $0x10e0] sm:$0xff] }
 0x407   :  { %v21012_v36 = vpop.f32.mrf.mxu1  ;;  %14791 = vmatmul.mubr.msk.f32.gmra.mxu1 %vm78_vm0, %v11272_v6  ;;  %v14270_v26 = vpop.f32.mrf.mxu0  ;;  %v11160_v6 = vld [vmem:[%s25446_s0 + $0xf20] sm:$0xff] }
 0x408   :  { %26380 = vst [vmem:[#allocation23_spill] sm:$0xff] %v21005_v25  ;;  %26381 = vst [vmem:[#allocation24_spill] sm:$0xff] %v21012_v36  ;;  %14793 = vmatprep.mubr.msk.f32.mxu1 %vm16040_vm1, %v16039_v1  ;;  %v26389_v36 = vmax.f32 %v26387_v33, %v26388_v2  ;;  %v26392_v33 = vld [vmem:[#allocation29_spill] sm:$0xff] }
 0x409   :  { %v14453_v53 = vpop.f32.mrf.mxu1  ;;  %v4255_v62 = vpop.f32.mrf.mxu0  ;;  %14611 = vmatmul.mubr.msk.f32.gmra.mxu0 %vm78_vm0, %v11159_v49  ;;  %v26393_v49 = vld [vmem:[#allocation30_spill] sm:$0xff] }
 0x40a   :  { %v21026_v48 = vmax.f32 %v26384_v60, %v4255_v62  ;;  %14613 = vmatprep.mubr.msk.f32.mxu0 %vm16040_vm1, %v16039_v1  ;;  %v11274_v60 = vld [vmem:[%s25446_s0 + $0x10e8] sm:$0xff] }
 0x40b   :  { %v21033_v26 = vpop.f32.mrf.mxu1  ;;  %14794 = vmatmul.mubr.msk.f32.gmra.mxu1 %vm78_vm0, %v11273_v47  ;;  %v14273_v53 = vpop.f32.mrf.mxu0  ;;  %v11161_v47 = vld [vmem:[%s25446_s0 + $0xf28] sm:$0xff] }
 0x40c   :  { %26385 = vst [vmem:[#allocation25_spill] sm:$0xff] %v21026_v48  ;;  %26386 = vst [vmem:[#allocation26_spill] sm:$0xff] %v21033_v26  ;;  %14796 = vmatprep.mubr.msk.f32.mxu1 %vm16040_vm1, %v16039_v1  ;;  %v26394_v26 = vmax.f32 %v26392_v33, %v26393_v49  ;;  %v26397_v33 = vld [vmem:[#allocation31_spill] sm:$0xff] }
 0x40d   :  { %v14456_v9 = vpop.f32.mrf.mxu1  ;;  %v4260_v62 = vpop.f32.mrf.mxu0  ;;  %14614 = vmatmul.mubr.msk.f32.gmra.mxu0 %vm78_vm0, %v11160_v6  ;;  %v26398_v6 = vld [vmem:[#allocation32_spill] sm:$0xff] }
 0x40e   :  { %v21047_v25 = vmax.f32 %v26389_v36, %v4260_v62  ;;  %14616 = vmatprep.mubr.msk.f32.mxu0 %vm16040_vm1, %v16039_v1  ;;  %v11275_v36 = vld [vmem:[%s25446_s0 + $0x10f0] sm:$0xff] }
 0x40f   :  { %v21054_v53 = vpop.f32.mrf.mxu1  ;;  %14797 = vmatmul.mubr.msk.f32.gmra.mxu1 %vm78_vm0, %v11274_v60  ;;  %v14276_v9 = vpop.f32.mrf.mxu0  ;;  %v11162_v60 = vld [vmem:[%s25446_s0 + $0xf30] sm:$0xff] }
 0x410   :  { %26390 = vst [vmem:[#allocation27_spill] sm:$0xff] %v21047_v25  ;;  %26391 = vst [vmem:[#allocation28_spill] sm:$0xff] %v21054_v53  ;;  %14799 = vmatprep.mubr.msk.f32.mxu1 %vm16040_vm1, %v16039_v1  ;;  %v26399_v53 = vmax.f32 %v26397_v33, %v26398_v6  ;;  %v26402_v33 = vld [vmem:[#allocation33_spill] sm:$0xff] }
 0x411   :  { %v14459_v2 = vpop.f32.mrf.mxu1  ;;  %v4265_v62 = vpop.f32.mrf.mxu0  ;;  %14617 = vmatmul.mubr.msk.f32.gmra.mxu0 %vm78_vm0, %v11161_v47  ;;  %v26403_v47 = vld [vmem:[#allocation34_spill] sm:$0xff] }
 0x412   :  { %v21068_v48 = vmax.f32 %v26394_v26, %v4265_v62  ;;  %14619 = vmatprep.mubr.msk.f32.mxu0 %vm16040_vm1, %v16039_v1  ;;  %v11276_v26 = vld [vmem:[%s25446_s0 + $0x10f8] sm:$0xff] }
 0x413   :  { %v21075_v9 = vpop.f32.mrf.mxu1  ;;  %14800 = vmatmul.mubr.msk.f32.gmra.mxu1 %vm78_vm0, %v11275_v36  ;;  %v14279_v2 = vpop.f32.mrf.mxu0  ;;  %v11163_v36 = vld [vmem:[%s25446_s0 + $0xf38] sm:$0xff] }
 0x414   :  { %26395 = vst [vmem:[#allocation29_spill] sm:$0xff] %v21068_v48  ;;  %26396 = vst [vmem:[#allocation30_spill] sm:$0xff] %v21075_v9  ;;  %14802 = vmatprep.mubr.msk.f32.mxu1 %vm16040_vm1, %v16039_v1  ;;  %v26404_v9 = vmax.f32 %v26402_v33, %v26403_v47  ;;  %v26407_v33 = vld [vmem:[#allocation35_spill] sm:$0xff] }
 0x415   :  { %v14462_v49 = vpop.f32.mrf.mxu1  ;;  %v4270_v62 = vpop.f32.mrf.mxu0  ;;  %14620 = vmatmul.mubr.msk.f32.gmra.mxu0 %vm78_vm0, %v11162_v60  ;;  %v26408_v60 = vld [vmem:[#allocation36_spill] sm:$0xff] }
 0x416   :  { %v21089_v25 = vmax.f32 %v26399_v53, %v4270_v62  ;;  %14622 = vmatprep.mubr.msk.f32.mxu0 %vm16040_vm1, %v16039_v1  ;;  %v11277_v53 = vld [vmem:[%s25446_s0 + $0x1100] sm:$0xff] }
 0x417   :  { %v21096_v2 = vpop.f32.mrf.mxu1  ;;  %14803 = vmatmul.mubr.msk.f32.gmra.mxu1 %vm78_vm0, %v11276_v26  ;;  %v14282_v49 = vpop.f32.mrf.mxu0  ;;  %v11164_v26 = vld [vmem:[%s25446_s0 + $0xf40] sm:$0xff] }
 0x418   :  { %26400 = vst [vmem:[#allocation31_spill] sm:$0xff] %v21089_v25  ;;  %26401 = vst [vmem:[#allocation32_spill] sm:$0xff] %v21096_v2  ;;  %14805 = vmatprep.mubr.msk.f32.mxu1 %vm16040_vm1, %v16039_v1  ;;  %v26409_v2 = vmax.f32 %v26407_v33, %v26408_v60  ;;  %v26412_v33 = vld [vmem:[#allocation37_spill] sm:$0xff] }
 0x419   :  { %v14465_v6 = vpop.f32.mrf.mxu1  ;;  %v4275_v62 = vpop.f32.mrf.mxu0  ;;  %14623 = vmatmul.mubr.msk.f32.gmra.mxu0 %vm78_vm0, %v11163_v36  ;;  %v26413_v36 = vld [vmem:[#allocation38_spill] sm:$0xff] }
 0x41a   :  { %v21110_v48 = vmax.f32 %v26404_v9, %v4275_v62  ;;  %14625 = vmatprep.mubr.msk.f32.mxu0 %vm16040_vm1, %v16039_v1  ;;  %v11278_v9 = vld [vmem:[%s25446_s0 + $0x1108] sm:$0xff] }
 0x41b   :  { %v21117_v49 = vpop.f32.mrf.mxu1  ;;  %14806 = vmatmul.mubr.msk.f32.gmra.mxu1 %vm78_vm0, %v11277_v53  ;;  %v14285_v6 = vpop.f32.mrf.mxu0  ;;  %v11165_v53 = vld [vmem:[%s25446_s0 + $0xf48] sm:$0xff] }
 0x41c   :  { %26405 = vst [vmem:[#allocation33_spill] sm:$0xff] %v21110_v48  ;;  %26406 = vst [vmem:[#allocation34_spill] sm:$0xff] %v21117_v49  ;;  %14808 = vmatprep.mubr.msk.f32.mxu1 %vm16040_vm1, %v16039_v1  ;;  %v26414_v49 = vmax.f32 %v26412_v33, %v26413_v36  ;;  %v26417_v33 = vld [vmem:[#allocation39_spill] sm:$0xff] }
 0x41d   :  { %v14468_v47 = vpop.f32.mrf.mxu1  ;;  %v4280_v62 = vpop.f32.mrf.mxu0  ;;  %14626 = vmatmul.mubr.msk.f32.gmra.mxu0 %vm78_vm0, %v11164_v26  ;;  %v26418_v26 = vld [vmem:[#allocation40_spill] sm:$0xff] }
 0x41e   :  { %v21131_v25 = vmax.f32 %v26409_v2, %v4280_v62  ;;  %14628 = vmatprep.mubr.msk.f32.mxu0 %vm16040_vm1, %v16039_v1  ;;  %v11279_v2 = vld [vmem:[%s25446_s0 + $0x1110] sm:$0xff] }
 0x41f   :  { %v21138_v6 = vpop.f32.mrf.mxu1  ;;  %14809 = vmatmul.mubr.msk.f32.gmra.mxu1 %vm78_vm0, %v11278_v9  ;;  %v14288_v47 = vpop.f32.mrf.mxu0  ;;  %v11166_v9 = vld [vmem:[%s25446_s0 + $0xf50] sm:$0xff] }
 0x420   :  { %26410 = vst [vmem:[#allocation35_spill] sm:$0xff] %v21131_v25  ;;  %26411 = vst [vmem:[#allocation36_spill] sm:$0xff] %v21138_v6  ;;  %14811 = vmatprep.mubr.msk.f32.mxu1 %vm16040_vm1, %v16039_v1  ;;  %v26419_v6 = vmax.f32 %v26417_v33, %v26418_v26  ;;  %v26422_v33 = vld [vmem:[#allocation41_spill] sm:$0xff] }
 0x421   :  { %v14471_v60 = vpop.f32.mrf.mxu1  ;;  %v4285_v62 = vpop.f32.mrf.mxu0  ;;  %14629 = vmatmul.mubr.msk.f32.gmra.mxu0 %vm78_vm0, %v11165_v53  ;;  %v26423_v53 = vld [vmem:[#allocation42_spill] sm:$0xff] }
 0x422   :  { %v21152_v48 = vmax.f32 %v26414_v49, %v4285_v62  ;;  %14631 = vmatprep.mubr.msk.f32.mxu0 %vm16040_vm1, %v16039_v1  ;;  %v11280_v49 = vld [vmem:[%s25446_s0 + $0x1118] sm:$0xff] }
 0x423   :  { %v21159_v47 = vpop.f32.mrf.mxu1  ;;  %14812 = vmatmul.mubr.msk.f32.gmra.mxu1 %vm78_vm0, %v11279_v2  ;;  %v14291_v60 = vpop.f32.mrf.mxu0  ;;  %v11167_v2 = vld [vmem:[%s25446_s0 + $0xf58] sm:$0xff] }
 0x424   :  { %26415 = vst [vmem:[#allocation37_spill] sm:$0xff] %v21152_v48  ;;  %26416 = vst [vmem:[#allocation38_spill] sm:$0xff] %v21159_v47  ;;  %14814 = vmatprep.mubr.msk.f32.mxu1 %vm16040_vm1, %v16039_v1  ;;  %v26424_v47 = vmax.f32 %v26422_v33, %v26423_v53  ;;  %v26427_v33 = vld [vmem:[#allocation43_spill] sm:$0xff] }
 0x425   :  { %v14474_v36 = vpop.f32.mrf.mxu1  ;;  %v4290_v62 = vpop.f32.mrf.mxu0  ;;  %14632 = vmatmul.mubr.msk.f32.gmra.mxu0 %vm78_vm0, %v11166_v9  ;;  %v26428_v9 = vld [vmem:[#allocation44_spill] sm:$0xff] }
 0x426   :  { %v21173_v25 = vmax.f32 %v26419_v6, %v4290_v62  ;;  %14634 = vmatprep.mubr.msk.f32.mxu0 %vm16040_vm1, %v16039_v1  ;;  %v11281_v6 = vld [vmem:[%s25446_s0 + $0x1120] sm:$0xff] }
 0x427   :  { %v21180_v60 = vpop.f32.mrf.mxu1  ;;  %14815 = vmatmul.mubr.msk.f32.gmra.mxu1 %vm78_vm0, %v11280_v49  ;;  %v14294_v36 = vpop.f32.mrf.mxu0  ;;  %v11168_v49 = vld [vmem:[%s25446_s0 + $0xf60] sm:$0xff] }
 0x428   :  { %26420 = vst [vmem:[#allocation39_spill] sm:$0xff] %v21173_v25  ;;  %26421 = vst [vmem:[#allocation40_spill] sm:$0xff] %v21180_v60  ;;  %14817 = vmatprep.mubr.msk.f32.mxu1 %vm16040_vm1, %v16039_v1  ;;  %v26429_v60 = vmax.f32 %v26427_v33, %v26428_v9  ;;  %v26432_v33 = vld [vmem:[#allocation45_spill] sm:$0xff] }
 0x429   :  { %v14477_v26 = vpop.f32.mrf.mxu1  ;;  %v4295_v62 = vpop.f32.mrf.mxu0  ;;  %14635 = vmatmul.mubr.msk.f32.gmra.mxu0 %vm78_vm0, %v11167_v2  ;;  %v26433_v2 = vld [vmem:[#allocation46_spill] sm:$0xff] }
 0x42a   :  { %v21194_v48 = vmax.f32 %v26424_v47, %v4295_v62  ;;  %14637 = vmatprep.mubr.msk.f32.mxu0 %vm16040_vm1, %v16039_v1  ;;  %v11282_v47 = vld [vmem:[%s25446_s0 + $0x1128] sm:$0xff] }
 0x42b   :  { %v21201_v36 = vpop.f32.mrf.mxu1  ;;  %14818 = vmatmul.mubr.msk.f32.gmra.mxu1 %vm78_vm0, %v11281_v6  ;;  %v14297_v26 = vpop.f32.mrf.mxu0  ;;  %v11169_v6 = vld [vmem:[%s25446_s0 + $0xf68] sm:$0xff] }
 0x42c   :  { %26425 = vst [vmem:[#allocation41_spill] sm:$0xff] %v21194_v48  ;;  %26426 = vst [vmem:[#allocation42_spill] sm:$0xff] %v21201_v36  ;;  %14820 = vmatprep.mubr.msk.f32.mxu1 %vm16040_vm1, %v16039_v1  ;;  %v26434_v36 = vmax.f32 %v26432_v33, %v26433_v2  ;;  %v26437_v33 = vld [vmem:[#allocation47_spill] sm:$0xff] }
 0x42d   :  { %v14480_v53 = vpop.f32.mrf.mxu1  ;;  %v4300_v62 = vpop.f32.mrf.mxu0  ;;  %14638 = vmatmul.mubr.msk.f32.gmra.mxu0 %vm78_vm0, %v11168_v49  ;;  %v26438_v49 = vld [vmem:[#allocation48_spill] sm:$0xff] }
 0x42e   :  { %v21215_v25 = vmax.f32 %v26429_v60, %v4300_v62  ;;  %14640 = vmatprep.mubr.msk.f32.mxu0 %vm16040_vm1, %v16039_v1  ;;  %v11283_v60 = vld [vmem:[%s25446_s0 + $0x1130] sm:$0xff] }
 0x42f   :  { %v21222_v26 = vpop.f32.mrf.mxu1  ;;  %14821 = vmatmul.mubr.msk.f32.gmra.mxu1 %vm78_vm0, %v11282_v47  ;;  %v14300_v53 = vpop.f32.mrf.mxu0  ;;  %v11170_v47 = vld [vmem:[%s25446_s0 + $0xf70] sm:$0xff] }
 0x430   :  { %26430 = vst [vmem:[#allocation43_spill] sm:$0xff] %v21215_v25  ;;  %26431 = vst [vmem:[#allocation44_spill] sm:$0xff] %v21222_v26  ;;  %14823 = vmatprep.mubr.msk.f32.mxu1 %vm16040_vm1, %v16039_v1  ;;  %v26439_v26 = vmax.f32 %v26437_v33, %v26438_v49  ;;  %v26442_v33 = vld [vmem:[#allocation49_spill] sm:$0xff] }
 0x431   :  { %v14483_v9 = vpop.f32.mrf.mxu1  ;;  %v4305_v62 = vpop.f32.mrf.mxu0  ;;  %14641 = vmatmul.mubr.msk.f32.gmra.mxu0 %vm78_vm0, %v11169_v6  ;;  %v26443_v6 = vld [vmem:[#allocation50_spill] sm:$0xff] }
 0x432   :  { %v21236_v48 = vmax.f32 %v26434_v36, %v4305_v62  ;;  %14643 = vmatprep.mubr.msk.f32.mxu0 %vm16040_vm1, %v16039_v1  ;;  %v11284_v36 = vld [vmem:[%s25446_s0 + $0x1138] sm:$0xff] }
 0x433   :  { %v21243_v53 = vpop.f32.mrf.mxu1  ;;  %14824 = vmatmul.mubr.msk.f32.gmra.mxu1 %vm78_vm0, %v11283_v60  ;;  %v14303_v9 = vpop.f32.mrf.mxu0  ;;  %v11171_v60 = vld [vmem:[%s25446_s0 + $0xf78] sm:$0xff] }
 0x434   :  { %26435 = vst [vmem:[#allocation45_spill] sm:$0xff] %v21236_v48  ;;  %26436 = vst [vmem:[#allocation46_spill] sm:$0xff] %v21243_v53  ;;  %14826 = vmatprep.mubr.msk.f32.mxu1 %vm16040_vm1, %v16039_v1  ;;  %v26444_v53 = vmax.f32 %v26442_v33, %v26443_v6  ;;  %v26447_v33 = vld [vmem:[#allocation51_spill] sm:$0xff] }
 0x435   :  { %v14486_v2 = vpop.f32.mrf.mxu1  ;;  %v4310_v62 = vpop.f32.mrf.mxu0  ;;  %14644 = vmatmul.mubr.msk.f32.gmra.mxu0 %vm78_vm0, %v11170_v47  ;;  %v26448_v47 = vld [vmem:[#allocation52_spill] sm:$0xff] }
 0x436   :  { %v21257_v25 = vmax.f32 %v26439_v26, %v4310_v62  ;;  %14646 = vmatprep.mubr.msk.f32.mxu0 %vm16040_vm1, %v16039_v1  ;;  %v11285_v26 = vld [vmem:[%s25446_s0 + $0x1140] sm:$0xff] }
 0x437   :  { %v21264_v9 = vpop.f32.mrf.mxu1  ;;  %14827 = vmatmul.mubr.msk.f32.gmra.mxu1 %vm78_vm0, %v11284_v36  ;;  %v14306_v2 = vpop.f32.mrf.mxu0  ;;  %v11172_v36 = vld [vmem:[%s25446_s0 + $0xf80] sm:$0xff] }
 0x438   :  { %26440 = vst [vmem:[#allocation47_spill] sm:$0xff] %v21257_v25  ;;  %26441 = vst [vmem:[#allocation48_spill] sm:$0xff] %v21264_v9  ;;  %14829 = vmatprep.mubr.msk.f32.mxu1 %vm16040_vm1, %v16039_v1  ;;  %v26449_v9 = vmax.f32 %v26447_v33, %v26448_v47  ;;  %v26452_v33 = vld [vmem:[#allocation53_spill] sm:$0xff] }
 0x439   :  { %v14489_v49 = vpop.f32.mrf.mxu1  ;;  %v4315_v62 = vpop.f32.mrf.mxu0  ;;  %14647 = vmatmul.mubr.msk.f32.gmra.mxu0 %vm78_vm0, %v11171_v60  ;;  %v26453_v60 = vld [vmem:[#allocation54_spill] sm:$0xff] }
 0x43a   :  { %v21278_v48 = vmax.f32 %v26444_v53, %v4315_v62  ;;  %14649 = vmatprep.mubr.msk.f32.mxu0 %vm16040_vm1, %v16039_v1  ;;  %v11286_v53 = vld [vmem:[%s25446_s0 + $0x1148] sm:$0xff] }
 0x43b   :  { %v21285_v2 = vpop.f32.mrf.mxu1  ;;  %14830 = vmatmul.mubr.msk.f32.gmra.mxu1 %vm78_vm0, %v11285_v26  ;;  %v14309_v49 = vpop.f32.mrf.mxu0  ;;  %v11173_v26 = vld [vmem:[%s25446_s0 + $0xf88] sm:$0xff] }
 0x43c   :  { %26445 = vst [vmem:[#allocation49_spill] sm:$0xff] %v21278_v48  ;;  %26446 = vst [vmem:[#allocation50_spill] sm:$0xff] %v21285_v2  ;;  %14832 = vmatprep.mubr.msk.f32.mxu1 %vm16040_vm1, %v16039_v1  ;;  %v26454_v2 = vmax.f32 %v26452_v33, %v26453_v60  ;;  %v26455_v33 = vld [vmem:[#allocation55_spill] sm:$0xff] }
 0x43d   :  { %v14492_v6 = vpop.f32.mrf.mxu1  ;;  %v4320_v62 = vpop.f32.mrf.mxu0  ;;  %14650 = vmatmul.mubr.msk.f32.gmra.mxu0 %vm78_vm0, %v11172_v36  ;;  %v26456_v36 = vld [vmem:[#allocation56_spill] sm:$0xff] }
 0x43e   :  { %v21299_v25 = vmax.f32 %v26449_v9, %v4320_v62  ;;  %14652 = vmatprep.mubr.msk.f32.mxu0 %vm16040_vm1, %v16039_v1  ;;  %v11287_v9 = vld [vmem:[%s25446_s0 + $0x1150] sm:$0xff] }
 0x43f   :  { %v21306_v49 = vpop.f32.mrf.mxu1  ;;  %14833 = vmatmul.mubr.msk.f32.gmra.mxu1 %vm78_vm0, %v11286_v53  ;;  %v14312_v6 = vpop.f32.mrf.mxu0  ;;  %v11174_v53 = vld [vmem:[%s25446_s0 + $0xf90] sm:$0xff] }
 0x440   :  { %26450 = vst [vmem:[#allocation51_spill] sm:$0xff] %v21299_v25  ;;  %26451 = vst [vmem:[#allocation52_spill] sm:$0xff] %v21306_v49  ;;  %14835 = vmatprep.mubr.msk.f32.mxu1 %vm16040_vm1, %v16039_v1  ;;  %v26457_v49 = vmax.f32 %v26455_v33, %v26456_v36  ;;  %v26458_v33 = vmax.f32 %v20135_v46, %v20142_v45  ;;  %v11290_v46 = vld [vmem:[%s25446_s0 + $0x1168] sm:$0xff] }
 0x441   :  { %v14495_v47 = vpop.f32.mrf.mxu1  ;;  %v4325_v62 = vpop.f32.mrf.mxu0  ;;  %14653 = vmatmul.mubr.msk.f32.gmra.mxu0 %vm78_vm0, %v11173_v26 }
 0x442   :  { %v21320_v48 = vmax.f32 %v26454_v2, %v4325_v62  ;;  %14655 = vmatprep.mubr.msk.f32.mxu0 %vm16040_vm1, %v16039_v1  ;;  %v11288_v2 = vld [vmem:[%s25446_s0 + $0x1158] sm:$0xff] }
 0x443   :  { %v21327_v6 = vpop.f32.mrf.mxu1  ;;  %14836 = vmatmul.mubr.msk.f32.gmra.mxu1 %vm78_vm0, %v11287_v9  ;;  %v14315_v47 = vpop.f32.mrf.mxu0  ;;  %v11175_v9 = vld [vmem:[%s25446_s0 + $0xf98] sm:$0xff] }
 0x444   :  { %14838 = vmatprep.mubr.msk.f32.mxu1 %vm16040_vm1, %v16039_v1 }
 0x445   :  { %v14498_v60 = vpop.f32.mrf.mxu1  ;;  %v4330_v62 = vpop.f32.mrf.mxu0  ;;  %14656 = vmatmul.mubr.msk.f32.gmra.mxu0 %vm78_vm0, %v11174_v53 }
 0x446   :  { %v21341_v25 = vmax.f32 %v26457_v49, %v4330_v62  ;;  %14658 = vmatprep.mubr.msk.f32.mxu0 %vm16040_vm1, %v16039_v1  ;;  %v11289_v49 = vld [vmem:[%s25446_s0 + $0x1160] sm:$0xff] }
 0x447   :  { %v21348_v47 = vpop.f32.mrf.mxu1  ;;  %14839 = vmatmul.mubr.msk.f32.gmra.mxu1 %vm78_vm0, %v11288_v2  ;;  %v14318_v60 = vpop.f32.mrf.mxu0  ;;  %v11176_v2 = vld [vmem:[%s25446_s0 + $0xfa0] sm:$0xff] }
 0x448   :  { %14841 = vmatprep.mubr.msk.f32.mxu1 %vm16040_vm1, %v16039_v1 }
 0x449   :  { %v14501_v36 = vpop.f32.mrf.mxu1  ;;  %v4335_v62 = vpop.f32.mrf.mxu0  ;;  %14659 = vmatmul.mubr.msk.f32.gmra.mxu0 %vm78_vm0, %v11175_v9 }
 0x44a   :  { %v21362_v26 = vmax.f32 %v26458_v33, %v4335_v62  ;;  %14661 = vmatprep.mubr.msk.f32.mxu0 %vm16040_vm1, %v16039_v1  ;;  %v26459_v33 = vmax.f32 %v20156_v8, %v20163_v13  ;;  %v11291_v8 = vld [vmem:[%s25446_s0 + $0x1170] sm:$0xff] }
 0x44b   :  { %v21369_v60 = vpop.f32.mrf.mxu1  ;;  %14842 = vmatmul.mubr.msk.f32.gmra.mxu1 %vm78_vm0, %v11289_v49  ;;  %v14321_v36 = vpop.f32.mrf.mxu0  ;;  %v11177_v49 = vld [vmem:[%s25446_s0 + $0xfa8] sm:$0xff] }
 0x44c   :  { %14844 = vmatprep.mubr.msk.f32.mxu1 %vm16040_vm1, %v16039_v1 }
 0x44d   :  { %v14504_v45 = vpop.f32.mrf.mxu1  ;;  %v4340_v62 = vpop.f32.mrf.mxu0  ;;  %14662 = vmatmul.mubr.msk.f32.gmra.mxu0 %vm78_vm0, %v11176_v2 }
 0x44e   :  { %v21383_v53 = vmax.f32 %v26459_v33, %v4340_v62  ;;  %14664 = vmatprep.mubr.msk.f32.mxu0 %vm16040_vm1, %v16039_v1  ;;  %v26460_v33 = vmax.f32 %v20177_v5, %v20184_v24  ;;  %v11292_v5 = vld [vmem:[%s25446_s0 + $0x1178] sm:$0xff] }
 0x44f   :  { %v21390_v36 = vpop.f32.mrf.mxu1  ;;  %14845 = vmatmul.mubr.msk.f32.gmra.mxu1 %vm78_vm0, %v11290_v46  ;;  %v14324_v45 = vpop.f32.mrf.mxu0  ;;  %v11178_v46 = vld [vmem:[%s25446_s0 + $0xfb0] sm:$0xff] }
 0x450   :  { %14847 = vmatprep.mubr.msk.f32.mxu1 %vm16040_vm1, %v16039_v1 }
 0x451   :  { %v14507_v13 = vpop.f32.mrf.mxu1  ;;  %v4345_v62 = vpop.f32.mrf.mxu0  ;;  %14665 = vmatmul.mubr.msk.f32.gmra.mxu0 %vm78_vm0, %v11177_v49 }
 0x452   :  { %v21404_v9 = vmax.f32 %v26460_v33, %v4345_v62  ;;  %14667 = vmatprep.mubr.msk.f32.mxu0 %vm16040_vm1, %v16039_v1  ;;  %v26461_v33 = vmax.f32 %v20198_v3, %v20205_v43  ;;  %v11293_v3 = vld [vmem:[%s25446_s0 + $0x1180] sm:$0xff] }
 0x453   :  { %v21411_v45 = vpop.f32.mrf.mxu1  ;;  %14848 = vmatmul.mubr.msk.f32.gmra.mxu1 %vm78_vm0, %v11291_v8  ;;  %v14327_v13 = vpop.f32.mrf.mxu0  ;;  %v11179_v8 = vld [vmem:[%s25446_s0 + $0xfb8] sm:$0xff] }
 0x454   :  { %14850 = vmatprep.mubr.msk.f32.mxu1 %vm16040_vm1, %v16039_v1 }
 0x455   :  { %v14510_v24 = vpop.f32.mrf.mxu1  ;;  %v4350_v62 = vpop.f32.mrf.mxu0  ;;  %14668 = vmatmul.mubr.msk.f32.gmra.mxu0 %vm78_vm0, %v11178_v46 }
 0x456   :  { %v21425_v2 = vmax.f32 %v26461_v33, %v4350_v62  ;;  %14670 = vmatprep.mubr.msk.f32.mxu0 %vm16040_vm1, %v16039_v1  ;;  %v26462_v33 = vmax.f32 %v20219_v4, %v20226_v34  ;;  %v11294_v4 = vld [vmem:[%s25446_s0 + $0x1188] sm:$0xff] }
 0x457   :  { %v21432_v13 = vpop.f32.mrf.mxu1  ;;  %14851 = vmatmul.mubr.msk.f32.gmra.mxu1 %vm78_vm0, %v11292_v5  ;;  %v14330_v24 = vpop.f32.mrf.mxu0  ;;  %v11180_v5 = vld [vmem:[%s25446_s0 + $0xfc0] sm:$0xff] }
 0x458   :  { %14853 = vmatprep.mubr.msk.f32.mxu1 %vm16040_vm1, %v16039_v1 }
 0x459   :  { %v14513_v43 = vpop.f32.mrf.mxu1  ;;  %v4355_v62 = vpop.f32.mrf.mxu0  ;;  %14671 = vmatmul.mubr.msk.f32.gmra.mxu0 %vm78_vm0, %v11179_v8 }
 0x45a   :  { %v21446_v49 = vmax.f32 %v26462_v33, %v4355_v62  ;;  %14673 = vmatprep.mubr.msk.f32.mxu0 %vm16040_vm1, %v16039_v1  ;;  %v26463_v33 = vmax.f32 %v20240_v61, %v20247_v0  ;;  %v11295_v61 = vld [vmem:[%s25446_s0 + $0x1190] sm:$0xff] }
 0x45b   :  { %v21453_v24 = vpop.f32.mrf.mxu1  ;;  %14854 = vmatmul.mubr.msk.f32.gmra.mxu1 %vm78_vm0, %v11293_v3  ;;  %v14333_v43 = vpop.f32.mrf.mxu0  ;;  %v11181_v3 = vld [vmem:[%s25446_s0 + $0xfc8] sm:$0xff] }
 0x45c   :  { %14856 = vmatprep.mubr.msk.f32.mxu1 %vm16040_vm1, %v16039_v1 }
 0x45d   :  { %v14516_v34 = vpop.f32.mrf.mxu1  ;;  %v5347_v62 = vpop.f32.mrf.mxu0  ;;  %14674 = vmatmul.mubr.msk.f32.gmra.mxu0 %vm78_vm0, %v11180_v5 }
 0x45e   :  { %v21467_v46 = vmax.f32 %v26463_v33, %v5347_v62  ;;  %14676 = vmatprep.mubr.msk.f32.mxu0 %vm16040_vm1, %v16039_v1  ;;  %v26464_v33 = vmax.f32 %v20261_v18, %v20268_v41  ;;  %v11296_v18 = vld [vmem:[%s25446_s0 + $0x1198] sm:$0xff] }
 0x45f   :  { %v21474_v43 = vpop.f32.mrf.mxu1  ;;  %14857 = vmatmul.mubr.msk.f32.gmra.mxu1 %vm78_vm0, %v11294_v4  ;;  %v14531_v34 = vpop.f32.mrf.mxu0  ;;  %v11182_v4 = vld [vmem:[%s25446_s0 + $0xfd0] sm:$0xff] }
 0x460   :  { %14859 = vmatprep.mubr.msk.f32.mxu1 %vm16040_vm1, %v16039_v1 }
 0x461   :  { %v14714_v0 = vpop.f32.mrf.mxu1  ;;  %v5352_v62 = vpop.f32.mrf.mxu0  ;;  %14677 = vmatmul.mubr.msk.f32.gmra.mxu0 %vm78_vm0, %v11181_v3 }
 0x462   :  { %v21488_v8 = vmax.f32 %v26464_v33, %v5352_v62  ;;  %14679 = vmatprep.mubr.msk.f32.mxu0 %vm16040_vm1, %v16039_v1  ;;  %v26465_v33 = vmax.f32 %v20282_v38, %v20289_v20  ;;  %v11297_v38 = vld [vmem:[%s25446_s0 + $0x11a0] sm:$0xff] }
 0x463   :  { %v21495_v34 = vpop.f32.mrf.mxu1  ;;  %14860 = vmatmul.mubr.msk.f32.gmra.mxu1 %vm78_vm0, %v11295_v61  ;;  %v14534_v0 = vpop.f32.mrf.mxu0  ;;  %v11183_v61 = vld [vmem:[%s25446_s0 + $0xfd8] sm:$0xff] }
 0x464   :  { %14862 = vmatprep.mubr.msk.f32.mxu1 %vm16040_vm1, %v16039_v1 }
 0x465   :  { %v14717_v41 = vpop.f32.mrf.mxu1  ;;  %v5357_v62 = vpop.f32.mrf.mxu0  ;;  %14680 = vmatmul.mubr.msk.f32.gmra.mxu0 %vm78_vm0, %v11182_v4 }
 0x466   :  { %v21509_v5 = vmax.f32 %v26465_v33, %v5357_v62  ;;  %14682 = vmatprep.mubr.msk.f32.mxu0 %vm16040_vm1, %v16039_v1  ;;  %v26466_v33 = vmax.f32 %v20303_v58, %v20310_v59  ;;  %v11298_v58 = vld [vmem:[%s25446_s0 + $0x11a8] sm:$0xff] }
 0x467   :  { %v21516_v0 = vpop.f32.mrf.mxu1  ;;  %14863 = vmatmul.mubr.msk.f32.gmra.mxu1 %vm78_vm0, %v11296_v18  ;;  %v14537_v41 = vpop.f32.mrf.mxu0  ;;  %v11184_v18 = vld [vmem:[%s25446_s0 + $0xfe0] sm:$0xff] }
 0x468   :  { %14865 = vmatprep.mubr.msk.f32.mxu1 %vm16040_vm1, %v16039_v1 }
 0x469   :  { %v14720_v20 = vpop.f32.mrf.mxu1  ;;  %v5362_v62 = vpop.f32.mrf.mxu0  ;;  %14683 = vmatmul.mubr.msk.f32.gmra.mxu0 %vm78_vm0, %v11183_v61 }
 0x46a   :  { %v21530_v3 = vmax.f32 %v26466_v33, %v5362_v62  ;;  %14685 = vmatprep.mubr.msk.f32.mxu0 %vm16040_vm1, %v16039_v1  ;;  %v26467_v33 = vmax.f32 %v20324_v54, %v20331_v31  ;;  %v11299_v54 = vld [vmem:[%s25446_s0 + $0x11b0] sm:$0xff] }
 0x46b   :  { %v21537_v41 = vpop.f32.mrf.mxu1  ;;  %14866 = vmatmul.mubr.msk.f32.gmra.mxu1 %vm78_vm0, %v11297_v38  ;;  %v14540_v20 = vpop.f32.mrf.mxu0  ;;  %v11185_v38 = vld [vmem:[%s25446_s0 + $0xfe8] sm:$0xff] }
 0x46c   :  { %14868 = vmatprep.mubr.msk.f32.mxu1 %vm16040_vm1, %v16039_v1 }
 0x46d   :  { %v14723_v59 = vpop.f32.mrf.mxu1  ;;  %v5367_v62 = vpop.f32.mrf.mxu0  ;;  %14686 = vmatmul.mubr.msk.f32.gmra.mxu0 %vm78_vm0, %v11184_v18 }
 0x46e   :  { %v21551_v4 = vmax.f32 %v26467_v33, %v5367_v62  ;;  %14688 = vmatprep.mubr.msk.f32.mxu0 %vm16040_vm1, %v16039_v1  ;;  %v26468_v33 = vmax.f32 %v20345_v37, %v20352_v22  ;;  %v11300_v37 = vld [vmem:[%s25446_s0 + $0x11b8] sm:$0xff] }
 0x46f   :  { %v21558_v20 = vpop.f32.mrf.mxu1  ;;  %14869 = vmatmul.mubr.msk.f32.gmra.mxu1 %vm78_vm0, %v11298_v58  ;;  %v14543_v59 = vpop.f32.mrf.mxu0  ;;  %v11186_v58 = vld [vmem:[%s25446_s0 + $0xff0] sm:$0xff] }
 0x470   :  { %14871 = vmatprep.mubr.msk.f32.mxu1 %vm16040_vm1, %v16039_v1 }
 0x471   :  { %v14726_v31 = vpop.f32.mrf.mxu1  ;;  %v5372_v62 = vpop.f32.mrf.mxu0  ;;  %14689 = vmatmul.mubr.msk.f32.gmra.mxu0 %vm78_vm0, %v11185_v38 }
 0x472   :  { %v21572_v61 = vmax.f32 %v26468_v33, %v5372_v62  ;;  %14691 = vmatprep.mubr.msk.f32.mxu0 %vm16040_vm1, %v16039_v1  ;;  %v26469_v33 = vmax.f32 %v20366_v32, %v20373_v50  ;;  %v11301_v32 = vld [vmem:[%s25446_s0 + $0x11c0] sm:$0xff] }
 0x473   :  { %v21579_v59 = vpop.f32.mrf.mxu1  ;;  %14872 = vmatmul.mubr.msk.f32.gmra.mxu1 %vm78_vm0, %v11299_v54  ;;  %v14546_v31 = vpop.f32.mrf.mxu0  ;;  %v11187_v54 = vld [vmem:[%s25446_s0 + $0xff8] sm:$0xff] }
 0x474   :  { %14874 = vmatprep.mubr.msk.f32.mxu1 %vm16040_vm1, %v16039_v1 }
 0x475   :  { %v14729_v22 = vpop.f32.mrf.mxu1  ;;  %v5377_v62 = vpop.f32.mrf.mxu0  ;;  %14692 = vmatmul.mubr.msk.f32.gmra.mxu0 %vm78_vm0, %v11186_v58 }
 0x476   :  { %v21593_v18 = vmax.f32 %v26469_v33, %v5377_v62  ;;  %14694 = vmatprep.mubr.msk.f32.mxu0 %vm16040_vm1, %v16039_v1  ;;  %v26470_v33 = vmax.f32 %v20387_v11, %v20394_v57  ;;  %v11302_v11 = vld [vmem:[%s25446_s0 + $0x11c8] sm:$0xff] }
 0x477   :  { %v21600_v31 = vpop.f32.mrf.mxu1  ;;  %14875 = vmatmul.mubr.msk.f32.gmra.mxu1 %vm78_vm0, %v11300_v37  ;;  %v14549_v22 = vpop.f32.mrf.mxu0  ;;  %v11188_v37 = vld [vmem:[%s25446_s0 + $0x1000] sm:$0xff] }
 0x478   :  { %14877 = vmatprep.mubr.msk.f32.mxu1 %vm16040_vm1, %v16039_v1 }
 0x479   :  { %v14732_v50 = vpop.f32.mrf.mxu1  ;;  %v5382_v62 = vpop.f32.mrf.mxu0  ;;  %14695 = vmatmul.mubr.msk.f32.gmra.mxu0 %vm78_vm0, %v11187_v54 }
 0x47a   :  { %v21614_v38 = vmax.f32 %v26470_v33, %v5382_v62  ;;  %14697 = vmatprep.mubr.msk.f32.mxu0 %vm16040_vm1, %v16039_v1  ;;  %v26471_v33 = vmax.f32 %v20408_v27, %v20415_v7  ;;  %v11474_v27 = vld [vmem:[%s25446_s0 + $0x1398] sm:$0xff] }
 0x47b   :  { %v21621_v22 = vpop.f32.mrf.mxu1  ;;  %14878 = vmatmul.mubr.msk.f32.gmra.mxu1 %vm78_vm0, %v11301_v32  ;;  %v14552_v50 = vpop.f32.mrf.mxu0  ;;  %v11360_v32 = vld [vmem:[%s25446_s0 + $0x11d0] sm:$0xff] }
 0x47c   :  { %14880 = vmatprep.mubr.msk.f32.mxu1 %vm16040_vm1, %v16039_v1 }
 0x47d   :  { %v14735_v57 = vpop.f32.mrf.mxu1  ;;  %v5387_v62 = vpop.f32.mrf.mxu0  ;;  %14698 = vmatmul.mubr.msk.f32.gmra.mxu0 %vm78_vm0, %v11188_v37 }
 0x47e   :  { %v21635_v58 = vmax.f32 %v26471_v33, %v5387_v62  ;;  %14895 = vmatprep.mubr.msk.f32.mxu0 %vm16040_vm1, %v16039_v1  ;;  %v26472_v33 = vmax.f32 %v20429_v52, %v20439_v21  ;;  %v11475_v21 = vld [vmem:[%s25446_s0 + $0x13a0] sm:$0xff] }
 0x47f   :  { %v21642_v50 = vpop.f32.mrf.mxu1  ;;  %14881 = vmatmul.mubr.msk.f32.gmra.mxu1 %vm78_vm0, %v11302_v11  ;;  %v14555_v57 = vpop.f32.mrf.mxu0  ;;  %v16005_v11 = vld [vmem:[%s25447_s1 + $0x28] sm:$0xff] }
 0x480   :  { %15078 = vmatprep.mubr.msk.f32.mxu1 %vm16040_vm1, %v16039_v1  ;;  %v11361_v57 = vld [vmem:[%s25446_s0 + $0x11d8] sm:$0xff] }
 0x481   :  { %v14738_v7 = vpop.f32.mrf.mxu1  ;;  %v5392_v62 = vpop.f32.mrf.mxu0  ;;  %14896 = vmatmul.mubr.msk.f32.vlgmr.msra.gmra.mxu0 %vm78_vm0, %v11360_v32 }
 0x482   :  { %v21656_v54 = vmax.f32 %v26472_v33, %v5392_v62  ;;  %15250 = vmatpush3.msra.mxu0 %v16005_v11  ;;  %14898 = vmatprep.mubr.msk.f32.mxu0 %vm16040_vm1, %v16039_v1 }
 0x483   :  { %v21666_v7 = vpop.f32.mrf.mxu1  ;;  %15079 = vmatmul.mubr.msk.f32.vlgmr.msra.gmra.mxu1 %vm78_vm0, %v11474_v27  ;;  %v14558_v32 = vpop.f32.mrf.mxu0  ;;  %15251 = vmatprep.subr.mxu0 %v16039_v1  ;;  %v26473_v27 = vmax.f32 %v20455_v16, %v20465_v14  ;;  %v11476_v14 = vld [vmem:[%s25446_s0 + $0x13a8] sm:$0xff] }
 0x484   :  { %15433 = vmatpush3.msra.mxu1 %v16005_v11  ;;  %15081 = vmatprep.mubr.msk.f32.mxu1 %vm16040_vm1, %v16039_v1  ;;  %v11362_v11 = vld [vmem:[%s25446_s0 + $0x11e0] sm:$0xff]  ;;  %v11363_v16 = vld [vmem:[%s25446_s0 + $0x11e8] sm:$0xff] }
 0x485   :  { %v14741_v62 = vpop.f32.mrf.mxu1  ;;  %v5397_v33 = vpop.f32.mrf.mxu0  ;;  %14899 = vmatmul.mubr.msk.f32.gmra.mxu0 %vm78_vm0, %v11361_v57  ;;  %15434 = vmatprep.subr.mxu1 %v16039_v1 }
 0x486   :  { %v21682_v32 = vmax.f32 %v26473_v27, %v5397_v33  ;;  %14901 = vmatprep.mubr.msk.f32.mxu0 %vm16040_vm1, %v16039_v1  ;;  %v16006_v62 = vld [vmem:[%s25447_s1 + $0x20] sm:$0xff] }
 0x487   :  { %15252 = vmatpush3.msra.mxu0 %v16006_v62  ;;  %v21692_v57 = vpop.f32.mrf.mxu1  ;;  %15082 = vmatmul.mubr.msk.f32.gmra.mxu1 %vm78_vm0, %v11475_v21  ;;  %v14561_v52 = vpop.f32.mrf.mxu0 }
 0x488   :  { %15253 = vmatprep.subr.mxu0 %v16039_v1  ;;  %15084 = vmatprep.mubr.msk.f32.mxu1 %vm16040_vm1, %v16039_v1  ;;  %v26474_v52 = vmax.f32 %v20481_v35, %v20491_v44  ;;  %v11477_v44 = vld [vmem:[%s25446_s0 + $0x13b0] sm:$0xff] }
 0x489   :  { %15435 = vmatpush3.msra.mxu1 %v16006_v62  ;;  %v14744_v33 = vpop.f32.mrf.mxu1  ;;  %v5402_v27 = vpop.f32.mrf.mxu0  ;;  %14902 = vmatmul.mubr.msk.f32.gmra.mxu0 %vm78_vm0, %v11362_v11  ;;  %v16007_v62 = vld [vmem:[%s25447_s1 + $0x18] sm:$0xff]  ;;  %v11364_v35 = vld [vmem:[%s25446_s0 + $0x11f0] sm:$0xff] }
 0x48a   :  { %15436 = vmatprep.subr.mxu1 %v16039_v1  ;;  %v21708_v21 = vmax.f32 %v26474_v52, %v5402_v27  ;;  %14904 = vmatprep.mubr.msk.f32.mxu0 %vm16040_vm1, %v16039_v1 }
 0x48b   :  { %15254 = vmatpush3.msra.mxu0 %v16007_v62  ;;  %v21718_v11 = vpop.f32.mrf.mxu1  ;;  %15085 = vmatmul.mubr.msk.f32.gmra.mxu1 %vm78_vm0, %v11476_v14  ;;  %v14564_v33 = vpop.f32.mrf.mxu0  ;;  %v26475_v14 = vmax.f32 %v20507_v15, %v20517_v55  ;;  %v11478_v55 = vld [vmem:[%s25446_s0 + $0x13b8] sm:$0xff] }
 0x48c   :  { %15255 = vmatprep.subr.mxu0 %v16039_v1  ;;  %15087 = vmatprep.mubr.msk.f32.mxu1 %vm16040_vm1, %v16039_v1  ;;  %v11365_v15 = vld [vmem:[%s25446_s0 + $0x11f8] sm:$0xff] }
 0x48d   :  { %15437 = vmatpush3.msra.mxu1 %v16007_v62  ;;  %v14747_v27 = vpop.f32.mrf.mxu1  ;;  %v5407_v52 = vpop.f32.mrf.mxu0  ;;  %14905 = vmatmul.mubr.msk.f32.gmra.mxu0 %vm78_vm0, %v11363_v16  ;;  %v16008_v62 = vld [vmem:[%s25447_s1 + $0x10] sm:$0xff] }
 0x48e   :  { %15438 = vmatprep.subr.mxu1 %v16039_v1  ;;  %v21734_v33 = vmax.f32 %v26475_v14, %v5407_v52  ;;  %14907 = vmatprep.mubr.msk.f32.mxu0 %vm16040_vm1, %v16039_v1 }
 0x48f   :  { %15256 = vmatpush3.msra.mxu0 %v16008_v62  ;;  %v21744_v16 = vpop.f32.mrf.mxu1  ;;  %15088 = vmatmul.mubr.msk.f32.gmra.mxu1 %vm78_vm0, %v11477_v44  ;;  %v14567_v27 = vpop.f32.mrf.mxu0  ;;  %v26476_v44 = vmax.f32 %v20533_v30, %v20543_v51  ;;  %v11479_v51 = vld [vmem:[%s25446_s0 + $0x13c0] sm:$0xff] }
 0x490   :  { %15257 = vmatprep.subr.mxu0 %v16039_v1  ;;  %15090 = vmatprep.mubr.msk.f32.mxu1 %vm16040_vm1, %v16039_v1  ;;  %v11366_v30 = vld [vmem:[%s25446_s0 + $0x1200] sm:$0xff] }
 0x491   :  { %15439 = vmatpush3.msra.mxu1 %v16008_v62  ;;  %v14750_v52 = vpop.f32.mrf.mxu1  ;;  %v5412_v14 = vpop.f32.mrf.mxu0  ;;  %14908 = vmatmul.mubr.msk.f32.gmra.mxu0 %vm78_vm0, %v11364_v35  ;;  %v16009_v62 = vld [vmem:[%s25447_s1 + $0x8] sm:$0xff] }
 0x492   :  { %15440 = vmatprep.subr.mxu1 %v16039_v1  ;;  %v21760_v27 = vmax.f32 %v26476_v44, %v5412_v14  ;;  %14910 = vmatprep.mubr.msk.f32.mxu0 %vm16040_vm1, %v16039_v1 }
 0x493   :  { %15258 = vmatpush3.msra.mxu0 %v16009_v62  ;;  %v21770_v35 = vpop.f32.mrf.mxu1  ;;  %15091 = vmatmul.mubr.msk.f32.gmra.mxu1 %vm78_vm0, %v11478_v55  ;;  %v14570_v52 = vpop.f32.mrf.mxu0  ;;  %v26477_v55 = vmax.f32 %v20559_v10, %v20569_v39  ;;  %v11480_v39 = vld [vmem:[%s25446_s0 + $0x13c8] sm:$0xff] }
 0x494   :  { %15259 = vmatprep.subr.mxu0 %v16039_v1  ;;  %15093 = vmatprep.mubr.msk.f32.mxu1 %vm16040_vm1, %v16039_v1  ;;  %v11367_v10 = vld [vmem:[%s25446_s0 + $0x1208] sm:$0xff] }
 0x495   :  { %15441 = vmatpush3.msra.mxu1 %v16009_v62  ;;  %v14753_v14 = vpop.f32.mrf.mxu1  ;;  %v5417_v44 = vpop.f32.mrf.mxu0  ;;  %14911 = vmatmul.mubr.msk.f32.gmra.mxu0 %vm78_vm0, %v11365_v15  ;;  %v16010_v62 = vld [vmem:[%s25447_s1] sm:$0xff] }
 0x496   :  { %15442 = vmatprep.subr.mxu1 %v16039_v1  ;;  %v21786_v52 = vmax.f32 %v26477_v55, %v5417_v44  ;;  %14913 = vmatprep.mubr.msk.f32.mxu0 %vm16040_vm1, %v16039_v1 }
 0x497   :  { %15260 = vmatpush3.msra.mxu0 %v16010_v62  ;;  %v21796_v15 = vpop.f32.mrf.mxu1  ;;  %15094 = vmatmul.mubr.msk.f32.gmra.mxu1 %vm78_vm0, %v11479_v51  ;;  %v14573_v14 = vpop.f32.mrf.mxu0  ;;  %v26478_v51 = vmax.f32 %v20585_v28, %v20592_v23  ;;  %v11481_v23 = vld [vmem:[%s25446_s0 + $0x13d0] sm:$0xff] }
 0x498   :  { %15615 = vmatprep.subr.mxu0 %v16039_v1  ;;  %15096 = vmatprep.mubr.msk.f32.mxu1 %vm16040_vm1, %v16039_v1 }
 0x499   :  { %15443 = vmatpush3.msra.mxu1 %v16010_v62  ;;  %v14756_v44 = vpop.f32.mrf.mxu1  ;;  %v5422_v55 = vpop.f32.mrf.mxu0  ;;  %14914 = vmatmul.mubr.msk.f32.gmra.mxu0 %vm78_vm0, %v11366_v30 }
 0x49a   :  { %15798 = vmatprep.subr.mxu1 %v16039_v1  ;;  %v21812_v14 = vmax.f32 %v26478_v51, %v5422_v55  ;;  %14916 = vmatprep.mubr.msk.f32.mxu0 %vm16040_vm1, %v16039_v1  ;;  %v26479_v55 = vmax.f32 %v20606_v63, %v20613_v40  ;;  %v11482_v63 = vld [vmem:[%s25446_s0 + $0x13d8] sm:$0xff] }
 0x49b   :  { %v21819_v37 = vpop.f32.mrf.mxu1  ;;  %15097 = vmatmul.mubr.msk.f32.gmra.mxu1 %vm78_vm0, %v11480_v39  ;;  %v14576_v62 = vpop.f32.mrf.mxu0  ;;  %v11368_v39 = vld [vmem:[%s25446_s0 + $0x1210] sm:$0xff] }
 0x49c   :  { %15099 = vmatprep.mubr.msk.f32.mxu1 %vm16040_vm1, %v16039_v1 }
 0x49d   :  { %v14759_v28 = vpop.f32.mrf.mxu1  ;;  %v5427_v44 = vpop.f32.mrf.mxu0  ;;  %14917 = vmatmul.mubr.msk.f32.gmra.mxu0 %vm78_vm0, %v11367_v10 }
 0x49e   :  { %v21833_v51 = vmax.f32 %v26479_v55, %v5427_v44  ;;  %14919 = vmatprep.mubr.msk.f32.mxu0 %vm16040_vm1, %v16039_v1  ;;  %v26480_v55 = vmax.f32 %v20627_v12, %v20634_v42  ;;  %v11483_v12 = vld [vmem:[%s25446_s0 + $0x13e0] sm:$0xff] }
 0x49f   :  { %v21840_v62 = vpop.f32.mrf.mxu1  ;;  %15100 = vmatmul.mubr.msk.f32.gmra.mxu1 %vm78_vm0, %v11481_v23  ;;  %v14579_v28 = vpop.f32.mrf.mxu0  ;;  %v11369_v23 = vld [vmem:[%s25446_s0 + $0x1218] sm:$0xff] }
 0x4a0   :  { %15102 = vmatprep.mubr.msk.f32.mxu1 %vm16040_vm1, %v16039_v1 }
 0x4a1   :  { %v14762_v40 = vpop.f32.mrf.mxu1  ;;  %v5432_v44 = vpop.f32.mrf.mxu0  ;;  %14920 = vmatmul.mubr.msk.f32.gmra.mxu0 %vm78_vm0, %v11368_v39 }
 0x4a2   :  { %v21854_v30 = vmax.f32 %v26480_v55, %v5432_v44  ;;  %14922 = vmatprep.mubr.msk.f32.mxu0 %vm16040_vm1, %v16039_v1  ;;  %v26481_v55 = vmax.f32 %v20648_v19, %v20655_v29  ;;  %v11484_v19 = vld [vmem:[%s25446_s0 + $0x13e8] sm:$0xff] }
 0x4a3   :  { %v21861_v28 = vpop.f32.mrf.mxu1  ;;  %15103 = vmatmul.mubr.msk.f32.gmra.mxu1 %vm78_vm0, %v11482_v63  ;;  %v14582_v40 = vpop.f32.mrf.mxu0  ;;  %v11370_v63 = vld [vmem:[%s25446_s0 + $0x1220] sm:$0xff] }
 0x4a4   :  { %15105 = vmatprep.mubr.msk.f32.mxu1 %vm16040_vm1, %v16039_v1 }
 0x4a5   :  { %v14765_v42 = vpop.f32.mrf.mxu1  ;;  %v5437_v44 = vpop.f32.mrf.mxu0  ;;  %14923 = vmatmul.mubr.msk.f32.gmra.mxu0 %vm78_vm0, %v11369_v23  ;;  %v26488_v23 = vld [vmem:[#allocation58_spill] sm:$0xff] }
 0x4a6   :  { %v21875_v10 = vmax.f32 %v26481_v55, %v5437_v44  ;;  %14925 = vmatprep.mubr.msk.f32.mxu0 %vm16040_vm1, %v16039_v1  ;;  %v26484_v55 = vmax.f32 %v20669_v56, %v20676_v17  ;;  %v11485_v56 = vld [vmem:[%s25446_s0 + $0x13f0] sm:$0xff] }
 0x4a7   :  { %v21882_v40 = vpop.f32.mrf.mxu1  ;;  %15106 = vmatmul.mubr.msk.f32.gmra.mxu1 %vm78_vm0, %v11483_v12  ;;  %v14585_v42 = vpop.f32.mrf.mxu0  ;;  %v11371_v12 = vld [vmem:[%s25446_s0 + $0x1228] sm:$0xff] }
 0x4a8   :  { %26482 = vst [vmem:[#allocation53_spill] sm:$0xff] %v21875_v10  ;;  %26483 = vst [vmem:[#allocation54_spill] sm:$0xff] %v21882_v40  ;;  %15108 = vmatprep.mubr.msk.f32.mxu1 %vm16040_vm1, %v16039_v1 }
 0x4a9   :  { %v14768_v29 = vpop.f32.mrf.mxu1  ;;  %v5442_v44 = vpop.f32.mrf.mxu0  ;;  %14926 = vmatmul.mubr.msk.f32.gmra.mxu0 %vm78_vm0, %v11370_v63  ;;  %v26493_v63 = vld [vmem:[#allocation60_spill] sm:$0xff] }
 0x4aa   :  { %v21896_v39 = vmax.f32 %v26484_v55, %v5442_v44  ;;  %14928 = vmatprep.mubr.msk.f32.mxu0 %vm16040_vm1, %v16039_v1  ;;  %v26487_v55 = vld [vmem:[#allocation57_spill] sm:$0xff] }
 0x4ab   :  { %v21903_v42 = vpop.f32.mrf.mxu1  ;;  %15109 = vmatmul.mubr.msk.f32.gmra.mxu1 %vm78_vm0, %v11484_v19  ;;  %v14588_v29 = vpop.f32.mrf.mxu0  ;;  %v26489_v40 = vmax.f32 %v26487_v55, %v26488_v23  ;;  %v11372_v19 = vld [vmem:[%s25446_s0 + $0x1230] sm:$0xff]  ;;  %v26492_v55 = vld [vmem:[#allocation59_spill] sm:$0xff] }
 0x4ac   :  { %26485 = vst [vmem:[#allocation55_spill] sm:$0xff] %v21896_v39  ;;  %26486 = vst [vmem:[#allocation56_spill] sm:$0xff] %v21903_v42  ;;  %15111 = vmatprep.mubr.msk.f32.mxu1 %vm16040_vm1, %v16039_v1  ;;  %v26494_v42 = vmax.f32 %v26492_v55, %v26493_v63  ;;  %v26497_v55 = vld [vmem:[#allocation61_spill] sm:$0xff] }
 0x4ad   :  { %v14771_v17 = vpop.f32.mrf.mxu1  ;;  %v5447_v44 = vpop.f32.mrf.mxu0  ;;  %14929 = vmatmul.mubr.msk.f32.gmra.mxu0 %vm78_vm0, %v11371_v12  ;;  %v26498_v12 = vld [vmem:[#allocation62_spill] sm:$0xff] }
 0x4ae   :  { %v21917_v10 = vmax.f32 %v26489_v40, %v5447_v44  ;;  %14931 = vmatprep.mubr.msk.f32.mxu0 %vm16040_vm1, %v16039_v1  ;;  %v11486_v40 = vld [vmem:[%s25446_s0 + $0x13f8] sm:$0xff] }
 0x4af   :  { %v21924_v29 = vpop.f32.mrf.mxu1  ;;  %15112 = vmatmul.mubr.msk.f32.gmra.mxu1 %vm78_vm0, %v11485_v56  ;;  %v14591_v17 = vpop.f32.mrf.mxu0  ;;  %v11373_v56 = vld [vmem:[%s25446_s0 + $0x1238] sm:$0xff] }
 0x4b0   :  { %26490 = vst [vmem:[#allocation57_spill] sm:$0xff] %v21917_v10  ;;  %26491 = vst [vmem:[#allocation58_spill] sm:$0xff] %v21924_v29  ;;  %15114 = vmatprep.mubr.msk.f32.mxu1 %vm16040_vm1, %v16039_v1  ;;  %v26499_v29 = vmax.f32 %v26497_v55, %v26498_v12  ;;  %v26502_v55 = vld [vmem:[#allocation63_spill] sm:$0xff] }
 0x4b1   :  { %v14774_v23 = vpop.f32.mrf.mxu1  ;;  %v5452_v44 = vpop.f32.mrf.mxu0  ;;  %14932 = vmatmul.mubr.msk.f32.gmra.mxu0 %vm78_vm0, %v11372_v19  ;;  %v26503_v19 = vld [vmem:[#allocation64_spill] sm:$0xff] }
 0x4b2   :  { %v21938_v39 = vmax.f32 %v26494_v42, %v5452_v44  ;;  %14934 = vmatprep.mubr.msk.f32.mxu0 %vm16040_vm1, %v16039_v1  ;;  %v11487_v42 = vld [vmem:[%s25446_s0 + $0x1400] sm:$0xff] }
 0x4b3   :  { %v21945_v17 = vpop.f32.mrf.mxu1  ;;  %15115 = vmatmul.mubr.msk.f32.gmra.mxu1 %vm78_vm0, %v11486_v40  ;;  %v14594_v23 = vpop.f32.mrf.mxu0  ;;  %v11374_v40 = vld [vmem:[%s25446_s0 + $0x1240] sm:$0xff] }
 0x4b4   :  { %26495 = vst [vmem:[#allocation59_spill] sm:$0xff] %v21938_v39  ;;  %26496 = vst [vmem:[#allocation60_spill] sm:$0xff] %v21945_v17  ;;  %15117 = vmatprep.mubr.msk.f32.mxu1 %vm16040_vm1, %v16039_v1  ;;  %v26504_v17 = vmax.f32 %v26502_v55, %v26503_v19  ;;  %v26507_v55 = vld [vmem:[#allocation65_spill] sm:$0xff] }
 0x4b5   :  { %v14777_v63 = vpop.f32.mrf.mxu1  ;;  %v5457_v44 = vpop.f32.mrf.mxu0  ;;  %14935 = vmatmul.mubr.msk.f32.gmra.mxu0 %vm78_vm0, %v11373_v56  ;;  %v26508_v56 = vld [vmem:[#allocation66_spill] sm:$0xff] }
 0x4b6   :  { %v21959_v10 = vmax.f32 %v26499_v29, %v5457_v44  ;;  %14937 = vmatprep.mubr.msk.f32.mxu0 %vm16040_vm1, %v16039_v1  ;;  %v11488_v29 = vld [vmem:[%s25446_s0 + $0x1408] sm:$0xff] }
 0x4b7   :  { %v21966_v23 = vpop.f32.mrf.mxu1  ;;  %15118 = vmatmul.mubr.msk.f32.gmra.mxu1 %vm78_vm0, %v11487_v42  ;;  %v14597_v63 = vpop.f32.mrf.mxu0  ;;  %v11375_v42 = vld [vmem:[%s25446_s0 + $0x1248] sm:$0xff] }
 0x4b8   :  { %26500 = vst [vmem:[#allocation61_spill] sm:$0xff] %v21959_v10  ;;  %26501 = vst [vmem:[#allocation62_spill] sm:$0xff] %v21966_v23  ;;  %15120 = vmatprep.mubr.msk.f32.mxu1 %vm16040_vm1, %v16039_v1  ;;  %v26509_v23 = vmax.f32 %v26507_v55, %v26508_v56  ;;  %v26512_v55 = vld [vmem:[#allocation67_spill] sm:$0xff] }
 0x4b9   :  { %v14780_v12 = vpop.f32.mrf.mxu1  ;;  %v5462_v44 = vpop.f32.mrf.mxu0  ;;  %14938 = vmatmul.mubr.msk.f32.gmra.mxu0 %vm78_vm0, %v11374_v40  ;;  %v26513_v40 = vld [vmem:[#allocation68_spill] sm:$0xff] }
 0x4ba   :  { %v21980_v39 = vmax.f32 %v26504_v17, %v5462_v44  ;;  %14940 = vmatprep.mubr.msk.f32.mxu0 %vm16040_vm1, %v16039_v1  ;;  %v11489_v17 = vld [vmem:[%s25446_s0 + $0x1410] sm:$0xff] }
 0x4bb   :  { %v21987_v63 = vpop.f32.mrf.mxu1  ;;  %15121 = vmatmul.mubr.msk.f32.gmra.mxu1 %vm78_vm0, %v11488_v29  ;;  %v14600_v12 = vpop.f32.mrf.mxu0  ;;  %v11376_v29 = vld [vmem:[%s25446_s0 + $0x1250] sm:$0xff] }
 0x4bc   :  { %26505 = vst [vmem:[#allocation63_spill] sm:$0xff] %v21980_v39  ;;  %26506 = vst [vmem:[#allocation64_spill] sm:$0xff] %v21987_v63  ;;  %15123 = vmatprep.mubr.msk.f32.mxu1 %vm16040_vm1, %v16039_v1  ;;  %v26514_v63 = vmax.f32 %v26512_v55, %v26513_v40  ;;  %v26517_v55 = vld [vmem:[#allocation5_spill] sm:$0xff] }
 0x4bd   :  { %v14783_v19 = vpop.f32.mrf.mxu1  ;;  %v5467_v44 = vpop.f32.mrf.mxu0  ;;  %14941 = vmatmul.mubr.msk.f32.gmra.mxu0 %vm78_vm0, %v11375_v42  ;;  %v26518_v42 = vld [vmem:[#allocation6_spill] sm:$0xff] }
 0x4be   :  { %v22001_v10 = vmax.f32 %v26509_v23, %v5467_v44  ;;  %14943 = vmatprep.mubr.msk.f32.mxu0 %vm16040_vm1, %v16039_v1  ;;  %v11490_v23 = vld [vmem:[%s25446_s0 + $0x1418] sm:$0xff] }
 0x4bf   :  { %v22008_v12 = vpop.f32.mrf.mxu1  ;;  %15124 = vmatmul.mubr.msk.f32.gmra.mxu1 %vm78_vm0, %v11489_v17  ;;  %v14603_v19 = vpop.f32.mrf.mxu0  ;;  %v11377_v17 = vld [vmem:[%s25446_s0 + $0x1258] sm:$0xff] }
 0x4c0   :  { %26510 = vst [vmem:[#allocation65_spill] sm:$0xff] %v22001_v10  ;;  %26511 = vst [vmem:[#allocation66_spill] sm:$0xff] %v22008_v12  ;;  %15126 = vmatprep.mubr.msk.f32.mxu1 %vm16040_vm1, %v16039_v1  ;;  %v26519_v12 = vmax.f32 %v26517_v55, %v26518_v42  ;;  %v26522_v55 = vld [vmem:[#allocation7_spill] sm:$0xff] }
 0x4c1   :  { %v14786_v56 = vpop.f32.mrf.mxu1  ;;  %v5472_v44 = vpop.f32.mrf.mxu0  ;;  %14944 = vmatmul.mubr.msk.f32.gmra.mxu0 %vm78_vm0, %v11376_v29  ;;  %v26523_v29 = vld [vmem:[#allocation8_spill] sm:$0xff] }
 0x4c2   :  { %v22022_v39 = vmax.f32 %v26514_v63, %v5472_v44  ;;  %14946 = vmatprep.mubr.msk.f32.mxu0 %vm16040_vm1, %v16039_v1  ;;  %v11491_v63 = vld [vmem:[%s25446_s0 + $0x1420] sm:$0xff] }
 0x4c3   :  { %v22029_v19 = vpop.f32.mrf.mxu1  ;;  %15127 = vmatmul.mubr.msk.f32.gmra.mxu1 %vm78_vm0, %v11490_v23  ;;  %v14606_v56 = vpop.f32.mrf.mxu0  ;;  %v11378_v23 = vld [vmem:[%s25446_s0 + $0x1260] sm:$0xff] }
 0x4c4   :  { %26515 = vst [vmem:[#allocation67_spill] sm:$0xff] %v22022_v39  ;;  %26516 = vst [vmem:[#allocation68_spill] sm:$0xff] %v22029_v19  ;;  %15129 = vmatprep.mubr.msk.f32.mxu1 %vm16040_vm1, %v16039_v1  ;;  %v26524_v19 = vmax.f32 %v26522_v55, %v26523_v29  ;;  %v26527_v55 = vld [vmem:[#allocation9_spill] sm:$0xff] }
 0x4c5   :  { %v14789_v40 = vpop.f32.mrf.mxu1  ;;  %v5477_v44 = vpop.f32.mrf.mxu0  ;;  %14947 = vmatmul.mubr.msk.f32.gmra.mxu0 %vm78_vm0, %v11377_v17  ;;  %v26528_v17 = vld [vmem:[#allocation10_spill] sm:$0xff] }
 0x4c6   :  { %v22043_v10 = vmax.f32 %v26519_v12, %v5477_v44  ;;  %14949 = vmatprep.mubr.msk.f32.mxu0 %vm16040_vm1, %v16039_v1  ;;  %v11492_v12 = vld [vmem:[%s25446_s0 + $0x1428] sm:$0xff] }
 0x4c7   :  { %v22050_v56 = vpop.f32.mrf.mxu1  ;;  %15130 = vmatmul.mubr.msk.f32.gmra.mxu1 %vm78_vm0, %v11491_v63  ;;  %v14609_v40 = vpop.f32.mrf.mxu0  ;;  %v11379_v63 = vld [vmem:[%s25446_s0 + $0x1268] sm:$0xff] }
 0x4c8   :  { %26520 = vst [vmem:[#allocation5_spill] sm:$0xff] %v22043_v10  ;;  %26521 = vst [vmem:[#allocation6_spill] sm:$0xff] %v22050_v56  ;;  %15132 = vmatprep.mubr.msk.f32.mxu1 %vm16040_vm1, %v16039_v1  ;;  %v26529_v56 = vmax.f32 %v26527_v55, %v26528_v17  ;;  %v26532_v55 = vld [vmem:[#allocation11_spill] sm:$0xff] }
 0x4c9   :  { %v14792_v42 = vpop.f32.mrf.mxu1  ;;  %v5482_v44 = vpop.f32.mrf.mxu0  ;;  %14950 = vmatmul.mubr.msk.f32.gmra.mxu0 %vm78_vm0, %v11378_v23  ;;  %v26533_v23 = vld [vmem:[#allocation12_spill] sm:$0xff] }
 0x4ca   :  { %v22064_v39 = vmax.f32 %v26524_v19, %v5482_v44  ;;  %14952 = vmatprep.mubr.msk.f32.mxu0 %vm16040_vm1, %v16039_v1  ;;  %v11493_v19 = vld [vmem:[%s25446_s0 + $0x1430] sm:$0xff] }
 0x4cb   :  { %v22071_v40 = vpop.f32.mrf.mxu1  ;;  %15133 = vmatmul.mubr.msk.f32.gmra.mxu1 %vm78_vm0, %v11492_v12  ;;  %v14612_v42 = vpop.f32.mrf.mxu0  ;;  %v11380_v12 = vld [vmem:[%s25446_s0 + $0x1270] sm:$0xff] }
 0x4cc   :  { %26525 = vst [vmem:[#allocation7_spill] sm:$0xff] %v22064_v39  ;;  %26526 = vst [vmem:[#allocation8_spill] sm:$0xff] %v22071_v40  ;;  %15135 = vmatprep.mubr.msk.f32.mxu1 %vm16040_vm1, %v16039_v1  ;;  %v26534_v40 = vmax.f32 %v26532_v55, %v26533_v23  ;;  %v26537_v55 = vld [vmem:[#allocation13_spill] sm:$0xff] }
 0x4cd   :  { %v14795_v29 = vpop.f32.mrf.mxu1  ;;  %v5487_v44 = vpop.f32.mrf.mxu0  ;;  %14953 = vmatmul.mubr.msk.f32.gmra.mxu0 %vm78_vm0, %v11379_v63  ;;  %v26538_v63 = vld [vmem:[#allocation14_spill] sm:$0xff] }
 0x4ce   :  { %v22085_v10 = vmax.f32 %v26529_v56, %v5487_v44  ;;  %14955 = vmatprep.mubr.msk.f32.mxu0 %vm16040_vm1, %v16039_v1  ;;  %v11494_v56 = vld [vmem:[%s25446_s0 + $0x1438] sm:$0xff] }
 0x4cf   :  { %v22092_v42 = vpop.f32.mrf.mxu1  ;;  %15136 = vmatmul.mubr.msk.f32.gmra.mxu1 %vm78_vm0, %v11493_v19  ;;  %v14615_v29 = vpop.f32.mrf.mxu0  ;;  %v11381_v19 = vld [vmem:[%s25446_s0 + $0x1278] sm:$0xff] }
 0x4d0   :  { %26530 = vst [vmem:[#allocation9_spill] sm:$0xff] %v22085_v10  ;;  %26531 = vst [vmem:[#allocation10_spill] sm:$0xff] %v22092_v42  ;;  %15138 = vmatprep.mubr.msk.f32.mxu1 %vm16040_vm1, %v16039_v1  ;;  %v26539_v42 = vmax.f32 %v26537_v55, %v26538_v63  ;;  %v26542_v55 = vld [vmem:[#allocation15_spill] sm:$0xff] }
 0x4d1   :  { %v14798_v17 = vpop.f32.mrf.mxu1  ;;  %v5492_v44 = vpop.f32.mrf.mxu0  ;;  %14956 = vmatmul.mubr.msk.f32.gmra.mxu0 %vm78_vm0, %v11380_v12  ;;  %v26543_v12 = vld [vmem:[#allocation16_spill] sm:$0xff] }
 0x4d2   :  { %v22106_v39 = vmax.f32 %v26534_v40, %v5492_v44  ;;  %14958 = vmatprep.mubr.msk.f32.mxu0 %vm16040_vm1, %v16039_v1  ;;  %v11495_v40 = vld [vmem:[%s25446_s0 + $0x1440] sm:$0xff] }
 0x4d3   :  { %v22113_v29 = vpop.f32.mrf.mxu1  ;;  %15139 = vmatmul.mubr.msk.f32.gmra.mxu1 %vm78_vm0, %v11494_v56  ;;  %v14618_v17 = vpop.f32.mrf.mxu0  ;;  %v11382_v56 = vld [vmem:[%s25446_s0 + $0x1280] sm:$0xff] }
 0x4d4   :  { %26535 = vst [vmem:[#allocation11_spill] sm:$0xff] %v22106_v39  ;;  %26536 = vst [vmem:[#allocation12_spill] sm:$0xff] %v22113_v29  ;;  %15141 = vmatprep.mubr.msk.f32.mxu1 %vm16040_vm1, %v16039_v1  ;;  %v26544_v29 = vmax.f32 %v26542_v55, %v26543_v12  ;;  %v26547_v55 = vld [vmem:[#allocation17_spill] sm:$0xff] }
 0x4d5   :  { %v14801_v23 = vpop.f32.mrf.mxu1  ;;  %v5497_v44 = vpop.f32.mrf.mxu0  ;;  %14959 = vmatmul.mubr.msk.f32.gmra.mxu0 %vm78_vm0, %v11381_v19  ;;  %v26548_v19 = vld [vmem:[#allocation18_spill] sm:$0xff] }
 0x4d6   :  { %v22127_v10 = vmax.f32 %v26539_v42, %v5497_v44  ;;  %14961 = vmatprep.mubr.msk.f32.mxu0 %vm16040_vm1, %v16039_v1  ;;  %v11496_v42 = vld [vmem:[%s25446_s0 + $0x1448] sm:$0xff] }
 0x4d7   :  { %v22134_v17 = vpop.f32.mrf.mxu1  ;;  %15142 = vmatmul.mubr.msk.f32.gmra.mxu1 %vm78_vm0, %v11495_v40  ;;  %v14621_v23 = vpop.f32.mrf.mxu0  ;;  %v11383_v40 = vld [vmem:[%s25446_s0 + $0x1288] sm:$0xff] }
 0x4d8   :  { %26540 = vst [vmem:[#allocation13_spill] sm:$0xff] %v22127_v10  ;;  %26541 = vst [vmem:[#allocation14_spill] sm:$0xff] %v22134_v17  ;;  %15144 = vmatprep.mubr.msk.f32.mxu1 %vm16040_vm1, %v16039_v1  ;;  %v26549_v17 = vmax.f32 %v26547_v55, %v26548_v19  ;;  %v26552_v55 = vld [vmem:[#allocation19_spill] sm:$0xff] }
 0x4d9   :  { %v14804_v63 = vpop.f32.mrf.mxu1  ;;  %v5502_v44 = vpop.f32.mrf.mxu0  ;;  %14962 = vmatmul.mubr.msk.f32.gmra.mxu0 %vm78_vm0, %v11382_v56  ;;  %v26553_v56 = vld [vmem:[#allocation20_spill] sm:$0xff] }
 0x4da   :  { %v22148_v39 = vmax.f32 %v26544_v29, %v5502_v44  ;;  %14964 = vmatprep.mubr.msk.f32.mxu0 %vm16040_vm1, %v16039_v1  ;;  %v11497_v29 = vld [vmem:[%s25446_s0 + $0x1450] sm:$0xff] }
 0x4db   :  { %v22155_v23 = vpop.f32.mrf.mxu1  ;;  %15145 = vmatmul.mubr.msk.f32.gmra.mxu1 %vm78_vm0, %v11496_v42  ;;  %v14624_v63 = vpop.f32.mrf.mxu0  ;;  %v11384_v42 = vld [vmem:[%s25446_s0 + $0x1290] sm:$0xff] }
 0x4dc   :  { %26545 = vst [vmem:[#allocation15_spill] sm:$0xff] %v22148_v39  ;;  %26546 = vst [vmem:[#allocation16_spill] sm:$0xff] %v22155_v23  ;;  %15147 = vmatprep.mubr.msk.f32.mxu1 %vm16040_vm1, %v16039_v1  ;;  %v26554_v23 = vmax.f32 %v26552_v55, %v26553_v56  ;;  %v26557_v55 = vld [vmem:[#allocation21_spill] sm:$0xff] }
 0x4dd   :  { %v14807_v12 = vpop.f32.mrf.mxu1  ;;  %v5507_v44 = vpop.f32.mrf.mxu0  ;;  %14965 = vmatmul.mubr.msk.f32.gmra.mxu0 %vm78_vm0, %v11383_v40  ;;  %v26558_v40 = vld [vmem:[#allocation22_spill] sm:$0xff] }
 0x4de   :  { %v22169_v10 = vmax.f32 %v26549_v17, %v5507_v44  ;;  %14967 = vmatprep.mubr.msk.f32.mxu0 %vm16040_vm1, %v16039_v1  ;;  %v11498_v17 = vld [vmem:[%s25446_s0 + $0x1458] sm:$0xff] }
 0x4df   :  { %v22176_v63 = vpop.f32.mrf.mxu1  ;;  %15148 = vmatmul.mubr.msk.f32.gmra.mxu1 %vm78_vm0, %v11497_v29  ;;  %v14627_v12 = vpop.f32.mrf.mxu0  ;;  %v11385_v29 = vld [vmem:[%s25446_s0 + $0x1298] sm:$0xff] }
 0x4e0   :  { %26550 = vst [vmem:[#allocation17_spill] sm:$0xff] %v22169_v10  ;;  %26551 = vst [vmem:[#allocation18_spill] sm:$0xff] %v22176_v63  ;;  %15150 = vmatprep.mubr.msk.f32.mxu1 %vm16040_vm1, %v16039_v1  ;;  %v26559_v63 = vmax.f32 %v26557_v55, %v26558_v40  ;;  %v26562_v55 = vld [vmem:[#allocation23_spill] sm:$0xff] }
 0x4e1   :  { %v14810_v19 = vpop.f32.mrf.mxu1  ;;  %v5512_v44 = vpop.f32.mrf.mxu0  ;;  %14968 = vmatmul.mubr.msk.f32.gmra.mxu0 %vm78_vm0, %v11384_v42  ;;  %v26563_v42 = vld [vmem:[#allocation24_spill] sm:$0xff] }
 0x4e2   :  { %v22190_v39 = vmax.f32 %v26554_v23, %v5512_v44  ;;  %14970 = vmatprep.mubr.msk.f32.mxu0 %vm16040_vm1, %v16039_v1  ;;  %v11499_v23 = vld [vmem:[%s25446_s0 + $0x1460] sm:$0xff] }
 0x4e3   :  { %v22197_v12 = vpop.f32.mrf.mxu1  ;;  %15151 = vmatmul.mubr.msk.f32.gmra.mxu1 %vm78_vm0, %v11498_v17  ;;  %v14630_v19 = vpop.f32.mrf.mxu0  ;;  %v11386_v17 = vld [vmem:[%s25446_s0 + $0x12a0] sm:$0xff] }
 0x4e4   :  { %26555 = vst [vmem:[#allocation19_spill] sm:$0xff] %v22190_v39  ;;  %26556 = vst [vmem:[#allocation20_spill] sm:$0xff] %v22197_v12  ;;  %15153 = vmatprep.mubr.msk.f32.mxu1 %vm16040_vm1, %v16039_v1  ;;  %v26564_v12 = vmax.f32 %v26562_v55, %v26563_v42  ;;  %v26567_v55 = vld [vmem:[#allocation25_spill] sm:$0xff] }
 0x4e5   :  { %v14813_v56 = vpop.f32.mrf.mxu1  ;;  %v5517_v44 = vpop.f32.mrf.mxu0  ;;  %14971 = vmatmul.mubr.msk.f32.gmra.mxu0 %vm78_vm0, %v11385_v29  ;;  %v26568_v29 = vld [vmem:[#allocation26_spill] sm:$0xff] }
 0x4e6   :  { %v22211_v10 = vmax.f32 %v26559_v63, %v5517_v44  ;;  %14973 = vmatprep.mubr.msk.f32.mxu0 %vm16040_vm1, %v16039_v1  ;;  %v11500_v63 = vld [vmem:[%s25446_s0 + $0x1468] sm:$0xff] }
 0x4e7   :  { %v22218_v19 = vpop.f32.mrf.mxu1  ;;  %15154 = vmatmul.mubr.msk.f32.gmra.mxu1 %vm78_vm0, %v11499_v23  ;;  %v14633_v56 = vpop.f32.mrf.mxu0  ;;  %v11387_v23 = vld [vmem:[%s25446_s0 + $0x12a8] sm:$0xff] }
 0x4e8   :  { %26560 = vst [vmem:[#allocation21_spill] sm:$0xff] %v22211_v10  ;;  %26561 = vst [vmem:[#allocation22_spill] sm:$0xff] %v22218_v19  ;;  %15156 = vmatprep.mubr.msk.f32.mxu1 %vm16040_vm1, %v16039_v1  ;;  %v26569_v19 = vmax.f32 %v26567_v55, %v26568_v29  ;;  %v26572_v55 = vld [vmem:[#allocation27_spill] sm:$0xff] }
 0x4e9   :  { %v14816_v40 = vpop.f32.mrf.mxu1  ;;  %v5522_v44 = vpop.f32.mrf.mxu0  ;;  %14974 = vmatmul.mubr.msk.f32.gmra.mxu0 %vm78_vm0, %v11386_v17  ;;  %v26573_v17 = vld [vmem:[#allocation28_spill] sm:$0xff] }
 0x4ea   :  { %v22232_v39 = vmax.f32 %v26564_v12, %v5522_v44  ;;  %14976 = vmatprep.mubr.msk.f32.mxu0 %vm16040_vm1, %v16039_v1  ;;  %v11501_v12 = vld [vmem:[%s25446_s0 + $0x1470] sm:$0xff] }
 0x4eb   :  { %v22239_v56 = vpop.f32.mrf.mxu1  ;;  %15157 = vmatmul.mubr.msk.f32.gmra.mxu1 %vm78_vm0, %v11500_v63  ;;  %v14636_v40 = vpop.f32.mrf.mxu0  ;;  %v11388_v63 = vld [vmem:[%s25446_s0 + $0x12b0] sm:$0xff] }
 0x4ec   :  { %26565 = vst [vmem:[#allocation23_spill] sm:$0xff] %v22232_v39  ;;  %26566 = vst [vmem:[#allocation24_spill] sm:$0xff] %v22239_v56  ;;  %15159 = vmatprep.mubr.msk.f32.mxu1 %vm16040_vm1, %v16039_v1  ;;  %v26574_v56 = vmax.f32 %v26572_v55, %v26573_v17  ;;  %v26577_v55 = vld [vmem:[#allocation29_spill] sm:$0xff] }
 0x4ed   :  { %v14819_v42 = vpop.f32.mrf.mxu1  ;;  %v5527_v44 = vpop.f32.mrf.mxu0  ;;  %14977 = vmatmul.mubr.msk.f32.gmra.mxu0 %vm78_vm0, %v11387_v23  ;;  %v26578_v23 = vld [vmem:[#allocation30_spill] sm:$0xff] }
 0x4ee   :  { %v22253_v10 = vmax.f32 %v26569_v19, %v5527_v44  ;;  %14979 = vmatprep.mubr.msk.f32.mxu0 %vm16040_vm1, %v16039_v1  ;;  %v11502_v19 = vld [vmem:[%s25446_s0 + $0x1478] sm:$0xff] }
 0x4ef   :  { %v22260_v40 = vpop.f32.mrf.mxu1  ;;  %15160 = vmatmul.mubr.msk.f32.gmra.mxu1 %vm78_vm0, %v11501_v12  ;;  %v14639_v42 = vpop.f32.mrf.mxu0  ;;  %v11389_v12 = vld [vmem:[%s25446_s0 + $0x12b8] sm:$0xff] }
 0x4f0   :  { %26570 = vst [vmem:[#allocation25_spill] sm:$0xff] %v22253_v10  ;;  %26571 = vst [vmem:[#allocation26_spill] sm:$0xff] %v22260_v40  ;;  %15162 = vmatprep.mubr.msk.f32.mxu1 %vm16040_vm1, %v16039_v1  ;;  %v26579_v40 = vmax.f32 %v26577_v55, %v26578_v23  ;;  %v26582_v55 = vld [vmem:[#allocation31_spill] sm:$0xff] }
 0x4f1   :  { %v14822_v29 = vpop.f32.mrf.mxu1  ;;  %v5532_v44 = vpop.f32.mrf.mxu0  ;;  %14980 = vmatmul.mubr.msk.f32.gmra.mxu0 %vm78_vm0, %v11388_v63  ;;  %v26583_v63 = vld [vmem:[#allocation32_spill] sm:$0xff] }
 0x4f2   :  { %v22274_v39 = vmax.f32 %v26574_v56, %v5532_v44  ;;  %14982 = vmatprep.mubr.msk.f32.mxu0 %vm16040_vm1, %v16039_v1  ;;  %v11503_v56 = vld [vmem:[%s25446_s0 + $0x1480] sm:$0xff] }
 0x4f3   :  { %v22281_v42 = vpop.f32.mrf.mxu1  ;;  %15163 = vmatmul.mubr.msk.f32.gmra.mxu1 %vm78_vm0, %v11502_v19  ;;  %v14642_v29 = vpop.f32.mrf.mxu0  ;;  %v11390_v19 = vld [vmem:[%s25446_s0 + $0x12c0] sm:$0xff] }
 0x4f4   :  { %26575 = vst [vmem:[#allocation27_spill] sm:$0xff] %v22274_v39  ;;  %26576 = vst [vmem:[#allocation28_spill] sm:$0xff] %v22281_v42  ;;  %15165 = vmatprep.mubr.msk.f32.mxu1 %vm16040_vm1, %v16039_v1  ;;  %v26584_v42 = vmax.f32 %v26582_v55, %v26583_v63  ;;  %v26587_v55 = vld [vmem:[#allocation33_spill] sm:$0xff] }
 0x4f5   :  { %v14825_v17 = vpop.f32.mrf.mxu1  ;;  %v5537_v44 = vpop.f32.mrf.mxu0  ;;  %14983 = vmatmul.mubr.msk.f32.gmra.mxu0 %vm78_vm0, %v11389_v12  ;;  %v26588_v12 = vld [vmem:[#allocation34_spill] sm:$0xff] }
 0x4f6   :  { %v22295_v10 = vmax.f32 %v26579_v40, %v5537_v44  ;;  %14985 = vmatprep.mubr.msk.f32.mxu0 %vm16040_vm1, %v16039_v1  ;;  %v11504_v40 = vld [vmem:[%s25446_s0 + $0x1488] sm:$0xff] }
 0x4f7   :  { %v22302_v29 = vpop.f32.mrf.mxu1  ;;  %15166 = vmatmul.mubr.msk.f32.gmra.mxu1 %vm78_vm0, %v11503_v56  ;;  %v14645_v17 = vpop.f32.mrf.mxu0  ;;  %v11391_v56 = vld [vmem:[%s25446_s0 + $0x12c8] sm:$0xff] }
 0x4f8   :  { %26580 = vst [vmem:[#allocation29_spill] sm:$0xff] %v22295_v10  ;;  %26581 = vst [vmem:[#allocation30_spill] sm:$0xff] %v22302_v29  ;;  %15168 = vmatprep.mubr.msk.f32.mxu1 %vm16040_vm1, %v16039_v1  ;;  %v26589_v29 = vmax.f32 %v26587_v55, %v26588_v12  ;;  %v26592_v55 = vld [vmem:[#allocation35_spill] sm:$0xff] }
 0x4f9   :  { %v14828_v23 = vpop.f32.mrf.mxu1  ;;  %v5542_v44 = vpop.f32.mrf.mxu0  ;;  %14986 = vmatmul.mubr.msk.f32.gmra.mxu0 %vm78_vm0, %v11390_v19  ;;  %v26593_v19 = vld [vmem:[#allocation36_spill] sm:$0xff] }
 0x4fa   :  { %v22316_v39 = vmax.f32 %v26584_v42, %v5542_v44  ;;  %14988 = vmatprep.mubr.msk.f32.mxu0 %vm16040_vm1, %v16039_v1  ;;  %v11505_v42 = vld [vmem:[%s25446_s0 + $0x1490] sm:$0xff] }
 0x4fb   :  { %v22323_v17 = vpop.f32.mrf.mxu1  ;;  %15169 = vmatmul.mubr.msk.f32.gmra.mxu1 %vm78_vm0, %v11504_v40  ;;  %v14648_v23 = vpop.f32.mrf.mxu0  ;;  %v11392_v40 = vld [vmem:[%s25446_s0 + $0x12d0] sm:$0xff] }
 0x4fc   :  { %26585 = vst [vmem:[#allocation31_spill] sm:$0xff] %v22316_v39  ;;  %26586 = vst [vmem:[#allocation32_spill] sm:$0xff] %v22323_v17  ;;  %15171 = vmatprep.mubr.msk.f32.mxu1 %vm16040_vm1, %v16039_v1  ;;  %v26594_v17 = vmax.f32 %v26592_v55, %v26593_v19  ;;  %v26597_v55 = vld [vmem:[#allocation37_spill] sm:$0xff] }
 0x4fd   :  { %v14831_v63 = vpop.f32.mrf.mxu1  ;;  %v5547_v44 = vpop.f32.mrf.mxu0  ;;  %14989 = vmatmul.mubr.msk.f32.gmra.mxu0 %vm78_vm0, %v11391_v56  ;;  %v26598_v56 = vld [vmem:[#allocation38_spill] sm:$0xff] }
 0x4fe   :  { %v22337_v10 = vmax.f32 %v26589_v29, %v5547_v44  ;;  %14991 = vmatprep.mubr.msk.f32.mxu0 %vm16040_vm1, %v16039_v1  ;;  %v11506_v29 = vld [vmem:[%s25446_s0 + $0x1498] sm:$0xff] }
 0x4ff   :  { %v22344_v23 = vpop.f32.mrf.mxu1  ;;  %15172 = vmatmul.mubr.msk.f32.gmra.mxu1 %vm78_vm0, %v11505_v42  ;;  %v14651_v63 = vpop.f32.mrf.mxu0  ;;  %v11393_v42 = vld [vmem:[%s25446_s0 + $0x12d8] sm:$0xff] }
 0x500   :  { %26590 = vst [vmem:[#allocation33_spill] sm:$0xff] %v22337_v10  ;;  %26591 = vst [vmem:[#allocation34_spill] sm:$0xff] %v22344_v23  ;;  %15174 = vmatprep.mubr.msk.f32.mxu1 %vm16040_vm1, %v16039_v1  ;;  %v26599_v23 = vmax.f32 %v26597_v55, %v26598_v56  ;;  %v26602_v55 = vld [vmem:[#allocation39_spill] sm:$0xff] }
 0x501   :  { %v14834_v12 = vpop.f32.mrf.mxu1  ;;  %v5552_v44 = vpop.f32.mrf.mxu0  ;;  %14992 = vmatmul.mubr.msk.f32.gmra.mxu0 %vm78_vm0, %v11392_v40  ;;  %v26603_v40 = vld [vmem:[#allocation40_spill] sm:$0xff] }
 0x502   :  { %v22358_v39 = vmax.f32 %v26594_v17, %v5552_v44  ;;  %14994 = vmatprep.mubr.msk.f32.mxu0 %vm16040_vm1, %v16039_v1  ;;  %v11507_v17 = vld [vmem:[%s25446_s0 + $0x14a0] sm:$0xff] }
 0x503   :  { %v22365_v63 = vpop.f32.mrf.mxu1  ;;  %15175 = vmatmul.mubr.msk.f32.gmra.mxu1 %vm78_vm0, %v11506_v29  ;;  %v14654_v12 = vpop.f32.mrf.mxu0  ;;  %v11394_v29 = vld [vmem:[%s25446_s0 + $0x12e0] sm:$0xff] }
 0x504   :  { %26595 = vst [vmem:[#allocation35_spill] sm:$0xff] %v22358_v39  ;;  %26596 = vst [vmem:[#allocation36_spill] sm:$0xff] %v22365_v63  ;;  %15177 = vmatprep.mubr.msk.f32.mxu1 %vm16040_vm1, %v16039_v1  ;;  %v26604_v63 = vmax.f32 %v26602_v55, %v26603_v40  ;;  %v26607_v55 = vld [vmem:[#allocation41_spill] sm:$0xff] }
 0x505   :  { %v14837_v19 = vpop.f32.mrf.mxu1  ;;  %v5557_v44 = vpop.f32.mrf.mxu0  ;;  %14995 = vmatmul.mubr.msk.f32.gmra.mxu0 %vm78_vm0, %v11393_v42  ;;  %v26608_v42 = vld [vmem:[#allocation42_spill] sm:$0xff] }
 0x506   :  { %v22379_v10 = vmax.f32 %v26599_v23, %v5557_v44  ;;  %14997 = vmatprep.mubr.msk.f32.mxu0 %vm16040_vm1, %v16039_v1  ;;  %v11508_v23 = vld [vmem:[%s25446_s0 + $0x14a8] sm:$0xff] }
 0x507   :  { %v22386_v12 = vpop.f32.mrf.mxu1  ;;  %15178 = vmatmul.mubr.msk.f32.gmra.mxu1 %vm78_vm0, %v11507_v17  ;;  %v14657_v19 = vpop.f32.mrf.mxu0  ;;  %v11395_v17 = vld [vmem:[%s25446_s0 + $0x12e8] sm:$0xff] }
 0x508   :  { %26600 = vst [vmem:[#allocation37_spill] sm:$0xff] %v22379_v10  ;;  %26601 = vst [vmem:[#allocation38_spill] sm:$0xff] %v22386_v12  ;;  %15180 = vmatprep.mubr.msk.f32.mxu1 %vm16040_vm1, %v16039_v1  ;;  %v26609_v12 = vmax.f32 %v26607_v55, %v26608_v42  ;;  %v26612_v55 = vld [vmem:[#allocation43_spill] sm:$0xff] }
 0x509   :  { %v14840_v56 = vpop.f32.mrf.mxu1  ;;  %v5562_v44 = vpop.f32.mrf.mxu0  ;;  %14998 = vmatmul.mubr.msk.f32.gmra.mxu0 %vm78_vm0, %v11394_v29  ;;  %v26613_v29 = vld [vmem:[#allocation44_spill] sm:$0xff] }
 0x50a   :  { %v22400_v39 = vmax.f32 %v26604_v63, %v5562_v44  ;;  %15000 = vmatprep.mubr.msk.f32.mxu0 %vm16040_vm1, %v16039_v1  ;;  %v11509_v63 = vld [vmem:[%s25446_s0 + $0x14b0] sm:$0xff] }
 0x50b   :  { %v22407_v19 = vpop.f32.mrf.mxu1  ;;  %15181 = vmatmul.mubr.msk.f32.gmra.mxu1 %vm78_vm0, %v11508_v23  ;;  %v14660_v56 = vpop.f32.mrf.mxu0  ;;  %v11396_v23 = vld [vmem:[%s25446_s0 + $0x12f0] sm:$0xff] }
 0x50c   :  { %26605 = vst [vmem:[#allocation39_spill] sm:$0xff] %v22400_v39  ;;  %26606 = vst [vmem:[#allocation40_spill] sm:$0xff] %v22407_v19  ;;  %15183 = vmatprep.mubr.msk.f32.mxu1 %vm16040_vm1, %v16039_v1  ;;  %v26614_v19 = vmax.f32 %v26612_v55, %v26613_v29  ;;  %v26617_v55 = vld [vmem:[#allocation45_spill] sm:$0xff] }
 0x50d   :  { %v14843_v40 = vpop.f32.mrf.mxu1  ;;  %v5567_v44 = vpop.f32.mrf.mxu0  ;;  %15001 = vmatmul.mubr.msk.f32.gmra.mxu0 %vm78_vm0, %v11395_v17  ;;  %v26618_v17 = vld [vmem:[#allocation46_spill] sm:$0xff] }
 0x50e   :  { %v22421_v10 = vmax.f32 %v26609_v12, %v5567_v44  ;;  %15003 = vmatprep.mubr.msk.f32.mxu0 %vm16040_vm1, %v16039_v1  ;;  %v11510_v12 = vld [vmem:[%s25446_s0 + $0x14b8] sm:$0xff] }
 0x50f   :  { %v22428_v56 = vpop.f32.mrf.mxu1  ;;  %15184 = vmatmul.mubr.msk.f32.gmra.mxu1 %vm78_vm0, %v11509_v63  ;;  %v14663_v40 = vpop.f32.mrf.mxu0  ;;  %v11397_v63 = vld [vmem:[%s25446_s0 + $0x12f8] sm:$0xff] }
 0x510   :  { %26610 = vst [vmem:[#allocation41_spill] sm:$0xff] %v22421_v10  ;;  %26611 = vst [vmem:[#allocation42_spill] sm:$0xff] %v22428_v56  ;;  %15186 = vmatprep.mubr.msk.f32.mxu1 %vm16040_vm1, %v16039_v1  ;;  %v26619_v56 = vmax.f32 %v26617_v55, %v26618_v17  ;;  %v26622_v55 = vld [vmem:[#allocation47_spill] sm:$0xff] }
 0x511   :  { %v14846_v42 = vpop.f32.mrf.mxu1  ;;  %v5572_v44 = vpop.f32.mrf.mxu0  ;;  %15004 = vmatmul.mubr.msk.f32.gmra.mxu0 %vm78_vm0, %v11396_v23  ;;  %v26623_v23 = vld [vmem:[#allocation48_spill] sm:$0xff] }
 0x512   :  { %v22442_v39 = vmax.f32 %v26614_v19, %v5572_v44  ;;  %15006 = vmatprep.mubr.msk.f32.mxu0 %vm16040_vm1, %v16039_v1  ;;  %v11511_v19 = vld [vmem:[%s25446_s0 + $0x14c0] sm:$0xff] }
 0x513   :  { %v22449_v40 = vpop.f32.mrf.mxu1  ;;  %15187 = vmatmul.mubr.msk.f32.gmra.mxu1 %vm78_vm0, %v11510_v12  ;;  %v14666_v42 = vpop.f32.mrf.mxu0  ;;  %v11398_v12 = vld [vmem:[%s25446_s0 + $0x1300] sm:$0xff] }
 0x514   :  { %26615 = vst [vmem:[#allocation43_spill] sm:$0xff] %v22442_v39  ;;  %26616 = vst [vmem:[#allocation44_spill] sm:$0xff] %v22449_v40  ;;  %15189 = vmatprep.mubr.msk.f32.mxu1 %vm16040_vm1, %v16039_v1  ;;  %v26624_v40 = vmax.f32 %v26622_v55, %v26623_v23  ;;  %v26627_v55 = vld [vmem:[#allocation49_spill] sm:$0xff] }
 0x515   :  { %v14849_v29 = vpop.f32.mrf.mxu1  ;;  %v5577_v44 = vpop.f32.mrf.mxu0  ;;  %15007 = vmatmul.mubr.msk.f32.gmra.mxu0 %vm78_vm0, %v11397_v63  ;;  %v26628_v63 = vld [vmem:[#allocation50_spill] sm:$0xff] }
 0x516   :  { %v22463_v10 = vmax.f32 %v26619_v56, %v5577_v44  ;;  %15009 = vmatprep.mubr.msk.f32.mxu0 %vm16040_vm1, %v16039_v1  ;;  %v11512_v56 = vld [vmem:[%s25446_s0 + $0x14c8] sm:$0xff] }
 0x517   :  { %v22470_v42 = vpop.f32.mrf.mxu1  ;;  %15190 = vmatmul.mubr.msk.f32.gmra.mxu1 %vm78_vm0, %v11511_v19  ;;  %v14669_v29 = vpop.f32.mrf.mxu0  ;;  %v11399_v19 = vld [vmem:[%s25446_s0 + $0x1308] sm:$0xff] }
 0x518   :  { %26620 = vst [vmem:[#allocation45_spill] sm:$0xff] %v22463_v10  ;;  %26621 = vst [vmem:[#allocation46_spill] sm:$0xff] %v22470_v42  ;;  %15192 = vmatprep.mubr.msk.f32.mxu1 %vm16040_vm1, %v16039_v1  ;;  %v26629_v42 = vmax.f32 %v26627_v55, %v26628_v63  ;;  %v26630_v55 = vld [vmem:[#allocation51_spill] sm:$0xff] }
 0x519   :  { %v14852_v17 = vpop.f32.mrf.mxu1  ;;  %v5582_v44 = vpop.f32.mrf.mxu0  ;;  %15010 = vmatmul.mubr.msk.f32.gmra.mxu0 %vm78_vm0, %v11398_v12  ;;  %v26631_v12 = vld [vmem:[#allocation52_spill] sm:$0xff] }
 0x51a   :  { %v22484_v39 = vmax.f32 %v26624_v40, %v5582_v44  ;;  %15012 = vmatprep.mubr.msk.f32.mxu0 %vm16040_vm1, %v16039_v1  ;;  %v11513_v40 = vld [vmem:[%s25446_s0 + $0x14d0] sm:$0xff] }
 0x51b   :  { %v22491_v29 = vpop.f32.mrf.mxu1  ;;  %15193 = vmatmul.mubr.msk.f32.gmra.mxu1 %vm78_vm0, %v11512_v56  ;;  %v14672_v17 = vpop.f32.mrf.mxu0  ;;  %v11400_v56 = vld [vmem:[%s25446_s0 + $0x1310] sm:$0xff] }
 0x51c   :  { %26625 = vst [vmem:[#allocation47_spill] sm:$0xff] %v22484_v39  ;;  %26626 = vst [vmem:[#allocation48_spill] sm:$0xff] %v22491_v29  ;;  %15195 = vmatprep.mubr.msk.f32.mxu1 %vm16040_vm1, %v16039_v1  ;;  %v26632_v29 = vmax.f32 %v26630_v55, %v26631_v12  ;;  %v26633_v55 = vmax.f32 %v21320_v48, %v21327_v6  ;;  %v11516_v48 = vld [vmem:[%s25446_s0 + $0x14e8] sm:$0xff] }
 0x51d   :  { %v14855_v23 = vpop.f32.mrf.mxu1  ;;  %v5587_v44 = vpop.f32.mrf.mxu0  ;;  %15013 = vmatmul.mubr.msk.f32.gmra.mxu0 %vm78_vm0, %v11399_v19 }
 0x51e   :  { %v22505_v10 = vmax.f32 %v26629_v42, %v5587_v44  ;;  %15015 = vmatprep.mubr.msk.f32.mxu0 %vm16040_vm1, %v16039_v1  ;;  %v11514_v42 = vld [vmem:[%s25446_s0 + $0x14d8] sm:$0xff] }
 0x51f   :  { %v22512_v17 = vpop.f32.mrf.mxu1  ;;  %15196 = vmatmul.mubr.msk.f32.gmra.mxu1 %vm78_vm0, %v11513_v40  ;;  %v14675_v23 = vpop.f32.mrf.mxu0  ;;  %v11401_v40 = vld [vmem:[%s25446_s0 + $0x1318] sm:$0xff] }
 0x520   :  { %15198 = vmatprep.mubr.msk.f32.mxu1 %vm16040_vm1, %v16039_v1 }
 0x521   :  { %v14858_v63 = vpop.f32.mrf.mxu1  ;;  %v5592_v44 = vpop.f32.mrf.mxu0  ;;  %15016 = vmatmul.mubr.msk.f32.gmra.mxu0 %vm78_vm0, %v11400_v56 }
 0x522   :  { %v22526_v39 = vmax.f32 %v26632_v29, %v5592_v44  ;;  %15018 = vmatprep.mubr.msk.f32.mxu0 %vm16040_vm1, %v16039_v1  ;;  %v11515_v29 = vld [vmem:[%s25446_s0 + $0x14e0] sm:$0xff] }
 0x523   :  { %v22533_v23 = vpop.f32.mrf.mxu1  ;;  %15199 = vmatmul.mubr.msk.f32.gmra.mxu1 %vm78_vm0, %v11514_v42  ;;  %v14678_v63 = vpop.f32.mrf.mxu0  ;;  %v11402_v42 = vld [vmem:[%s25446_s0 + $0x1320] sm:$0xff] }
 0x524   :  { %15201 = vmatprep.mubr.msk.f32.mxu1 %vm16040_vm1, %v16039_v1 }
 0x525   :  { %v14861_v12 = vpop.f32.mrf.mxu1  ;;  %v5597_v44 = vpop.f32.mrf.mxu0  ;;  %15019 = vmatmul.mubr.msk.f32.gmra.mxu0 %vm78_vm0, %v11401_v40 }
 0x526   :  { %v22547_v19 = vmax.f32 %v26633_v55, %v5597_v44  ;;  %15021 = vmatprep.mubr.msk.f32.mxu0 %vm16040_vm1, %v16039_v1  ;;  %v26634_v55 = vmax.f32 %v21341_v25, %v21348_v47  ;;  %v11517_v25 = vld [vmem:[%s25446_s0 + $0x14f0] sm:$0xff] }
 0x527   :  { %v22554_v63 = vpop.f32.mrf.mxu1  ;;  %15202 = vmatmul.mubr.msk.f32.gmra.mxu1 %vm78_vm0, %v11515_v29  ;;  %v14681_v12 = vpop.f32.mrf.mxu0  ;;  %v11403_v29 = vld [vmem:[%s25446_s0 + $0x1328] sm:$0xff] }
 0x528   :  { %15204 = vmatprep.mubr.msk.f32.mxu1 %vm16040_vm1, %v16039_v1 }
 0x529   :  { %v14864_v6 = vpop.f32.mrf.mxu1  ;;  %v5602_v44 = vpop.f32.mrf.mxu0  ;;  %15022 = vmatmul.mubr.msk.f32.gmra.mxu0 %vm78_vm0, %v11402_v42 }
 0x52a   :  { %v22568_v56 = vmax.f32 %v26634_v55, %v5602_v44  ;;  %15024 = vmatprep.mubr.msk.f32.mxu0 %vm16040_vm1, %v16039_v1  ;;  %v26635_v55 = vmax.f32 %v21362_v26, %v21369_v60  ;;  %v11518_v26 = vld [vmem:[%s25446_s0 + $0x14f8] sm:$0xff] }
 0x52b   :  { %v22575_v12 = vpop.f32.mrf.mxu1  ;;  %15205 = vmatmul.mubr.msk.f32.gmra.mxu1 %vm78_vm0, %v11516_v48  ;;  %v14684_v6 = vpop.f32.mrf.mxu0  ;;  %v11404_v48 = vld [vmem:[%s25446_s0 + $0x1330] sm:$0xff] }
 0x52c   :  { %15207 = vmatprep.mubr.msk.f32.mxu1 %vm16040_vm1, %v16039_v1 }
 0x52d   :  { %v14867_v47 = vpop.f32.mrf.mxu1  ;;  %v5607_v44 = vpop.f32.mrf.mxu0  ;;  %15025 = vmatmul.mubr.msk.f32.gmra.mxu0 %vm78_vm0, %v11403_v29 }
 0x52e   :  { %v22589_v40 = vmax.f32 %v26635_v55, %v5607_v44  ;;  %15027 = vmatprep.mubr.msk.f32.mxu0 %vm16040_vm1, %v16039_v1  ;;  %v26636_v55 = vmax.f32 %v21383_v53, %v21390_v36  ;;  %v11519_v53 = vld [vmem:[%s25446_s0 + $0x1500] sm:$0xff] }
 0x52f   :  { %v22596_v6 = vpop.f32.mrf.mxu1  ;;  %15208 = vmatmul.mubr.msk.f32.gmra.mxu1 %vm78_vm0, %v11517_v25  ;;  %v14687_v47 = vpop.f32.mrf.mxu0  ;;  %v11405_v25 = vld [vmem:[%s25446_s0 + $0x1338] sm:$0xff] }
 0x530   :  { %15210 = vmatprep.mubr.msk.f32.mxu1 %vm16040_vm1, %v16039_v1 }
 0x531   :  { %v14870_v60 = vpop.f32.mrf.mxu1  ;;  %v5612_v44 = vpop.f32.mrf.mxu0  ;;  %15028 = vmatmul.mubr.msk.f32.gmra.mxu0 %vm78_vm0, %v11404_v48 }
 0x532   :  { %v22610_v42 = vmax.f32 %v26636_v55, %v5612_v44  ;;  %15030 = vmatprep.mubr.msk.f32.mxu0 %vm16040_vm1, %v16039_v1  ;;  %v26637_v55 = vmax.f32 %v21404_v9, %v21411_v45  ;;  %v11520_v9 = vld [vmem:[%s25446_s0 + $0x1508] sm:$0xff] }
 0x533   :  { %v22617_v47 = vpop.f32.mrf.mxu1  ;;  %15211 = vmatmul.mubr.msk.f32.gmra.mxu1 %vm78_vm0, %v11518_v26  ;;  %v14690_v60 = vpop.f32.mrf.mxu0  ;;  %v11406_v26 = vld [vmem:[%s25446_s0 + $0x1340] sm:$0xff] }
 0x534   :  { %15213 = vmatprep.mubr.msk.f32.mxu1 %vm16040_vm1, %v16039_v1 }
 0x535   :  { %v14873_v36 = vpop.f32.mrf.mxu1  ;;  %v5617_v44 = vpop.f32.mrf.mxu0  ;;  %15031 = vmatmul.mubr.msk.f32.gmra.mxu0 %vm78_vm0, %v11405_v25 }
 0x536   :  { %v22631_v29 = vmax.f32 %v26637_v55, %v5617_v44  ;;  %15033 = vmatprep.mubr.msk.f32.mxu0 %vm16040_vm1, %v16039_v1  ;;  %v26638_v55 = vmax.f32 %v21425_v2, %v21432_v13  ;;  %v11521_v2 = vld [vmem:[%s25446_s0 + $0x1510] sm:$0xff] }
 0x537   :  { %v22638_v60 = vpop.f32.mrf.mxu1  ;;  %15214 = vmatmul.mubr.msk.f32.gmra.mxu1 %vm78_vm0, %v11519_v53  ;;  %v14693_v36 = vpop.f32.mrf.mxu0  ;;  %v11407_v53 = vld [vmem:[%s25446_s0 + $0x1348] sm:$0xff] }
 0x538   :  { %15216 = vmatprep.mubr.msk.f32.mxu1 %vm16040_vm1, %v16039_v1 }
 0x539   :  { %v14876_v45 = vpop.f32.mrf.mxu1  ;;  %v5622_v44 = vpop.f32.mrf.mxu0  ;;  %15034 = vmatmul.mubr.msk.f32.gmra.mxu0 %vm78_vm0, %v11406_v26 }
 0x53a   :  { %v22652_v48 = vmax.f32 %v26638_v55, %v5622_v44  ;;  %15036 = vmatprep.mubr.msk.f32.mxu0 %vm16040_vm1, %v16039_v1  ;;  %v26639_v55 = vmax.f32 %v21446_v49, %v21453_v24  ;;  %v11522_v49 = vld [vmem:[%s25446_s0 + $0x1518] sm:$0xff] }
 0x53b   :  { %v22659_v36 = vpop.f32.mrf.mxu1  ;;  %15217 = vmatmul.mubr.msk.f32.gmra.mxu1 %vm78_vm0, %v11520_v9  ;;  %v14696_v45 = vpop.f32.mrf.mxu0  ;;  %v11408_v9 = vld [vmem:[%s25446_s0 + $0x1350] sm:$0xff] }
 0x53c   :  { %15219 = vmatprep.mubr.msk.f32.mxu1 %vm16040_vm1, %v16039_v1 }
 0x53d   :  { %v14879_v13 = vpop.f32.mrf.mxu1  ;;  %v5627_v44 = vpop.f32.mrf.mxu0  ;;  %15037 = vmatmul.mubr.msk.f32.gmra.mxu0 %vm78_vm0, %v11407_v53 }
 0x53e   :  { %v22673_v25 = vmax.f32 %v26639_v55, %v5627_v44  ;;  %15039 = vmatprep.mubr.msk.f32.mxu0 %vm16040_vm1, %v16039_v1  ;;  %v26640_v55 = vmax.f32 %v21467_v46, %v21474_v43  ;;  %v11523_v46 = vld [vmem:[%s25446_s0 + $0x1520] sm:$0xff] }
 0x53f   :  { %v22680_v45 = vpop.f32.mrf.mxu1  ;;  %15220 = vmatmul.mubr.msk.f32.gmra.mxu1 %vm78_vm0, %v11521_v2  ;;  %v14699_v13 = vpop.f32.mrf.mxu0  ;;  %v11409_v2 = vld [vmem:[%s25446_s0 + $0x1358] sm:$0xff] }
 0x540   :  { %15222 = vmatprep.mubr.msk.f32.mxu1 %vm16040_vm1, %v16039_v1 }
 0x541   :  { %v14882_v24 = vpop.f32.mrf.mxu1  ;;  %v6619_v44 = vpop.f32.mrf.mxu0  ;;  %15040 = vmatmul.mubr.msk.f32.gmra.mxu0 %vm78_vm0, %v11408_v9 }
 0x542   :  { %v22694_v26 = vmax.f32 %v26640_v55, %v6619_v44  ;;  %15042 = vmatprep.mubr.msk.f32.mxu0 %vm16040_vm1, %v16039_v1  ;;  %v26641_v55 = vmax.f32 %v21488_v8, %v21495_v34  ;;  %v11524_v8 = vld [vmem:[%s25446_s0 + $0x1528] sm:$0xff] }
 0x543   :  { %v22701_v13 = vpop.f32.mrf.mxu1  ;;  %15223 = vmatmul.mubr.msk.f32.gmra.mxu1 %vm78_vm0, %v11522_v49  ;;  %v14897_v24 = vpop.f32.mrf.mxu0  ;;  %v11410_v49 = vld [vmem:[%s25446_s0 + $0x1360] sm:$0xff] }
 0x544   :  { %15225 = vmatprep.mubr.msk.f32.mxu1 %vm16040_vm1, %v16039_v1 }
 0x545   :  { %v15080_v43 = vpop.f32.mrf.mxu1  ;;  %v6624_v44 = vpop.f32.mrf.mxu0  ;;  %15043 = vmatmul.mubr.msk.f32.gmra.mxu0 %vm78_vm0, %v11409_v2 }
 0x546   :  { %v22715_v53 = vmax.f32 %v26641_v55, %v6624_v44  ;;  %15045 = vmatprep.mubr.msk.f32.mxu0 %vm16040_vm1, %v16039_v1  ;;  %v26642_v55 = vmax.f32 %v21509_v5, %v21516_v0  ;;  %v11525_v5 = vld [vmem:[%s25446_s0 + $0x1530] sm:$0xff] }
 0x547   :  { %v22722_v24 = vpop.f32.mrf.mxu1  ;;  %15226 = vmatmul.mubr.msk.f32.gmra.mxu1 %vm78_vm0, %v11523_v46  ;;  %v14900_v43 = vpop.f32.mrf.mxu0  ;;  %v11411_v46 = vld [vmem:[%s25446_s0 + $0x1368] sm:$0xff] }
 0x548   :  { %15228 = vmatprep.mubr.msk.f32.mxu1 %vm16040_vm1, %v16039_v1 }
 0x549   :  { %v15083_v34 = vpop.f32.mrf.mxu1  ;;  %v6629_v44 = vpop.f32.mrf.mxu0  ;;  %15046 = vmatmul.mubr.msk.f32.gmra.mxu0 %vm78_vm0, %v11410_v49 }
 0x54a   :  { %v22736_v9 = vmax.f32 %v26642_v55, %v6629_v44  ;;  %15048 = vmatprep.mubr.msk.f32.mxu0 %vm16040_vm1, %v16039_v1  ;;  %v26643_v55 = vmax.f32 %v21530_v3, %v21537_v41  ;;  %v11526_v3 = vld [vmem:[%s25446_s0 + $0x1538] sm:$0xff] }
 0x54b   :  { %v22743_v43 = vpop.f32.mrf.mxu1  ;;  %15229 = vmatmul.mubr.msk.f32.gmra.mxu1 %vm78_vm0, %v11524_v8  ;;  %v14903_v34 = vpop.f32.mrf.mxu0  ;;  %v11412_v8 = vld [vmem:[%s25446_s0 + $0x1370] sm:$0xff] }
 0x54c   :  { %15231 = vmatprep.mubr.msk.f32.mxu1 %vm16040_vm1, %v16039_v1 }
 0x54d   :  { %v15086_v0 = vpop.f32.mrf.mxu1  ;;  %v6634_v44 = vpop.f32.mrf.mxu0  ;;  %15049 = vmatmul.mubr.msk.f32.gmra.mxu0 %vm78_vm0, %v11411_v46 }
 0x54e   :  { %v22757_v2 = vmax.f32 %v26643_v55, %v6634_v44  ;;  %15051 = vmatprep.mubr.msk.f32.mxu0 %vm16040_vm1, %v16039_v1  ;;  %v26644_v55 = vmax.f32 %v21551_v4, %v21558_v20  ;;  %v11527_v4 = vld [vmem:[%s25446_s0 + $0x1540] sm:$0xff] }
 0x54f   :  { %v22764_v34 = vpop.f32.mrf.mxu1  ;;  %15232 = vmatmul.mubr.msk.f32.gmra.mxu1 %vm78_vm0, %v11525_v5  ;;  %v14906_v0 = vpop.f32.mrf.mxu0  ;;  %v11413_v5 = vld [vmem:[%s25446_s0 + $0x1378] sm:$0xff] }
 0x550   :  { %15234 = vmatprep.mubr.msk.f32.mxu1 %vm16040_vm1, %v16039_v1 }
 0x551   :  { %v15089_v41 = vpop.f32.mrf.mxu1  ;;  %v6639_v44 = vpop.f32.mrf.mxu0  ;;  %15052 = vmatmul.mubr.msk.f32.gmra.mxu0 %vm78_vm0, %v11412_v8 }
 0x552   :  { %v22778_v49 = vmax.f32 %v26644_v55, %v6639_v44  ;;  %15054 = vmatprep.mubr.msk.f32.mxu0 %vm16040_vm1, %v16039_v1  ;;  %v26645_v55 = vmax.f32 %v21572_v61, %v21579_v59  ;;  %v11528_v61 = vld [vmem:[%s25446_s0 + $0x1548] sm:$0xff] }
 0x553   :  { %v22785_v0 = vpop.f32.mrf.mxu1  ;;  %15235 = vmatmul.mubr.msk.f32.gmra.mxu1 %vm78_vm0, %v11526_v3  ;;  %v14909_v41 = vpop.f32.mrf.mxu0  ;;  %v11414_v3 = vld [vmem:[%s25446_s0 + $0x1380] sm:$0xff] }
 0x554   :  { %15237 = vmatprep.mubr.msk.f32.mxu1 %vm16040_vm1, %v16039_v1 }
 0x555   :  { %v15092_v20 = vpop.f32.mrf.mxu1  ;;  %v6644_v44 = vpop.f32.mrf.mxu0  ;;  %15055 = vmatmul.mubr.msk.f32.gmra.mxu0 %vm78_vm0, %v11413_v5 }
 0x556   :  { %v22799_v46 = vmax.f32 %v26645_v55, %v6644_v44  ;;  %15057 = vmatprep.mubr.msk.f32.mxu0 %vm16040_vm1, %v16039_v1  ;;  %v26646_v55 = vmax.f32 %v21593_v18, %v21600_v31  ;;  %v11529_v18 = vld [vmem:[%s25446_s0 + $0x1550] sm:$0xff] }
 0x557   :  { %v22806_v41 = vpop.f32.mrf.mxu1  ;;  %15238 = vmatmul.mubr.msk.f32.gmra.mxu1 %vm78_vm0, %v11527_v4  ;;  %v14912_v20 = vpop.f32.mrf.mxu0  ;;  %v11415_v4 = vld [vmem:[%s25446_s0 + $0x1388] sm:$0xff] }
 0x558   :  { %15240 = vmatprep.mubr.msk.f32.mxu1 %vm16040_vm1, %v16039_v1 }
 0x559   :  { %v15095_v59 = vpop.f32.mrf.mxu1  ;;  %v6649_v44 = vpop.f32.mrf.mxu0  ;;  %15058 = vmatmul.mubr.msk.f32.gmra.mxu0 %vm78_vm0, %v11414_v3 }
 0x55a   :  { %v22820_v8 = vmax.f32 %v26646_v55, %v6649_v44  ;;  %15060 = vmatprep.mubr.msk.f32.mxu0 %vm16040_vm1, %v16039_v1  ;;  %v26647_v55 = vmax.f32 %v21614_v38, %v21621_v22  ;;  %v11530_v38 = vld [vmem:[%s25446_s0 + $0x1558] sm:$0xff] }
 0x55b   :  { %v22827_v20 = vpop.f32.mrf.mxu1  ;;  %15241 = vmatmul.mubr.msk.f32.gmra.mxu1 %vm78_vm0, %v11528_v61  ;;  %v14915_v59 = vpop.f32.mrf.mxu0  ;;  %v11416_v61 = vld [vmem:[%s25446_s0 + $0x1390] sm:$0xff] }
 0x55c   :  { %15243 = vmatprep.mubr.msk.f32.mxu1 %vm16040_vm1, %v16039_v1 }
 0x55d   :  { %v15098_v31 = vpop.f32.mrf.mxu1  ;;  %v6654_v44 = vpop.f32.mrf.mxu0  ;;  %15061 = vmatmul.mubr.msk.f32.gmra.mxu0 %vm78_vm0, %v11415_v4 }
 0x55e   :  { %v22841_v5 = vmax.f32 %v26647_v55, %v6654_v44  ;;  %15063 = vmatprep.mubr.msk.f32.mxu0 %vm16040_vm1, %v16039_v1  ;;  %v26648_v55 = vmax.f32 %v21635_v58, %v21642_v50  ;;  %v11702_v58 = vld [vmem:[%s25446_s0 + $0x1728] sm:$0xff] }
 0x55f   :  { %v22848_v59 = vpop.f32.mrf.mxu1  ;;  %15244 = vmatmul.mubr.msk.f32.gmra.mxu1 %vm78_vm0, %v11529_v18  ;;  %v14918_v31 = vpop.f32.mrf.mxu0  ;;  %v11588_v18 = vld [vmem:[%s25446_s0 + $0x1560] sm:$0xff] }
 0x560   :  { %15246 = vmatprep.mubr.msk.f32.mxu1 %vm16040_vm1, %v16039_v1 }
 0x561   :  { %v15101_v22 = vpop.f32.mrf.mxu1  ;;  %v6659_v44 = vpop.f32.mrf.mxu0  ;;  %15064 = vmatmul.mubr.msk.f32.gmra.mxu0 %vm78_vm0, %v11416_v61  ;;  %v26655_v61 = vmax.f32 %v21812_v14, %v21819_v37  ;;  %v11709_v37 = vld [vmem:[%s25446_s0 + $0x1760] sm:$0xff] }
 0x562   :  { %v22862_v3 = vmax.f32 %v26648_v55, %v6659_v44  ;;  %15261 = vmatprep.mubr.msk.f32.mxu0 %vm16040_vm1, %v16039_v1  ;;  %v26649_v55 = vmax.f32 %v21656_v54, %v21666_v7  ;;  %v11703_v7 = vld [vmem:[%s25446_s0 + $0x1730] sm:$0xff] }
 0x563   :  { %v22869_v31 = vpop.f32.mrf.mxu1  ;;  %15247 = vmatmul.mubr.msk.f32.gmra.mxu1 %vm78_vm0, %v11530_v38  ;;  %v14921_v22 = vpop.f32.mrf.mxu0  ;;  %v16011_v38 = vld [vmem:[%s25447_s1 + $0x28] sm:$0xff] }
 0x564   :  { %15444 = vmatprep.mubr.msk.f32.mxu1 %vm16040_vm1, %v16039_v1  ;;  %v11589_v22 = vld [vmem:[%s25446_s0 + $0x1568] sm:$0xff] }
 0x565   :  { %v15104_v50 = vpop.f32.mrf.mxu1  ;;  %v6664_v44 = vpop.f32.mrf.mxu0  ;;  %15262 = vmatmul.mubr.msk.f32.vlgmr.msra.gmra.mxu0 %vm78_vm0, %v11588_v18 }
 0x566   :  { %v22883_v4 = vmax.f32 %v26649_v55, %v6664_v44  ;;  %15616 = vmatpush3.msra.mxu0 %v16011_v38  ;;  %15264 = vmatprep.mubr.msk.f32.mxu0 %vm16040_vm1, %v16039_v1 }
 0x567   :  { %v22893_v50 = vpop.f32.mrf.mxu1  ;;  %15445 = vmatmul.mubr.msk.f32.vlgmr.msra.gmra.mxu1 %vm78_vm0, %v11702_v58  ;;  %v14924_v18 = vpop.f32.mrf.mxu0  ;;  %15617 = vmatprep.subr.mxu0 %v16039_v1  ;;  %v26650_v58 = vmax.f32 %v21682_v32, %v21692_v57  ;;  %v11704_v57 = vld [vmem:[%s25446_s0 + $0x1738] sm:$0xff] }
 0x568   :  { %15799 = vmatpush3.msra.mxu1 %v16011_v38  ;;  %15447 = vmatprep.mubr.msk.f32.mxu1 %vm16040_vm1, %v16039_v1  ;;  %v11590_v38 = vld [vmem:[%s25446_s0 + $0x1570] sm:$0xff]  ;;  %v11591_v32 = vld [vmem:[%s25446_s0 + $0x1578] sm:$0xff] }
 0x569   :  { %v15107_v44 = vpop.f32.mrf.mxu1  ;;  %v6669_v55 = vpop.f32.mrf.mxu0  ;;  %15265 = vmatmul.mubr.msk.f32.gmra.mxu0 %vm78_vm0, %v11589_v22  ;;  %15800 = vmatprep.subr.mxu1 %v16039_v1 }
 0x56a   :  { %v22909_v18 = vmax.f32 %v26650_v58, %v6669_v55  ;;  %15267 = vmatprep.mubr.msk.f32.mxu0 %vm16040_vm1, %v16039_v1  ;;  %v16012_v44 = vld [vmem:[%s25447_s1 + $0x20] sm:$0xff] }
 0x56b   :  { %15618 = vmatpush3.msra.mxu0 %v16012_v44  ;;  %v22919_v22 = vpop.f32.mrf.mxu1  ;;  %15448 = vmatmul.mubr.msk.f32.gmra.mxu1 %vm78_vm0, %v11703_v7  ;;  %v14927_v54 = vpop.f32.mrf.mxu0 }
 0x56c   :  { %15619 = vmatprep.subr.mxu0 %v16039_v1  ;;  %15450 = vmatprep.mubr.msk.f32.mxu1 %vm16040_vm1, %v16039_v1  ;;  %v26651_v54 = vmax.f32 %v21708_v21, %v21718_v11  ;;  %v11705_v11 = vld [vmem:[%s25446_s0 + $0x1740] sm:$0xff] }
 0x56d   :  { %15801 = vmatpush3.msra.mxu1 %v16012_v44  ;;  %v15110_v55 = vpop.f32.mrf.mxu1  ;;  %v6674_v58 = vpop.f32.mrf.mxu0  ;;  %15268 = vmatmul.mubr.msk.f32.gmra.mxu0 %vm78_vm0, %v11590_v38  ;;  %v16013_v44 = vld [vmem:[%s25447_s1 + $0x18] sm:$0xff]  ;;  %v11592_v21 = vld [vmem:[%s25446_s0 + $0x1580] sm:$0xff] }
 0x56e   :  { %15802 = vmatprep.subr.mxu1 %v16039_v1  ;;  %v22935_v7 = vmax.f32 %v26651_v54, %v6674_v58  ;;  %15270 = vmatprep.mubr.msk.f32.mxu0 %vm16040_vm1, %v16039_v1 }
 0x56f   :  { %15620 = vmatpush3.msra.mxu0 %v16013_v44  ;;  %v22945_v38 = vpop.f32.mrf.mxu1  ;;  %15451 = vmatmul.mubr.msk.f32.gmra.mxu1 %vm78_vm0, %v11704_v57  ;;  %v14930_v55 = vpop.f32.mrf.mxu0  ;;  %v26652_v57 = vmax.f32 %v21734_v33, %v21744_v16  ;;  %v11706_v16 = vld [vmem:[%s25446_s0 + $0x1748] sm:$0xff] }
 0x570   :  { %15621 = vmatprep.subr.mxu0 %v16039_v1  ;;  %15453 = vmatprep.mubr.msk.f32.mxu1 %vm16040_vm1, %v16039_v1  ;;  %v11593_v33 = vld [vmem:[%s25446_s0 + $0x1588] sm:$0xff] }
 0x571   :  { %15803 = vmatpush3.msra.mxu1 %v16013_v44  ;;  %v15113_v58 = vpop.f32.mrf.mxu1  ;;  %v6679_v54 = vpop.f32.mrf.mxu0  ;;  %15271 = vmatmul.mubr.msk.f32.gmra.mxu0 %vm78_vm0, %v11591_v32  ;;  %v16014_v44 = vld [vmem:[%s25447_s1 + $0x10] sm:$0xff] }
 0x572   :  { %15804 = vmatprep.subr.mxu1 %v16039_v1  ;;  %v22961_v55 = vmax.f32 %v26652_v57, %v6679_v54  ;;  %15273 = vmatprep.mubr.msk.f32.mxu0 %vm16040_vm1, %v16039_v1 }
 0x573   :  { %15622 = vmatpush3.msra.mxu0 %v16014_v44  ;;  %v22971_v32 = vpop.f32.mrf.mxu1  ;;  %15454 = vmatmul.mubr.msk.f32.gmra.mxu1 %vm78_vm0, %v11705_v11  ;;  %v14933_v58 = vpop.f32.mrf.mxu0  ;;  %v26653_v11 = vmax.f32 %v21760_v27, %v21770_v35  ;;  %v11707_v35 = vld [vmem:[%s25446_s0 + $0x1750] sm:$0xff] }
 0x574   :  { %15623 = vmatprep.subr.mxu0 %v16039_v1  ;;  %15456 = vmatprep.mubr.msk.f32.mxu1 %vm16040_vm1, %v16039_v1  ;;  %v11594_v27 = vld [vmem:[%s25446_s0 + $0x1590] sm:$0xff] }
 0x575   :  { %15805 = vmatpush3.msra.mxu1 %v16014_v44  ;;  %v15116_v54 = vpop.f32.mrf.mxu1  ;;  %v6684_v57 = vpop.f32.mrf.mxu0  ;;  %15274 = vmatmul.mubr.msk.f32.gmra.mxu0 %vm78_vm0, %v11592_v21  ;;  %v16015_v44 = vld [vmem:[%s25447_s1 + $0x8] sm:$0xff] }
 0x576   :  { %15806 = vmatprep.subr.mxu1 %v16039_v1  ;;  %v22987_v58 = vmax.f32 %v26653_v11, %v6684_v57  ;;  %15276 = vmatprep.mubr.msk.f32.mxu0 %vm16040_vm1, %v16039_v1 }
 0x577   :  { %15624 = vmatpush3.msra.mxu0 %v16015_v44  ;;  %v22997_v21 = vpop.f32.mrf.mxu1  ;;  %15457 = vmatmul.mubr.msk.f32.gmra.mxu1 %vm78_vm0, %v11706_v16  ;;  %v14936_v54 = vpop.f32.mrf.mxu0  ;;  %v26654_v16 = vmax.f32 %v21786_v52, %v21796_v15  ;;  %v11708_v15 = vld [vmem:[%s25446_s0 + $0x1758] sm:$0xff] }
 0x578   :  { %15625 = vmatprep.subr.mxu0 %v16039_v1  ;;  %15459 = vmatprep.mubr.msk.f32.mxu1 %vm16040_vm1, %v16039_v1 }
 0x579   :  { %15807 = vmatpush3.msra.mxu1 %v16015_v44  ;;  %v15119_v57 = vpop.f32.mrf.mxu1  ;;  %v6689_v11 = vpop.f32.mrf.mxu0  ;;  %15277 = vmatmul.mubr.msk.f32.gmra.mxu0 %vm78_vm0, %v11593_v33  ;;  %v16016_v44 = vld [vmem:[%s25447_s1] sm:$0xff] }
 0x57a   :  { %15808 = vmatprep.subr.mxu1 %v16039_v1  ;;  %v23013_v54 = vmax.f32 %v26654_v16, %v6689_v11  ;;  %15279 = vmatprep.mubr.msk.f32.mxu0 %vm16040_vm1, %v16039_v1 }
 0x57b   :  { %15626 = vmatpush3.msra.mxu0 %v16016_v44  ;;  %v23023_v33 = vpop.f32.mrf.mxu1  ;;  %15460 = vmatmul.mubr.msk.f32.gmra.mxu1 %vm78_vm0, %v11707_v35  ;;  %v14939_v57 = vpop.f32.mrf.mxu0 }
 0x57c   :  { %15462 = vmatprep.mubr.msk.f32.mxu1 %vm16040_vm1, %v16039_v1  ;;  %15809 = vmatpush3.msra.mxu1 %v16016_v44  ;;  %v11595_v57 = vld [vmem:[%s25446_s0 + $0x1598] sm:$0xff] }
 0x57d   :  { %v15122_v11 = vpop.f32.mrf.mxu1  ;;  %v6694_v16 = vpop.f32.mrf.mxu0  ;;  %15280 = vmatmul.mubr.msk.f32.gmra.mxu0 %vm78_vm0, %v11594_v27 }
 0x57e   :  { %v23037_v35 = vmax.f32 %v26655_v61, %v6694_v16  ;;  %15282 = vmatprep.mubr.msk.f32.mxu0 %vm16040_vm1, %v16039_v1  ;;  %v26656_v11 = vmax.f32 %v21833_v51, %v21840_v62  ;;  %v11710_v51 = vld [vmem:[%s25446_s0 + $0x1768] sm:$0xff] }
 0x57f   :  { %v23044_v52 = vpop.f32.mrf.mxu1  ;;  %15463 = vmatmul.mubr.msk.f32.gmra.mxu1 %vm78_vm0, %v11708_v15  ;;  %v14942_v44 = vpop.f32.mrf.mxu0  ;;  %v11596_v15 = vld [vmem:[%s25446_s0 + $0x15a0] sm:$0xff] }
 0x580   :  { %15465 = vmatprep.mubr.msk.f32.mxu1 %vm16040_vm1, %v16039_v1 }
 0x581   :  { %v15125_v14 = vpop.f32.mrf.mxu1  ;;  %v6699_v61 = vpop.f32.mrf.mxu0  ;;  %15283 = vmatmul.mubr.msk.f32.gmra.mxu0 %vm78_vm0, %v11595_v57  ;;  %v26663_v57 = vld [vmem:[#allocation54_spill] sm:$0xff] }
 0x582   :  { %v23058_v16 = vmax.f32 %v26656_v11, %v6699_v61  ;;  %15285 = vmatprep.mubr.msk.f32.mxu0 %vm16040_vm1, %v16039_v1  ;;  %v26659_v11 = vmax.f32 %v21854_v30, %v21861_v28  ;;  %v11711_v30 = vld [vmem:[%s25446_s0 + $0x1770] sm:$0xff] }
 0x583   :  { %v23065_v44 = vpop.f32.mrf.mxu1  ;;  %15466 = vmatmul.mubr.msk.f32.gmra.mxu1 %vm78_vm0, %v11709_v37  ;;  %v14945_v14 = vpop.f32.mrf.mxu0  ;;  %v11597_v37 = vld [vmem:[%s25446_s0 + $0x15a8] sm:$0xff] }
 0x584   :  { %26657 = vst [vmem:[#allocation49_spill] sm:$0xff] %v23058_v16  ;;  %26658 = vst [vmem:[#allocation50_spill] sm:$0xff] %v23065_v44  ;;  %15468 = vmatprep.mubr.msk.f32.mxu1 %vm16040_vm1, %v16039_v1 }
 0x585   :  { %v15128_v62 = vpop.f32.mrf.mxu1  ;;  %v6704_v61 = vpop.f32.mrf.mxu0  ;;  %15286 = vmatmul.mubr.msk.f32.gmra.mxu0 %vm78_vm0, %v11596_v15  ;;  %v26668_v15 = vld [vmem:[#allocation56_spill] sm:$0xff] }
 0x586   :  { %v23079_v27 = vmax.f32 %v26659_v11, %v6704_v61  ;;  %15288 = vmatprep.mubr.msk.f32.mxu0 %vm16040_vm1, %v16039_v1  ;;  %v26662_v11 = vld [vmem:[#allocation53_spill] sm:$0xff] }
 0x587   :  { %v23086_v14 = vpop.f32.mrf.mxu1  ;;  %15469 = vmatmul.mubr.msk.f32.gmra.mxu1 %vm78_vm0, %v11710_v51  ;;  %v14948_v62 = vpop.f32.mrf.mxu0  ;;  %v26664_v44 = vmax.f32 %v26662_v11, %v26663_v57  ;;  %v11598_v51 = vld [vmem:[%s25446_s0 + $0x15b0] sm:$0xff]  ;;  %v26667_v11 = vld [vmem:[#allocation55_spill] sm:$0xff] }
 0x588   :  { %26660 = vst [vmem:[#allocation51_spill] sm:$0xff] %v23079_v27  ;;  %26661 = vst [vmem:[#allocation52_spill] sm:$0xff] %v23086_v14  ;;  %15471 = vmatprep.mubr.msk.f32.mxu1 %vm16040_vm1, %v16039_v1  ;;  %v26669_v14 = vmax.f32 %v26667_v11, %v26668_v15  ;;  %v26672_v11 = vld [vmem:[#allocation57_spill] sm:$0xff] }
 0x589   :  { %v15131_v28 = vpop.f32.mrf.mxu1  ;;  %v6709_v61 = vpop.f32.mrf.mxu0  ;;  %15289 = vmatmul.mubr.msk.f32.gmra.mxu0 %vm78_vm0, %v11597_v37  ;;  %v26673_v37 = vld [vmem:[#allocation58_spill] sm:$0xff] }
 0x58a   :  { %v23100_v16 = vmax.f32 %v26664_v44, %v6709_v61  ;;  %15291 = vmatprep.mubr.msk.f32.mxu0 %vm16040_vm1, %v16039_v1  ;;  %v11712_v44 = vld [vmem:[%s25446_s0 + $0x1778] sm:$0xff] }
 0x58b   :  { %v23107_v62 = vpop.f32.mrf.mxu1  ;;  %15472 = vmatmul.mubr.msk.f32.gmra.mxu1 %vm78_vm0, %v11711_v30  ;;  %v14951_v28 = vpop.f32.mrf.mxu0  ;;  %v11599_v30 = vld [vmem:[%s25446_s0 + $0x15b8] sm:$0xff] }
 0x58c   :  { %26665 = vst [vmem:[#allocation53_spill] sm:$0xff] %v23100_v16  ;;  %26666 = vst [vmem:[#allocation54_spill] sm:$0xff] %v23107_v62  ;;  %15474 = vmatprep.mubr.msk.f32.mxu1 %vm16040_vm1, %v16039_v1  ;;  %v26674_v62 = vmax.f32 %v26672_v11, %v26673_v37  ;;  %v26677_v11 = vld [vmem:[#allocation59_spill] sm:$0xff] }
 0x58d   :  { %v15134_v57 = vpop.f32.mrf.mxu1  ;;  %v6714_v61 = vpop.f32.mrf.mxu0  ;;  %15292 = vmatmul.mubr.msk.f32.gmra.mxu0 %vm78_vm0, %v11598_v51  ;;  %v26678_v51 = vld [vmem:[#allocation60_spill] sm:$0xff] }
 0x58e   :  { %v23121_v27 = vmax.f32 %v26669_v14, %v6714_v61  ;;  %15294 = vmatprep.mubr.msk.f32.mxu0 %vm16040_vm1, %v16039_v1  ;;  %v11713_v14 = vld [vmem:[%s25446_s0 + $0x1780] sm:$0xff] }
 0x58f   :  { %v23128_v28 = vpop.f32.mrf.mxu1  ;;  %15475 = vmatmul.mubr.msk.f32.gmra.mxu1 %vm78_vm0, %v11712_v44  ;;  %v14954_v57 = vpop.f32.mrf.mxu0  ;;  %v11600_v44 = vld [vmem:[%s25446_s0 + $0x15c0] sm:$0xff] }
 0x590   :  { %26670 = vst [vmem:[#allocation55_spill] sm:$0xff] %v23121_v27  ;;  %26671 = vst [vmem:[#allocation56_spill] sm:$0xff] %v23128_v28  ;;  %15477 = vmatprep.mubr.msk.f32.mxu1 %vm16040_vm1, %v16039_v1  ;;  %v26679_v28 = vmax.f32 %v26677_v11, %v26678_v51  ;;  %v26682_v11 = vld [vmem:[#allocation61_spill] sm:$0xff] }
 0x591   :  { %v15137_v15 = vpop.f32.mrf.mxu1  ;;  %v6719_v61 = vpop.f32.mrf.mxu0  ;;  %15295 = vmatmul.mubr.msk.f32.gmra.mxu0 %vm78_vm0, %v11599_v30  ;;  %v26683_v30 = vld [vmem:[#allocation62_spill] sm:$0xff] }
 0x592   :  { %v23142_v16 = vmax.f32 %v26674_v62, %v6719_v61  ;;  %15297 = vmatprep.mubr.msk.f32.mxu0 %vm16040_vm1, %v16039_v1  ;;  %v11714_v62 = vld [vmem:[%s25446_s0 + $0x1788] sm:$0xff] }
 0x593   :  { %v23149_v57 = vpop.f32.mrf.mxu1  ;;  %15478 = vmatmul.mubr.msk.f32.gmra.mxu1 %vm78_vm0, %v11713_v14  ;;  %v14957_v15 = vpop.f32.mrf.mxu0  ;;  %v11601_v14 = vld [vmem:[%s25446_s0 + $0x15c8] sm:$0xff] }
 0x594   :  { %26675 = vst [vmem:[#allocation57_spill] sm:$0xff] %v23142_v16  ;;  %26676 = vst [vmem:[#allocation58_spill] sm:$0xff] %v23149_v57  ;;  %15480 = vmatprep.mubr.msk.f32.mxu1 %vm16040_vm1, %v16039_v1  ;;  %v26684_v57 = vmax.f32 %v26682_v11, %v26683_v30  ;;  %v26687_v11 = vld [vmem:[#allocation63_spill] sm:$0xff] }
 0x595   :  { %v15140_v37 = vpop.f32.mrf.mxu1  ;;  %v6724_v61 = vpop.f32.mrf.mxu0  ;;  %15298 = vmatmul.mubr.msk.f32.gmra.mxu0 %vm78_vm0, %v11600_v44  ;;  %v26688_v44 = vld [vmem:[#allocation64_spill] sm:$0xff] }
 0x596   :  { %v23163_v27 = vmax.f32 %v26679_v28, %v6724_v61  ;;  %15300 = vmatprep.mubr.msk.f32.mxu0 %vm16040_vm1, %v16039_v1  ;;  %v11715_v28 = vld [vmem:[%s25446_s0 + $0x1790] sm:$0xff] }
 0x597   :  { %v23170_v15 = vpop.f32.mrf.mxu1  ;;  %15481 = vmatmul.mubr.msk.f32.gmra.mxu1 %vm78_vm0, %v11714_v62  ;;  %v14960_v37 = vpop.f32.mrf.mxu0  ;;  %v11602_v62 = vld [vmem:[%s25446_s0 + $0x15d0] sm:$0xff] }
 0x598   :  { %26680 = vst [vmem:[#allocation59_spill] sm:$0xff] %v23163_v27  ;;  %26681 = vst [vmem:[#allocation60_spill] sm:$0xff] %v23170_v15  ;;  %15483 = vmatprep.mubr.msk.f32.mxu1 %vm16040_vm1, %v16039_v1  ;;  %v26689_v15 = vmax.f32 %v26687_v11, %v26688_v44  ;;  %v26692_v11 = vld [vmem:[#allocation65_spill] sm:$0xff] }
 0x599   :  { %v15143_v51 = vpop.f32.mrf.mxu1  ;;  %v6729_v61 = vpop.f32.mrf.mxu0  ;;  %15301 = vmatmul.mubr.msk.f32.gmra.mxu0 %vm78_vm0, %v11601_v14  ;;  %v26693_v14 = vld [vmem:[#allocation66_spill] sm:$0xff] }
 0x59a   :  { %v23184_v16 = vmax.f32 %v26684_v57, %v6729_v61  ;;  %15303 = vmatprep.mubr.msk.f32.mxu0 %vm16040_vm1, %v16039_v1  ;;  %v11716_v57 = vld [vmem:[%s25446_s0 + $0x1798] sm:$0xff] }
 0x59b   :  { %v23191_v37 = vpop.f32.mrf.mxu1  ;;  %15484 = vmatmul.mubr.msk.f32.gmra.mxu1 %vm78_vm0, %v11715_v28  ;;  %v14963_v51 = vpop.f32.mrf.mxu0  ;;  %v11603_v28 = vld [vmem:[%s25446_s0 + $0x15d8] sm:$0xff] }
 0x59c   :  { %26685 = vst [vmem:[#allocation61_spill] sm:$0xff] %v23184_v16  ;;  %26686 = vst [vmem:[#allocation62_spill] sm:$0xff] %v23191_v37  ;;  %15486 = vmatprep.mubr.msk.f32.mxu1 %vm16040_vm1, %v16039_v1  ;;  %v26694_v37 = vmax.f32 %v26692_v11, %v26693_v14  ;;  %v26697_v11 = vld [vmem:[#allocation67_spill] sm:$0xff] }
 0x59d   :  { %v15146_v30 = vpop.f32.mrf.mxu1  ;;  %v6734_v61 = vpop.f32.mrf.mxu0  ;;  %15304 = vmatmul.mubr.msk.f32.gmra.mxu0 %vm78_vm0, %v11602_v62  ;;  %v26698_v62 = vld [vmem:[#allocation68_spill] sm:$0xff] }
 0x59e   :  { %v23205_v27 = vmax.f32 %v26689_v15, %v6734_v61  ;;  %15306 = vmatprep.mubr.msk.f32.mxu0 %vm16040_vm1, %v16039_v1  ;;  %v11717_v15 = vld [vmem:[%s25446_s0 + $0x17a0] sm:$0xff] }
 0x59f   :  { %v23212_v51 = vpop.f32.mrf.mxu1  ;;  %15487 = vmatmul.mubr.msk.f32.gmra.mxu1 %vm78_vm0, %v11716_v57  ;;  %v14966_v30 = vpop.f32.mrf.mxu0  ;;  %v11604_v57 = vld [vmem:[%s25446_s0 + $0x15e0] sm:$0xff] }
 0x5a0   :  { %26690 = vst [vmem:[#allocation63_spill] sm:$0xff] %v23205_v27  ;;  %26691 = vst [vmem:[#allocation64_spill] sm:$0xff] %v23212_v51  ;;  %15489 = vmatprep.mubr.msk.f32.mxu1 %vm16040_vm1, %v16039_v1  ;;  %v26699_v51 = vmax.f32 %v26697_v11, %v26698_v62  ;;  %v26702_v11 = vld [vmem:[#allocation5_spill] sm:$0xff] }
 0x5a1   :  { %v15149_v44 = vpop.f32.mrf.mxu1  ;;  %v6739_v61 = vpop.f32.mrf.mxu0  ;;  %15307 = vmatmul.mubr.msk.f32.gmra.mxu0 %vm78_vm0, %v11603_v28  ;;  %v26703_v28 = vld [vmem:[#allocation6_spill] sm:$0xff] }
 0x5a2   :  { %v23226_v16 = vmax.f32 %v26694_v37, %v6739_v61  ;;  %15309 = vmatprep.mubr.msk.f32.mxu0 %vm16040_vm1, %v16039_v1  ;;  %v11718_v37 = vld [vmem:[%s25446_s0 + $0x17a8] sm:$0xff] }
 0x5a3   :  { %v23233_v30 = vpop.f32.mrf.mxu1  ;;  %15490 = vmatmul.mubr.msk.f32.gmra.mxu1 %vm78_vm0, %v11717_v15  ;;  %v14969_v44 = vpop.f32.mrf.mxu0  ;;  %v11605_v15 = vld [vmem:[%s25446_s0 + $0x15e8] sm:$0xff] }
 0x5a4   :  { %26695 = vst [vmem:[#allocation65_spill] sm:$0xff] %v23226_v16  ;;  %26696 = vst [vmem:[#allocation66_spill] sm:$0xff] %v23233_v30  ;;  %15492 = vmatprep.mubr.msk.f32.mxu1 %vm16040_vm1, %v16039_v1  ;;  %v26704_v30 = vmax.f32 %v26702_v11, %v26703_v28  ;;  %v26707_v11 = vld [vmem:[#allocation7_spill] sm:$0xff] }
 0x5a5   :  { %v15152_v14 = vpop.f32.mrf.mxu1  ;;  %v6744_v61 = vpop.f32.mrf.mxu0  ;;  %15310 = vmatmul.mubr.msk.f32.gmra.mxu0 %vm78_vm0, %v11604_v57  ;;  %v26708_v57 = vld [vmem:[#allocation8_spill] sm:$0xff] }
 0x5a6   :  { %v23247_v27 = vmax.f32 %v26699_v51, %v6744_v61  ;;  %15312 = vmatprep.mubr.msk.f32.mxu0 %vm16040_vm1, %v16039_v1  ;;  %v11719_v51 = vld [vmem:[%s25446_s0 + $0x17b0] sm:$0xff] }
 0x5a7   :  { %v23254_v44 = vpop.f32.mrf.mxu1  ;;  %15493 = vmatmul.mubr.msk.f32.gmra.mxu1 %vm78_vm0, %v11718_v37  ;;  %v14972_v14 = vpop.f32.mrf.mxu0  ;;  %v11606_v37 = vld [vmem:[%s25446_s0 + $0x15f0] sm:$0xff] }
 0x5a8   :  { %26700 = vst [vmem:[#allocation67_spill] sm:$0xff] %v23247_v27  ;;  %26701 = vst [vmem:[#allocation68_spill] sm:$0xff] %v23254_v44  ;;  %15495 = vmatprep.mubr.msk.f32.mxu1 %vm16040_vm1, %v16039_v1  ;;  %v26709_v44 = vmax.f32 %v26707_v11, %v26708_v57  ;;  %v26712_v11 = vld [vmem:[#allocation9_spill] sm:$0xff] }
 0x5a9   :  { %v15155_v62 = vpop.f32.mrf.mxu1  ;;  %v6749_v61 = vpop.f32.mrf.mxu0  ;;  %15313 = vmatmul.mubr.msk.f32.gmra.mxu0 %vm78_vm0, %v11605_v15  ;;  %v26713_v15 = vld [vmem:[#allocation10_spill] sm:$0xff] }
 0x5aa   :  { %v23268_v16 = vmax.f32 %v26704_v30, %v6749_v61  ;;  %15315 = vmatprep.mubr.msk.f32.mxu0 %vm16040_vm1, %v16039_v1  ;;  %v11720_v30 = vld [vmem:[%s25446_s0 + $0x17b8] sm:$0xff] }
 0x5ab   :  { %v23275_v14 = vpop.f32.mrf.mxu1  ;;  %15496 = vmatmul.mubr.msk.f32.gmra.mxu1 %vm78_vm0, %v11719_v51  ;;  %v14975_v62 = vpop.f32.mrf.mxu0  ;;  %v11607_v51 = vld [vmem:[%s25446_s0 + $0x15f8] sm:$0xff] }
 0x5ac   :  { %26705 = vst [vmem:[#allocation5_spill] sm:$0xff] %v23268_v16  ;;  %26706 = vst [vmem:[#allocation6_spill] sm:$0xff] %v23275_v14  ;;  %15498 = vmatprep.mubr.msk.f32.mxu1 %vm16040_vm1, %v16039_v1  ;;  %v26714_v14 = vmax.f32 %v26712_v11, %v26713_v15  ;;  %v26717_v11 = vld [vmem:[#allocation11_spill] sm:$0xff] }
 0x5ad   :  { %v15158_v28 = vpop.f32.mrf.mxu1  ;;  %v6754_v61 = vpop.f32.mrf.mxu0  ;;  %15316 = vmatmul.mubr.msk.f32.gmra.mxu0 %vm78_vm0, %v11606_v37  ;;  %v26718_v37 = vld [vmem:[#allocation12_spill] sm:$0xff] }
 0x5ae   :  { %v23289_v27 = vmax.f32 %v26709_v44, %v6754_v61  ;;  %15318 = vmatprep.mubr.msk.f32.mxu0 %vm16040_vm1, %v16039_v1  ;;  %v11721_v44 = vld [vmem:[%s25446_s0 + $0x17c0] sm:$0xff] }
 0x5af   :  { %v23296_v62 = vpop.f32.mrf.mxu1  ;;  %15499 = vmatmul.mubr.msk.f32.gmra.mxu1 %vm78_vm0, %v11720_v30  ;;  %v14978_v28 = vpop.f32.mrf.mxu0  ;;  %v11608_v30 = vld [vmem:[%s25446_s0 + $0x1600] sm:$0xff] }
 0x5b0   :  { %26710 = vst [vmem:[#allocation7_spill] sm:$0xff] %v23289_v27  ;;  %26711 = vst [vmem:[#allocation8_spill] sm:$0xff] %v23296_v62  ;;  %15501 = vmatprep.mubr.msk.f32.mxu1 %vm16040_vm1, %v16039_v1  ;;  %v26719_v62 = vmax.f32 %v26717_v11, %v26718_v37  ;;  %v26722_v11 = vld [vmem:[#allocation13_spill] sm:$0xff] }
 0x5b1   :  { %v15161_v57 = vpop.f32.mrf.mxu1  ;;  %v6759_v61 = vpop.f32.mrf.mxu0  ;;  %15319 = vmatmul.mubr.msk.f32.gmra.mxu0 %vm78_vm0, %v11607_v51  ;;  %v26723_v51 = vld [vmem:[#allocation14_spill] sm:$0xff] }
 0x5b2   :  { %v23310_v16 = vmax.f32 %v26714_v14, %v6759_v61  ;;  %15321 = vmatprep.mubr.msk.f32.mxu0 %vm16040_vm1, %v16039_v1  ;;  %v11722_v14 = vld [vmem:[%s25446_s0 + $0x17c8] sm:$0xff] }
 0x5b3   :  { %v23317_v28 = vpop.f32.mrf.mxu1  ;;  %15502 = vmatmul.mubr.msk.f32.gmra.mxu1 %vm78_vm0, %v11721_v44  ;;  %v14981_v57 = vpop.f32.mrf.mxu0  ;;  %v11609_v44 = vld [vmem:[%s25446_s0 + $0x1608] sm:$0xff] }
 0x5b4   :  { %26715 = vst [vmem:[#allocation9_spill] sm:$0xff] %v23310_v16  ;;  %26716 = vst [vmem:[#allocation10_spill] sm:$0xff] %v23317_v28  ;;  %15504 = vmatprep.mubr.msk.f32.mxu1 %vm16040_vm1, %v16039_v1  ;;  %v26724_v28 = vmax.f32 %v26722_v11, %v26723_v51  ;;  %v26727_v11 = vld [vmem:[#allocation15_spill] sm:$0xff] }
 0x5b5   :  { %v15164_v15 = vpop.f32.mrf.mxu1  ;;  %v6764_v61 = vpop.f32.mrf.mxu0  ;;  %15322 = vmatmul.mubr.msk.f32.gmra.mxu0 %vm78_vm0, %v11608_v30  ;;  %v26728_v30 = vld [vmem:[#allocation16_spill] sm:$0xff] }
 0x5b6   :  { %v23331_v27 = vmax.f32 %v26719_v62, %v6764_v61  ;;  %15324 = vmatprep.mubr.msk.f32.mxu0 %vm16040_vm1, %v16039_v1  ;;  %v11723_v62 = vld [vmem:[%s25446_s0 + $0x17d0] sm:$0xff] }
 0x5b7   :  { %v23338_v57 = vpop.f32.mrf.mxu1  ;;  %15505 = vmatmul.mubr.msk.f32.gmra.mxu1 %vm78_vm0, %v11722_v14  ;;  %v14984_v15 = vpop.f32.mrf.mxu0  ;;  %v11610_v14 = vld [vmem:[%s25446_s0 + $0x1610] sm:$0xff] }
 0x5b8   :  { %26720 = vst [vmem:[#allocation11_spill] sm:$0xff] %v23331_v27  ;;  %26721 = vst [vmem:[#allocation12_spill] sm:$0xff] %v23338_v57  ;;  %15507 = vmatprep.mubr.msk.f32.mxu1 %vm16040_vm1, %v16039_v1  ;;  %v26729_v57 = vmax.f32 %v26727_v11, %v26728_v30  ;;  %v26732_v11 = vld [vmem:[#allocation17_spill] sm:$0xff] }
 0x5b9   :  { %v15167_v37 = vpop.f32.mrf.mxu1  ;;  %v6769_v61 = vpop.f32.mrf.mxu0  ;;  %15325 = vmatmul.mubr.msk.f32.gmra.mxu0 %vm78_vm0, %v11609_v44  ;;  %v26733_v44 = vld [vmem:[#allocation18_spill] sm:$0xff] }
 0x5ba   :  { %v23352_v16 = vmax.f32 %v26724_v28, %v6769_v61  ;;  %15327 = vmatprep.mubr.msk.f32.mxu0 %vm16040_vm1, %v16039_v1  ;;  %v11724_v28 = vld [vmem:[%s25446_s0 + $0x17d8] sm:$0xff] }
 0x5bb   :  { %v23359_v15 = vpop.f32.mrf.mxu1  ;;  %15508 = vmatmul.mubr.msk.f32.gmra.mxu1 %vm78_vm0, %v11723_v62  ;;  %v14987_v37 = vpop.f32.mrf.mxu0  ;;  %v11611_v62 = vld [vmem:[%s25446_s0 + $0x1618] sm:$0xff] }
 0x5bc   :  { %26725 = vst [vmem:[#allocation13_spill] sm:$0xff] %v23352_v16  ;;  %26726 = vst [vmem:[#allocation14_spill] sm:$0xff] %v23359_v15  ;;  %15510 = vmatprep.mubr.msk.f32.mxu1 %vm16040_vm1, %v16039_v1  ;;  %v26734_v15 = vmax.f32 %v26732_v11, %v26733_v44  ;;  %v26737_v11 = vld [vmem:[#allocation19_spill] sm:$0xff] }
 0x5bd   :  { %v15170_v51 = vpop.f32.mrf.mxu1  ;;  %v6774_v61 = vpop.f32.mrf.mxu0  ;;  %15328 = vmatmul.mubr.msk.f32.gmra.mxu0 %vm78_vm0, %v11610_v14  ;;  %v26738_v14 = vld [vmem:[#allocation20_spill] sm:$0xff] }
 0x5be   :  { %v23373_v27 = vmax.f32 %v26729_v57, %v6774_v61  ;;  %15330 = vmatprep.mubr.msk.f32.mxu0 %vm16040_vm1, %v16039_v1  ;;  %v11725_v57 = vld [vmem:[%s25446_s0 + $0x17e0] sm:$0xff] }
 0x5bf   :  { %v23380_v37 = vpop.f32.mrf.mxu1  ;;  %15511 = vmatmul.mubr.msk.f32.gmra.mxu1 %vm78_vm0, %v11724_v28  ;;  %v14990_v51 = vpop.f32.mrf.mxu0  ;;  %v11612_v28 = vld [vmem:[%s25446_s0 + $0x1620] sm:$0xff] }
 0x5c0   :  { %26730 = vst [vmem:[#allocation15_spill] sm:$0xff] %v23373_v27  ;;  %26731 = vst [vmem:[#allocation16_spill] sm:$0xff] %v23380_v37  ;;  %15513 = vmatprep.mubr.msk.f32.mxu1 %vm16040_vm1, %v16039_v1  ;;  %v26739_v37 = vmax.f32 %v26737_v11, %v26738_v14  ;;  %v26742_v11 = vld [vmem:[#allocation21_spill] sm:$0xff] }
 0x5c1   :  { %v15173_v30 = vpop.f32.mrf.mxu1  ;;  %v6779_v61 = vpop.f32.mrf.mxu0  ;;  %15331 = vmatmul.mubr.msk.f32.gmra.mxu0 %vm78_vm0, %v11611_v62  ;;  %v26743_v62 = vld [vmem:[#allocation22_spill] sm:$0xff] }
 0x5c2   :  { %v23394_v16 = vmax.f32 %v26734_v15, %v6779_v61  ;;  %15333 = vmatprep.mubr.msk.f32.mxu0 %vm16040_vm1, %v16039_v1  ;;  %v11726_v15 = vld [vmem:[%s25446_s0 + $0x17e8] sm:$0xff] }
 0x5c3   :  { %v23401_v51 = vpop.f32.mrf.mxu1  ;;  %15514 = vmatmul.mubr.msk.f32.gmra.mxu1 %vm78_vm0, %v11725_v57  ;;  %v14993_v30 = vpop.f32.mrf.mxu0  ;;  %v11613_v57 = vld [vmem:[%s25446_s0 + $0x1628] sm:$0xff] }
 0x5c4   :  { %26735 = vst [vmem:[#allocation17_spill] sm:$0xff] %v23394_v16  ;;  %26736 = vst [vmem:[#allocation18_spill] sm:$0xff] %v23401_v51  ;;  %15516 = vmatprep.mubr.msk.f32.mxu1 %vm16040_vm1, %v16039_v1  ;;  %v26744_v51 = vmax.f32 %v26742_v11, %v26743_v62  ;;  %v26747_v11 = vld [vmem:[#allocation23_spill] sm:$0xff] }
 0x5c5   :  { %v15176_v44 = vpop.f32.mrf.mxu1  ;;  %v6784_v61 = vpop.f32.mrf.mxu0  ;;  %15334 = vmatmul.mubr.msk.f32.gmra.mxu0 %vm78_vm0, %v11612_v28  ;;  %v26748_v28 = vld [vmem:[#allocation24_spill] sm:$0xff] }
 0x5c6   :  { %v23415_v27 = vmax.f32 %v26739_v37, %v6784_v61  ;;  %15336 = vmatprep.mubr.msk.f32.mxu0 %vm16040_vm1, %v16039_v1  ;;  %v11727_v37 = vld [vmem:[%s25446_s0 + $0x17f0] sm:$0xff] }
 0x5c7   :  { %v23422_v30 = vpop.f32.mrf.mxu1  ;;  %15517 = vmatmul.mubr.msk.f32.gmra.mxu1 %vm78_vm0, %v11726_v15  ;;  %v14996_v44 = vpop.f32.mrf.mxu0  ;;  %v11614_v15 = vld [vmem:[%s25446_s0 + $0x1630] sm:$0xff] }
 0x5c8   :  { %26740 = vst [vmem:[#allocation19_spill] sm:$0xff] %v23415_v27  ;;  %26741 = vst [vmem:[#allocation20_spill] sm:$0xff] %v23422_v30  ;;  %15519 = vmatprep.mubr.msk.f32.mxu1 %vm16040_vm1, %v16039_v1  ;;  %v26749_v30 = vmax.f32 %v26747_v11, %v26748_v28  ;;  %v26752_v11 = vld [vmem:[#allocation25_spill] sm:$0xff] }
 0x5c9   :  { %v15179_v14 = vpop.f32.mrf.mxu1  ;;  %v6789_v61 = vpop.f32.mrf.mxu0  ;;  %15337 = vmatmul.mubr.msk.f32.gmra.mxu0 %vm78_vm0, %v11613_v57  ;;  %v26753_v57 = vld [vmem:[#allocation26_spill] sm:$0xff] }
 0x5ca   :  { %v23436_v16 = vmax.f32 %v26744_v51, %v6789_v61  ;;  %15339 = vmatprep.mubr.msk.f32.mxu0 %vm16040_vm1, %v16039_v1  ;;  %v11728_v51 = vld [vmem:[%s25446_s0 + $0x17f8] sm:$0xff] }
 0x5cb   :  { %v23443_v44 = vpop.f32.mrf.mxu1  ;;  %15520 = vmatmul.mubr.msk.f32.gmra.mxu1 %vm78_vm0, %v11727_v37  ;;  %v14999_v14 = vpop.f32.mrf.mxu0  ;;  %v11615_v37 = vld [vmem:[%s25446_s0 + $0x1638] sm:$0xff] }
 0x5cc   :  { %26745 = vst [vmem:[#allocation21_spill] sm:$0xff] %v23436_v16  ;;  %26746 = vst [vmem:[#allocation22_spill] sm:$0xff] %v23443_v44  ;;  %15522 = vmatprep.mubr.msk.f32.mxu1 %vm16040_vm1, %v16039_v1  ;;  %v26754_v44 = vmax.f32 %v26752_v11, %v26753_v57  ;;  %v26757_v11 = vld [vmem:[#allocation27_spill] sm:$0xff] }
 0x5cd   :  { %v15182_v62 = vpop.f32.mrf.mxu1  ;;  %v6794_v61 = vpop.f32.mrf.mxu0  ;;  %15340 = vmatmul.mubr.msk.f32.gmra.mxu0 %vm78_vm0, %v11614_v15  ;;  %v26758_v15 = vld [vmem:[#allocation28_spill] sm:$0xff] }
 0x5ce   :  { %v23457_v27 = vmax.f32 %v26749_v30, %v6794_v61  ;;  %15342 = vmatprep.mubr.msk.f32.mxu0 %vm16040_vm1, %v16039_v1  ;;  %v11729_v30 = vld [vmem:[%s25446_s0 + $0x1800] sm:$0xff] }
 0x5cf   :  { %v23464_v14 = vpop.f32.mrf.mxu1  ;;  %15523 = vmatmul.mubr.msk.f32.gmra.mxu1 %vm78_vm0, %v11728_v51  ;;  %v15002_v62 = vpop.f32.mrf.mxu0  ;;  %v11616_v51 = vld [vmem:[%s25446_s0 + $0x1640] sm:$0xff] }
 0x5d0   :  { %26750 = vst [vmem:[#allocation23_spill] sm:$0xff] %v23457_v27  ;;  %26751 = vst [vmem:[#allocation24_spill] sm:$0xff] %v23464_v14  ;;  %15525 = vmatprep.mubr.msk.f32.mxu1 %vm16040_vm1, %v16039_v1  ;;  %v26759_v14 = vmax.f32 %v26757_v11, %v26758_v15  ;;  %v26762_v11 = vld [vmem:[#allocation29_spill] sm:$0xff] }
 0x5d1   :  { %v15185_v28 = vpop.f32.mrf.mxu1  ;;  %v6799_v61 = vpop.f32.mrf.mxu0  ;;  %15343 = vmatmul.mubr.msk.f32.gmra.mxu0 %vm78_vm0, %v11615_v37  ;;  %v26763_v37 = vld [vmem:[#allocation30_spill] sm:$0xff] }
 0x5d2   :  { %v23478_v16 = vmax.f32 %v26754_v44, %v6799_v61  ;;  %15345 = vmatprep.mubr.msk.f32.mxu0 %vm16040_vm1, %v16039_v1  ;;  %v11730_v44 = vld [vmem:[%s25446_s0 + $0x1808] sm:$0xff] }
 0x5d3   :  { %v23485_v62 = vpop.f32.mrf.mxu1  ;;  %15526 = vmatmul.mubr.msk.f32.gmra.mxu1 %vm78_vm0, %v11729_v30  ;;  %v15005_v28 = vpop.f32.mrf.mxu0  ;;  %v11617_v30 = vld [vmem:[%s25446_s0 + $0x1648] sm:$0xff] }
 0x5d4   :  { %26755 = vst [vmem:[#allocation25_spill] sm:$0xff] %v23478_v16  ;;  %26756 = vst [vmem:[#allocation26_spill] sm:$0xff] %v23485_v62  ;;  %15528 = vmatprep.mubr.msk.f32.mxu1 %vm16040_vm1, %v16039_v1  ;;  %v26764_v62 = vmax.f32 %v26762_v11, %v26763_v37  ;;  %v26767_v11 = vld [vmem:[#allocation31_spill] sm:$0xff] }
 0x5d5   :  { %v15188_v57 = vpop.f32.mrf.mxu1  ;;  %v6804_v61 = vpop.f32.mrf.mxu0  ;;  %15346 = vmatmul.mubr.msk.f32.gmra.mxu0 %vm78_vm0, %v11616_v51  ;;  %v26768_v51 = vld [vmem:[#allocation32_spill] sm:$0xff] }
 0x5d6   :  { %v23499_v27 = vmax.f32 %v26759_v14, %v6804_v61  ;;  %15348 = vmatprep.mubr.msk.f32.mxu0 %vm16040_vm1, %v16039_v1  ;;  %v11731_v14 = vld [vmem:[%s25446_s0 + $0x1810] sm:$0xff] }
 0x5d7   :  { %v23506_v28 = vpop.f32.mrf.mxu1  ;;  %15529 = vmatmul.mubr.msk.f32.gmra.mxu1 %vm78_vm0, %v11730_v44  ;;  %v15008_v57 = vpop.f32.mrf.mxu0  ;;  %v11618_v44 = vld [vmem:[%s25446_s0 + $0x1650] sm:$0xff] }
 0x5d8   :  { %26760 = vst [vmem:[#allocation27_spill] sm:$0xff] %v23499_v27  ;;  %26761 = vst [vmem:[#allocation28_spill] sm:$0xff] %v23506_v28  ;;  %15531 = vmatprep.mubr.msk.f32.mxu1 %vm16040_vm1, %v16039_v1  ;;  %v26769_v28 = vmax.f32 %v26767_v11, %v26768_v51  ;;  %v26772_v11 = vld [vmem:[#allocation33_spill] sm:$0xff] }
 0x5d9   :  { %v15191_v15 = vpop.f32.mrf.mxu1  ;;  %v6809_v61 = vpop.f32.mrf.mxu0  ;;  %15349 = vmatmul.mubr.msk.f32.gmra.mxu0 %vm78_vm0, %v11617_v30  ;;  %v26773_v30 = vld [vmem:[#allocation34_spill] sm:$0xff] }
 0x5da   :  { %v23520_v16 = vmax.f32 %v26764_v62, %v6809_v61  ;;  %15351 = vmatprep.mubr.msk.f32.mxu0 %vm16040_vm1, %v16039_v1  ;;  %v11732_v62 = vld [vmem:[%s25446_s0 + $0x1818] sm:$0xff] }
 0x5db   :  { %v23527_v57 = vpop.f32.mrf.mxu1  ;;  %15532 = vmatmul.mubr.msk.f32.gmra.mxu1 %vm78_vm0, %v11731_v14  ;;  %v15011_v15 = vpop.f32.mrf.mxu0  ;;  %v11619_v14 = vld [vmem:[%s25446_s0 + $0x1658] sm:$0xff] }
 0x5dc   :  { %26765 = vst [vmem:[#allocation29_spill] sm:$0xff] %v23520_v16  ;;  %26766 = vst [vmem:[#allocation30_spill] sm:$0xff] %v23527_v57  ;;  %15534 = vmatprep.mubr.msk.f32.mxu1 %vm16040_vm1, %v16039_v1  ;;  %v26774_v57 = vmax.f32 %v26772_v11, %v26773_v30  ;;  %v26777_v11 = vld [vmem:[#allocation35_spill] sm:$0xff] }
 0x5dd   :  { %v15194_v37 = vpop.f32.mrf.mxu1  ;;  %v6814_v61 = vpop.f32.mrf.mxu0  ;;  %15352 = vmatmul.mubr.msk.f32.gmra.mxu0 %vm78_vm0, %v11618_v44  ;;  %v26778_v44 = vld [vmem:[#allocation36_spill] sm:$0xff] }
 0x5de   :  { %v23541_v27 = vmax.f32 %v26769_v28, %v6814_v61  ;;  %15354 = vmatprep.mubr.msk.f32.mxu0 %vm16040_vm1, %v16039_v1  ;;  %v11733_v28 = vld [vmem:[%s25446_s0 + $0x1820] sm:$0xff] }
 0x5df   :  { %v23548_v15 = vpop.f32.mrf.mxu1  ;;  %15535 = vmatmul.mubr.msk.f32.gmra.mxu1 %vm78_vm0, %v11732_v62  ;;  %v15014_v37 = vpop.f32.mrf.mxu0  ;;  %v11620_v62 = vld [vmem:[%s25446_s0 + $0x1660] sm:$0xff] }
 0x5e0   :  { %26770 = vst [vmem:[#allocation31_spill] sm:$0xff] %v23541_v27  ;;  %26771 = vst [vmem:[#allocation32_spill] sm:$0xff] %v23548_v15  ;;  %15537 = vmatprep.mubr.msk.f32.mxu1 %vm16040_vm1, %v16039_v1  ;;  %v26779_v15 = vmax.f32 %v26777_v11, %v26778_v44  ;;  %v26782_v11 = vld [vmem:[#allocation37_spill] sm:$0xff] }
 0x5e1   :  { %v15197_v51 = vpop.f32.mrf.mxu1  ;;  %v6819_v61 = vpop.f32.mrf.mxu0  ;;  %15355 = vmatmul.mubr.msk.f32.gmra.mxu0 %vm78_vm0, %v11619_v14  ;;  %v26783_v14 = vld [vmem:[#allocation38_spill] sm:$0xff] }
 0x5e2   :  { %v23562_v16 = vmax.f32 %v26774_v57, %v6819_v61  ;;  %15357 = vmatprep.mubr.msk.f32.mxu0 %vm16040_vm1, %v16039_v1  ;;  %v11734_v57 = vld [vmem:[%s25446_s0 + $0x1828] sm:$0xff] }
 0x5e3   :  { %v23569_v37 = vpop.f32.mrf.mxu1  ;;  %15538 = vmatmul.mubr.msk.f32.gmra.mxu1 %vm78_vm0, %v11733_v28  ;;  %v15017_v51 = vpop.f32.mrf.mxu0  ;;  %v11621_v28 = vld [vmem:[%s25446_s0 + $0x1668] sm:$0xff] }
 0x5e4   :  { %26775 = vst [vmem:[#allocation33_spill] sm:$0xff] %v23562_v16  ;;  %26776 = vst [vmem:[#allocation34_spill] sm:$0xff] %v23569_v37  ;;  %15540 = vmatprep.mubr.msk.f32.mxu1 %vm16040_vm1, %v16039_v1  ;;  %v26784_v37 = vmax.f32 %v26782_v11, %v26783_v14  ;;  %v26787_v11 = vld [vmem:[#allocation39_spill] sm:$0xff] }
 0x5e5   :  { %v15200_v30 = vpop.f32.mrf.mxu1  ;;  %v6824_v61 = vpop.f32.mrf.mxu0  ;;  %15358 = vmatmul.mubr.msk.f32.gmra.mxu0 %vm78_vm0, %v11620_v62  ;;  %v26788_v62 = vld [vmem:[#allocation40_spill] sm:$0xff] }
 0x5e6   :  { %v23583_v27 = vmax.f32 %v26779_v15, %v6824_v61  ;;  %15360 = vmatprep.mubr.msk.f32.mxu0 %vm16040_vm1, %v16039_v1  ;;  %v11735_v15 = vld [vmem:[%s25446_s0 + $0x1830] sm:$0xff] }
 0x5e7   :  { %v23590_v51 = vpop.f32.mrf.mxu1  ;;  %15541 = vmatmul.mubr.msk.f32.gmra.mxu1 %vm78_vm0, %v11734_v57  ;;  %v15020_v30 = vpop.f32.mrf.mxu0  ;;  %v11622_v57 = vld [vmem:[%s25446_s0 + $0x1670] sm:$0xff] }
 0x5e8   :  { %26780 = vst [vmem:[#allocation35_spill] sm:$0xff] %v23583_v27  ;;  %26781 = vst [vmem:[#allocation36_spill] sm:$0xff] %v23590_v51  ;;  %15543 = vmatprep.mubr.msk.f32.mxu1 %vm16040_vm1, %v16039_v1  ;;  %v26789_v51 = vmax.f32 %v26787_v11, %v26788_v62  ;;  %v26792_v11 = vld [vmem:[#allocation41_spill] sm:$0xff] }
 0x5e9   :  { %v15203_v44 = vpop.f32.mrf.mxu1  ;;  %v6829_v61 = vpop.f32.mrf.mxu0  ;;  %15361 = vmatmul.mubr.msk.f32.gmra.mxu0 %vm78_vm0, %v11621_v28  ;;  %v26793_v28 = vld [vmem:[#allocation42_spill] sm:$0xff] }
 0x5ea   :  { %v23604_v16 = vmax.f32 %v26784_v37, %v6829_v61  ;;  %15363 = vmatprep.mubr.msk.f32.mxu0 %vm16040_vm1, %v16039_v1  ;;  %v11736_v37 = vld [vmem:[%s25446_s0 + $0x1838] sm:$0xff] }
 0x5eb   :  { %v23611_v30 = vpop.f32.mrf.mxu1  ;;  %15544 = vmatmul.mubr.msk.f32.gmra.mxu1 %vm78_vm0, %v11735_v15  ;;  %v15023_v44 = vpop.f32.mrf.mxu0  ;;  %v11623_v15 = vld [vmem:[%s25446_s0 + $0x1678] sm:$0xff] }
 0x5ec   :  { %26785 = vst [vmem:[#allocation37_spill] sm:$0xff] %v23604_v16  ;;  %26786 = vst [vmem:[#allocation38_spill] sm:$0xff] %v23611_v30  ;;  %15546 = vmatprep.mubr.msk.f32.mxu1 %vm16040_vm1, %v16039_v1  ;;  %v26794_v30 = vmax.f32 %v26792_v11, %v26793_v28  ;;  %v26797_v11 = vld [vmem:[#allocation43_spill] sm:$0xff] }
 0x5ed   :  { %v15206_v14 = vpop.f32.mrf.mxu1  ;;  %v6834_v61 = vpop.f32.mrf.mxu0  ;;  %15364 = vmatmul.mubr.msk.f32.gmra.mxu0 %vm78_vm0, %v11622_v57  ;;  %v26798_v57 = vld [vmem:[#allocation44_spill] sm:$0xff] }
 0x5ee   :  { %v23625_v27 = vmax.f32 %v26789_v51, %v6834_v61  ;;  %15366 = vmatprep.mubr.msk.f32.mxu0 %vm16040_vm1, %v16039_v1  ;;  %v11737_v51 = vld [vmem:[%s25446_s0 + $0x1840] sm:$0xff] }
 0x5ef   :  { %v23632_v44 = vpop.f32.mrf.mxu1  ;;  %15547 = vmatmul.mubr.msk.f32.gmra.mxu1 %vm78_vm0, %v11736_v37  ;;  %v15026_v14 = vpop.f32.mrf.mxu0  ;;  %v11624_v37 = vld [vmem:[%s25446_s0 + $0x1680] sm:$0xff] }
 0x5f0   :  { %26790 = vst [vmem:[#allocation39_spill] sm:$0xff] %v23625_v27  ;;  %26791 = vst [vmem:[#allocation40_spill] sm:$0xff] %v23632_v44  ;;  %15549 = vmatprep.mubr.msk.f32.mxu1 %vm16040_vm1, %v16039_v1  ;;  %v26799_v44 = vmax.f32 %v26797_v11, %v26798_v57  ;;  %v26802_v11 = vld [vmem:[#allocation45_spill] sm:$0xff] }
 0x5f1   :  { %v15209_v62 = vpop.f32.mrf.mxu1  ;;  %v6839_v61 = vpop.f32.mrf.mxu0  ;;  %15367 = vmatmul.mubr.msk.f32.gmra.mxu0 %vm78_vm0, %v11623_v15  ;;  %v26803_v15 = vld [vmem:[#allocation46_spill] sm:$0xff] }
 0x5f2   :  { %v23646_v16 = vmax.f32 %v26794_v30, %v6839_v61  ;;  %15369 = vmatprep.mubr.msk.f32.mxu0 %vm16040_vm1, %v16039_v1  ;;  %v11738_v30 = vld [vmem:[%s25446_s0 + $0x1848] sm:$0xff] }
 0x5f3   :  { %v23653_v14 = vpop.f32.mrf.mxu1  ;;  %15550 = vmatmul.mubr.msk.f32.gmra.mxu1 %vm78_vm0, %v11737_v51  ;;  %v15029_v62 = vpop.f32.mrf.mxu0  ;;  %v11625_v51 = vld [vmem:[%s25446_s0 + $0x1688] sm:$0xff] }
 0x5f4   :  { %26795 = vst [vmem:[#allocation41_spill] sm:$0xff] %v23646_v16  ;;  %26796 = vst [vmem:[#allocation42_spill] sm:$0xff] %v23653_v14  ;;  %15552 = vmatprep.mubr.msk.f32.mxu1 %vm16040_vm1, %v16039_v1  ;;  %v26804_v14 = vmax.f32 %v26802_v11, %v26803_v15  ;;  %v26805_v11 = vld [vmem:[#allocation47_spill] sm:$0xff] }
 0x5f5   :  { %v15212_v28 = vpop.f32.mrf.mxu1  ;;  %v6844_v61 = vpop.f32.mrf.mxu0  ;;  %15370 = vmatmul.mubr.msk.f32.gmra.mxu0 %vm78_vm0, %v11624_v37  ;;  %v26806_v37 = vld [vmem:[#allocation48_spill] sm:$0xff] }
 0x5f6   :  { %v23667_v27 = vmax.f32 %v26799_v44, %v6844_v61  ;;  %15372 = vmatprep.mubr.msk.f32.mxu0 %vm16040_vm1, %v16039_v1  ;;  %v11739_v44 = vld [vmem:[%s25446_s0 + $0x1850] sm:$0xff] }
 0x5f7   :  { %v23674_v62 = vpop.f32.mrf.mxu1  ;;  %15553 = vmatmul.mubr.msk.f32.gmra.mxu1 %vm78_vm0, %v11738_v30  ;;  %v15032_v28 = vpop.f32.mrf.mxu0  ;;  %v11626_v30 = vld [vmem:[%s25446_s0 + $0x1690] sm:$0xff] }
 0x5f8   :  { %26800 = vst [vmem:[#allocation43_spill] sm:$0xff] %v23667_v27  ;;  %26801 = vst [vmem:[#allocation44_spill] sm:$0xff] %v23674_v62  ;;  %15555 = vmatprep.mubr.msk.f32.mxu1 %vm16040_vm1, %v16039_v1  ;;  %v26807_v62 = vmax.f32 %v26805_v11, %v26806_v37  ;;  %v26808_v11 = vmax.f32 %v22505_v10, %v22512_v17  ;;  %v11742_v10 = vld [vmem:[%s25446_s0 + $0x1868] sm:$0xff] }
 0x5f9   :  { %v15215_v57 = vpop.f32.mrf.mxu1  ;;  %v6849_v61 = vpop.f32.mrf.mxu0  ;;  %15373 = vmatmul.mubr.msk.f32.gmra.mxu0 %vm78_vm0, %v11625_v51 }
 0x5fa   :  { %v23688_v16 = vmax.f32 %v26804_v14, %v6849_v61  ;;  %15375 = vmatprep.mubr.msk.f32.mxu0 %vm16040_vm1, %v16039_v1  ;;  %v11740_v14 = vld [vmem:[%s25446_s0 + $0x1858] sm:$0xff] }
 0x5fb   :  { %v23695_v28 = vpop.f32.mrf.mxu1  ;;  %15556 = vmatmul.mubr.msk.f32.gmra.mxu1 %vm78_vm0, %v11739_v44  ;;  %v15035_v57 = vpop.f32.mrf.mxu0  ;;  %v11627_v44 = vld [vmem:[%s25446_s0 + $0x1698] sm:$0xff] }
 0x5fc   :  { %15558 = vmatprep.mubr.msk.f32.mxu1 %vm16040_vm1, %v16039_v1 }
 0x5fd   :  { %v15218_v15 = vpop.f32.mrf.mxu1  ;;  %v6854_v61 = vpop.f32.mrf.mxu0  ;;  %15376 = vmatmul.mubr.msk.f32.gmra.mxu0 %vm78_vm0, %v11626_v30 }
 0x5fe   :  { %v23709_v27 = vmax.f32 %v26807_v62, %v6854_v61  ;;  %15378 = vmatprep.mubr.msk.f32.mxu0 %vm16040_vm1, %v16039_v1  ;;  %v11741_v62 = vld [vmem:[%s25446_s0 + $0x1860] sm:$0xff] }
 0x5ff   :  { %v23716_v57 = vpop.f32.mrf.mxu1  ;;  %15559 = vmatmul.mubr.msk.f32.gmra.mxu1 %vm78_vm0, %v11740_v14  ;;  %v15038_v15 = vpop.f32.mrf.mxu0  ;;  %v11628_v14 = vld [vmem:[%s25446_s0 + $0x16a0] sm:$0xff] }
 0x600   :  { %15561 = vmatprep.mubr.msk.f32.mxu1 %vm16040_vm1, %v16039_v1 }
 0x601   :  { %v15221_v37 = vpop.f32.mrf.mxu1  ;;  %v6859_v61 = vpop.f32.mrf.mxu0  ;;  %15379 = vmatmul.mubr.msk.f32.gmra.mxu0 %vm78_vm0, %v11627_v44 }
 0x602   :  { %v23730_v51 = vmax.f32 %v26808_v11, %v6859_v61  ;;  %15381 = vmatprep.mubr.msk.f32.mxu0 %vm16040_vm1, %v16039_v1  ;;  %v26809_v11 = vmax.f32 %v22526_v39, %v22533_v23  ;;  %v11743_v39 = vld [vmem:[%s25446_s0 + $0x1870] sm:$0xff] }
 0x603   :  { %v23737_v15 = vpop.f32.mrf.mxu1  ;;  %15562 = vmatmul.mubr.msk.f32.gmra.mxu1 %vm78_vm0, %v11741_v62  ;;  %v15041_v37 = vpop.f32.mrf.mxu0  ;;  %v11629_v62 = vld [vmem:[%s25446_s0 + $0x16a8] sm:$0xff] }
 0x604   :  { %15564 = vmatprep.mubr.msk.f32.mxu1 %vm16040_vm1, %v16039_v1 }
 0x605   :  { %v15224_v17 = vpop.f32.mrf.mxu1  ;;  %v6864_v61 = vpop.f32.mrf.mxu0  ;;  %15382 = vmatmul.mubr.msk.f32.gmra.mxu0 %vm78_vm0, %v11628_v14 }
 0x606   :  { %v23751_v30 = vmax.f32 %v26809_v11, %v6864_v61  ;;  %15384 = vmatprep.mubr.msk.f32.mxu0 %vm16040_vm1, %v16039_v1  ;;  %v26810_v11 = vmax.f32 %v22547_v19, %v22554_v63  ;;  %v11744_v19 = vld [vmem:[%s25446_s0 + $0x1878] sm:$0xff] }
 0x607   :  { %v23758_v37 = vpop.f32.mrf.mxu1  ;;  %15565 = vmatmul.mubr.msk.f32.gmra.mxu1 %vm78_vm0, %v11742_v10  ;;  %v15044_v17 = vpop.f32.mrf.mxu0  ;;  %v11630_v10 = vld [vmem:[%s25446_s0 + $0x16b0] sm:$0xff] }
 0x608   :  { %15567 = vmatprep.mubr.msk.f32.mxu1 %vm16040_vm1, %v16039_v1 }
 0x609   :  { %v15227_v23 = vpop.f32.mrf.mxu1  ;;  %v6869_v61 = vpop.f32.mrf.mxu0  ;;  %15385 = vmatmul.mubr.msk.f32.gmra.mxu0 %vm78_vm0, %v11629_v62 }
 0x60a   :  { %v23772_v44 = vmax.f32 %v26810_v11, %v6869_v61  ;;  %15387 = vmatprep.mubr.msk.f32.mxu0 %vm16040_vm1, %v16039_v1  ;;  %v26811_v11 = vmax.f32 %v22568_v56, %v22575_v12  ;;  %v11745_v56 = vld [vmem:[%s25446_s0 + $0x1880] sm:$0xff] }
 0x60b   :  { %v23779_v17 = vpop.f32.mrf.mxu1  ;;  %15568 = vmatmul.mubr.msk.f32.gmra.mxu1 %vm78_vm0, %v11743_v39  ;;  %v15047_v23 = vpop.f32.mrf.mxu0  ;;  %v11631_v39 = vld [vmem:[%s25446_s0 + $0x16b8] sm:$0xff] }
 0x60c   :  { %15570 = vmatprep.mubr.msk.f32.mxu1 %vm16040_vm1, %v16039_v1 }
 0x60d   :  { %v15230_v63 = vpop.f32.mrf.mxu1  ;;  %v6874_v61 = vpop.f32.mrf.mxu0  ;;  %15388 = vmatmul.mubr.msk.f32.gmra.mxu0 %vm78_vm0, %v11630_v10 }
 0x60e   :  { %v23793_v14 = vmax.f32 %v26811_v11, %v6874_v61  ;;  %15390 = vmatprep.mubr.msk.f32.mxu0 %vm16040_vm1, %v16039_v1  ;;  %v26812_v11 = vmax.f32 %v22589_v40, %v22596_v6  ;;  %v11746_v40 = vld [vmem:[%s25446_s0 + $0x1888] sm:$0xff] }
 0x60f   :  { %v23800_v23 = vpop.f32.mrf.mxu1  ;;  %15571 = vmatmul.mubr.msk.f32.gmra.mxu1 %vm78_vm0, %v11744_v19  ;;  %v15050_v63 = vpop.f32.mrf.mxu0  ;;  %v11632_v19 = vld [vmem:[%s25446_s0 + $0x16c0] sm:$0xff] }
 0x610   :  { %15573 = vmatprep.mubr.msk.f32.mxu1 %vm16040_vm1, %v16039_v1 }
 0x611   :  { %v15233_v12 = vpop.f32.mrf.mxu1  ;;  %v6879_v61 = vpop.f32.mrf.mxu0  ;;  %15391 = vmatmul.mubr.msk.f32.gmra.mxu0 %vm78_vm0, %v11631_v39 }
 0x612   :  { %v23814_v62 = vmax.f32 %v26812_v11, %v6879_v61  ;;  %15393 = vmatprep.mubr.msk.f32.mxu0 %vm16040_vm1, %v16039_v1  ;;  %v26813_v11 = vmax.f32 %v22610_v42, %v22617_v47  ;;  %v11747_v42 = vld [vmem:[%s25446_s0 + $0x1890] sm:$0xff] }
 0x613   :  { %v23821_v63 = vpop.f32.mrf.mxu1  ;;  %15574 = vmatmul.mubr.msk.f32.gmra.mxu1 %vm78_vm0, %v11745_v56  ;;  %v15053_v12 = vpop.f32.mrf.mxu0  ;;  %v11633_v56 = vld [vmem:[%s25446_s0 + $0x16c8] sm:$0xff] }
 0x614   :  { %15576 = vmatprep.mubr.msk.f32.mxu1 %vm16040_vm1, %v16039_v1 }
 0x615   :  { %v15236_v6 = vpop.f32.mrf.mxu1  ;;  %v6884_v61 = vpop.f32.mrf.mxu0  ;;  %15394 = vmatmul.mubr.msk.f32.gmra.mxu0 %vm78_vm0, %v11632_v19 }
 0x616   :  { %v23835_v10 = vmax.f32 %v26813_v11, %v6884_v61  ;;  %15396 = vmatprep.mubr.msk.f32.mxu0 %vm16040_vm1, %v16039_v1  ;;  %v26814_v11 = vmax.f32 %v22631_v29, %v22638_v60  ;;  %v11748_v29 = vld [vmem:[%s25446_s0 + $0x1898] sm:$0xff] }
 0x617   :  { %v23842_v12 = vpop.f32.mrf.mxu1  ;;  %15577 = vmatmul.mubr.msk.f32.gmra.mxu1 %vm78_vm0, %v11746_v40  ;;  %v15056_v6 = vpop.f32.mrf.mxu0  ;;  %v11634_v40 = vld [vmem:[%s25446_s0 + $0x16d0] sm:$0xff] }
 0x618   :  { %15579 = vmatprep.mubr.msk.f32.mxu1 %vm16040_vm1, %v16039_v1 }
 0x619   :  { %v15239_v47 = vpop.f32.mrf.mxu1  ;;  %v6889_v61 = vpop.f32.mrf.mxu0  ;;  %15397 = vmatmul.mubr.msk.f32.gmra.mxu0 %vm78_vm0, %v11633_v56 }
 0x61a   :  { %v23856_v39 = vmax.f32 %v26814_v11, %v6889_v61  ;;  %15399 = vmatprep.mubr.msk.f32.mxu0 %vm16040_vm1, %v16039_v1  ;;  %v26815_v11 = vmax.f32 %v22652_v48, %v22659_v36  ;;  %v11749_v48 = vld [vmem:[%s25446_s0 + $0x18a0] sm:$0xff] }
 0x61b   :  { %v23863_v6 = vpop.f32.mrf.mxu1  ;;  %15580 = vmatmul.mubr.msk.f32.gmra.mxu1 %vm78_vm0, %v11747_v42  ;;  %v15059_v47 = vpop.f32.mrf.mxu0  ;;  %v11635_v42 = vld [vmem:[%s25446_s0 + $0x16d8] sm:$0xff] }
 0x61c   :  { %15582 = vmatprep.mubr.msk.f32.mxu1 %vm16040_vm1, %v16039_v1 }
 0x61d   :  { %v15242_v60 = vpop.f32.mrf.mxu1  ;;  %v6894_v61 = vpop.f32.mrf.mxu0  ;;  %15400 = vmatmul.mubr.msk.f32.gmra.mxu0 %vm78_vm0, %v11634_v40 }
 0x61e   :  { %v23877_v19 = vmax.f32 %v26815_v11, %v6894_v61  ;;  %15402 = vmatprep.mubr.msk.f32.mxu0 %vm16040_vm1, %v16039_v1  ;;  %v26816_v11 = vmax.f32 %v22673_v25, %v22680_v45  ;;  %v11750_v25 = vld [vmem:[%s25446_s0 + $0x18a8] sm:$0xff] }
 0x61f   :  { %v23884_v47 = vpop.f32.mrf.mxu1  ;;  %15583 = vmatmul.mubr.msk.f32.gmra.mxu1 %vm78_vm0, %v11748_v29  ;;  %v15062_v60 = vpop.f32.mrf.mxu0  ;;  %v11636_v29 = vld [vmem:[%s25446_s0 + $0x16e0] sm:$0xff] }
 0x620   :  { %15585 = vmatprep.mubr.msk.f32.mxu1 %vm16040_vm1, %v16039_v1 }
 0x621   :  { %v15245_v36 = vpop.f32.mrf.mxu1  ;;  %v6899_v61 = vpop.f32.mrf.mxu0  ;;  %15403 = vmatmul.mubr.msk.f32.gmra.mxu0 %vm78_vm0, %v11635_v42 }
 0x622   :  { %v23898_v56 = vmax.f32 %v26816_v11, %v6899_v61  ;;  %15405 = vmatprep.mubr.msk.f32.mxu0 %vm16040_vm1, %v16039_v1  ;;  %v26817_v11 = vmax.f32 %v22694_v26, %v22701_v13  ;;  %v11751_v26 = vld [vmem:[%s25446_s0 + $0x18b0] sm:$0xff] }
 0x623   :  { %v23905_v60 = vpop.f32.mrf.mxu1  ;;  %15586 = vmatmul.mubr.msk.f32.gmra.mxu1 %vm78_vm0, %v11749_v48  ;;  %v15065_v36 = vpop.f32.mrf.mxu0  ;;  %v11637_v48 = vld [vmem:[%s25446_s0 + $0x16e8] sm:$0xff] }
 0x624   :  { %15588 = vmatprep.mubr.msk.f32.mxu1 %vm16040_vm1, %v16039_v1 }
 0x625   :  { %v15248_v45 = vpop.f32.mrf.mxu1  ;;  %v7891_v61 = vpop.f32.mrf.mxu0  ;;  %15406 = vmatmul.mubr.msk.f32.gmra.mxu0 %vm78_vm0, %v11636_v29 }
 0x626   :  { %v23919_v40 = vmax.f32 %v26817_v11, %v7891_v61  ;;  %15408 = vmatprep.mubr.msk.f32.mxu0 %vm16040_vm1, %v16039_v1  ;;  %v26818_v11 = vmax.f32 %v22715_v53, %v22722_v24  ;;  %v11752_v53 = vld [vmem:[%s25446_s0 + $0x18b8] sm:$0xff] }
 0x627   :  { %v23926_v36 = vpop.f32.mrf.mxu1  ;;  %15589 = vmatmul.mubr.msk.f32.gmra.mxu1 %vm78_vm0, %v11750_v25  ;;  %v15263_v45 = vpop.f32.mrf.mxu0  ;;  %v11638_v25 = vld [vmem:[%s25446_s0 + $0x16f0] sm:$0xff] }
 0x628   :  { %15591 = vmatprep.mubr.msk.f32.mxu1 %vm16040_vm1, %v16039_v1 }
 0x629   :  { %v15446_v13 = vpop.f32.mrf.mxu1  ;;  %v7896_v61 = vpop.f32.mrf.mxu0  ;;  %15409 = vmatmul.mubr.msk.f32.gmra.mxu0 %vm78_vm0, %v11637_v48 }
 0x62a   :  { %v23940_v42 = vmax.f32 %v26818_v11, %v7896_v61  ;;  %15411 = vmatprep.mubr.msk.f32.mxu0 %vm16040_vm1, %v16039_v1  ;;  %v26819_v11 = vmax.f32 %v22736_v9, %v22743_v43  ;;  %v11753_v9 = vld [vmem:[%s25446_s0 + $0x18c0] sm:$0xff] }
 0x62b   :  { %v23947_v45 = vpop.f32.mrf.mxu1  ;;  %15592 = vmatmul.mubr.msk.f32.gmra.mxu1 %vm78_vm0, %v11751_v26  ;;  %v15266_v13 = vpop.f32.mrf.mxu0  ;;  %v11639_v26 = vld [vmem:[%s25446_s0 + $0x16f8] sm:$0xff] }
 0x62c   :  { %15594 = vmatprep.mubr.msk.f32.mxu1 %vm16040_vm1, %v16039_v1 }
 0x62d   :  { %v15449_v24 = vpop.f32.mrf.mxu1  ;;  %v7901_v61 = vpop.f32.mrf.mxu0  ;;  %15412 = vmatmul.mubr.msk.f32.gmra.mxu0 %vm78_vm0, %v11638_v25 }
 0x62e   :  { %v23961_v29 = vmax.f32 %v26819_v11, %v7901_v61  ;;  %15414 = vmatprep.mubr.msk.f32.mxu0 %vm16040_vm1, %v16039_v1  ;;  %v26820_v11 = vmax.f32 %v22757_v2, %v22764_v34  ;;  %v11754_v2 = vld [vmem:[%s25446_s0 + $0x18c8] sm:$0xff] }
 0x62f   :  { %v23968_v13 = vpop.f32.mrf.mxu1  ;;  %15595 = vmatmul.mubr.msk.f32.gmra.mxu1 %vm78_vm0, %v11752_v53  ;;  %v15269_v24 = vpop.f32.mrf.mxu0  ;;  %v11640_v53 = vld [vmem:[%s25446_s0 + $0x1700] sm:$0xff] }
 0x630   :  { %15597 = vmatprep.mubr.msk.f32.mxu1 %vm16040_vm1, %v16039_v1 }
 0x631   :  { %v15452_v43 = vpop.f32.mrf.mxu1  ;;  %v7906_v61 = vpop.f32.mrf.mxu0  ;;  %15415 = vmatmul.mubr.msk.f32.gmra.mxu0 %vm78_vm0, %v11639_v26 }
 0x632   :  { %v23982_v48 = vmax.f32 %v26820_v11, %v7906_v61  ;;  %15417 = vmatprep.mubr.msk.f32.mxu0 %vm16040_vm1, %v16039_v1  ;;  %v26821_v11 = vmax.f32 %v22778_v49, %v22785_v0  ;;  %v11755_v49 = vld [vmem:[%s25446_s0 + $0x18d0] sm:$0xff] }
 0x633   :  { %v23989_v24 = vpop.f32.mrf.mxu1  ;;  %15598 = vmatmul.mubr.msk.f32.gmra.mxu1 %vm78_vm0, %v11753_v9  ;;  %v15272_v43 = vpop.f32.mrf.mxu0  ;;  %v11641_v9 = vld [vmem:[%s25446_s0 + $0x1708] sm:$0xff] }
 0x634   :  { %15600 = vmatprep.mubr.msk.f32.mxu1 %vm16040_vm1, %v16039_v1 }
 0x635   :  { %v15455_v34 = vpop.f32.mrf.mxu1  ;;  %v7911_v61 = vpop.f32.mrf.mxu0  ;;  %15418 = vmatmul.mubr.msk.f32.gmra.mxu0 %vm78_vm0, %v11640_v53 }
 0x636   :  { %v24003_v25 = vmax.f32 %v26821_v11, %v7911_v61  ;;  %15420 = vmatprep.mubr.msk.f32.mxu0 %vm16040_vm1, %v16039_v1  ;;  %v26822_v11 = vmax.f32 %v22799_v46, %v22806_v41  ;;  %v11756_v46 = vld [vmem:[%s25446_s0 + $0x18d8] sm:$0xff] }
 0x637   :  { %v24010_v43 = vpop.f32.mrf.mxu1  ;;  %15601 = vmatmul.mubr.msk.f32.gmra.mxu1 %vm78_vm0, %v11754_v2  ;;  %v15275_v34 = vpop.f32.mrf.mxu0  ;;  %v11642_v2 = vld [vmem:[%s25446_s0 + $0x1710] sm:$0xff] }
 0x638   :  { %15603 = vmatprep.mubr.msk.f32.mxu1 %vm16040_vm1, %v16039_v1 }
 0x639   :  { %v15458_v0 = vpop.f32.mrf.mxu1  ;;  %v7916_v61 = vpop.f32.mrf.mxu0  ;;  %15421 = vmatmul.mubr.msk.f32.gmra.mxu0 %vm78_vm0, %v11641_v9 }
 0x63a   :  { %v24024_v26 = vmax.f32 %v26822_v11, %v7916_v61  ;;  %15423 = vmatprep.mubr.msk.f32.mxu0 %vm16040_vm1, %v16039_v1  ;;  %v26823_v11 = vmax.f32 %v22820_v8, %v22827_v20  ;;  %v11757_v8 = vld [vmem:[%s25446_s0 + $0x18e0] sm:$0xff] }
 0x63b   :  { %v24031_v34 = vpop.f32.mrf.mxu1  ;;  %15604 = vmatmul.mubr.msk.f32.gmra.mxu1 %vm78_vm0, %v11755_v49  ;;  %v15278_v0 = vpop.f32.mrf.mxu0  ;;  %v11643_v49 = vld [vmem:[%s25446_s0 + $0x1718] sm:$0xff] }
 0x63c   :  { %15606 = vmatprep.mubr.msk.f32.mxu1 %vm16040_vm1, %v16039_v1 }
 0x63d   :  { %v15461_v41 = vpop.f32.mrf.mxu1  ;;  %v7921_v61 = vpop.f32.mrf.mxu0  ;;  %15424 = vmatmul.mubr.msk.f32.gmra.mxu0 %vm78_vm0, %v11642_v2 }
 0x63e   :  { %v24045_v53 = vmax.f32 %v26823_v11, %v7921_v61  ;;  %15426 = vmatprep.mubr.msk.f32.mxu0 %vm16040_vm1, %v16039_v1  ;;  %v26824_v11 = vmax.f32 %v22841_v5, %v22848_v59  ;;  %v11758_v5 = vld [vmem:[%s25446_s0 + $0x18e8] sm:$0xff] }
 0x63f   :  { %v24052_v0 = vpop.f32.mrf.mxu1  ;;  %15607 = vmatmul.mubr.msk.f32.gmra.mxu1 %vm78_vm0, %v11756_v46  ;;  %v15281_v41 = vpop.f32.mrf.mxu0  ;;  %v11644_v46 = vld [vmem:[%s25446_s0 + $0x1720] sm:$0xff] }
 0x640   :  { %15609 = vmatprep.mubr.msk.f32.mxu1 %vm16040_vm1, %v16039_v1 }
 0x641   :  { %v15464_v20 = vpop.f32.mrf.mxu1  ;;  %v7926_v61 = vpop.f32.mrf.mxu0  ;;  %15427 = vmatmul.mubr.msk.f32.gmra.mxu0 %vm78_vm0, %v11643_v49 }
 0x642   :  { %v24066_v9 = vmax.f32 %v26824_v11, %v7926_v61  ;;  %15429 = vmatprep.mubr.msk.f32.mxu0 %vm16040_vm1, %v16039_v1  ;;  %v26825_v11 = vmax.f32 %v22862_v3, %v22869_v31  ;;  %v11930_v3 = vld [vmem:[%s25446_s0 + $0x1ab8] sm:$0xff] }
 0x643   :  { %v24073_v41 = vpop.f32.mrf.mxu1  ;;  %15610 = vmatmul.mubr.msk.f32.gmra.mxu1 %vm78_vm0, %v11757_v8  ;;  %v15284_v20 = vpop.f32.mrf.mxu0  ;;  %v11816_v8 = vld [vmem:[%s25446_s0 + $0x18f0] sm:$0xff] }
 0x644   :  { %15612 = vmatprep.mubr.msk.f32.mxu1 %vm16040_vm1, %v16039_v1 }
 0x645   :  { %v15467_v59 = vpop.f32.mrf.mxu1  ;;  %v7931_v61 = vpop.f32.mrf.mxu0  ;;  %15430 = vmatmul.mubr.msk.f32.gmra.mxu0 %vm78_vm0, %v11644_v46 }
 0x646   :  { %v24087_v2 = vmax.f32 %v26825_v11, %v7931_v61  ;;  %15627 = vmatprep.mubr.msk.f32.mxu0 %vm16040_vm1, %v16039_v1  ;;  %v26826_v11 = vmax.f32 %v22883_v4, %v22893_v50  ;;  %v11931_v4 = vld [vmem:[%s25446_s0 + $0x1ac0] sm:$0xff] }
 0x647   :  { %v24094_v20 = vpop.f32.mrf.mxu1  ;;  %15613 = vmatmul.mubr.msk.f32.gmra.mxu1 %vm78_vm0, %v11758_v5  ;;  %v15287_v59 = vpop.f32.mrf.mxu0  ;;  %v11817_v5 = vld [vmem:[%s25446_s0 + $0x18f8] sm:$0xff] }
 0x648   :  { %15810 = vmatprep.mubr.msk.f32.mxu1 %vm16040_vm1, %v16039_v1 }
 0x649   :  { %v15470_v31 = vpop.f32.mrf.mxu1  ;;  %v7936_v61 = vpop.f32.mrf.mxu0  ;;  %15628 = vmatmul.mubr.msk.f32.vlgmr.msra.gmra.mxu0 %vm78_vm0, %v11816_v8 }
 0x64a   :  { %v24108_v49 = vmax.f32 %v26826_v11, %v7936_v61  ;;  %15630 = vmatprep.mubr.msk.f32.mxu0 %vm16040_vm1, %v16039_v1  ;;  %v26827_v11 = vmax.f32 %v22909_v18, %v22919_v22  ;;  %v11932_v18 = vld [vmem:[%s25446_s0 + $0x1ac8] sm:$0xff] }
 0x64b   :  { %v24115_v59 = vpop.f32.mrf.mxu1  ;;  %15811 = vmatmul.mubr.msk.f32.vlgmr.msra.gmra.mxu1 %vm78_vm0, %v11930_v3  ;;  %v15290_v31 = vpop.f32.mrf.mxu0  ;;  %v11818_v3 = vld [vmem:[%s25446_s0 + $0x1900] sm:$0xff] }
 0x64c   :  { %15813 = vmatprep.mubr.msk.f32.mxu1 %vm16040_vm1, %v16039_v1 }
 0x64d   :  { %v15473_v50 = vpop.f32.mrf.mxu1  ;;  %v7941_v61 = vpop.f32.mrf.mxu0  ;;  %15631 = vmatmul.mubr.msk.f32.gmra.mxu0 %vm78_vm0, %v11817_v5 }
 0x64e   :  { %v24129_v46 = vmax.f32 %v26827_v11, %v7941_v61  ;;  %15633 = vmatprep.mubr.msk.f32.mxu0 %vm16040_vm1, %v16039_v1  ;;  %v26828_v11 = vmax.f32 %v22935_v7, %v22945_v38  ;;  %v11933_v7 = vld [vmem:[%s25446_s0 + $0x1ad0] sm:$0xff] }
 0x64f   :  { %v24136_v31 = vpop.f32.mrf.mxu1  ;;  %15814 = vmatmul.mubr.msk.f32.gmra.mxu1 %vm78_vm0, %v11931_v4  ;;  %v15293_v50 = vpop.f32.mrf.mxu0  ;;  %v11819_v4 = vld [vmem:[%s25446_s0 + $0x1908] sm:$0xff] }
 0x650   :  { %15816 = vmatprep.mubr.msk.f32.mxu1 %vm16040_vm1, %v16039_v1 }
 0x651   :  { %v15476_v22 = vpop.f32.mrf.mxu1  ;;  %v7946_v61 = vpop.f32.mrf.mxu0  ;;  %15634 = vmatmul.mubr.msk.f32.gmra.mxu0 %vm78_vm0, %v11818_v3 }
 0x652   :  { %v24150_v8 = vmax.f32 %v26828_v11, %v7946_v61  ;;  %15636 = vmatprep.mubr.msk.f32.mxu0 %vm16040_vm1, %v16039_v1  ;;  %v26829_v11 = vmax.f32 %v22961_v55, %v22971_v32  ;;  %v11934_v55 = vld [vmem:[%s25446_s0 + $0x1ad8] sm:$0xff] }
 0x653   :  { %v24157_v50 = vpop.f32.mrf.mxu1  ;;  %15817 = vmatmul.mubr.msk.f32.gmra.mxu1 %vm78_vm0, %v11932_v18  ;;  %v15296_v22 = vpop.f32.mrf.mxu0  ;;  %v11820_v18 = vld [vmem:[%s25446_s0 + $0x1910] sm:$0xff] }
 0x654   :  { %15819 = vmatprep.mubr.msk.f32.mxu1 %vm16040_vm1, %v16039_v1 }
 0x655   :  { %v15479_v38 = vpop.f32.mrf.mxu1  ;;  %v7951_v61 = vpop.f32.mrf.mxu0  ;;  %15637 = vmatmul.mubr.msk.f32.gmra.mxu0 %vm78_vm0, %v11819_v4 }
 0x656   :  { %v24171_v5 = vmax.f32 %v26829_v11, %v7951_v61  ;;  %15639 = vmatprep.mubr.msk.f32.mxu0 %vm16040_vm1, %v16039_v1  ;;  %v26830_v11 = vmax.f32 %v22987_v58, %v22997_v21  ;;  %v11935_v58 = vld [vmem:[%s25446_s0 + $0x1ae0] sm:$0xff] }
 0x657   :  { %v24178_v22 = vpop.f32.mrf.mxu1  ;;  %15820 = vmatmul.mubr.msk.f32.gmra.mxu1 %vm78_vm0, %v11933_v7  ;;  %v15299_v38 = vpop.f32.mrf.mxu0  ;;  %v11821_v7 = vld [vmem:[%s25446_s0 + $0x1918] sm:$0xff] }
 0x658   :  { %15822 = vmatprep.mubr.msk.f32.mxu1 %vm16040_vm1, %v16039_v1 }
 0x659   :  { %v15482_v32 = vpop.f32.mrf.mxu1  ;;  %v7956_v61 = vpop.f32.mrf.mxu0  ;;  %15640 = vmatmul.mubr.msk.f32.gmra.mxu0 %vm78_vm0, %v11820_v18 }
 0x65a   :  { %v24192_v3 = vmax.f32 %v26830_v11, %v7956_v61  ;;  %15642 = vmatprep.mubr.msk.f32.mxu0 %vm16040_vm1, %v16039_v1  ;;  %v26831_v11 = vmax.f32 %v23013_v54, %v23023_v33  ;;  %v11936_v54 = vld [vmem:[%s25446_s0 + $0x1ae8] sm:$0xff] }
 0x65b   :  { %v24199_v38 = vpop.f32.mrf.mxu1  ;;  %15823 = vmatmul.mubr.msk.f32.gmra.mxu1 %vm78_vm0, %v11934_v55  ;;  %v15302_v32 = vpop.f32.mrf.mxu0  ;;  %v11822_v55 = vld [vmem:[%s25446_s0 + $0x1920] sm:$0xff] }
 0x65c   :  { %15825 = vmatprep.mubr.msk.f32.mxu1 %vm16040_vm1, %v16039_v1 }
 0x65d   :  { %v15485_v21 = vpop.f32.mrf.mxu1  ;;  %v7961_v61 = vpop.f32.mrf.mxu0  ;;  %15643 = vmatmul.mubr.msk.f32.gmra.mxu0 %vm78_vm0, %v11821_v7  ;;  %v26838_v7 = vld [vmem:[#allocation50_spill] sm:$0xff] }
 0x65e   :  { %v24213_v4 = vmax.f32 %v26831_v11, %v7961_v61  ;;  %15645 = vmatprep.mubr.msk.f32.mxu0 %vm16040_vm1, %v16039_v1  ;;  %v26834_v11 = vmax.f32 %v23037_v35, %v23044_v52  ;;  %v11937_v52 = vld [vmem:[%s25446_s0 + $0x1af0] sm:$0xff] }
 0x65f   :  { %v24220_v32 = vpop.f32.mrf.mxu1  ;;  %15826 = vmatmul.mubr.msk.f32.gmra.mxu1 %vm78_vm0, %v11935_v58  ;;  %v15305_v21 = vpop.f32.mrf.mxu0  ;;  %v11823_v58 = vld [vmem:[%s25446_s0 + $0x1928] sm:$0xff] }
 0x660   :  { %26832 = vst [vmem:[#allocation45_spill] sm:$0xff] %v24213_v4  ;;  %26833 = vst [vmem:[#allocation46_spill] sm:$0xff] %v24220_v32  ;;  %15828 = vmatprep.mubr.msk.f32.mxu1 %vm16040_vm1, %v16039_v1 }
 0x661   :  { %v15488_v33 = vpop.f32.mrf.mxu1  ;;  %v7966_v61 = vpop.f32.mrf.mxu0  ;;  %15646 = vmatmul.mubr.msk.f32.gmra.mxu0 %vm78_vm0, %v11822_v55  ;;  %v26843_v55 = vld [vmem:[#allocation52_spill] sm:$0xff] }
 0x662   :  { %v24234_v18 = vmax.f32 %v26834_v11, %v7966_v61  ;;  %15648 = vmatprep.mubr.msk.f32.mxu0 %vm16040_vm1, %v16039_v1  ;;  %v26837_v11 = vld [vmem:[#allocation49_spill] sm:$0xff] }
 0x663   :  { %v24241_v21 = vpop.f32.mrf.mxu1  ;;  %15829 = vmatmul.mubr.msk.f32.gmra.mxu1 %vm78_vm0, %v11936_v54  ;;  %v15308_v33 = vpop.f32.mrf.mxu0  ;;  %v26839_v32 = vmax.f32 %v26837_v11, %v26838_v7  ;;  %v11824_v54 = vld [vmem:[%s25446_s0 + $0x1930] sm:$0xff]  ;;  %v26842_v11 = vld [vmem:[#allocation51_spill] sm:$0xff] }
 0x664   :  { %26835 = vst [vmem:[#allocation47_spill] sm:$0xff] %v24234_v18  ;;  %26836 = vst [vmem:[#allocation48_spill] sm:$0xff] %v24241_v21  ;;  %15831 = vmatprep.mubr.msk.f32.mxu1 %vm16040_vm1, %v16039_v1  ;;  %v26844_v21 = vmax.f32 %v26842_v11, %v26843_v55  ;;  %v26847_v11 = vld [vmem:[#allocation53_spill] sm:$0xff] }
 0x665   :  { %v15491_v35 = vpop.f32.mrf.mxu1  ;;  %v7971_v61 = vpop.f32.mrf.mxu0  ;;  %15649 = vmatmul.mubr.msk.f32.gmra.mxu0 %vm78_vm0, %v11823_v58  ;;  %v26848_v58 = vld [vmem:[#allocation54_spill] sm:$0xff] }
 0x666   :  { %v24255_v4 = vmax.f32 %v26839_v32, %v7971_v61  ;;  %15651 = vmatprep.mubr.msk.f32.mxu0 %vm16040_vm1, %v16039_v1  ;;  %v11938_v32 = vld [vmem:[%s25446_s0 + $0x1af8] sm:$0xff] }
 0x667   :  { %v24262_v33 = vpop.f32.mrf.mxu1  ;;  %15832 = vmatmul.mubr.msk.f32.gmra.mxu1 %vm78_vm0, %v11937_v52  ;;  %v15311_v35 = vpop.f32.mrf.mxu0  ;;  %v11825_v52 = vld [vmem:[%s25446_s0 + $0x1938] sm:$0xff] }
 0x668   :  { %26840 = vst [vmem:[#allocation49_spill] sm:$0xff] %v24255_v4  ;;  %26841 = vst [vmem:[#allocation50_spill] sm:$0xff] %v24262_v33  ;;  %15834 = vmatprep.mubr.msk.f32.mxu1 %vm16040_vm1, %v16039_v1  ;;  %v26849_v33 = vmax.f32 %v26847_v11, %v26848_v58  ;;  %v26852_v11 = vld [vmem:[#allocation55_spill] sm:$0xff] }
 0x669   :  { %v15494_v7 = vpop.f32.mrf.mxu1  ;;  %v7976_v61 = vpop.f32.mrf.mxu0  ;;  %15652 = vmatmul.mubr.msk.f32.gmra.mxu0 %vm78_vm0, %v11824_v54  ;;  %v26853_v54 = vld [vmem:[#allocation56_spill] sm:$0xff] }
 0x66a   :  { %v24276_v18 = vmax.f32 %v26844_v21, %v7976_v61  ;;  %15654 = vmatprep.mubr.msk.f32.mxu0 %vm16040_vm1, %v16039_v1  ;;  %v11939_v21 = vld [vmem:[%s25446_s0 + $0x1b00] sm:$0xff] }
 0x66b   :  { %v24283_v35 = vpop.f32.mrf.mxu1  ;;  %15835 = vmatmul.mubr.msk.f32.gmra.mxu1 %vm78_vm0, %v11938_v32  ;;  %v15314_v7 = vpop.f32.mrf.mxu0  ;;  %v11826_v32 = vld [vmem:[%s25446_s0 + $0x1940] sm:$0xff] }
 0x66c   :  { %26845 = vst [vmem:[#allocation51_spill] sm:$0xff] %v24276_v18  ;;  %26846 = vst [vmem:[#allocation52_spill] sm:$0xff] %v24283_v35  ;;  %15837 = vmatprep.mubr.msk.f32.mxu1 %vm16040_vm1, %v16039_v1  ;;  %v26854_v35 = vmax.f32 %v26852_v11, %v26853_v54  ;;  %v26857_v11 = vld [vmem:[#allocation57_spill] sm:$0xff] }
 0x66d   :  { %v15497_v55 = vpop.f32.mrf.mxu1  ;;  %v7981_v61 = vpop.f32.mrf.mxu0  ;;  %15655 = vmatmul.mubr.msk.f32.gmra.mxu0 %vm78_vm0, %v11825_v52  ;;  %v26858_v52 = vld [vmem:[#allocation58_spill] sm:$0xff] }
 0x66e   :  { %v24297_v4 = vmax.f32 %v26849_v33, %v7981_v61  ;;  %15657 = vmatprep.mubr.msk.f32.mxu0 %vm16040_vm1, %v16039_v1  ;;  %v11940_v33 = vld [vmem:[%s25446_s0 + $0x1b08] sm:$0xff] }
 0x66f   :  { %v24304_v7 = vpop.f32.mrf.mxu1  ;;  %15838 = vmatmul.mubr.msk.f32.gmra.mxu1 %vm78_vm0, %v11939_v21  ;;  %v15317_v55 = vpop.f32.mrf.mxu0  ;;  %v11827_v21 = vld [vmem:[%s25446_s0 + $0x1948] sm:$0xff] }
 0x670   :  { %26850 = vst [vmem:[#allocation53_spill] sm:$0xff] %v24297_v4  ;;  %26851 = vst [vmem:[#allocation54_spill] sm:$0xff] %v24304_v7  ;;  %15840 = vmatprep.mubr.msk.f32.mxu1 %vm16040_vm1, %v16039_v1  ;;  %v26859_v7 = vmax.f32 %v26857_v11, %v26858_v52  ;;  %v26862_v11 = vld [vmem:[#allocation59_spill] sm:$0xff] }
 0x671   :  { %v15500_v58 = vpop.f32.mrf.mxu1  ;;  %v7986_v61 = vpop.f32.mrf.mxu0  ;;  %15658 = vmatmul.mubr.msk.f32.gmra.mxu0 %vm78_vm0, %v11826_v32  ;;  %v26863_v32 = vld [vmem:[#allocation60_spill] sm:$0xff] }
 0x672   :  { %v24318_v18 = vmax.f32 %v26854_v35, %v7986_v61  ;;  %15660 = vmatprep.mubr.msk.f32.mxu0 %vm16040_vm1, %v16039_v1  ;;  %v11941_v35 = vld [vmem:[%s25446_s0 + $0x1b10] sm:$0xff] }
 0x673   :  { %v24325_v55 = vpop.f32.mrf.mxu1  ;;  %15841 = vmatmul.mubr.msk.f32.gmra.mxu1 %vm78_vm0, %v11940_v33  ;;  %v15320_v58 = vpop.f32.mrf.mxu0  ;;  %v11828_v33 = vld [vmem:[%s25446_s0 + $0x1950] sm:$0xff] }
 0x674   :  { %26855 = vst [vmem:[#allocation55_spill] sm:$0xff] %v24318_v18  ;;  %26856 = vst [vmem:[#allocation56_spill] sm:$0xff] %v24325_v55  ;;  %15843 = vmatprep.mubr.msk.f32.mxu1 %vm16040_vm1, %v16039_v1  ;;  %v26864_v55 = vmax.f32 %v26862_v11, %v26863_v32  ;;  %v26867_v11 = vld [vmem:[#allocation61_spill] sm:$0xff] }
 0x675   :  { %v15503_v54 = vpop.f32.mrf.mxu1  ;;  %v7991_v61 = vpop.f32.mrf.mxu0  ;;  %15661 = vmatmul.mubr.msk.f32.gmra.mxu0 %vm78_vm0, %v11827_v21  ;;  %v26868_v21 = vld [vmem:[#allocation62_spill] sm:$0xff] }
 0x676   :  { %v24339_v4 = vmax.f32 %v26859_v7, %v7991_v61  ;;  %15663 = vmatprep.mubr.msk.f32.mxu0 %vm16040_vm1, %v16039_v1  ;;  %v11942_v7 = vld [vmem:[%s25446_s0 + $0x1b18] sm:$0xff] }
 0x677   :  { %v24346_v58 = vpop.f32.mrf.mxu1  ;;  %15844 = vmatmul.mubr.msk.f32.gmra.mxu1 %vm78_vm0, %v11941_v35  ;;  %v15323_v54 = vpop.f32.mrf.mxu0  ;;  %v11829_v35 = vld [vmem:[%s25446_s0 + $0x1958] sm:$0xff] }
 0x678   :  { %26860 = vst [vmem:[#allocation57_spill] sm:$0xff] %v24339_v4  ;;  %26861 = vst [vmem:[#allocation58_spill] sm:$0xff] %v24346_v58  ;;  %15846 = vmatprep.mubr.msk.f32.mxu1 %vm16040_vm1, %v16039_v1  ;;  %v26869_v58 = vmax.f32 %v26867_v11, %v26868_v21  ;;  %v26872_v11 = vld [vmem:[#allocation63_spill] sm:$0xff] }
 0x679   :  { %v15506_v52 = vpop.f32.mrf.mxu1  ;;  %v7996_v61 = vpop.f32.mrf.mxu0  ;;  %15664 = vmatmul.mubr.msk.f32.gmra.mxu0 %vm78_vm0, %v11828_v33  ;;  %v26873_v33 = vld [vmem:[#allocation64_spill] sm:$0xff] }
 0x67a   :  { %v24360_v18 = vmax.f32 %v26864_v55, %v7996_v61  ;;  %15666 = vmatprep.mubr.msk.f32.mxu0 %vm16040_vm1, %v16039_v1  ;;  %v11943_v55 = vld [vmem:[%s25446_s0 + $0x1b20] sm:$0xff] }
 0x67b   :  { %v24367_v54 = vpop.f32.mrf.mxu1  ;;  %15847 = vmatmul.mubr.msk.f32.gmra.mxu1 %vm78_vm0, %v11942_v7  ;;  %v15326_v52 = vpop.f32.mrf.mxu0  ;;  %v11830_v7 = vld [vmem:[%s25446_s0 + $0x1960] sm:$0xff] }
 0x67c   :  { %26865 = vst [vmem:[#allocation59_spill] sm:$0xff] %v24360_v18  ;;  %26866 = vst [vmem:[#allocation60_spill] sm:$0xff] %v24367_v54  ;;  %15849 = vmatprep.mubr.msk.f32.mxu1 %vm16040_vm1, %v16039_v1  ;;  %v26874_v54 = vmax.f32 %v26872_v11, %v26873_v33  ;;  %v26877_v11 = vld [vmem:[#allocation65_spill] sm:$0xff] }
 0x67d   :  { %v15509_v32 = vpop.f32.mrf.mxu1  ;;  %v8001_v61 = vpop.f32.mrf.mxu0  ;;  %15667 = vmatmul.mubr.msk.f32.gmra.mxu0 %vm78_vm0, %v11829_v35  ;;  %v26878_v35 = vld [vmem:[#allocation66_spill] sm:$0xff] }
 0x67e   :  { %v24381_v4 = vmax.f32 %v26869_v58, %v8001_v61  ;;  %15669 = vmatprep.mubr.msk.f32.mxu0 %vm16040_vm1, %v16039_v1  ;;  %v11944_v58 = vld [vmem:[%s25446_s0 + $0x1b28] sm:$0xff] }
 0x67f   :  { %v24388_v52 = vpop.f32.mrf.mxu1  ;;  %15850 = vmatmul.mubr.msk.f32.gmra.mxu1 %vm78_vm0, %v11943_v55  ;;  %v15329_v32 = vpop.f32.mrf.mxu0  ;;  %v11831_v55 = vld [vmem:[%s25446_s0 + $0x1968] sm:$0xff] }
 0x680   :  { %26870 = vst [vmem:[#allocation61_spill] sm:$0xff] %v24381_v4  ;;  %26871 = vst [vmem:[#allocation62_spill] sm:$0xff] %v24388_v52  ;;  %15852 = vmatprep.mubr.msk.f32.mxu1 %vm16040_vm1, %v16039_v1  ;;  %v26879_v52 = vmax.f32 %v26877_v11, %v26878_v35  ;;  %v26882_v11 = vld [vmem:[#allocation67_spill] sm:$0xff] }
 0x681   :  { %v15512_v21 = vpop.f32.mrf.mxu1  ;;  %v8006_v61 = vpop.f32.mrf.mxu0  ;;  %15670 = vmatmul.mubr.msk.f32.gmra.mxu0 %vm78_vm0, %v11830_v7  ;;  %v26883_v7 = vld [vmem:[#allocation68_spill] sm:$0xff] }
 0x682   :  { %v24402_v18 = vmax.f32 %v26874_v54, %v8006_v61  ;;  %15672 = vmatprep.mubr.msk.f32.mxu0 %vm16040_vm1, %v16039_v1  ;;  %v11945_v54 = vld [vmem:[%s25446_s0 + $0x1b30] sm:$0xff] }
 0x683   :  { %v24409_v32 = vpop.f32.mrf.mxu1  ;;  %15853 = vmatmul.mubr.msk.f32.gmra.mxu1 %vm78_vm0, %v11944_v58  ;;  %v15332_v21 = vpop.f32.mrf.mxu0  ;;  %v11832_v58 = vld [vmem:[%s25446_s0 + $0x1970] sm:$0xff] }
 0x684   :  { %26875 = vst [vmem:[#allocation63_spill] sm:$0xff] %v24402_v18  ;;  %26876 = vst [vmem:[#allocation64_spill] sm:$0xff] %v24409_v32  ;;  %15855 = vmatprep.mubr.msk.f32.mxu1 %vm16040_vm1, %v16039_v1  ;;  %v26884_v32 = vmax.f32 %v26882_v11, %v26883_v7  ;;  %v26887_v11 = vld [vmem:[#allocation5_spill] sm:$0xff] }
 0x685   :  { %v15515_v33 = vpop.f32.mrf.mxu1  ;;  %v8011_v61 = vpop.f32.mrf.mxu0  ;;  %15673 = vmatmul.mubr.msk.f32.gmra.mxu0 %vm78_vm0, %v11831_v55  ;;  %v26888_v55 = vld [vmem:[#allocation6_spill] sm:$0xff] }
 0x686   :  { %v24423_v4 = vmax.f32 %v26879_v52, %v8011_v61  ;;  %15675 = vmatprep.mubr.msk.f32.mxu0 %vm16040_vm1, %v16039_v1  ;;  %v11946_v52 = vld [vmem:[%s25446_s0 + $0x1b38] sm:$0xff] }
 0x687   :  { %v24430_v21 = vpop.f32.mrf.mxu1  ;;  %15856 = vmatmul.mubr.msk.f32.gmra.mxu1 %vm78_vm0, %v11945_v54  ;;  %v15335_v33 = vpop.f32.mrf.mxu0  ;;  %v11833_v54 = vld [vmem:[%s25446_s0 + $0x1978] sm:$0xff] }
 0x688   :  { %26880 = vst [vmem:[#allocation65_spill] sm:$0xff] %v24423_v4  ;;  %26881 = vst [vmem:[#allocation66_spill] sm:$0xff] %v24430_v21  ;;  %15858 = vmatprep.mubr.msk.f32.mxu1 %vm16040_vm1, %v16039_v1  ;;  %v26889_v21 = vmax.f32 %v26887_v11, %v26888_v55  ;;  %v26892_v11 = vld [vmem:[#allocation7_spill] sm:$0xff] }
 0x689   :  { %v15518_v35 = vpop.f32.mrf.mxu1  ;;  %v8016_v61 = vpop.f32.mrf.mxu0  ;;  %15676 = vmatmul.mubr.msk.f32.gmra.mxu0 %vm78_vm0, %v11832_v58  ;;  %v26893_v58 = vld [vmem:[#allocation8_spill] sm:$0xff] }
 0x68a   :  { %v24444_v18 = vmax.f32 %v26884_v32, %v8016_v61  ;;  %15678 = vmatprep.mubr.msk.f32.mxu0 %vm16040_vm1, %v16039_v1  ;;  %v11947_v32 = vld [vmem:[%s25446_s0 + $0x1b40] sm:$0xff] }
 0x68b   :  { %v24451_v33 = vpop.f32.mrf.mxu1  ;;  %15859 = vmatmul.mubr.msk.f32.gmra.mxu1 %vm78_vm0, %v11946_v52  ;;  %v15338_v35 = vpop.f32.mrf.mxu0  ;;  %v11834_v52 = vld [vmem:[%s25446_s0 + $0x1980] sm:$0xff] }
 0x68c   :  { %26885 = vst [vmem:[#allocation67_spill] sm:$0xff] %v24444_v18  ;;  %26886 = vst [vmem:[#allocation68_spill] sm:$0xff] %v24451_v33  ;;  %15861 = vmatprep.mubr.msk.f32.mxu1 %vm16040_vm1, %v16039_v1  ;;  %v26894_v33 = vmax.f32 %v26892_v11, %v26893_v58  ;;  %v26897_v11 = vld [vmem:[#allocation9_spill] sm:$0xff] }
 0x68d   :  { %v15521_v7 = vpop.f32.mrf.mxu1  ;;  %v8021_v61 = vpop.f32.mrf.mxu0  ;;  %15679 = vmatmul.mubr.msk.f32.gmra.mxu0 %vm78_vm0, %v11833_v54  ;;  %v26898_v54 = vld [vmem:[#allocation10_spill] sm:$0xff] }
 0x68e   :  { %v24465_v4 = vmax.f32 %v26889_v21, %v8021_v61  ;;  %15681 = vmatprep.mubr.msk.f32.mxu0 %vm16040_vm1, %v16039_v1  ;;  %v11948_v21 = vld [vmem:[%s25446_s0 + $0x1b48] sm:$0xff] }
 0x68f   :  { %v24472_v35 = vpop.f32.mrf.mxu1  ;;  %15862 = vmatmul.mubr.msk.f32.gmra.mxu1 %vm78_vm0, %v11947_v32  ;;  %v15341_v7 = vpop.f32.mrf.mxu0  ;;  %v11835_v32 = vld [vmem:[%s25446_s0 + $0x1988] sm:$0xff] }
 0x690   :  { %26890 = vst [vmem:[#allocation5_spill] sm:$0xff] %v24465_v4  ;;  %26891 = vst [vmem:[#allocation6_spill] sm:$0xff] %v24472_v35  ;;  %15864 = vmatprep.mubr.msk.f32.mxu1 %vm16040_vm1, %v16039_v1  ;;  %v26899_v35 = vmax.f32 %v26897_v11, %v26898_v54  ;;  %v26902_v11 = vld [vmem:[#allocation11_spill] sm:$0xff] }
 0x691   :  { %v15524_v55 = vpop.f32.mrf.mxu1  ;;  %v8026_v61 = vpop.f32.mrf.mxu0  ;;  %15682 = vmatmul.mubr.msk.f32.gmra.mxu0 %vm78_vm0, %v11834_v52  ;;  %v26903_v52 = vld [vmem:[#allocation12_spill] sm:$0xff] }
 0x692   :  { %v24486_v18 = vmax.f32 %v26894_v33, %v8026_v61  ;;  %15684 = vmatprep.mubr.msk.f32.mxu0 %vm16040_vm1, %v16039_v1  ;;  %v11949_v33 = vld [vmem:[%s25446_s0 + $0x1b50] sm:$0xff] }
 0x693   :  { %v24493_v7 = vpop.f32.mrf.mxu1  ;;  %15865 = vmatmul.mubr.msk.f32.gmra.mxu1 %vm78_vm0, %v11948_v21  ;;  %v15344_v55 = vpop.f32.mrf.mxu0  ;;  %v11836_v21 = vld [vmem:[%s25446_s0 + $0x1990] sm:$0xff] }
 0x694   :  { %26895 = vst [vmem:[#allocation7_spill] sm:$0xff] %v24486_v18  ;;  %26896 = vst [vmem:[#allocation8_spill] sm:$0xff] %v24493_v7  ;;  %15867 = vmatprep.mubr.msk.f32.mxu1 %vm16040_vm1, %v16039_v1  ;;  %v26904_v7 = vmax.f32 %v26902_v11, %v26903_v52  ;;  %v26907_v11 = vld [vmem:[#allocation13_spill] sm:$0xff] }
 0x695   :  { %v15527_v58 = vpop.f32.mrf.mxu1  ;;  %v8031_v61 = vpop.f32.mrf.mxu0  ;;  %15685 = vmatmul.mubr.msk.f32.gmra.mxu0 %vm78_vm0, %v11835_v32  ;;  %v26908_v32 = vld [vmem:[#allocation14_spill] sm:$0xff] }
 0x696   :  { %v24507_v4 = vmax.f32 %v26899_v35, %v8031_v61  ;;  %15687 = vmatprep.mubr.msk.f32.mxu0 %vm16040_vm1, %v16039_v1  ;;  %v11950_v35 = vld [vmem:[%s25446_s0 + $0x1b58] sm:$0xff] }
 0x697   :  { %v24514_v55 = vpop.f32.mrf.mxu1  ;;  %15868 = vmatmul.mubr.msk.f32.gmra.mxu1 %vm78_vm0, %v11949_v33  ;;  %v15347_v58 = vpop.f32.mrf.mxu0  ;;  %v11837_v33 = vld [vmem:[%s25446_s0 + $0x1998] sm:$0xff] }
 0x698   :  { %26900 = vst [vmem:[#allocation9_spill] sm:$0xff] %v24507_v4  ;;  %26901 = vst [vmem:[#allocation10_spill] sm:$0xff] %v24514_v55  ;;  %15870 = vmatprep.mubr.msk.f32.mxu1 %vm16040_vm1, %v16039_v1  ;;  %v26909_v55 = vmax.f32 %v26907_v11, %v26908_v32  ;;  %v26912_v11 = vld [vmem:[#allocation15_spill] sm:$0xff] }
 0x699   :  { %v15530_v54 = vpop.f32.mrf.mxu1  ;;  %v8036_v61 = vpop.f32.mrf.mxu0  ;;  %15688 = vmatmul.mubr.msk.f32.gmra.mxu0 %vm78_vm0, %v11836_v21  ;;  %v26913_v21 = vld [vmem:[#allocation16_spill] sm:$0xff] }
 0x69a   :  { %v24528_v18 = vmax.f32 %v26904_v7, %v8036_v61  ;;  %15690 = vmatprep.mubr.msk.f32.mxu0 %vm16040_vm1, %v16039_v1  ;;  %v11951_v7 = vld [vmem:[%s25446_s0 + $0x1b60] sm:$0xff] }
 0x69b   :  { %v24535_v58 = vpop.f32.mrf.mxu1  ;;  %15871 = vmatmul.mubr.msk.f32.gmra.mxu1 %vm78_vm0, %v11950_v35  ;;  %v15350_v54 = vpop.f32.mrf.mxu0  ;;  %v11838_v35 = vld [vmem:[%s25446_s0 + $0x19a0] sm:$0xff] }
 0x69c   :  { %26905 = vst [vmem:[#allocation11_spill] sm:$0xff] %v24528_v18  ;;  %26906 = vst [vmem:[#allocation12_spill] sm:$0xff] %v24535_v58  ;;  %15873 = vmatprep.mubr.msk.f32.mxu1 %vm16040_vm1, %v16039_v1  ;;  %v26914_v58 = vmax.f32 %v26912_v11, %v26913_v21  ;;  %v26917_v11 = vld [vmem:[#allocation17_spill] sm:$0xff] }
 0x69d   :  { %v15533_v52 = vpop.f32.mrf.mxu1  ;;  %v8041_v61 = vpop.f32.mrf.mxu0  ;;  %15691 = vmatmul.mubr.msk.f32.gmra.mxu0 %vm78_vm0, %v11837_v33  ;;  %v26918_v33 = vld [vmem:[#allocation18_spill] sm:$0xff] }
 0x69e   :  { %v24549_v4 = vmax.f32 %v26909_v55, %v8041_v61  ;;  %15693 = vmatprep.mubr.msk.f32.mxu0 %vm16040_vm1, %v16039_v1  ;;  %v11952_v55 = vld [vmem:[%s25446_s0 + $0x1b68] sm:$0xff] }
 0x69f   :  { %v24556_v54 = vpop.f32.mrf.mxu1  ;;  %15874 = vmatmul.mubr.msk.f32.gmra.mxu1 %vm78_vm0, %v11951_v7  ;;  %v15353_v52 = vpop.f32.mrf.mxu0  ;;  %v11839_v7 = vld [vmem:[%s25446_s0 + $0x19a8] sm:$0xff] }
 0x6a0   :  { %26910 = vst [vmem:[#allocation13_spill] sm:$0xff] %v24549_v4  ;;  %26911 = vst [vmem:[#allocation14_spill] sm:$0xff] %v24556_v54  ;;  %15876 = vmatprep.mubr.msk.f32.mxu1 %vm16040_vm1, %v16039_v1  ;;  %v26919_v54 = vmax.f32 %v26917_v11, %v26918_v33  ;;  %v26922_v11 = vld [vmem:[#allocation19_spill] sm:$0xff] }
 0x6a1   :  { %v15536_v32 = vpop.f32.mrf.mxu1  ;;  %v8046_v61 = vpop.f32.mrf.mxu0  ;;  %15694 = vmatmul.mubr.msk.f32.gmra.mxu0 %vm78_vm0, %v11838_v35  ;;  %v26923_v35 = vld [vmem:[#allocation20_spill] sm:$0xff] }
 0x6a2   :  { %v24570_v18 = vmax.f32 %v26914_v58, %v8046_v61  ;;  %15696 = vmatprep.mubr.msk.f32.mxu0 %vm16040_vm1, %v16039_v1  ;;  %v11953_v58 = vld [vmem:[%s25446_s0 + $0x1b70] sm:$0xff] }
 0x6a3   :  { %v24577_v52 = vpop.f32.mrf.mxu1  ;;  %15877 = vmatmul.mubr.msk.f32.gmra.mxu1 %vm78_vm0, %v11952_v55  ;;  %v15356_v32 = vpop.f32.mrf.mxu0  ;;  %v11840_v55 = vld [vmem:[%s25446_s0 + $0x19b0] sm:$0xff] }
 0x6a4   :  { %26915 = vst [vmem:[#allocation15_spill] sm:$0xff] %v24570_v18  ;;  %26916 = vst [vmem:[#allocation16_spill] sm:$0xff] %v24577_v52  ;;  %15879 = vmatprep.mubr.msk.f32.mxu1 %vm16040_vm1, %v16039_v1  ;;  %v26924_v52 = vmax.f32 %v26922_v11, %v26923_v35  ;;  %v26927_v11 = vld [vmem:[#allocation21_spill] sm:$0xff] }
 0x6a5   :  { %v15539_v21 = vpop.f32.mrf.mxu1  ;;  %v8051_v61 = vpop.f32.mrf.mxu0  ;;  %15697 = vmatmul.mubr.msk.f32.gmra.mxu0 %vm78_vm0, %v11839_v7  ;;  %v26928_v7 = vld [vmem:[#allocation22_spill] sm:$0xff] }
 0x6a6   :  { %v24591_v4 = vmax.f32 %v26919_v54, %v8051_v61  ;;  %15699 = vmatprep.mubr.msk.f32.mxu0 %vm16040_vm1, %v16039_v1  ;;  %v11954_v54 = vld [vmem:[%s25446_s0 + $0x1b78] sm:$0xff] }
 0x6a7   :  { %v24598_v32 = vpop.f32.mrf.mxu1  ;;  %15880 = vmatmul.mubr.msk.f32.gmra.mxu1 %vm78_vm0, %v11953_v58  ;;  %v15359_v21 = vpop.f32.mrf.mxu0  ;;  %v11841_v58 = vld [vmem:[%s25446_s0 + $0x19b8] sm:$0xff] }
 0x6a8   :  { %26920 = vst [vmem:[#allocation17_spill] sm:$0xff] %v24591_v4  ;;  %26921 = vst [vmem:[#allocation18_spill] sm:$0xff] %v24598_v32  ;;  %15882 = vmatprep.mubr.msk.f32.mxu1 %vm16040_vm1, %v16039_v1  ;;  %v26929_v32 = vmax.f32 %v26927_v11, %v26928_v7  ;;  %v26932_v11 = vld [vmem:[#allocation23_spill] sm:$0xff] }
 0x6a9   :  { %v15542_v33 = vpop.f32.mrf.mxu1  ;;  %v8056_v61 = vpop.f32.mrf.mxu0  ;;  %15700 = vmatmul.mubr.msk.f32.gmra.mxu0 %vm78_vm0, %v11840_v55  ;;  %v26933_v55 = vld [vmem:[#allocation24_spill] sm:$0xff] }
 0x6aa   :  { %v24612_v18 = vmax.f32 %v26924_v52, %v8056_v61  ;;  %15702 = vmatprep.mubr.msk.f32.mxu0 %vm16040_vm1, %v16039_v1  ;;  %v11955_v52 = vld [vmem:[%s25446_s0 + $0x1b80] sm:$0xff] }
 0x6ab   :  { %v24619_v21 = vpop.f32.mrf.mxu1  ;;  %15883 = vmatmul.mubr.msk.f32.gmra.mxu1 %vm78_vm0, %v11954_v54  ;;  %v15362_v33 = vpop.f32.mrf.mxu0  ;;  %v11842_v54 = vld [vmem:[%s25446_s0 + $0x19c0] sm:$0xff] }
 0x6ac   :  { %26925 = vst [vmem:[#allocation19_spill] sm:$0xff] %v24612_v18  ;;  %26926 = vst [vmem:[#allocation20_spill] sm:$0xff] %v24619_v21  ;;  %15885 = vmatprep.mubr.msk.f32.mxu1 %vm16040_vm1, %v16039_v1  ;;  %v26934_v21 = vmax.f32 %v26932_v11, %v26933_v55  ;;  %v26937_v11 = vld [vmem:[#allocation25_spill] sm:$0xff] }
 0x6ad   :  { %v15545_v35 = vpop.f32.mrf.mxu1  ;;  %v8061_v61 = vpop.f32.mrf.mxu0  ;;  %15703 = vmatmul.mubr.msk.f32.gmra.mxu0 %vm78_vm0, %v11841_v58  ;;  %v26938_v58 = vld [vmem:[#allocation26_spill] sm:$0xff] }
 0x6ae   :  { %v24633_v4 = vmax.f32 %v26929_v32, %v8061_v61  ;;  %15705 = vmatprep.mubr.msk.f32.mxu0 %vm16040_vm1, %v16039_v1  ;;  %v11956_v32 = vld [vmem:[%s25446_s0 + $0x1b88] sm:$0xff] }
 0x6af   :  { %v24640_v33 = vpop.f32.mrf.mxu1  ;;  %15886 = vmatmul.mubr.msk.f32.gmra.mxu1 %vm78_vm0, %v11955_v52  ;;  %v15365_v35 = vpop.f32.mrf.mxu0  ;;  %v11843_v52 = vld [vmem:[%s25446_s0 + $0x19c8] sm:$0xff] }
 0x6b0   :  { %26930 = vst [vmem:[#allocation21_spill] sm:$0xff] %v24633_v4  ;;  %26931 = vst [vmem:[#allocation22_spill] sm:$0xff] %v24640_v33  ;;  %15888 = vmatprep.mubr.msk.f32.mxu1 %vm16040_vm1, %v16039_v1  ;;  %v26939_v33 = vmax.f32 %v26937_v11, %v26938_v58  ;;  %v26942_v11 = vld [vmem:[#allocation27_spill] sm:$0xff] }
 0x6b1   :  { %v15548_v7 = vpop.f32.mrf.mxu1  ;;  %v8066_v61 = vpop.f32.mrf.mxu0  ;;  %15706 = vmatmul.mubr.msk.f32.gmra.mxu0 %vm78_vm0, %v11842_v54  ;;  %v26943_v54 = vld [vmem:[#allocation28_spill] sm:$0xff] }
 0x6b2   :  { %v24654_v18 = vmax.f32 %v26934_v21, %v8066_v61  ;;  %15708 = vmatprep.mubr.msk.f32.mxu0 %vm16040_vm1, %v16039_v1  ;;  %v11957_v21 = vld [vmem:[%s25446_s0 + $0x1b90] sm:$0xff] }
 0x6b3   :  { %v24661_v35 = vpop.f32.mrf.mxu1  ;;  %15889 = vmatmul.mubr.msk.f32.gmra.mxu1 %vm78_vm0, %v11956_v32  ;;  %v15368_v7 = vpop.f32.mrf.mxu0  ;;  %v11844_v32 = vld [vmem:[%s25446_s0 + $0x19d0] sm:$0xff] }
 0x6b4   :  { %26935 = vst [vmem:[#allocation23_spill] sm:$0xff] %v24654_v18  ;;  %26936 = vst [vmem:[#allocation24_spill] sm:$0xff] %v24661_v35  ;;  %15891 = vmatprep.mubr.msk.f32.mxu1 %vm16040_vm1, %v16039_v1  ;;  %v26944_v35 = vmax.f32 %v26942_v11, %v26943_v54  ;;  %v26947_v11 = vld [vmem:[#allocation29_spill] sm:$0xff] }
 0x6b5   :  { %v15551_v55 = vpop.f32.mrf.mxu1  ;;  %v8071_v61 = vpop.f32.mrf.mxu0  ;;  %15709 = vmatmul.mubr.msk.f32.gmra.mxu0 %vm78_vm0, %v11843_v52  ;;  %v26948_v52 = vld [vmem:[#allocation30_spill] sm:$0xff] }
 0x6b6   :  { %v24675_v4 = vmax.f32 %v26939_v33, %v8071_v61  ;;  %15711 = vmatprep.mubr.msk.f32.mxu0 %vm16040_vm1, %v16039_v1  ;;  %v11958_v33 = vld [vmem:[%s25446_s0 + $0x1b98] sm:$0xff] }
 0x6b7   :  { %v24682_v7 = vpop.f32.mrf.mxu1  ;;  %15892 = vmatmul.mubr.msk.f32.gmra.mxu1 %vm78_vm0, %v11957_v21  ;;  %v15371_v55 = vpop.f32.mrf.mxu0  ;;  %v11845_v21 = vld [vmem:[%s25446_s0 + $0x19d8] sm:$0xff] }
 0x6b8   :  { %26940 = vst [vmem:[#allocation25_spill] sm:$0xff] %v24675_v4  ;;  %26941 = vst [vmem:[#allocation26_spill] sm:$0xff] %v24682_v7  ;;  %15894 = vmatprep.mubr.msk.f32.mxu1 %vm16040_vm1, %v16039_v1  ;;  %v26949_v7 = vmax.f32 %v26947_v11, %v26948_v52  ;;  %v26952_v11 = vld [vmem:[#allocation31_spill] sm:$0xff] }
 0x6b9   :  { %v15554_v58 = vpop.f32.mrf.mxu1  ;;  %v8076_v61 = vpop.f32.mrf.mxu0  ;;  %15712 = vmatmul.mubr.msk.f32.gmra.mxu0 %vm78_vm0, %v11844_v32  ;;  %v26953_v32 = vld [vmem:[#allocation32_spill] sm:$0xff] }
 0x6ba   :  { %v24696_v18 = vmax.f32 %v26944_v35, %v8076_v61  ;;  %15714 = vmatprep.mubr.msk.f32.mxu0 %vm16040_vm1, %v16039_v1  ;;  %v11959_v35 = vld [vmem:[%s25446_s0 + $0x1ba0] sm:$0xff] }
 0x6bb   :  { %v24703_v55 = vpop.f32.mrf.mxu1  ;;  %15895 = vmatmul.mubr.msk.f32.gmra.mxu1 %vm78_vm0, %v11958_v33  ;;  %v15374_v58 = vpop.f32.mrf.mxu0  ;;  %v11846_v33 = vld [vmem:[%s25446_s0 + $0x19e0] sm:$0xff] }
 0x6bc   :  { %26945 = vst [vmem:[#allocation27_spill] sm:$0xff] %v24696_v18  ;;  %26946 = vst [vmem:[#allocation28_spill] sm:$0xff] %v24703_v55  ;;  %15897 = vmatprep.mubr.msk.f32.mxu1 %vm16040_vm1, %v16039_v1  ;;  %v26954_v55 = vmax.f32 %v26952_v11, %v26953_v32  ;;  %v26957_v11 = vld [vmem:[#allocation33_spill] sm:$0xff] }
 0x6bd   :  { %v15557_v54 = vpop.f32.mrf.mxu1  ;;  %v8081_v61 = vpop.f32.mrf.mxu0  ;;  %15715 = vmatmul.mubr.msk.f32.gmra.mxu0 %vm78_vm0, %v11845_v21  ;;  %v26958_v21 = vld [vmem:[#allocation34_spill] sm:$0xff] }
 0x6be   :  { %v24717_v4 = vmax.f32 %v26949_v7, %v8081_v61  ;;  %15717 = vmatprep.mubr.msk.f32.mxu0 %vm16040_vm1, %v16039_v1  ;;  %v11960_v7 = vld [vmem:[%s25446_s0 + $0x1ba8] sm:$0xff] }
 0x6bf   :  { %v24724_v58 = vpop.f32.mrf.mxu1  ;;  %15898 = vmatmul.mubr.msk.f32.gmra.mxu1 %vm78_vm0, %v11959_v35  ;;  %v15377_v54 = vpop.f32.mrf.mxu0  ;;  %v11847_v35 = vld [vmem:[%s25446_s0 + $0x19e8] sm:$0xff] }
 0x6c0   :  { %26950 = vst [vmem:[#allocation29_spill] sm:$0xff] %v24717_v4  ;;  %26951 = vst [vmem:[#allocation30_spill] sm:$0xff] %v24724_v58  ;;  %15900 = vmatprep.mubr.msk.f32.mxu1 %vm16040_vm1, %v16039_v1  ;;  %v26959_v58 = vmax.f32 %v26957_v11, %v26958_v21  ;;  %v26962_v11 = vld [vmem:[#allocation35_spill] sm:$0xff] }
 0x6c1   :  { %v15560_v52 = vpop.f32.mrf.mxu1  ;;  %v8086_v61 = vpop.f32.mrf.mxu0  ;;  %15718 = vmatmul.mubr.msk.f32.gmra.mxu0 %vm78_vm0, %v11846_v33  ;;  %v26963_v33 = vld [vmem:[#allocation36_spill] sm:$0xff] }
 0x6c2   :  { %v24738_v18 = vmax.f32 %v26954_v55, %v8086_v61  ;;  %15720 = vmatprep.mubr.msk.f32.mxu0 %vm16040_vm1, %v16039_v1  ;;  %v11961_v55 = vld [vmem:[%s25446_s0 + $0x1bb0] sm:$0xff] }
 0x6c3   :  { %v24745_v54 = vpop.f32.mrf.mxu1  ;;  %15901 = vmatmul.mubr.msk.f32.gmra.mxu1 %vm78_vm0, %v11960_v7  ;;  %v15380_v52 = vpop.f32.mrf.mxu0  ;;  %v11848_v7 = vld [vmem:[%s25446_s0 + $0x19f0] sm:$0xff] }
 0x6c4   :  { %26955 = vst [vmem:[#allocation31_spill] sm:$0xff] %v24738_v18  ;;  %26956 = vst [vmem:[#allocation32_spill] sm:$0xff] %v24745_v54  ;;  %15903 = vmatprep.mubr.msk.f32.mxu1 %vm16040_vm1, %v16039_v1  ;;  %v26964_v54 = vmax.f32 %v26962_v11, %v26963_v33  ;;  %v26967_v11 = vld [vmem:[#allocation37_spill] sm:$0xff] }
 0x6c5   :  { %v15563_v32 = vpop.f32.mrf.mxu1  ;;  %v8091_v61 = vpop.f32.mrf.mxu0  ;;  %15721 = vmatmul.mubr.msk.f32.gmra.mxu0 %vm78_vm0, %v11847_v35  ;;  %v26968_v35 = vld [vmem:[#allocation38_spill] sm:$0xff] }
 0x6c6   :  { %v24759_v4 = vmax.f32 %v26959_v58, %v8091_v61  ;;  %15723 = vmatprep.mubr.msk.f32.mxu0 %vm16040_vm1, %v16039_v1  ;;  %v11962_v58 = vld [vmem:[%s25446_s0 + $0x1bb8] sm:$0xff] }
 0x6c7   :  { %v24766_v52 = vpop.f32.mrf.mxu1  ;;  %15904 = vmatmul.mubr.msk.f32.gmra.mxu1 %vm78_vm0, %v11961_v55  ;;  %v15383_v32 = vpop.f32.mrf.mxu0  ;;  %v11849_v55 = vld [vmem:[%s25446_s0 + $0x19f8] sm:$0xff] }
 0x6c8   :  { %26960 = vst [vmem:[#allocation33_spill] sm:$0xff] %v24759_v4  ;;  %26961 = vst [vmem:[#allocation34_spill] sm:$0xff] %v24766_v52  ;;  %15906 = vmatprep.mubr.msk.f32.mxu1 %vm16040_vm1, %v16039_v1  ;;  %v26969_v52 = vmax.f32 %v26967_v11, %v26968_v35  ;;  %v26972_v11 = vld [vmem:[#allocation39_spill] sm:$0xff] }
 0x6c9   :  { %v15566_v21 = vpop.f32.mrf.mxu1  ;;  %v8096_v61 = vpop.f32.mrf.mxu0  ;;  %15724 = vmatmul.mubr.msk.f32.gmra.mxu0 %vm78_vm0, %v11848_v7  ;;  %v26973_v7 = vld [vmem:[#allocation40_spill] sm:$0xff] }
 0x6ca   :  { %v24780_v18 = vmax.f32 %v26964_v54, %v8096_v61  ;;  %15726 = vmatprep.mubr.msk.f32.mxu0 %vm16040_vm1, %v16039_v1  ;;  %v11963_v54 = vld [vmem:[%s25446_s0 + $0x1bc0] sm:$0xff] }
 0x6cb   :  { %v24787_v32 = vpop.f32.mrf.mxu1  ;;  %15907 = vmatmul.mubr.msk.f32.gmra.mxu1 %vm78_vm0, %v11962_v58  ;;  %v15386_v21 = vpop.f32.mrf.mxu0  ;;  %v11850_v58 = vld [vmem:[%s25446_s0 + $0x1a00] sm:$0xff] }
 0x6cc   :  { %26965 = vst [vmem:[#allocation35_spill] sm:$0xff] %v24780_v18  ;;  %26966 = vst [vmem:[#allocation36_spill] sm:$0xff] %v24787_v32  ;;  %15909 = vmatprep.mubr.msk.f32.mxu1 %vm16040_vm1, %v16039_v1  ;;  %v26974_v32 = vmax.f32 %v26972_v11, %v26973_v7  ;;  %v26977_v11 = vld [vmem:[#allocation41_spill] sm:$0xff] }
 0x6cd   :  { %v15569_v33 = vpop.f32.mrf.mxu1  ;;  %v8101_v61 = vpop.f32.mrf.mxu0  ;;  %15727 = vmatmul.mubr.msk.f32.gmra.mxu0 %vm78_vm0, %v11849_v55  ;;  %v26978_v55 = vld [vmem:[#allocation42_spill] sm:$0xff] }
 0x6ce   :  { %v24801_v4 = vmax.f32 %v26969_v52, %v8101_v61  ;;  %15729 = vmatprep.mubr.msk.f32.mxu0 %vm16040_vm1, %v16039_v1  ;;  %v11964_v52 = vld [vmem:[%s25446_s0 + $0x1bc8] sm:$0xff] }
 0x6cf   :  { %v24808_v21 = vpop.f32.mrf.mxu1  ;;  %15910 = vmatmul.mubr.msk.f32.gmra.mxu1 %vm78_vm0, %v11963_v54  ;;  %v15389_v33 = vpop.f32.mrf.mxu0  ;;  %v11851_v54 = vld [vmem:[%s25446_s0 + $0x1a08] sm:$0xff] }
 0x6d0   :  { %26970 = vst [vmem:[#allocation37_spill] sm:$0xff] %v24801_v4  ;;  %26971 = vst [vmem:[#allocation38_spill] sm:$0xff] %v24808_v21  ;;  %15912 = vmatprep.mubr.msk.f32.mxu1 %vm16040_vm1, %v16039_v1  ;;  %v26979_v21 = vmax.f32 %v26977_v11, %v26978_v55  ;;  %v26980_v11 = vld [vmem:[#allocation43_spill] sm:$0xff] }
 0x6d1   :  { %v15572_v35 = vpop.f32.mrf.mxu1  ;;  %v8106_v61 = vpop.f32.mrf.mxu0  ;;  %15730 = vmatmul.mubr.msk.f32.gmra.mxu0 %vm78_vm0, %v11850_v58  ;;  %v26981_v58 = vld [vmem:[#allocation44_spill] sm:$0xff] }
 0x6d2   :  { %v24822_v18 = vmax.f32 %v26974_v32, %v8106_v61  ;;  %15732 = vmatprep.mubr.msk.f32.mxu0 %vm16040_vm1, %v16039_v1  ;;  %v11965_v32 = vld [vmem:[%s25446_s0 + $0x1bd0] sm:$0xff] }
 0x6d3   :  { %v24829_v33 = vpop.f32.mrf.mxu1  ;;  %15913 = vmatmul.mubr.msk.f32.gmra.mxu1 %vm78_vm0, %v11964_v52  ;;  %v15392_v35 = vpop.f32.mrf.mxu0  ;;  %v11852_v52 = vld [vmem:[%s25446_s0 + $0x1a10] sm:$0xff] }
 0x6d4   :  { %26975 = vst [vmem:[#allocation39_spill] sm:$0xff] %v24822_v18  ;;  %26976 = vst [vmem:[#allocation40_spill] sm:$0xff] %v24829_v33  ;;  %15915 = vmatprep.mubr.msk.f32.mxu1 %vm16040_vm1, %v16039_v1  ;;  %v26982_v33 = vmax.f32 %v26980_v11, %v26981_v58  ;;  %v26983_v11 = vmax.f32 %v23688_v16, %v23695_v28  ;;  %v11968_v16 = vld [vmem:[%s25446_s0 + $0x1be8] sm:$0xff] }
 0x6d5   :  { %v15575_v7 = vpop.f32.mrf.mxu1  ;;  %v8111_v61 = vpop.f32.mrf.mxu0  ;;  %15733 = vmatmul.mubr.msk.f32.gmra.mxu0 %vm78_vm0, %v11851_v54 }
 0x6d6   :  { %v24843_v4 = vmax.f32 %v26979_v21, %v8111_v61  ;;  %15735 = vmatprep.mubr.msk.f32.mxu0 %vm16040_vm1, %v16039_v1  ;;  %v11966_v21 = vld [vmem:[%s25446_s0 + $0x1bd8] sm:$0xff] }
 0x6d7   :  { %v24850_v35 = vpop.f32.mrf.mxu1  ;;  %15916 = vmatmul.mubr.msk.f32.gmra.mxu1 %vm78_vm0, %v11965_v32  ;;  %v15395_v7 = vpop.f32.mrf.mxu0  ;;  %v11853_v32 = vld [vmem:[%s25446_s0 + $0x1a18] sm:$0xff] }
 0x6d8   :  { %15918 = vmatprep.mubr.msk.f32.mxu1 %vm16040_vm1, %v16039_v1 }
 0x6d9   :  { %v15578_v55 = vpop.f32.mrf.mxu1  ;;  %v8116_v61 = vpop.f32.mrf.mxu0  ;;  %15736 = vmatmul.mubr.msk.f32.gmra.mxu0 %vm78_vm0, %v11852_v52 }
 0x6da   :  { %v24864_v18 = vmax.f32 %v26982_v33, %v8116_v61  ;;  %15738 = vmatprep.mubr.msk.f32.mxu0 %vm16040_vm1, %v16039_v1  ;;  %v11967_v33 = vld [vmem:[%s25446_s0 + $0x1be0] sm:$0xff] }
 0x6db   :  { %v24871_v7 = vpop.f32.mrf.mxu1  ;;  %15919 = vmatmul.mubr.msk.f32.gmra.mxu1 %vm78_vm0, %v11966_v21  ;;  %v15398_v55 = vpop.f32.mrf.mxu0  ;;  %v11854_v21 = vld [vmem:[%s25446_s0 + $0x1a20] sm:$0xff] }
 0x6dc   :  { %15921 = vmatprep.mubr.msk.f32.mxu1 %vm16040_vm1, %v16039_v1 }
 0x6dd   :  { %v15581_v58 = vpop.f32.mrf.mxu1  ;;  %v8121_v61 = vpop.f32.mrf.mxu0  ;;  %15739 = vmatmul.mubr.msk.f32.gmra.mxu0 %vm78_vm0, %v11853_v32 }
 0x6de   :  { %v24885_v54 = vmax.f32 %v26983_v11, %v8121_v61  ;;  %15741 = vmatprep.mubr.msk.f32.mxu0 %vm16040_vm1, %v16039_v1  ;;  %v26984_v11 = vmax.f32 %v23709_v27, %v23716_v57  ;;  %v11969_v27 = vld [vmem:[%s25446_s0 + $0x1bf0] sm:$0xff] }
 0x6df   :  { %v24892_v55 = vpop.f32.mrf.mxu1  ;;  %15922 = vmatmul.mubr.msk.f32.gmra.mxu1 %vm78_vm0, %v11967_v33  ;;  %v15401_v58 = vpop.f32.mrf.mxu0  ;;  %v11855_v33 = vld [vmem:[%s25446_s0 + $0x1a28] sm:$0xff] }
 0x6e0   :  { %15924 = vmatprep.mubr.msk.f32.mxu1 %vm16040_vm1, %v16039_v1 }
 0x6e1   :  { %v15584_v28 = vpop.f32.mrf.mxu1  ;;  %v8126_v61 = vpop.f32.mrf.mxu0  ;;  %15742 = vmatmul.mubr.msk.f32.gmra.mxu0 %vm78_vm0, %v11854_v21 }
 0x6e2   :  { %v24906_v52 = vmax.f32 %v26984_v11, %v8126_v61  ;;  %15744 = vmatprep.mubr.msk.f32.mxu0 %vm16040_vm1, %v16039_v1  ;;  %v26985_v11 = vmax.f32 %v23730_v51, %v23737_v15  ;;  %v11970_v51 = vld [vmem:[%s25446_s0 + $0x1bf8] sm:$0xff] }
 0x6e3   :  { %v24913_v58 = vpop.f32.mrf.mxu1  ;;  %15925 = vmatmul.mubr.msk.f32.gmra.mxu1 %vm78_vm0, %v11968_v16  ;;  %v15404_v28 = vpop.f32.mrf.mxu0  ;;  %v11856_v16 = vld [vmem:[%s25446_s0 + $0x1a30] sm:$0xff] }
 0x6e4   :  { %15927 = vmatprep.mubr.msk.f32.mxu1 %vm16040_vm1, %v16039_v1 }
 0x6e5   :  { %v15587_v57 = vpop.f32.mrf.mxu1  ;;  %v8131_v61 = vpop.f32.mrf.mxu0  ;;  %15745 = vmatmul.mubr.msk.f32.gmra.mxu0 %vm78_vm0, %v11855_v33 }
 0x6e6   :  { %v24927_v32 = vmax.f32 %v26985_v11, %v8131_v61  ;;  %15747 = vmatprep.mubr.msk.f32.mxu0 %vm16040_vm1, %v16039_v1  ;;  %v26986_v11 = vmax.f32 %v23751_v30, %v23758_v37  ;;  %v11971_v30 = vld [vmem:[%s25446_s0 + $0x1c00] sm:$0xff] }
 0x6e7   :  { %v24934_v28 = vpop.f32.mrf.mxu1  ;;  %15928 = vmatmul.mubr.msk.f32.gmra.mxu1 %vm78_vm0, %v11969_v27  ;;  %v15407_v57 = vpop.f32.mrf.mxu0  ;;  %v11857_v27 = vld [vmem:[%s25446_s0 + $0x1a38] sm:$0xff] }
 0x6e8   :  { %15930 = vmatprep.mubr.msk.f32.mxu1 %vm16040_vm1, %v16039_v1 }
 0x6e9   :  { %v15590_v15 = vpop.f32.mrf.mxu1  ;;  %v8136_v61 = vpop.f32.mrf.mxu0  ;;  %15748 = vmatmul.mubr.msk.f32.gmra.mxu0 %vm78_vm0, %v11856_v16 }
 0x6ea   :  { %v24948_v21 = vmax.f32 %v26986_v11, %v8136_v61  ;;  %15750 = vmatprep.mubr.msk.f32.mxu0 %vm16040_vm1, %v16039_v1  ;;  %v26987_v11 = vmax.f32 %v23772_v44, %v23779_v17  ;;  %v11972_v44 = vld [vmem:[%s25446_s0 + $0x1c08] sm:$0xff] }
 0x6eb   :  { %v24955_v57 = vpop.f32.mrf.mxu1  ;;  %15931 = vmatmul.mubr.msk.f32.gmra.mxu1 %vm78_vm0, %v11970_v51  ;;  %v15410_v15 = vpop.f32.mrf.mxu0  ;;  %v11858_v51 = vld [vmem:[%s25446_s0 + $0x1a40] sm:$0xff] }
 0x6ec   :  { %15933 = vmatprep.mubr.msk.f32.mxu1 %vm16040_vm1, %v16039_v1 }
 0x6ed   :  { %v15593_v37 = vpop.f32.mrf.mxu1  ;;  %v8141_v61 = vpop.f32.mrf.mxu0  ;;  %15751 = vmatmul.mubr.msk.f32.gmra.mxu0 %vm78_vm0, %v11857_v27 }
 0x6ee   :  { %v24969_v33 = vmax.f32 %v26987_v11, %v8141_v61  ;;  %15753 = vmatprep.mubr.msk.f32.mxu0 %vm16040_vm1, %v16039_v1  ;;  %v26988_v11 = vmax.f32 %v23793_v14, %v23800_v23  ;;  %v11973_v14 = vld [vmem:[%s25446_s0 + $0x1c10] sm:$0xff] }
 0x6ef   :  { %v24976_v15 = vpop.f32.mrf.mxu1  ;;  %15934 = vmatmul.mubr.msk.f32.gmra.mxu1 %vm78_vm0, %v11971_v30  ;;  %v15413_v37 = vpop.f32.mrf.mxu0  ;;  %v11859_v30 = vld [vmem:[%s25446_s0 + $0x1a48] sm:$0xff] }
 0x6f0   :  { %15936 = vmatprep.mubr.msk.f32.mxu1 %vm16040_vm1, %v16039_v1 }
 0x6f1   :  { %v15596_v17 = vpop.f32.mrf.mxu1  ;;  %v8146_v61 = vpop.f32.mrf.mxu0  ;;  %15754 = vmatmul.mubr.msk.f32.gmra.mxu0 %vm78_vm0, %v11858_v51 }
 0x6f2   :  { %v24990_v16 = vmax.f32 %v26988_v11, %v8146_v61  ;;  %15756 = vmatprep.mubr.msk.f32.mxu0 %vm16040_vm1, %v16039_v1  ;;  %v26989_v11 = vmax.f32 %v23814_v62, %v23821_v63  ;;  %v11974_v62 = vld [vmem:[%s25446_s0 + $0x1c18] sm:$0xff] }
 0x6f3   :  { %v24997_v37 = vpop.f32.mrf.mxu1  ;;  %15937 = vmatmul.mubr.msk.f32.gmra.mxu1 %vm78_vm0, %v11972_v44  ;;  %v15416_v17 = vpop.f32.mrf.mxu0  ;;  %v11860_v44 = vld [vmem:[%s25446_s0 + $0x1a50] sm:$0xff] }
 0x6f4   :  { %15939 = vmatprep.mubr.msk.f32.mxu1 %vm16040_vm1, %v16039_v1 }
 0x6f5   :  { %v15599_v23 = vpop.f32.mrf.mxu1  ;;  %v8151_v61 = vpop.f32.mrf.mxu0  ;;  %15757 = vmatmul.mubr.msk.f32.gmra.mxu0 %vm78_vm0, %v11859_v30 }
 0x6f6   :  { %v25011_v27 = vmax.f32 %v26989_v11, %v8151_v61  ;;  %15759 = vmatprep.mubr.msk.f32.mxu0 %vm16040_vm1, %v16039_v1  ;;  %v26990_v11 = vmax.f32 %v23835_v10, %v23842_v12  ;;  %v11975_v10 = vld [vmem:[%s25446_s0 + $0x1c20] sm:$0xff] }
 0x6f7   :  { %v25018_v17 = vpop.f32.mrf.mxu1  ;;  %15940 = vmatmul.mubr.msk.f32.gmra.mxu1 %vm78_vm0, %v11973_v14  ;;  %v15419_v23 = vpop.f32.mrf.mxu0  ;;  %v11861_v14 = vld [vmem:[%s25446_s0 + $0x1a58] sm:$0xff] }
 0x6f8   :  { %15942 = vmatprep.mubr.msk.f32.mxu1 %vm16040_vm1, %v16039_v1 }
 0x6f9   :  { %v15602_v63 = vpop.f32.mrf.mxu1  ;;  %v8156_v61 = vpop.f32.mrf.mxu0  ;;  %15760 = vmatmul.mubr.msk.f32.gmra.mxu0 %vm78_vm0, %v11860_v44 }
 0x6fa   :  { %v25032_v51 = vmax.f32 %v26990_v11, %v8156_v61  ;;  %15762 = vmatprep.mubr.msk.f32.mxu0 %vm16040_vm1, %v16039_v1  ;;  %v26991_v11 = vmax.f32 %v23856_v39, %v23863_v6  ;;  %v11976_v39 = vld [vmem:[%s25446_s0 + $0x1c28] sm:$0xff] }
 0x6fb   :  { %v25039_v23 = vpop.f32.mrf.mxu1  ;;  %15943 = vmatmul.mubr.msk.f32.gmra.mxu1 %vm78_vm0, %v11974_v62  ;;  %v15422_v63 = vpop.f32.mrf.mxu0  ;;  %v11862_v62 = vld [vmem:[%s25446_s0 + $0x1a60] sm:$0xff] }
 0x6fc   :  { %15945 = vmatprep.mubr.msk.f32.mxu1 %vm16040_vm1, %v16039_v1 }
 0x6fd   :  { %v15605_v12 = vpop.f32.mrf.mxu1  ;;  %v8161_v61 = vpop.f32.mrf.mxu0  ;;  %15763 = vmatmul.mubr.msk.f32.gmra.mxu0 %vm78_vm0, %v11861_v14 }
 0x6fe   :  { %v25053_v30 = vmax.f32 %v26991_v11, %v8161_v61  ;;  %15765 = vmatprep.mubr.msk.f32.mxu0 %vm16040_vm1, %v16039_v1  ;;  %v26992_v11 = vmax.f32 %v23877_v19, %v23884_v47  ;;  %v11977_v19 = vld [vmem:[%s25446_s0 + $0x1c30] sm:$0xff] }
 0x6ff   :  { %v25060_v63 = vpop.f32.mrf.mxu1  ;;  %15946 = vmatmul.mubr.msk.f32.gmra.mxu1 %vm78_vm0, %v11975_v10  ;;  %v15425_v12 = vpop.f32.mrf.mxu0  ;;  %v11863_v10 = vld [vmem:[%s25446_s0 + $0x1a68] sm:$0xff] }
 0x700   :  { %15948 = vmatprep.mubr.msk.f32.mxu1 %vm16040_vm1, %v16039_v1 }
 0x701   :  { %v15608_v6 = vpop.f32.mrf.mxu1  ;;  %v8166_v61 = vpop.f32.mrf.mxu0  ;;  %15766 = vmatmul.mubr.msk.f32.gmra.mxu0 %vm78_vm0, %v11862_v62 }
 0x702   :  { %v25074_v44 = vmax.f32 %v26992_v11, %v8166_v61  ;;  %15768 = vmatprep.mubr.msk.f32.mxu0 %vm16040_vm1, %v16039_v1  ;;  %v26993_v11 = vmax.f32 %v23898_v56, %v23905_v60  ;;  %v11978_v56 = vld [vmem:[%s25446_s0 + $0x1c38] sm:$0xff] }
 0x703   :  { %v25081_v12 = vpop.f32.mrf.mxu1  ;;  %15949 = vmatmul.mubr.msk.f32.gmra.mxu1 %vm78_vm0, %v11976_v39  ;;  %v15428_v6 = vpop.f32.mrf.mxu0  ;;  %v11864_v39 = vld [vmem:[%s25446_s0 + $0x1a70] sm:$0xff] }
 0x704   :  { %15951 = vmatprep.mubr.msk.f32.mxu1 %vm16040_vm1, %v16039_v1 }
 0x705   :  { %v15611_v47 = vpop.f32.mrf.mxu1  ;;  %v8171_v61 = vpop.f32.mrf.mxu0  ;;  %15769 = vmatmul.mubr.msk.f32.gmra.mxu0 %vm78_vm0, %v11863_v10  ;;  %v25124_v10 = vld [vmem:[%s25448_s2] ss:$0 sm:$0xff] }
 0x706   :  { %v25095_v14 = vmax.f32 %v26993_v11, %v8171_v61  ;;  %15771 = vmatprep.mubr.msk.f32.mxu0 %vm16040_vm1, %v16039_v1  ;;  %v26996_v11 = vmax.f32 %v23919_v40, %v23926_v36  ;;  %v11979_v40 = vld [vmem:[%s25446_s0 + $0x1c40] sm:$0xff] }
 0x707   :  { %v25102_v6 = vpop.f32.mrf.mxu1  ;;  %15952 = vmatmul.mubr.msk.f32.gmra.mxu1 %vm78_vm0, %v11977_v19  ;;  %v15431_v47 = vpop.f32.mrf.mxu0  ;;  %v11865_v19 = vld [vmem:[%s25446_s0 + $0x1a78] sm:$0xff] }
 0x708   :  { %26994 = vst [vmem:[#allocation41_spill] sm:$0xff] %v25095_v14  ;;  %26995 = vst [vmem:[#allocation42_spill] sm:$0xff] %v25102_v6  ;;  %15954 = vmatprep.mubr.msk.f32.mxu1 %vm16040_vm1, %v16039_v1  ;;  %v26997_v6 = vmax.f32 %v23940_v42, %v23947_v45  ;;  %v11980_v42 = vld [vmem:[%s25446_s0 + $0x1c48] sm:$0xff] }
 0x709   :  { %v15614_v60 = vpop.f32.mrf.mxu1  ;;  %v9163_v61 = vpop.f32.mrf.mxu0  ;;  %15772 = vmatmul.mubr.msk.f32.gmra.mxu0 %vm78_vm0, %v11864_v39 }
 0x70a   :  { %v9447_v62 = vmax.f32 %v26996_v11, %v9163_v61  ;;  %15774 = vmatprep.mubr.msk.f32.mxu0 %vm16040_vm1, %v16039_v1 }
 0x70b   :  { %v9799_v47 = vpop.f32.mrf.mxu1  ;;  %15955 = vmatmul.mubr.msk.f32.gmra.mxu1 %vm78_vm0, %v11978_v56  ;;  %v15629_v39 = vpop.f32.mrf.mxu0 }
 0x70c   :  { %v10083_v60 = vmax.f32 %v9447_v62, %v9799_v47  ;;  %15957 = vmatprep.mubr.msk.f32.mxu1 %vm16040_vm1, %v16039_v1  ;;  %v11866_v62 = vld [vmem:[%s25446_s0 + $0x1a80] sm:$0xff] }
 0x70d   :  { %v15812_v36 = vpop.f32.mrf.mxu1  ;;  %v9168_v61 = vpop.f32.mrf.mxu0  ;;  %15775 = vmatmul.mubr.msk.f32.gmra.mxu0 %vm78_vm0, %v11865_v19 }
 0x70e   :  { %v10147_v11 = vadd.f32 %v25124_v10, %v10083_v60  ;;  %v9448_v14 = vmax.f32 %v26997_v6, %v9168_v61  ;;  %15777 = vmatprep.mubr.msk.f32.mxu0 %vm16040_vm1, %v16039_v1  ;;  %v26998_v60 = vmax.f32 %v23961_v29, %v23968_v13  ;;  %v11981_v29 = vld [vmem:[%s25446_s0 + $0x1c50] sm:$0xff] }
 0x70f   :  { %v9804_v56 = vpop.f32.mrf.mxu1  ;;  %15958 = vmatmul.mubr.msk.f32.gmra.mxu1 %vm78_vm0, %v11979_v40  ;;  %v15632_v47 = vpop.f32.mrf.mxu0 }
 0x710   :  { %10204 = vst [vmem:[#allocation2] sm:$0xff] %v10147_v11  ;;  %v10084_v39 = vmax.f32 %v9448_v14, %v9804_v56  ;;  %15960 = vmatprep.mubr.msk.f32.mxu1 %vm16040_vm1, %v16039_v1  ;;  %v11867_v14 = vld [vmem:[%s25446_s0 + $0x1a88] sm:$0xff]  ;;  %v26999_v47 = vmax.f32 %v23982_v48, %v23989_v24  ;;  %v11982_v48 = vld [vmem:[%s25446_s0 + $0x1c58] sm:$0xff] }
 0x711   :  { %v15815_v45 = vpop.f32.mrf.mxu1  ;;  %v9173_v6 = vpop.f32.mrf.mxu0  ;;  %15778 = vmatmul.mubr.msk.f32.gmra.mxu0 %vm78_vm0, %v11866_v62 }
 0x712   :  { %v10148_v19 = vadd.f32 %v25124_v10, %v10084_v39  ;;  %v9449_v40 = vmax.f32 %v26998_v60, %v9173_v6  ;;  %15780 = vmatprep.mubr.msk.f32.mxu0 %vm16040_vm1, %v16039_v1 }
 0x713   :  { %v9809_v36 = vpop.f32.mrf.mxu1  ;;  %15961 = vmatmul.mubr.msk.f32.gmra.mxu1 %vm78_vm0, %v11980_v42  ;;  %v15635_v61 = vpop.f32.mrf.mxu0  ;;  %v11868_v42 = vld [vmem:[%s25446_s0 + $0x1a90] sm:$0xff] }
 0x714   :  { %10205 = vst [vmem:[#allocation2 + $0x8] sm:$0xff] %v10148_v19  ;;  %v10085_v11 = vmax.f32 %v9449_v40, %v9809_v36  ;;  %15963 = vmatprep.mubr.msk.f32.mxu1 %vm16040_vm1, %v16039_v1  ;;  %v11869_v61 = vld [vmem:[%s25446_s0 + $0x1a98] sm:$0xff] }
 0x715   :  { %v15818_v13 = vpop.f32.mrf.mxu1  ;;  %v9178_v62 = vpop.f32.mrf.mxu0  ;;  %15781 = vmatmul.mubr.msk.f32.gmra.mxu0 %vm78_vm0, %v11867_v14  ;;  %v27000_v14 = vmax.f32 %v24003_v25, %v24010_v43  ;;  %v11983_v25 = vld [vmem:[%s25446_s0 + $0x1c60] sm:$0xff] }
 0x716   :  { %v10149_v56 = vadd.f32 %v25124_v10, %v10085_v11  ;;  %v9450_v39 = vmax.f32 %v26999_v47, %v9178_v62  ;;  %15783 = vmatprep.mubr.msk.f32.mxu0 %vm16040_vm1, %v16039_v1  ;;  %v27001_v47 = vmax.f32 %v24024_v26, %v24031_v34  ;;  %v11984_v26 = vld [vmem:[%s25446_s0 + $0x1c68] sm:$0xff] }
 0x717   :  { %v9814_v45 = vpop.f32.mrf.mxu1  ;;  %15964 = vmatmul.mubr.msk.f32.gmra.mxu1 %vm78_vm0, %v11981_v29  ;;  %v15638_v6 = vpop.f32.mrf.mxu0 }
 0x718   :  { %10206 = vst [vmem:[#allocation2 + $0x10] sm:$0xff] %v10149_v56  ;;  %v10086_v19 = vmax.f32 %v9450_v39, %v9814_v45  ;;  %15966 = vmatprep.mubr.msk.f32.mxu1 %vm16040_vm1, %v16039_v1 }
 0x719   :  { %v15821_v24 = vpop.f32.mrf.mxu1  ;;  %v9183_v60 = vpop.f32.mrf.mxu0  ;;  %15784 = vmatmul.mubr.msk.f32.gmra.mxu0 %vm78_vm0, %v11868_v42  ;;  %v11870_v42 = vld [vmem:[%s25446_s0 + $0x1aa0] sm:$0xff] }
 0x71a   :  { %v10150_v40 = vadd.f32 %v25124_v10, %v10086_v19  ;;  %v9451_v36 = vmax.f32 %v27000_v14, %v9183_v60  ;;  %15786 = vmatprep.mubr.msk.f32.mxu0 %vm16040_vm1, %v16039_v1  ;;  %v27002_v60 = vmax.f32 %v24045_v53, %v24052_v0  ;;  %v11871_v14 = vld [vmem:[%s25446_s0 + $0x1aa8] sm:$0xff]  ;;  %v11985_v53 = vld [vmem:[%s25446_s0 + $0x1c70] sm:$0xff] }
 0x71b   :  { %v9819_v11 = vpop.f32.mrf.mxu1  ;;  %15967 = vmatmul.mubr.msk.f32.gmra.mxu1 %vm78_vm0, %v11982_v48  ;;  %v15641_v29 = vpop.f32.mrf.mxu0 }
 0x71c   :  { %10207 = vst [vmem:[#allocation2 + $0x18] sm:$0xff] %v10150_v40  ;;  %v10087_v13 = vmax.f32 %v9451_v36, %v9819_v11  ;;  %15969 = vmatprep.mubr.msk.f32.mxu1 %vm16040_vm1, %v16039_v1 }
 0x71d   :  { %v15824_v43 = vpop.f32.mrf.mxu1  ;;  %v9188_v62 = vpop.f32.mrf.mxu0  ;;  %15787 = vmatmul.mubr.msk.f32.gmra.mxu0 %vm78_vm0, %v11869_v61 }
 0x71e   :  { %v10151_v56 = vadd.f32 %v25124_v10, %v10087_v13  ;;  %v9452_v39 = vmax.f32 %v27001_v47, %v9188_v62  ;;  %15789 = vmatprep.mubr.msk.f32.mxu0 %vm16040_vm1, %v16039_v1  ;;  %v11872_v62 = vld [vmem:[%s25446_s0 + $0x1ab0] sm:$0xff] }
 0x71f   :  { %v9824_v45 = vpop.f32.mrf.mxu1  ;;  %15970 = vmatmul.mubr.msk.f32.gmra.mxu1 %vm78_vm0, %v11983_v25  ;;  %v15644_v6 = vpop.f32.mrf.mxu0  ;;  %v27003_v25 = vmax.f32 %v24066_v9, %v24073_v41  ;;  %v11986_v9 = vld [vmem:[%s25446_s0 + $0x1c78] sm:$0xff]  ;;  %s16041_s0 = smov [#allocation2]  }
 0x720   :  { %10208 = vst [vmem:[#allocation2 + $0x20] sm:$0xff] %v10151_v56  ;;  %v10088_v19 = vmax.f32 %v9452_v39, %v9824_v45  ;;  %15972 = vmatprep.mubr.msk.f32.mxu1 %vm16040_vm1, %v16039_v1  ;;  %v27004_v6 = vmax.f32 %v24087_v2, %v24094_v20  ;;  %s10266_s5 = sshll.u32 %s16041_s0, 4  ;;  %s10267_s5 = int_to_ptr.vmem [resolvable:$true] %s10266_s5 }
 0x721   :  { %v15827_v34 = vpop.f32.mrf.mxu1  ;;  %v9193_v48 = vpop.f32.mrf.mxu0  ;;  %15790 = vmatmul.mubr.msk.f32.gmra.mxu0 %vm78_vm0, %v11870_v42  ;;  %s16017_s2 = scalar_lea.vmem %s10267_s5, 7296  ;;  %p16022_p1 = scmp.lt.s32.totalorder %s10267_s5, %s10267_s5 }
 0x722   :  { %v10152_v24 = vadd.f32 %v25124_v10, %v10088_v19  ;;  %v9453_v40 = vmax.f32 %v27002_v60, %v9193_v48  ;;  %15792 = vmatprep.mubr.msk.f32.mxu0 %vm16040_vm1, %v16039_v1  ;;  %p16018_p0 = scmp.ne.s32.totalorder %s10267_s5, %s16017_s2  ;;  %p16023_p2 = scmp.lt.s32.totalorder %s16017_s2, %s16017_s2 }
 0x723   :  { %v9829_v36 = vpop.f32.mrf.mxu1  ;;  %15973 = vmatmul.mubr.msk.f32.gmra.mxu1 %vm78_vm0, %v11984_v26  ;;  %v15647_v61 = vpop.f32.mrf.mxu0 }
 0x724   :  { %10209 = vst [vmem:[#allocation2 + $0x28] sm:$0xff] %v10152_v24  ;;  %v10089_v11 = vmax.f32 %v9453_v40, %v9829_v36  ;;  %15975 = vmatprep.mubr.msk.f32.mxu1 %vm16040_vm1, %v16039_v1  ;;  %v27005_v40 = vmax.f32 %v24108_v49, %v24115_v59  ;;  %v27007_v59 = vmax.f32 %v24150_v8, %v24157_v50  ;;  %p16024_p3 = por %p16023_p2, %p16022_p1 }
 0x725   :  { %v15830_v0 = vpop.f32.mrf.mxu1  ;;  %v9198_v29 = vpop.f32.mrf.mxu0  ;;  %15793 = vmatmul.mubr.msk.f32.gmra.mxu0 %vm78_vm0, %v11871_v14  ;;  %v27009_v50 = vmax.f32 %v24192_v3, %v24199_v38  ;;  %v27013_v38 = vld [vmem:[#allocation47_spill] sm:$0xff] }
 0x726   :  { %v10153_v13 = vadd.f32 %v25124_v10, %v10089_v11  ;;  %v9454_v43 = vmax.f32 %v27003_v25, %v9198_v29  ;;  %15795 = vmatprep.mubr.msk.f32.mxu0 %vm16040_vm1, %v16039_v1  ;;  %v27006_v0 = vmax.f32 %v24129_v46, %v24136_v31  ;;  %v27008_v31 = vmax.f32 %v24171_v5, %v24178_v22  ;;  %v27010_v22 = vld [vmem:[#allocation45_spill] sm:$0xff]  ;;  %p16025_p4 = pnand %p16024_p3, %p16018_p0 }
 0x727   :  { %v9834_v56 = vpop.f32.mrf.mxu1  ;;  %15976 = vmatmul.mubr.msk.f32.gmra.mxu1 %vm78_vm0, %v11985_v53  ;;  %v15650_v47 = vpop.f32.mrf.mxu0 }
 0x728   :  { %10210 = vst [vmem:[#allocation2 + $0x30] sm:$0xff] %v10153_v13  ;;  %v10090_v39 = vmax.f32 %v9454_v43, %v9834_v56  ;;  %15978 = vmatprep.mubr.msk.f32.mxu1 %vm16040_vm1, %v16039_v1 }
 0x729   :  { %v15833_v41 = vpop.f32.mrf.mxu1  ;;  %v9203_v42 = vpop.f32.mrf.mxu0  ;;  %15796 = vmatmul.mubr.msk.f32.gmra.mxu0 %vm78_vm0, %v11872_v62 }
 0x72a   :  { %v10154_v45 = vadd.f32 %v25124_v10, %v10090_v39  ;;  %v9455_v19 = vmax.f32 %v27004_v6, %v9203_v42 }
 0x72b   :  { %v9839_v26 = vpop.f32.mrf.mxu1  ;;  %15979 = vmatmul.mubr.msk.f32.gmra.mxu1 %vm78_vm0, %v11986_v9  ;;  %v15653_v34 = vpop.f32.mrf.mxu0 }
 0x72c   :  { %10211 = vst [vmem:[#allocation2 + $0x38] sm:$0xff] %v10154_v45  ;;  %v10091_v1 = vmax.f32 %v9455_v19, %v9839_v26 }
 0x72d   :  { %v15836_v48 = vpop.f32.mrf.mxu1  ;;  %v9208_v24 = vpop.f32.mrf.mxu0 }
 0x72e   :  { %v10155_v60 = vadd.f32 %v25124_v10, %v10091_v1  ;;  %v9456_v14 = vmax.f32 %v27005_v40, %v9208_v24 }
 0x72f   :  { %v9844_v36 = vpop.f32.mrf.mxu1  ;;  %v15656_v61 = vpop.f32.mrf.mxu0 }
 0x730   :  { %10212 = vst [vmem:[#allocation2 + $0x40] sm:$0xff] %v10155_v60  ;;  %v10092_v11 = vmax.f32 %v9456_v14, %v9844_v36 }
 0x731   :  { %v15839_v2 = vpop.f32.mrf.mxu1  ;;  %v9213_v20 = vpop.f32.mrf.mxu0 }
 0x732   :  { %v10156_v53 = vadd.f32 %v25124_v10, %v10092_v11  ;;  %v9457_v29 = vmax.f32 %v27006_v0, %v9213_v20  ;;  %v27011_v11 = vld [vmem:[#allocation46_spill] sm:$0xff] }
 0x733   :  { %v9849_v13 = vpop.f32.mrf.mxu1  ;;  %v15659_v25 = vpop.f32.mrf.mxu0  ;;  %v27012_v2 = vmax.f32 %v27010_v22, %v27011_v11  ;;  %v27022_v11 = vld [vmem:[#allocation53_spill] sm:$0xff] }
 0x734   :  { %10213 = vst [vmem:[#allocation2 + $0x48] sm:$0xff] %v10156_v53  ;;  %v10093_v43 = vmax.f32 %v9457_v29, %v9849_v13 }
 0x735   :  { %v15842_v62 = vpop.f32.mrf.mxu1  ;;  %v9218_v56 = vpop.f32.mrf.mxu0 }
 0x736   :  { %v10157_v49 = vadd.f32 %v25124_v10, %v10093_v43  ;;  %v9458_v47 = vmax.f32 %v27007_v59, %v9218_v56  ;;  %v27014_v43 = vld [vmem:[#allocation48_spill] sm:$0xff] }
 0x737   :  { %v9854_v39 = vpop.f32.mrf.mxu1  ;;  %v15662_v9 = vpop.f32.mrf.mxu0  ;;  %v27015_v62 = vmax.f32 %v27013_v38, %v27014_v43  ;;  %v27025_v43 = vld [vmem:[#allocation55_spill] sm:$0xff] }
 0x738   :  { %10214 = vst [vmem:[#allocation2 + $0x50] sm:$0xff] %v10157_v49  ;;  %v10094_v41 = vmax.f32 %v9458_v47, %v9854_v39 }
 0x739   :  { %v15845_v42 = vpop.f32.mrf.mxu1  ;;  %v9223_v45 = vpop.f32.mrf.mxu0 }
 0x73a   :  { %v10158_v46 = vadd.f32 %v25124_v10, %v10094_v41  ;;  %v9459_v6 = vmax.f32 %v27008_v31, %v9223_v45  ;;  %v27016_v42 = vld [vmem:[#allocation49_spill] sm:$0xff]  ;;  %v27017_v45 = vld [vmem:[#allocation50_spill] sm:$0xff] }
 0x73b   :  { %v9859_v19 = vpop.f32.mrf.mxu1  ;;  %v15665_v26 = vpop.f32.mrf.mxu0 }
 0x73c   :  { %10215 = vst [vmem:[#allocation2 + $0x58] sm:$0xff] %v10158_v46  ;;  %v10095_v34 = vmax.f32 %v9459_v6, %v9859_v19  ;;  %v27018_v46 = vmax.f32 %v27016_v42, %v27017_v45  ;;  %v27028_v45 = vld [vmem:[#allocation57_spill] sm:$0xff] }
 0x73d   :  { %v15848_v1 = vpop.f32.mrf.mxu1  ;;  %v9228_v48 = vpop.f32.mrf.mxu0 }
 0x73e   :  { %v10159_v8 = vadd.f32 %v25124_v10, %v10095_v34  ;;  %v9460_v24 = vmax.f32 %v27009_v50, %v9228_v48  ;;  %v27020_v50 = vld [vmem:[#allocation52_spill] sm:$0xff] }
 0x73f   :  { %v9864_v60 = vpop.f32.mrf.mxu1  ;;  %v15668_v40 = vpop.f32.mrf.mxu0 }
 0x740   :  { %10216 = vst [vmem:[#allocation2 + $0x60] sm:$0xff] %v10159_v8  ;;  %v10096_v14 = vmax.f32 %v9460_v24, %v9864_v60  ;;  %v27019_v8 = vld [vmem:[#allocation51_spill] sm:$0xff] }
 0x741   :  { %v15851_v36 = vpop.f32.mrf.mxu1  ;;  %v9233_v61 = vpop.f32.mrf.mxu0  ;;  %v27021_v24 = vmax.f32 %v27019_v8, %v27020_v50  ;;  %v27031_v50 = vld [vmem:[#allocation59_spill] sm:$0xff] }
 0x742   :  { %v10160_v5 = vadd.f32 %v25124_v10, %v10096_v14  ;;  %v9461_v20 = vmax.f32 %v27012_v2, %v9233_v61  ;;  %v27023_v2 = vld [vmem:[#allocation54_spill] sm:$0xff] }
 0x743   :  { %v9869_v53 = vpop.f32.mrf.mxu1  ;;  %v15671_v0 = vpop.f32.mrf.mxu0 }
 0x744   :  { %10217 = vst [vmem:[#allocation2 + $0x68] sm:$0xff] %v10160_v5  ;;  %v10097_v29 = vmax.f32 %v9461_v20, %v9869_v53  ;;  %v27024_v20 = vmax.f32 %v27022_v11, %v27023_v2  ;;  %v27034_v2 = vld [vmem:[#allocation61_spill] sm:$0xff] }
 0x745   :  { %v15854_v13 = vpop.f32.mrf.mxu1  ;;  %v9238_v25 = vpop.f32.mrf.mxu0 }
 0x746   :  { %v10161_v3 = vadd.f32 %v25124_v10, %v10097_v29  ;;  %v9462_v56 = vmax.f32 %v27015_v62, %v9238_v25  ;;  %v27026_v62 = vld [vmem:[#allocation56_spill] sm:$0xff] }
 0x747   :  { %v9874_v49 = vpop.f32.mrf.mxu1  ;;  %v15674_v59 = vpop.f32.mrf.mxu0 }
 0x748   :  { %10218 = vst [vmem:[#allocation2 + $0x70] sm:$0xff] %v10161_v3  ;;  %v10098_v47 = vmax.f32 %v9462_v56, %v9874_v49  ;;  %v27027_v56 = vmax.f32 %v27025_v43, %v27026_v62  ;;  %v27037_v62 = vld [vmem:[#allocation63_spill] sm:$0xff] }
 0x749   :  { %v15857_v39 = vpop.f32.mrf.mxu1  ;;  %v9243_v9 = vpop.f32.mrf.mxu0 }
 0x74a   :  { %v10162_v41 = vadd.f32 %v25124_v10, %v10098_v47  ;;  %v9463_v31 = vmax.f32 %v27018_v46, %v9243_v9  ;;  %v27029_v46 = vld [vmem:[#allocation58_spill] sm:$0xff] }
 0x74b   :  { %v9879_v6 = vpop.f32.mrf.mxu1  ;;  %v15677_v19 = vpop.f32.mrf.mxu0 }
 0x74c   :  { %10219 = vst [vmem:[#allocation2 + $0x78] sm:$0xff] %v10162_v41  ;;  %v10099_v26 = vmax.f32 %v9463_v31, %v9879_v6  ;;  %v27030_v31 = vmax.f32 %v27028_v45, %v27029_v46  ;;  %v27040_v46 = vld [vmem:[#allocation65_spill] sm:$0xff] }
 0x74d   :  { %v15860_v34 = vpop.f32.mrf.mxu1  ;;  %v9248_v1 = vpop.f32.mrf.mxu0 }
 0x74e   :  { %v10163_v48 = vadd.f32 %v25124_v10, %v10099_v26  ;;  %v9464_v60 = vmax.f32 %v27021_v24, %v9248_v1  ;;  %v27032_v24 = vld [vmem:[#allocation60_spill] sm:$0xff] }
 0x74f   :  { %v9884_v40 = vpop.f32.mrf.mxu1  ;;  %v15680_v14 = vpop.f32.mrf.mxu0 }
 0x750   :  { %10220 = vst [vmem:[#allocation2 + $0x80] sm:$0xff] %v10163_v48  ;;  %v10100_v36 = vmax.f32 %v9464_v60, %v9884_v40  ;;  %v27033_v60 = vmax.f32 %v27031_v50, %v27032_v24  ;;  %v27043_v24 = vld [vmem:[#allocation67_spill] sm:$0xff] }
 0x751   :  { %v15863_v61 = vpop.f32.mrf.mxu1  ;;  %v9253_v5 = vpop.f32.mrf.mxu0 }
 0x752   :  { %v10164_v22 = vadd.f32 %v25124_v10, %v10100_v36  ;;  %v9465_v53 = vmax.f32 %v27024_v20, %v9253_v5  ;;  %v27035_v20 = vld [vmem:[#allocation62_spill] sm:$0xff] }
 0x753   :  { %v9889_v0 = vpop.f32.mrf.mxu1  ;;  %v15683_v29 = vpop.f32.mrf.mxu0 }
 0x754   :  { %10221 = vst [vmem:[#allocation2 + $0x88] sm:$0xff] %v10164_v22  ;;  %v10101_v13 = vmax.f32 %v9465_v53, %v9889_v0  ;;  %v27036_v53 = vmax.f32 %v27034_v2, %v27035_v20  ;;  %v27046_v20 = vld [vmem:[#allocation5_spill] sm:$0xff] }
 0x755   :  { %v15866_v25 = vpop.f32.mrf.mxu1  ;;  %v9258_v3 = vpop.f32.mrf.mxu0 }
 0x756   :  { %v10165_v38 = vadd.f32 %v25124_v10, %v10101_v13  ;;  %v9466_v49 = vmax.f32 %v27027_v56, %v9258_v3  ;;  %v27038_v56 = vld [vmem:[#allocation64_spill] sm:$0xff] }
 0x757   :  { %v9894_v59 = vpop.f32.mrf.mxu1  ;;  %v15686_v47 = vpop.f32.mrf.mxu0 }
 0x758   :  { %10222 = vst [vmem:[#allocation2 + $0x90] sm:$0xff] %v10165_v38  ;;  %v10102_v39 = vmax.f32 %v9466_v49, %v9894_v59  ;;  %v27039_v49 = vmax.f32 %v27037_v62, %v27038_v56  ;;  %v27049_v56 = vld [vmem:[#allocation7_spill] sm:$0xff] }
 0x759   :  { %v15869_v9 = vpop.f32.mrf.mxu1  ;;  %v9263_v41 = vpop.f32.mrf.mxu0 }
 0x75a   :  { %v10166_v42 = vadd.f32 %v25124_v10, %v10102_v39  ;;  %v9467_v6 = vmax.f32 %v27030_v31, %v9263_v41  ;;  %v27041_v31 = vld [vmem:[#allocation66_spill] sm:$0xff] }
 0x75b   :  { %v9899_v19 = vpop.f32.mrf.mxu1  ;;  %v15689_v26 = vpop.f32.mrf.mxu0 }
 0x75c   :  { %10223 = vst [vmem:[#allocation2 + $0x98] sm:$0xff] %v10166_v42  ;;  %v10103_v34 = vmax.f32 %v9467_v6, %v9899_v19  ;;  %v27042_v6 = vmax.f32 %v27040_v46, %v27041_v31  ;;  %v27052_v31 = vld [vmem:[#allocation9_spill] sm:$0xff] }
 0x75d   :  { %v15872_v1 = vpop.f32.mrf.mxu1  ;;  %v9268_v48 = vpop.f32.mrf.mxu0 }
 0x75e   :  { %v10167_v8 = vadd.f32 %v25124_v10, %v10103_v34  ;;  %v9468_v40 = vmax.f32 %v27033_v60, %v9268_v48  ;;  %v27044_v60 = vld [vmem:[#allocation68_spill] sm:$0xff] }
 0x75f   :  { %v9904_v14 = vpop.f32.mrf.mxu1  ;;  %v15692_v36 = vpop.f32.mrf.mxu0 }
 0x760   :  { %10224 = vst [vmem:[#allocation2 + $0xa0] sm:$0xff] %v10167_v8  ;;  %v10104_v61 = vmax.f32 %v9468_v40, %v9904_v14  ;;  %v27045_v40 = vmax.f32 %v27043_v24, %v27044_v60  ;;  %v27055_v60 = vld [vmem:[#allocation11_spill] sm:$0xff] }
 0x761   :  { %v15875_v5 = vpop.f32.mrf.mxu1  ;;  %v9273_v22 = vpop.f32.mrf.mxu0 }
 0x762   :  { %v10168_v11 = vadd.f32 %v25124_v10, %v10104_v61  ;;  %v9469_v0 = vmax.f32 %v27036_v53, %v9273_v22  ;;  %v27047_v53 = vld [vmem:[#allocation6_spill] sm:$0xff] }
 0x763   :  { %v9909_v29 = vpop.f32.mrf.mxu1  ;;  %v15695_v13 = vpop.f32.mrf.mxu0 }
 0x764   :  { %10225 = vst [vmem:[#allocation2 + $0xa8] sm:$0xff] %v10168_v11  ;;  %v10105_v25 = vmax.f32 %v9469_v0, %v9909_v29  ;;  %v27048_v0 = vmax.f32 %v27046_v20, %v27047_v53  ;;  %v27058_v53 = vld [vmem:[#allocation13_spill] sm:$0xff] }
 0x765   :  { %v15878_v3 = vpop.f32.mrf.mxu1  ;;  %v9278_v38 = vpop.f32.mrf.mxu0 }
 0x766   :  { %v10169_v43 = vadd.f32 %v25124_v10, %v10105_v25  ;;  %v9470_v59 = vmax.f32 %v27039_v49, %v9278_v38  ;;  %v27050_v49 = vld [vmem:[#allocation8_spill] sm:$0xff] }
 0x767   :  { %v9914_v47 = vpop.f32.mrf.mxu1  ;;  %v15698_v39 = vpop.f32.mrf.mxu0 }
 0x768   :  { %10226 = vst [vmem:[#allocation2 + $0xb0] sm:$0xff] %v10169_v43  ;;  %v10106_v9 = vmax.f32 %v9470_v59, %v9914_v47  ;;  %v27051_v59 = vmax.f32 %v27049_v56, %v27050_v49  ;;  %v27061_v49 = vld [vmem:[#allocation15_spill] sm:$0xff] }
 0x769   :  { %v15881_v41 = vpop.f32.mrf.mxu1  ;;  %v9283_v42 = vpop.f32.mrf.mxu0 }
 0x76a   :  { %v10170_v45 = vadd.f32 %v25124_v10, %v10106_v9  ;;  %v9471_v19 = vmax.f32 %v27042_v6, %v9283_v42  ;;  %v27053_v6 = vld [vmem:[#allocation10_spill] sm:$0xff] }
 0x76b   :  { %v9919_v26 = vpop.f32.mrf.mxu1  ;;  %v15701_v34 = vpop.f32.mrf.mxu0 }
 0x76c   :  { %10227 = vst [vmem:[#allocation2 + $0xb8] sm:$0xff] %v10170_v45  ;;  %v10107_v1 = vmax.f32 %v9471_v19, %v9919_v26  ;;  %v27054_v19 = vmax.f32 %v27052_v31, %v27053_v6  ;;  %v27064_v6 = vld [vmem:[#allocation17_spill] sm:$0xff] }
 0x76d   :  { %v15884_v48 = vpop.f32.mrf.mxu1  ;;  %v9288_v8 = vpop.f32.mrf.mxu0 }
 0x76e   :  { %v10171_v50 = vadd.f32 %v25124_v10, %v10107_v1  ;;  %v9472_v14 = vmax.f32 %v27045_v40, %v9288_v8  ;;  %v27056_v40 = vld [vmem:[#allocation12_spill] sm:$0xff] }
 0x76f   :  { %v9924_v36 = vpop.f32.mrf.mxu1  ;;  %v15704_v61 = vpop.f32.mrf.mxu0 }
 0x770   :  { %10228 = vst [vmem:[#allocation2 + $0xc0] sm:$0xff] %v10171_v50  ;;  %v10108_v5 = vmax.f32 %v9472_v14, %v9924_v36  ;;  %v27057_v14 = vmax.f32 %v27055_v60, %v27056_v40  ;;  %v27067_v40 = vld [vmem:[#allocation19_spill] sm:$0xff] }
 0x771   :  { %v15887_v22 = vpop.f32.mrf.mxu1  ;;  %v9293_v11 = vpop.f32.mrf.mxu0 }
 0x772   :  { %v10172_v2 = vadd.f32 %v25124_v10, %v10108_v5  ;;  %v9473_v29 = vmax.f32 %v27048_v0, %v9293_v11  ;;  %v27059_v0 = vld [vmem:[#allocation14_spill] sm:$0xff] }
 0x773   :  { %v9929_v13 = vpop.f32.mrf.mxu1  ;;  %v15707_v25 = vpop.f32.mrf.mxu0 }
 0x774   :  { %10229 = vst [vmem:[#allocation2 + $0xc8] sm:$0xff] %v10172_v2  ;;  %v10109_v3 = vmax.f32 %v9473_v29, %v9929_v13  ;;  %v27060_v29 = vmax.f32 %v27058_v53, %v27059_v0  ;;  %v27070_v0 = vld [vmem:[#allocation21_spill] sm:$0xff] }
 0x775   :  { %v15890_v38 = vpop.f32.mrf.mxu1  ;;  %v9298_v43 = vpop.f32.mrf.mxu0 }
 0x776   :  { %v10173_v62 = vadd.f32 %v25124_v10, %v10109_v3  ;;  %v9474_v47 = vmax.f32 %v27051_v59, %v9298_v43  ;;  %v27062_v59 = vld [vmem:[#allocation16_spill] sm:$0xff] }
 0x777   :  { %v9934_v39 = vpop.f32.mrf.mxu1  ;;  %v15710_v9 = vpop.f32.mrf.mxu0 }
 0x778   :  { %10230 = vst [vmem:[#allocation2 + $0xd0] sm:$0xff] %v10173_v62  ;;  %v10110_v41 = vmax.f32 %v9474_v47, %v9934_v39  ;;  %v27063_v47 = vmax.f32 %v27061_v49, %v27062_v59  ;;  %v27073_v59 = vld [vmem:[#allocation23_spill] sm:$0xff] }
 0x779   :  { %v15893_v42 = vpop.f32.mrf.mxu1  ;;  %v9303_v45 = vpop.f32.mrf.mxu0 }
 0x77a   :  { %v10174_v46 = vadd.f32 %v25124_v10, %v10110_v41  ;;  %v9475_v26 = vmax.f32 %v27054_v19, %v9303_v45  ;;  %v27065_v19 = vld [vmem:[#allocation18_spill] sm:$0xff] }
 0x77b   :  { %v9939_v34 = vpop.f32.mrf.mxu1  ;;  %v15713_v1 = vpop.f32.mrf.mxu0 }
 0x77c   :  { %10231 = vst [vmem:[#allocation2 + $0xd8] sm:$0xff] %v10174_v46  ;;  %v10111_v48 = vmax.f32 %v9475_v26, %v9939_v34  ;;  %v27066_v26 = vmax.f32 %v27064_v6, %v27065_v19  ;;  %v27076_v19 = vld [vmem:[#allocation25_spill] sm:$0xff] }
 0x77d   :  { %v15896_v8 = vpop.f32.mrf.mxu1  ;;  %v9308_v50 = vpop.f32.mrf.mxu0 }
 0x77e   :  { %v10175_v24 = vadd.f32 %v25124_v10, %v10111_v48  ;;  %v9476_v36 = vmax.f32 %v27057_v14, %v9308_v50  ;;  %v27068_v14 = vld [vmem:[#allocation20_spill] sm:$0xff] }
 0x77f   :  { %v9944_v61 = vpop.f32.mrf.mxu1  ;;  %v15716_v5 = vpop.f32.mrf.mxu0 }
 0x780   :  { %10232 = vst [vmem:[#allocation2 + $0xe0] sm:$0xff] %v10175_v24  ;;  %v10112_v22 = vmax.f32 %v9476_v36, %v9944_v61  ;;  %v27069_v36 = vmax.f32 %v27067_v40, %v27068_v14  ;;  %v27079_v14 = vld [vmem:[#allocation27_spill] sm:$0xff] }
 0x781   :  { %v15899_v11 = vpop.f32.mrf.mxu1  ;;  %v9313_v2 = vpop.f32.mrf.mxu0 }
 0x782   :  { %v10176_v20 = vadd.f32 %v25124_v10, %v10112_v22  ;;  %v9477_v13 = vmax.f32 %v27060_v29, %v9313_v2  ;;  %v27071_v29 = vld [vmem:[#allocation22_spill] sm:$0xff] }
 0x783   :  { %v9949_v25 = vpop.f32.mrf.mxu1  ;;  %v15719_v3 = vpop.f32.mrf.mxu0 }
 0x784   :  { %10233 = vst [vmem:[#allocation2 + $0xe8] sm:$0xff] %v10176_v20  ;;  %v10113_v38 = vmax.f32 %v9477_v13, %v9949_v25  ;;  %v27072_v13 = vmax.f32 %v27070_v0, %v27071_v29  ;;  %v27082_v29 = vld [vmem:[#allocation29_spill] sm:$0xff] }
 0x785   :  { %v15902_v43 = vpop.f32.mrf.mxu1  ;;  %v9318_v62 = vpop.f32.mrf.mxu0 }
 0x786   :  { %v10177_v56 = vadd.f32 %v25124_v10, %v10113_v38  ;;  %v9478_v39 = vmax.f32 %v27063_v47, %v9318_v62  ;;  %v27074_v47 = vld [vmem:[#allocation24_spill] sm:$0xff] }
 0x787   :  { %v9954_v9 = vpop.f32.mrf.mxu1  ;;  %v15722_v41 = vpop.f32.mrf.mxu0 }
 0x788   :  { %10234 = vst [vmem:[#allocation2 + $0xf0] sm:$0xff] %v10177_v56  ;;  %v10114_v42 = vmax.f32 %v9478_v39, %v9954_v9  ;;  %v27075_v39 = vmax.f32 %v27073_v59, %v27074_v47  ;;  %v27085_v47 = vld [vmem:[#allocation31_spill] sm:$0xff] }
 0x789   :  { %v15905_v45 = vpop.f32.mrf.mxu1  ;;  %v9323_v46 = vpop.f32.mrf.mxu0 }
 0x78a   :  { %v10178_v31 = vadd.f32 %v25124_v10, %v10114_v42  ;;  %v9479_v34 = vmax.f32 %v27066_v26, %v9323_v46  ;;  %v27077_v26 = vld [vmem:[#allocation26_spill] sm:$0xff] }
 0x78b   :  { %v9959_v1 = vpop.f32.mrf.mxu1  ;;  %v15725_v48 = vpop.f32.mrf.mxu0 }
 0x78c   :  { %10235 = vst [vmem:[#allocation2 + $0xf8] sm:$0xff] %v10178_v31  ;;  %v10115_v8 = vmax.f32 %v9479_v34, %v9959_v1  ;;  %v27078_v34 = vmax.f32 %v27076_v19, %v27077_v26  ;;  %v27088_v26 = vld [vmem:[#allocation33_spill] sm:$0xff] }
 0x78d   :  { %v15908_v50 = vpop.f32.mrf.mxu1  ;;  %v9328_v24 = vpop.f32.mrf.mxu0 }
 0x78e   :  { %v10179_v60 = vadd.f32 %v25124_v10, %v10115_v8  ;;  %v9480_v61 = vmax.f32 %v27069_v36, %v9328_v24  ;;  %v27080_v36 = vld [vmem:[#allocation28_spill] sm:$0xff] }
 0x78f   :  { %v9964_v5 = vpop.f32.mrf.mxu1  ;;  %v15728_v22 = vpop.f32.mrf.mxu0 }
 0x790   :  { %10236 = vst [vmem:[#allocation2 + $0x100] sm:$0xff] %v10179_v60  ;;  %v10116_v11 = vmax.f32 %v9480_v61, %v9964_v5  ;;  %v27081_v61 = vmax.f32 %v27079_v14, %v27080_v36  ;;  %v27091_v36 = vld [vmem:[#allocation35_spill] sm:$0xff] }
 0x791   :  { %v15911_v2 = vpop.f32.mrf.mxu1  ;;  %v9333_v20 = vpop.f32.mrf.mxu0 }
 0x792   :  { %v10180_v53 = vadd.f32 %v25124_v10, %v10116_v11  ;;  %v9481_v25 = vmax.f32 %v27072_v13, %v9333_v20  ;;  %v27083_v13 = vld [vmem:[#allocation30_spill] sm:$0xff] }
 0x793   :  { %v9969_v3 = vpop.f32.mrf.mxu1  ;;  %v15731_v38 = vpop.f32.mrf.mxu0 }
 0x794   :  { %10237 = vst [vmem:[#allocation2 + $0x108] sm:$0xff] %v10180_v53  ;;  %v10117_v43 = vmax.f32 %v9481_v25, %v9969_v3  ;;  %v27084_v25 = vmax.f32 %v27082_v29, %v27083_v13  ;;  %v27094_v13 = vld [vmem:[#allocation37_spill] sm:$0xff] }
 0x795   :  { %v15914_v62 = vpop.f32.mrf.mxu1  ;;  %v9338_v56 = vpop.f32.mrf.mxu0 }
 0x796   :  { %v10181_v49 = vadd.f32 %v25124_v10, %v10117_v43  ;;  %v9482_v9 = vmax.f32 %v27075_v39, %v9338_v56  ;;  %v27086_v39 = vld [vmem:[#allocation32_spill] sm:$0xff] }
 0x797   :  { %v9974_v41 = vpop.f32.mrf.mxu1  ;;  %v15734_v42 = vpop.f32.mrf.mxu0 }
 0x798   :  { %10238 = vst [vmem:[#allocation2 + $0x110] sm:$0xff] %v10181_v49  ;;  %v10118_v45 = vmax.f32 %v9482_v9, %v9974_v41  ;;  %v27087_v9 = vmax.f32 %v27085_v47, %v27086_v39  ;;  %v27097_v39 = vld [vmem:[#allocation39_spill] sm:$0xff] }
 0x799   :  { %v15917_v46 = vpop.f32.mrf.mxu1  ;;  %v9343_v31 = vpop.f32.mrf.mxu0 }
 0x79a   :  { %v10182_v6 = vadd.f32 %v25124_v10, %v10118_v45  ;;  %v9483_v1 = vmax.f32 %v27078_v34, %v9343_v31  ;;  %v27089_v34 = vld [vmem:[#allocation34_spill] sm:$0xff] }
 0x79b   :  { %v9979_v48 = vpop.f32.mrf.mxu1  ;;  %v15737_v8 = vpop.f32.mrf.mxu0 }
 0x79c   :  { %10239 = vst [vmem:[#allocation2 + $0x118] sm:$0xff] %v10182_v6  ;;  %v10119_v50 = vmax.f32 %v9483_v1, %v9979_v48  ;;  %v27090_v1 = vmax.f32 %v27088_v26, %v27089_v34  ;;  %v27100_v34 = vmax.f32 %v24843_v4, %v24850_v35  ;;  %v27102_v35 = vmax.f32 %v24885_v54, %v24892_v55 }
 0x79d   :  { %v15920_v24 = vpop.f32.mrf.mxu1  ;;  %v9348_v60 = vpop.f32.mrf.mxu0  ;;  %v27104_v55 = vmax.f32 %v24927_v32, %v24934_v28  ;;  %v27106_v28 = vmax.f32 %v24969_v33, %v24976_v15  ;;  %v27108_v15 = vmax.f32 %v25011_v27, %v25018_v17  ;;  %v27110_v17 = vmax.f32 %v25053_v30, %v25060_v63  ;;  %v27112_v63 = vld [vmem:[#allocation41_spill] sm:$0xff] }
 0x79e   :  { %v10183_v40 = vadd.f32 %v25124_v10, %v10119_v50  ;;  %v9484_v5 = vmax.f32 %v27081_v61, %v9348_v60  ;;  %v27092_v61 = vld [vmem:[#allocation36_spill] sm:$0xff] }
 0x79f   :  { %v9984_v22 = vpop.f32.mrf.mxu1  ;;  %v15740_v11 = vpop.f32.mrf.mxu0 }
 0x7a0   :  { %10240 = vst [vmem:[#allocation2 + $0x120] sm:$0xff] %v10183_v40  ;;  %v10120_v2 = vmax.f32 %v9484_v5, %v9984_v22  ;;  %v27093_v5 = vmax.f32 %v27091_v36, %v27092_v61 }
 0x7a1   :  { %v15923_v20 = vpop.f32.mrf.mxu1  ;;  %v9353_v53 = vpop.f32.mrf.mxu0 }
 0x7a2   :  { %v10184_v0 = vadd.f32 %v25124_v10, %v10120_v2  ;;  %v9485_v3 = vmax.f32 %v27084_v25, %v9353_v53  ;;  %v27095_v25 = vld [vmem:[#allocation38_spill] sm:$0xff] }
 0x7a3   :  { %v9989_v38 = vpop.f32.mrf.mxu1  ;;  %v15743_v43 = vpop.f32.mrf.mxu0 }
 0x7a4   :  { %10241 = vst [vmem:[#allocation2 + $0x128] sm:$0xff] %v10184_v0  ;;  %v10121_v62 = vmax.f32 %v9485_v3, %v9989_v38  ;;  %v27096_v3 = vmax.f32 %v27094_v13, %v27095_v25 }
 0x7a5   :  { %v15926_v56 = vpop.f32.mrf.mxu1  ;;  %v9358_v49 = vpop.f32.mrf.mxu0 }
 0x7a6   :  { %v10185_v59 = vadd.f32 %v25124_v10, %v10121_v62  ;;  %v9486_v41 = vmax.f32 %v27087_v9, %v9358_v49  ;;  %v27098_v9 = vld [vmem:[#allocation40_spill] sm:$0xff] }
 0x7a7   :  { %v9994_v42 = vpop.f32.mrf.mxu1  ;;  %v15746_v45 = vpop.f32.mrf.mxu0 }
 0x7a8   :  { %10242 = vst [vmem:[#allocation2 + $0x130] sm:$0xff] %v10185_v59  ;;  %v10122_v46 = vmax.f32 %v9486_v41, %v9994_v42  ;;  %v27099_v41 = vmax.f32 %v27097_v39, %v27098_v9 }
 0x7a9   :  { %v15929_v31 = vpop.f32.mrf.mxu1  ;;  %v9363_v6 = vpop.f32.mrf.mxu0 }
 0x7aa   :  { %v10186_v19 = vadd.f32 %v25124_v10, %v10122_v46  ;;  %v9487_v48 = vmax.f32 %v27090_v1, %v9363_v6 }
 0x7ab   :  { %v9999_v8 = vpop.f32.mrf.mxu1  ;;  %v15749_v50 = vpop.f32.mrf.mxu0 }
 0x7ac   :  { %10243 = vst [vmem:[#allocation2 + $0x138] sm:$0xff] %v10186_v19  ;;  %v10123_v24 = vmax.f32 %v9487_v48, %v9999_v8 }
 0x7ad   :  { %v15932_v60 = vpop.f32.mrf.mxu1  ;;  %v9368_v40 = vpop.f32.mrf.mxu0 }
 0x7ae   :  { %v10187_v14 = vadd.f32 %v25124_v10, %v10123_v24  ;;  %v9488_v22 = vmax.f32 %v27093_v5, %v9368_v40 }
 0x7af   :  { %v10004_v11 = vpop.f32.mrf.mxu1  ;;  %v15752_v2 = vpop.f32.mrf.mxu0 }
 0x7b0   :  { %10244 = vst [vmem:[#allocation2 + $0x140] sm:$0xff] %v10187_v14  ;;  %v10124_v20 = vmax.f32 %v9488_v22, %v10004_v11  ;;  %v27101_v14 = vmax.f32 %v24864_v18, %v24871_v7  ;;  %v27103_v7 = vmax.f32 %v24906_v52, %v24913_v58  ;;  %v27105_v58 = vmax.f32 %v24948_v21, %v24955_v57 }
 0x7b1   :  { %v15935_v53 = vpop.f32.mrf.mxu1  ;;  %v9373_v0 = vpop.f32.mrf.mxu0  ;;  %v27107_v57 = vmax.f32 %v24990_v16, %v24997_v37  ;;  %v27109_v37 = vmax.f32 %v25032_v51, %v25039_v23  ;;  %v27111_v23 = vmax.f32 %v25074_v44, %v25081_v12 }
 0x7b2   :  { %v10188_v29 = vadd.f32 %v25124_v10, %v10124_v20  ;;  %v9489_v38 = vmax.f32 %v27096_v3, %v9373_v0 }
 0x7b3   :  { %v10009_v43 = vpop.f32.mrf.mxu1  ;;  %v15755_v62 = vpop.f32.mrf.mxu0 }
 0x7b4   :  { %10245 = vst [vmem:[#allocation2 + $0x148] sm:$0xff] %v10188_v29  ;;  %v10125_v56 = vmax.f32 %v9489_v38, %v10009_v43 }
 0x7b5   :  { %v15938_v49 = vpop.f32.mrf.mxu1  ;;  %v9378_v59 = vpop.f32.mrf.mxu0 }
 0x7b6   :  { %v10189_v47 = vadd.f32 %v25124_v10, %v10125_v56  ;;  %v9490_v42 = vmax.f32 %v27099_v41, %v9378_v59 }
 0x7b7   :  { %v10014_v45 = vpop.f32.mrf.mxu1  ;;  %v15758_v46 = vpop.f32.mrf.mxu0 }
 0x7b8   :  { %10246 = vst [vmem:[#allocation2 + $0x150] sm:$0xff] %v10189_v47  ;;  %v10126_v31 = vmax.f32 %v9490_v42, %v10014_v45 }
 0x7b9   :  { %v15941_v6 = vpop.f32.mrf.mxu1  ;;  %v9383_v19 = vpop.f32.mrf.mxu0 }
 0x7ba   :  { %v10190_v26 = vadd.f32 %v25124_v10, %v10126_v31  ;;  %v9491_v1 = vmax.f32 %v27100_v34, %v9383_v19 }
 0x7bb   :  { %v10019_v48 = vpop.f32.mrf.mxu1  ;;  %v15761_v8 = vpop.f32.mrf.mxu0 }
 0x7bc   :  { %10247 = vst [vmem:[#allocation2 + $0x158] sm:$0xff] %v10190_v26  ;;  %v10127_v50 = vmax.f32 %v9491_v1, %v10019_v48 }
 0x7bd   :  { %v15944_v24 = vpop.f32.mrf.mxu1  ;;  %v9388_v60 = vpop.f32.mrf.mxu0 }
 0x7be   :  { %v10191_v40 = vadd.f32 %v25124_v10, %v10127_v50  ;;  %v9492_v36 = vmax.f32 %v27101_v14, %v9388_v60 }
 0x7bf   :  { %v10024_v61 = vpop.f32.mrf.mxu1  ;;  %v15764_v5 = vpop.f32.mrf.mxu0 }
 0x7c0   :  { %10248 = vst [vmem:[#allocation2 + $0x160] sm:$0xff] %v10191_v40  ;;  %v10128_v22 = vmax.f32 %v9492_v36, %v10024_v61 }
 0x7c1   :  { %v15947_v11 = vpop.f32.mrf.mxu1  ;;  %v9393_v2 = vpop.f32.mrf.mxu0 }
 0x7c2   :  { %v10192_v4 = vadd.f32 %v25124_v10, %v10128_v22  ;;  %v9493_v20 = vmax.f32 %v27102_v35, %v9393_v2 }
 0x7c3   :  { %v10029_v53 = vpop.f32.mrf.mxu1  ;;  %v15767_v0 = vpop.f32.mrf.mxu0 }
 0x7c4   :  { %10249 = vst [vmem:[#allocation2 + $0x168] sm:$0xff] %v10192_v4  ;;  %v10129_v29 = vmax.f32 %v9493_v20, %v10029_v53 }
 0x7c5   :  { %v15950_v13 = vpop.f32.mrf.mxu1  ;;  %v9398_v25 = vpop.f32.mrf.mxu0 }
 0x7c6   :  { %v10193_v18 = vadd.f32 %v25124_v10, %v10129_v29  ;;  %v9494_v3 = vmax.f32 %v27103_v7, %v9398_v25 }
 0x7c7   :  { %v10034_v38 = vpop.f32.mrf.mxu1  ;;  %v15770_v43 = vpop.f32.mrf.mxu0 }
 0x7c8   :  { %10250 = vst [vmem:[#allocation2 + $0x170] sm:$0xff] %v10193_v18  ;;  %v10130_v62 = vmax.f32 %v9494_v3, %v10034_v38 }
 0x7c9   :  { %v15953_v56 = vpop.f32.mrf.mxu1  ;;  %v9403_v49 = vpop.f32.mrf.mxu0 }
 0x7ca   :  { %v10194_v54 = vadd.f32 %v25124_v10, %v10130_v62  ;;  %v9495_v59 = vmax.f32 %v27104_v55, %v9403_v49 }
 0x7cb   :  { %v10039_v47 = vpop.f32.mrf.mxu1  ;;  %v15773_v39 = vpop.f32.mrf.mxu0 }
 0x7cc   :  { %10251 = vst [vmem:[#allocation2 + $0x178] sm:$0xff] %v10194_v54  ;;  %v10131_v9 = vmax.f32 %v9495_v59, %v10039_v47 }
 0x7cd   :  { %v15956_v41 = vpop.f32.mrf.mxu1  ;;  %v9408_v42 = vpop.f32.mrf.mxu0 }
 0x7ce   :  { %v10195_v52 = vadd.f32 %v25124_v10, %v10131_v9  ;;  %v9496_v45 = vmax.f32 %v27105_v58, %v9408_v42  ;;  %v27113_v9 = vld [vmem:[#allocation42_spill] sm:$0xff] }
 0x7cf   :  { %v10044_v46 = vpop.f32.mrf.mxu1  ;;  %v15776_v31 = vpop.f32.mrf.mxu0  ;;  %v27114_v41 = vmax.f32 %v27112_v63, %v27113_v9 }
 0x7d0   :  { %10252 = vst [vmem:[#allocation2 + $0x180] sm:$0xff] %v10195_v52  ;;  %v10132_v6 = vmax.f32 %v9496_v45, %v10044_v46 }
 0x7d1   :  { %v15959_v19 = vpop.f32.mrf.mxu1  ;;  %v9413_v26 = vpop.f32.mrf.mxu0 }
 0x7d2   :  { %v10196_v32 = vadd.f32 %v25124_v10, %v10132_v6  ;;  %v9497_v34 = vmax.f32 %v27106_v28, %v9413_v26 }
 0x7d3   :  { %v10049_v1 = vpop.f32.mrf.mxu1  ;;  %v15779_v48 = vpop.f32.mrf.mxu0 }
 0x7d4   :  { %10253 = vst [vmem:[#allocation2 + $0x188] sm:$0xff] %v10196_v32  ;;  %v10133_v8 = vmax.f32 %v9497_v34, %v10049_v1 }
 0x7d5   :  { %v15962_v50 = vpop.f32.mrf.mxu1  ;;  %v9418_v24 = vpop.f32.mrf.mxu0 }
 0x7d6   :  { %v10197_v21 = vadd.f32 %v25124_v10, %v10133_v8  ;;  %v9498_v60 = vmax.f32 %v27107_v57, %v9418_v24 }
 0x7d7   :  { %v10054_v40 = vpop.f32.mrf.mxu1  ;;  %v15782_v14 = vpop.f32.mrf.mxu0 }
 0x7d8   :  { %10254 = vst [vmem:[#allocation2 + $0x190] sm:$0xff] %v10197_v21  ;;  %v10134_v36 = vmax.f32 %v9498_v60, %v10054_v40 }
 0x7d9   :  { %v15965_v61 = vpop.f32.mrf.mxu1  ;;  %v9423_v5 = vpop.f32.mrf.mxu0 }
 0x7da   :  { %v10198_v33 = vadd.f32 %v25124_v10, %v10134_v36  ;;  %v9499_v22 = vmax.f32 %v27108_v15, %v9423_v5 }
 0x7db   :  { %v10059_v11 = vpop.f32.mrf.mxu1  ;;  %v15785_v2 = vpop.f32.mrf.mxu0 }
 0x7dc   :  { %10255 = vst [vmem:[#allocation2 + $0x198] sm:$0xff] %v10198_v33  ;;  %v10135_v4 = vmax.f32 %v9499_v22, %v10059_v11 }
 0x7dd   :  { %v15968_v35 = vpop.f32.mrf.mxu1  ;;  %v9428_v20 = vpop.f32.mrf.mxu0 }
 0x7de   :  { %v10199_v16 = vadd.f32 %v25124_v10, %v10135_v4  ;;  %v9500_v53 = vmax.f32 %v27109_v37, %v9428_v20 }
 0x7df   :  { %v10064_v0 = vpop.f32.mrf.mxu1  ;;  %v15788_v29 = vpop.f32.mrf.mxu0 }
 0x7e0   :  { %10256 = vst [vmem:[#allocation2 + $0x1a0] sm:$0xff] %v10199_v16  ;;  %v10136_v13 = vmax.f32 %v9500_v53, %v10064_v0 }
 0x7e1   :  { %v15971_v25 = vpop.f32.mrf.mxu1  ;;  %v9433_v18 = vpop.f32.mrf.mxu0 }
 0x7e2   :  { %v10200_v27 = vadd.f32 %v25124_v10, %v10136_v13  ;;  %v9501_v7 = vmax.f32 %v27110_v17, %v9433_v18 }
 0x7e3   :  { %v10069_v3 = vpop.f32.mrf.mxu1  ;;  %v15791_v38 = vpop.f32.mrf.mxu0 }
 0x7e4   :  { %10257 = vst [vmem:[#allocation2 + $0x1a8] sm:$0xff] %v10200_v27  ;;  %v10137_v43 = vmax.f32 %v9501_v7, %v10069_v3 }
 0x7e5   :  { %v15974_v62 = vpop.f32.mrf.mxu1  ;;  %v9438_v56 = vpop.f32.mrf.mxu0 }
 0x7e6   :  { %v10201_v51 = vadd.f32 %v25124_v10, %v10137_v43  ;;  %v9502_v49 = vmax.f32 %v27111_v23, %v9438_v56 }
 0x7e7   :  { %v10074_v54 = vpop.f32.mrf.mxu1  ;;  %v15794_v55 = vpop.f32.mrf.mxu0 }
 0x7e8   :  { %10258 = vst [vmem:[#allocation2 + $0x1b0] sm:$0xff] %v10201_v51  ;;  %v10138_v59 = vmax.f32 %v9502_v49, %v10074_v54 }
 0x7e9   :  { %v15977_v47 = vpop.f32.mrf.mxu1  ;;  %v9443_v39 = vpop.f32.mrf.mxu0 }
 0x7ea   :  { %v10202_v30 = vadd.f32 %v25124_v10, %v10138_v59  ;;  %v9503_v42 = vmax.f32 %v27114_v41, %v9443_v39 }
 0x7eb   :  { %v10079_v52 = vpop.f32.mrf.mxu1  ;;  %v15797_v58 = vpop.f32.mrf.mxu0 }
 0x7ec   :  { %10259 = vst [vmem:[#allocation2 + $0x1b8] sm:$0xff] %v10202_v30  ;;  %v10139_v45 = vmax.f32 %v9503_v42, %v10079_v52 }
 0x7ed   :  { %v15980_v44 = vpop.f32.mrf.mxu1 }
 0x7ee   :  { %v10203_v12 = vadd.f32 %v25124_v10, %v10139_v45 }
 0x7f0   :  { %10260 = vst [vmem:[#allocation2 + $0x1c0] sm:$0xff] %v10203_v12 }
 0x7f1   :  { %16028 = shalt.err (!%p16025_p4)
}
 0x7f2   :  { %s16042_s6 = smov 128   ;;  %s16043_s7 = smov 8  }
 0x7f3   :  { %10272 = dma.vmem_to_hbm [thread:$0]  %s10267_s5, 7296, %s25449_s3, [#allocation3], %s16042_s6, %s16042_s6, %s16043_s7  }
 0x7f4   :  { %16037 = dma.done.wait [#allocation3], 7296  }
 0x7f5   :  { %16038 = vsyncadd [#allocation3], 4294960000 }
 0x7f6   :  { %10276 = vsyncpa [#allocation3], 1 }

</bundles_post_ra>
